<compile_context>
chip_gen: v6e
topology: v6e:2x2x1
jax: 0.10.0
libtpu: 0.0.40
codegen_flags: <defaults>
</compile_context>

<pallas_src>
import functools

import jax
import jax.numpy as jnp
from jax.experimental import pallas as pl
from jax.experimental.pallas import tpu as pltpu

_BN_EPS = 1e-5


def _round_up(x, m):
    return (x + m - 1) // m * m


# --------------------------- fused Pallas kernel -----------------------------

def _down_fused_kernel(xs_ref, valid_ref, maskl_ref, maskr_ref,
                       w1_ref, g1_ref, b1_ref, w2_ref, g2_ref, b2_ref,
                       t_ref, wt_ref, bt_ref,
                       o_ref, pp_ref, im_ref, y1p_ref,
                       *, B, H2, W2, pad, Cin_p):
    HW = H2 * W2
    S = HW + pad            # per-image row stride in the flat shared-halo maps
    Mg = B * S              # fused GEMM M dim (all images + inter-image halos)
    M = B * HW              # number of valid pixels (BatchNorm population)
    f32 = jnp.float32
    bf16 = jnp.bfloat16

    validf = valid_ref[...]                 # (Mg,1) f32, 1.0 on real pixels
    maskl = maskl_ref[...] > 0.5            # keep taps with dx == 0
    maskr = maskr_ref[...] > 0.5            # keep taps with dx == 2

    # ---- MaxPool2d(2): max over the four pre-gathered window views ----------
    pooled = jnp.maximum(jnp.maximum(xs_ref[0], xs_ref[1]),
                         jnp.maximum(xs_ref[2], xs_ref[3]))   # (Mg, Cin_p) f32
    # Interior store (inter-image gap rows are already zero in xs); only the
    # head/tail halos need explicit zeroing.
    pp_ref[pad:pad + Mg, :] = pooled.astype(bf16)
    zin = jnp.zeros((pad, Cin_p), bf16)
    pp_ref[0:pad, :] = zin
    pp_ref[pad + Mg:pad + Mg + pad, :] = zin

    # ---- Conv1: im2col (9 taps folded into K) + ONE GEMM --------------------
    for k in range(9):
        dy, dx = k // 3, k % 3
        s = (dy - 1) * W2 + (dx - 1)
        patch = pp_ref[pad + s:pad + s + Mg, :]               # (Mg, Cin_p) bf16
        if dx == 0:
            patch = jnp.where(maskl, patch, jnp.zeros_like(patch))
        elif dx == 2:
            patch = jnp.where(maskr, patch, jnp.zeros_like(patch))
        im_ref[:, k * Cin_p:(k + 1) * Cin_p] = patch
    acc1 = jnp.dot(im_ref[...], w1_ref[...],
                   preferred_element_type=f32)                # (Mg, Cmid_p) f32

    # ---- training-mode BatchNorm over the B*HW valid pixels + ReLU ----------
    def bn_relu(acc, gamma, beta):
        mean = jnp.sum(acc * validf, axis=0, keepdims=True) / M
        d = (acc - mean) * validf
        var = jnp.sum(d * d, axis=0, keepdims=True) / M
        scale = gamma * jax.lax.rsqrt(var + _BN_EPS)
        shift = beta - mean * scale
        return jnp.maximum(acc * scale + shift, 0.0)

    y1 = bn_relu(acc1, g1_ref[...], b1_ref[...])              # (Mg, Cmid_p) f32

    Cmid_p = y1p_ref.shape[1]
    # validf re-zeroes the inter-image gap rows -> they act as conv2's halo.
    y1p_ref[pad:pad + Mg, :] = (y1 * validf).astype(bf16)
    zmid = jnp.zeros((pad, Cmid_p), bf16)
    y1p_ref[0:pad, :] = zmid
    y1p_ref[pad + Mg:pad + Mg + pad, :] = zmid

    # ---- Conv2: batch-fused per-tap GEMMs, taps grouped by dx for masking ---
    acc2 = None
    for dx in range(3):
        grp = None
        for dy in range(3):
            s = (dy - 1) * W2 + (dx - 1)
            patch = y1p_ref[pad + s:pad + s + Mg, :]          # (Mg, Cmid_p) bf16
            contrib = jnp.dot(patch, w2_ref[dy * 3 + dx],
                              preferred_element_type=f32)
            grp = contrib if grp is None else grp + contrib
        if dx == 0:
            grp = jnp.where(maskl, grp, 0.0)
        elif dx == 2:
            grp = jnp.where(maskr, grp, 0.0)
        acc2 = grp if acc2 is None else acc2 + grp

    y2 = bn_relu(acc2, g2_ref[...], b2_ref[...])              # (Mg, Cout_p) f32

    # ---- time_mlp(t) + per-image broadcast add (no selector GEMM) -----------
    te = jnp.dot(t_ref[...], wt_ref[...],
                 preferred_element_type=f32) + bt_ref[...]    # (Bp, Cout_p)
    for b in range(B):
        o_ref[b] = (y2[b * S:b * S + HW, :] + te[b:b + 1, :]).astype(o_ref.dtype)


# --------------------------- wrapper ------------------------------------------

def down_forward(x_nchw, t, params):
    """Down.forward: NCHW input x, (B, T) time embedding t."""
    w1, g1, b1, w2, g2, b2, wt, bt = params
    B, Cin, H, W = x_nchw.shape
    assert H % 2 == 0 and W % 2 == 0
    H2, W2 = H // 2, W // 2
    assert W2 >= 2, "kernel assumes pooled width >= 2"
    HW = H2 * W2
    Cmid, Cout = w1.shape[-1], w2.shape[-1]
    T = wt.shape[0]

    f32 = jnp.float32
    bf16 = jnp.bfloat16
    Cin_p = _round_up(Cin, 16)          # bf16 contraction-dim packing
    Cmid_p = _round_up(Cmid, 128)       # lane-dense GEMM N / activation dims
    Cout_p = _round_up(Cout, 128)
    pad = _round_up(W2 + 1, 16)         # halo >= W2+1; 16 keeps bf16 stores aligned
    assert pad >= W2 + 1
    S = HW + pad
    Mg = B * S
    P_tot = Mg + 2 * pad
    Bp = max(B, 8)                      # pad the tiny time-MLP GEMM M dim

    # NCHW -> NHWC f32, pad channels, gather the 4 pool-window views with the
    # inter-image halo gaps already inserted (one small XLA layout pass).
    x = jnp.transpose(x_nchw, (0, 2, 3, 1)).astype(f32)
    x = jnp.pad(x, ((0, 0), (0, 0), (0, 0), (0, Cin_p - Cin)))
    xs = x.reshape(B, H2, 2, W2, 2, Cin_p).transpose(2, 4, 0, 1, 3, 5)
    xs = xs.reshape(4, B, HW, Cin_p)
    xs = jnp.pad(xs, ((0, 0), (0, 0), (0, pad), (0, 0))).reshape(4, Mg, Cin_p)

    # Row masks precomputed here (avoids integer div/mod on the TPU VPU).
    i_in_img = jnp.arange(S, dtype=jnp.int32)
    col = i_in_img % W2
    valid_row = i_in_img < HW
    validf = jnp.tile(valid_row.astype(f32), B).reshape(Mg, 1)
    maskl = jnp.tile((valid_row & (col >= 1)).astype(f32), B).reshape(Mg, 1)
    maskr = jnp.tile((valid_row & (col <= W2 - 2)).astype(f32), B).reshape(Mg, 1)

    def pad_w(w, ci_p, co_p):
        _, _, ci, co = w.shape
        w = jnp.pad(w, ((0, 0), (0, 0), (0, ci_p - ci), (0, co_p - co)))
        return w.astype(bf16)

    def pad_vec(v, c_p, fill=0.0):
        v = v.reshape(1, -1).astype(f32)
        return jnp.pad(v, ((0, 0), (0, c_p - v.shape[1])), constant_values=fill)

    # Conv1 weights flattened so K index = tap*Cin_p + cin (matches im2col).
    w1_p = pad_w(w1, Cin_p, Cmid_p).reshape(9 * Cin_p, Cmid_p)
    w2_p = pad_w(w2, Cmid_p, Cout_p).reshape(9, Cmid_p, Cout_p)
    g1_p, b1_p = pad_vec(g1, Cmid_p, 1.0), pad_vec(b1, Cmid_p)
    g2_p, b2_p = pad_vec(g2, Cout_p, 1.0), pad_vec(b2, Cout_p)
    wt_p = jnp.pad(wt.astype(f32), ((0, 0), (0, Cout_p - Cout)))
    bt_p = pad_vec(bt, Cout_p)
    t_p = jnp.pad(t.astype(f32), ((0, Bp - B), (0, 0)))

    kernel = functools.partial(_down_fused_kernel, B=B, H2=H2, W2=W2,
                               pad=pad, Cin_p=Cin_p)

    inputs = (xs, validf, maskl, maskr, w1_p, g1_p, b1_p, w2_p, g2_p, b2_p,
              t_p, wt_p, bt_p)
    flops = (2 * Mg * (9 * Cin_p) * Cmid_p + 2 * Mg * 9 * Cmid_p * Cout_p
             + 2 * Bp * T * Cout_p)
    bytes_acc = (sum(a.size * a.dtype.itemsize for a in inputs)
                 + B * HW * Cout_p * 4)
    scratch_bytes = (P_tot * Cin_p + Mg * 9 * Cin_p + P_tot * Cmid_p) * 2
    vmem_bytes = int(min(64 << 20, max(16 << 20, 2 * (bytes_acc + scratch_bytes))))

    out = pl.pallas_call(
        kernel,
        out_shape=jax.ShapeDtypeStruct((B, HW, Cout_p), f32),
        in_specs=[pl.BlockSpec(memory_space=pltpu.MemorySpace.VMEM)] * len(inputs),
        out_specs=pl.BlockSpec(memory_space=pltpu.MemorySpace.VMEM),
        scratch_shapes=[pltpu.VMEM((P_tot, Cin_p), bf16),      # padded pooled map
                        pltpu.VMEM((Mg, 9 * Cin_p), bf16),     # conv1 im2col tile
                        pltpu.VMEM((P_tot, Cmid_p), bf16)],    # padded conv1 output
        compiler_params=pltpu.CompilerParams(vmem_limit_bytes=vmem_bytes),
        cost_estimate=pl.CostEstimate(flops=flops,
                                      transcendentals=Cmid_p + Cout_p,
                                      bytes_accessed=bytes_acc),
    )(*inputs)

    out = out[:, :, :Cout].reshape(B, H2, W2, Cout)
    return jnp.transpose(out, (0, 3, 1, 2))  # NCHW


# --------------------------- pure-JAX reference -------------------------------

def _reference(x_nchw, t, params):
    w1, g1, b1, w2, g2, b2, wt, bt = params
    x = jnp.transpose(x_nchw, (0, 2, 3, 1))
    p = jnp.maximum(jnp.maximum(x[:, ::2, ::2], x[:, ::2, 1::2]),
                    jnp.maximum(x[:, 1::2, ::2], x[:, 1::2, 1::2]))

    def conv(z, w):
        return jax.lax.conv_general_dilated(
            z, w, (1, 1), 'SAME',
            dimension_numbers=('NHWC', 'HWIO', 'NHWC'),
            precision=jax.lax.Precision.HIGHEST)

    def bn_relu(z, g, b):
        m = z.mean(axis=(0, 1, 2))
        v = ((z - m) ** 2).mean(axis=(0, 1, 2))
        return jnp.maximum((z - m) * jax.lax.rsqrt(v + _BN_EPS) * g + b, 0.0)

    y = bn_relu(conv(p, w1), g1, b1)
    y = bn_relu(conv(y, w2), g2, b2)
    te = t @ wt + bt
    y = y + te[:, None, None, :]
    return jnp.transpose(y, (0, 3, 1, 2))


# --------------------------- main ---------------------------------------------

if __name__ == "__main__":
    B, Cin, Cout, T, H, W = 2, 4, 8, 16, 16, 16
    Cmid = Cout

    key = jax.random.PRNGKey(0)
    ks = jax.random.split(key, 6)
    # Deterministic synthetic parameters (shapes follow the module __init__).
    w1 = jax.random.normal(ks[0], (3, 3, Cin, Cmid), jnp.float32) * (2.0 / (9 * Cin)) ** 0.5
    w2 = jax.random.normal(ks[1], (3, 3, Cmid, Cout), jnp.float32) * (2.0 / (9 * Cmid)) ** 0.5
    g1 = jnp.ones((1, Cmid), jnp.float32)
    b1 = jnp.zeros((1, Cmid), jnp.float32)
    g2 = jnp.ones((1, Cout), jnp.float32)
    b2 = jnp.zeros((1, Cout), jnp.float32)
    wt = jax.random.normal(ks[2], (T, Cout), jnp.float32) * (1.0 / T) ** 0.5
    bt = jax.random.normal(ks[3], (1, Cout), jnp.float32) * 0.01
    params = (w1, g1, b1, w2, g2, b2, wt, bt)

    x = jax.random.normal(ks[4], (B, Cin, H, W), jnp.float32)
    t = jax.random.normal(ks[5], (B, T), jnp.float32)

    out = jax.block_until_ready(jax.jit(down_forward)(x, t, params))
    ref = jax.block_until_ready(_reference(x, t, params))

    assert out.shape == (B, Cout, H // 2, W // 2), out.shape
    # bf16 MXU operands + bf16 activation scratch vs. a full-f32 reference
    # (and BatchNorm re-scaling) -> relaxed tolerance.
    assert jnp.allclose(out, ref, atol=8e-2, rtol=8e-2), \
        float(jnp.max(jnp.abs(out - ref)))
    print("KERNEL_OK")
</pallas_src>

<mosaic_0001>
module attributes {stable_mosaic.version = 11 : i64} {
  func.func @_down_fused_kernel(%arg0: memref<4x160x16xf32, #tpu.memory_space<vmem>>, %arg1: memref<160x1xf32, #tpu.memory_space<vmem>>, %arg2: memref<160x1xf32, #tpu.memory_space<vmem>>, %arg3: memref<160x1xf32, #tpu.memory_space<vmem>>, %arg4: memref<144x128xbf16, #tpu.memory_space<vmem>>, %arg5: memref<1x128xf32, #tpu.memory_space<vmem>>, %arg6: memref<1x128xf32, #tpu.memory_space<vmem>>, %arg7: memref<9x128x128xbf16, #tpu.memory_space<vmem>>, %arg8: memref<1x128xf32, #tpu.memory_space<vmem>>, %arg9: memref<1x128xf32, #tpu.memory_space<vmem>>, %arg10: memref<8x16xf32, #tpu.memory_space<vmem>>, %arg11: memref<16x128xf32, #tpu.memory_space<vmem>>, %arg12: memref<1x128xf32, #tpu.memory_space<vmem>>, %arg13: memref<2x64x128xf32, #tpu.memory_space<vmem>>, %arg14: memref<192x16xbf16, #tpu.memory_space<vmem>>, %arg15: memref<160x144xbf16, #tpu.memory_space<vmem>>, %arg16: memref<192x128xbf16, #tpu.memory_space<vmem>>) attributes {dimension_semantics = [], scalar_prefetch = 0 : i64, scratch_operands = 3 : i64, tpu.core_type = #tpu.core_type<tc>} {
    %c0 = arith.constant 0 : index
    %c0_0 = arith.constant 0 : index
    %0 = vector.load %arg1[%c0, %c0_0] : memref<160x1xf32, #tpu.memory_space<vmem>>, vector<160x1xf32>
    %c0_1 = arith.constant 0 : index
    %c0_2 = arith.constant 0 : index
    %1 = vector.load %arg2[%c0_1, %c0_2] : memref<160x1xf32, #tpu.memory_space<vmem>>, vector<160x1xf32>
    %cst = arith.constant 5.000000e-01 : f32
    %2 = vector.broadcast %cst : f32 to vector<160x1xf32>
    %3 = arith.cmpf ogt, %1, %2 : vector<160x1xf32>
    %c0_3 = arith.constant 0 : index
    %c0_4 = arith.constant 0 : index
    %4 = vector.load %arg3[%c0_3, %c0_4] : memref<160x1xf32, #tpu.memory_space<vmem>>, vector<160x1xf32>
    %cst_5 = arith.constant 5.000000e-01 : f32
    %5 = vector.broadcast %cst_5 : f32 to vector<160x1xf32>
    %6 = arith.cmpf ogt, %4, %5 : vector<160x1xf32>
    %c0_6 = arith.constant 0 : index
    %c0_7 = arith.constant 0 : index
    %c0_8 = arith.constant 0 : index
    %7 = vector.load %arg0[%c0_6, %c0_7, %c0_8] : memref<4x160x16xf32, #tpu.memory_space<vmem>>, vector<1x160x16xf32>
    %8 = vector.shape_cast %7 : vector<1x160x16xf32> to vector<160x16xf32>
    %c1 = arith.constant 1 : index
    %c0_9 = arith.constant 0 : index
    %c0_10 = arith.constant 0 : index
    %9 = vector.load %arg0[%c1, %c0_9, %c0_10] : memref<4x160x16xf32, #tpu.memory_space<vmem>>, vector<1x160x16xf32>
    %10 = vector.shape_cast %9 : vector<1x160x16xf32> to vector<160x16xf32>
    %11 = arith.maximumf %8, %10 : vector<160x16xf32>
    %c2 = arith.constant 2 : index
    %c0_11 = arith.constant 0 : index
    %c0_12 = arith.constant 0 : index
    %12 = vector.load %arg0[%c2, %c0_11, %c0_12] : memref<4x160x16xf32, #tpu.memory_space<vmem>>, vector<1x160x16xf32>
    %13 = vector.shape_cast %12 : vector<1x160x16xf32> to vector<160x16xf32>
    %c3 = arith.constant 3 : index
    %c0_13 = arith.constant 0 : index
    %c0_14 = arith.constant 0 : index
    %14 = vector.load %arg0[%c3, %c0_13, %c0_14] : memref<4x160x16xf32, #tpu.memory_space<vmem>>, vector<1x160x16xf32>
    %15 = vector.shape_cast %14 : vector<1x160x16xf32> to vector<160x16xf32>
    %16 = arith.maximumf %13, %15 : vector<160x16xf32>
    %17 = arith.maximumf %11, %16 : vector<160x16xf32>
    %18 = arith.truncf %17 : vector<160x16xf32> to vector<160x16xbf16>
    %c16 = arith.constant 16 : index
    %c0_15 = arith.constant 0 : index
    %19 = vector.load %arg14[%c16, %c0_15] : memref<192x16xbf16, #tpu.memory_space<vmem>>, vector<160x16xbf16>
    tpu.vector_store %arg14[%c16, %c0_15], %18 {strides = array<i32>} : memref<192x16xbf16, #tpu.memory_space<vmem>>, vector<160x16xbf16>,
    %cst_16 = arith.constant 0.000000e+00 : bf16
    %20 = vector.broadcast %cst_16 : bf16 to vector<16x16xbf16>
    %c0_17 = arith.constant 0 : index
    %c0_18 = arith.constant 0 : index
    %21 = vector.load %arg14[%c0_17, %c0_18] : memref<192x16xbf16, #tpu.memory_space<vmem>>, vector<16x16xbf16>
    tpu.vector_store %arg14[%c0_17, %c0_18], %20 {strides = array<i32>} : memref<192x16xbf16, #tpu.memory_space<vmem>>, vector<16x16xbf16>,
    %c176 = arith.constant 176 : index
    %c0_19 = arith.constant 0 : index
    %22 = vector.load %arg14[%c176, %c0_19] : memref<192x16xbf16, #tpu.memory_space<vmem>>, vector<16x16xbf16>
    tpu.vector_store %arg14[%c176, %c0_19], %20 {strides = array<i32>} : memref<192x16xbf16, #tpu.memory_space<vmem>>, vector<16x16xbf16>,
    %c7 = arith.constant 7 : index
    %c0_20 = arith.constant 0 : index
    %23 = vector.load %arg14[%c7, %c0_20] : memref<192x16xbf16, #tpu.memory_space<vmem>>, vector<160x16xbf16>
    %cst_21 = arith.constant 0.000000e+00 : bf16
    %24 = vector.broadcast %cst_21 : bf16 to vector<160x16xbf16>
    %25 = vector.shape_cast %3 : vector<160x1xi1> to vector<160x1xi1>
    %26 = vector.broadcast %25 : vector<160x1xi1> to vector<160x16xi1>
    %27 = arith.select %26, %23, %24 : vector<160x16xi1>, vector<160x16xbf16>
    %c0_22 = arith.constant 0 : index
    %c0_23 = arith.constant 0 : index
    %28 = vector.load %arg15[%c0_22, %c0_23] : memref<160x144xbf16, #tpu.memory_space<vmem>>, vector<160x16xbf16>
    tpu.vector_store %arg15[%c0_22, %c0_23], %27 {strides = array<i32>} : memref<160x144xbf16, #tpu.memory_space<vmem>>, vector<160x16xbf16>,
    %c8 = arith.constant 8 : index
    %c0_24 = arith.constant 0 : index
    %29 = vector.load %arg14[%c8, %c0_24] : memref<192x16xbf16, #tpu.memory_space<vmem>>, vector<160x16xbf16>
    %c0_25 = arith.constant 0 : index
    %c16_26 = arith.constant 16 : index
    %30 = vector.load %arg15[%c0_25, %c16_26] : memref<160x144xbf16, #tpu.memory_space<vmem>>, vector<160x16xbf16>
    tpu.vector_store %arg15[%c0_25, %c16_26], %29 {strides = array<i32>} : memref<160x144xbf16, #tpu.memory_space<vmem>>, vector<160x16xbf16>,
    %c9 = arith.constant 9 : index
    %c0_27 = arith.constant 0 : index
    %31 = vector.load %arg14[%c9, %c0_27] : memref<192x16xbf16, #tpu.memory_space<vmem>>, vector<160x16xbf16>
    %cst_28 = arith.constant 0.000000e+00 : bf16
    %32 = vector.broadcast %cst_28 : bf16 to vector<160x16xbf16>
    %33 = vector.shape_cast %6 : vector<160x1xi1> to vector<160x1xi1>
    %34 = vector.broadcast %33 : vector<160x1xi1> to vector<160x16xi1>
    %35 = arith.select %34, %31, %32 : vector<160x16xi1>, vector<160x16xbf16>
    %c0_29 = arith.constant 0 : index
    %c32 = arith.constant 32 : index
    %36 = vector.load %arg15[%c0_29, %c32] : memref<160x144xbf16, #tpu.memory_space<vmem>>, vector<160x16xbf16>
    tpu.vector_store %arg15[%c0_29, %c32], %35 {strides = array<i32>} : memref<160x144xbf16, #tpu.memory_space<vmem>>, vector<160x16xbf16>,
    %c15 = arith.constant 15 : index
    %c0_30 = arith.constant 0 : index
    %37 = vector.load %arg14[%c15, %c0_30] : memref<192x16xbf16, #tpu.memory_space<vmem>>, vector<160x16xbf16>
    %cst_31 = arith.constant 0.000000e+00 : bf16
    %38 = vector.broadcast %cst_31 : bf16 to vector<160x16xbf16>
    %39 = vector.shape_cast %3 : vector<160x1xi1> to vector<160x1xi1>
    %40 = vector.broadcast %39 : vector<160x1xi1> to vector<160x16xi1>
    %41 = arith.select %40, %37, %38 : vector<160x16xi1>, vector<160x16xbf16>
    %c0_32 = arith.constant 0 : index
    %c48 = arith.constant 48 : index
    %42 = vector.load %arg15[%c0_32, %c48] : memref<160x144xbf16, #tpu.memory_space<vmem>>, vector<160x16xbf16>
    tpu.vector_store %arg15[%c0_32, %c48], %41 {strides = array<i32>} : memref<160x144xbf16, #tpu.memory_space<vmem>>, vector<160x16xbf16>,
    %c16_33 = arith.constant 16 : index
    %c0_34 = arith.constant 0 : index
    %43 = vector.load %arg14[%c16_33, %c0_34] : memref<192x16xbf16, #tpu.memory_space<vmem>>, vector<160x16xbf16>
    %c0_35 = arith.constant 0 : index
    %c64 = arith.constant 64 : index
    %44 = vector.load %arg15[%c0_35, %c64] : memref<160x144xbf16, #tpu.memory_space<vmem>>, vector<160x16xbf16>
    tpu.vector_store %arg15[%c0_35, %c64], %43 {strides = array<i32>} : memref<160x144xbf16, #tpu.memory_space<vmem>>, vector<160x16xbf16>,
    %c17 = arith.constant 17 : index
    %c0_36 = arith.constant 0 : index
    %45 = vector.load %arg14[%c17, %c0_36] : memref<192x16xbf16, #tpu.memory_space<vmem>>, vector<160x16xbf16>
    %cst_37 = arith.constant 0.000000e+00 : bf16
    %46 = vector.broadcast %cst_37 : bf16 to vector<160x16xbf16>
    %47 = vector.shape_cast %6 : vector<160x1xi1> to vector<160x1xi1>
    %48 = vector.broadcast %47 : vector<160x1xi1> to vector<160x16xi1>
    %49 = arith.select %48, %45, %46 : vector<160x16xi1>, vector<160x16xbf16>
    %c0_38 = arith.constant 0 : index
    %c80 = arith.constant 80 : index
    %50 = vector.load %arg15[%c0_38, %c80] : memref<160x144xbf16, #tpu.memory_space<vmem>>, vector<160x16xbf16>
    tpu.vector_store %arg15[%c0_38, %c80], %49 {strides = array<i32>} : memref<160x144xbf16, #tpu.memory_space<vmem>>, vector<160x16xbf16>,
    %c23 = arith.constant 23 : index
    %c0_39 = arith.constant 0 : index
    %51 = vector.load %arg14[%c23, %c0_39] : memref<192x16xbf16, #tpu.memory_space<vmem>>, vector<160x16xbf16>
    %cst_40 = arith.constant 0.000000e+00 : bf16
    %52 = vector.broadcast %cst_40 : bf16 to vector<160x16xbf16>
    %53 = vector.shape_cast %3 : vector<160x1xi1> to vector<160x1xi1>
    %54 = vector.broadcast %53 : vector<160x1xi1> to vector<160x16xi1>
    %55 = arith.select %54, %51, %52 : vector<160x16xi1>, vector<160x16xbf16>
    %c0_41 = arith.constant 0 : index
    %c96 = arith.constant 96 : index
    %56 = vector.load %arg15[%c0_41, %c96] : memref<160x144xbf16, #tpu.memory_space<vmem>>, vector<160x16xbf16>
    tpu.vector_store %arg15[%c0_41, %c96], %55 {strides = array<i32>} : memref<160x144xbf16, #tpu.memory_space<vmem>>, vector<160x16xbf16>,
    %c24 = arith.constant 24 : index
    %c0_42 = arith.constant 0 : index
    %57 = vector.load %arg14[%c24, %c0_42] : memref<192x16xbf16, #tpu.memory_space<vmem>>, vector<160x16xbf16>
    %c0_43 = arith.constant 0 : index
    %c112 = arith.constant 112 : index
    %58 = vector.load %arg15[%c0_43, %c112] : memref<160x144xbf16, #tpu.memory_space<vmem>>, vector<160x16xbf16>
    tpu.vector_store %arg15[%c0_43, %c112], %57 {strides = array<i32>} : memref<160x144xbf16, #tpu.memory_space<vmem>>, vector<160x16xbf16>,
    %c25 = arith.constant 25 : index
    %c0_44 = arith.constant 0 : index
    %59 = vector.load %arg14[%c25, %c0_44] : memref<192x16xbf16, #tpu.memory_space<vmem>>, vector<160x16xbf16>
    %cst_45 = arith.constant 0.000000e+00 : bf16
    %60 = vector.broadcast %cst_45 : bf16 to vector<160x16xbf16>
    %61 = vector.shape_cast %6 : vector<160x1xi1> to vector<160x1xi1>
    %62 = vector.broadcast %61 : vector<160x1xi1> to vector<160x16xi1>
    %63 = arith.select %62, %59, %60 : vector<160x16xi1>, vector<160x16xbf16>
    %c0_46 = arith.constant 0 : index
    %c128 = arith.constant 128 : index
    %64 = vector.load %arg15[%c0_46, %c128] : memref<160x144xbf16, #tpu.memory_space<vmem>>, vector<160x16xbf16>
    tpu.vector_store %arg15[%c0_46, %c128], %63 {strides = array<i32>} : memref<160x144xbf16, #tpu.memory_space<vmem>>, vector<160x16xbf16>,
    %c0_47 = arith.constant 0 : index
    %c0_48 = arith.constant 0 : index
    %65 = vector.load %arg15[%c0_47, %c0_48] : memref<160x144xbf16, #tpu.memory_space<vmem>>, vector<160x144xbf16>
    %c0_49 = arith.constant 0 : index
    %c0_50 = arith.constant 0 : index
    %66 = vector.load %arg4[%c0_49, %c0_50] : memref<144x128xbf16, #tpu.memory_space<vmem>>, vector<144x128xbf16>
    %cst_51 = arith.constant dense<0.000000e+00> : vector<160x128xf32>
    %67 = tpu.matmul %65, %66, %cst_51 {dimension_numbers = #tpu.dot_dimension_numbers<[1], [0], [0], [1], [0, 0, 1, 1], [], []>} : vector<160x144xbf16>, vector<144x128xbf16>, vector<160x128xf32> -> vector<160x128xf32>
    %c0_52 = arith.constant 0 : index
    %c0_53 = arith.constant 0 : index
    %68 = vector.load %arg5[%c0_52, %c0_53] : memref<1x128xf32, #tpu.memory_space<vmem>>, vector<1x128xf32>
    %c0_54 = arith.constant 0 : index
    %c0_55 = arith.constant 0 : index
    %69 = vector.load %arg6[%c0_54, %c0_55] : memref<1x128xf32, #tpu.memory_space<vmem>>, vector<1x128xf32>
    %70 = vector.broadcast %0 : vector<160x1xf32> to vector<160x128xf32>
    %71 = arith.mulf %67, %70 : vector<160x128xf32>
    %cst_56 = arith.constant dense<0.000000e+00> : vector<128xf32>
    %72 = vector.multi_reduction <add>, %71, %cst_56 [0] : vector<160x128xf32> to vector<128xf32>
    %73 = vector.shape_cast %72 : vector<128xf32> to vector<1x128xf32>
    %cst_57 = arith.constant 1.280000e+02 : f32
    %74 = vector.broadcast %cst_57 : f32 to vector<1x128xf32>
    %75 = arith.divf %73, %74 : vector<1x128xf32>
    %76 = vector.broadcast %75 : vector<1x128xf32> to vector<160x128xf32>
    %77 = arith.subf %67, %76 : vector<160x128xf32>
    %78 = vector.broadcast %0 : vector<160x1xf32> to vector<160x128xf32>
    %79 = arith.mulf %77, %78 : vector<160x128xf32>
    %80 = arith.mulf %79, %79 : vector<160x128xf32>
    %cst_58 = arith.constant dense<0.000000e+00> : vector<128xf32>
    %81 = vector.multi_reduction <add>, %80, %cst_58 [0] : vector<160x128xf32> to vector<128xf32>
    %82 = vector.shape_cast %81 : vector<128xf32> to vector<1x128xf32>
    %cst_59 = arith.constant 1.280000e+02 : f32
    %83 = vector.broadcast %cst_59 : f32 to vector<1x128xf32>
    %84 = arith.divf %82, %83 : vector<1x128xf32>
    %cst_60 = arith.constant 9.99999974E-6 : f32
    %85 = vector.broadcast %cst_60 : f32 to vector<1x128xf32>
    %86 = arith.addf %84, %85 : vector<1x128xf32>
    %87 = math.rsqrt %86 : vector<1x128xf32>
    %88 = arith.mulf %68, %87 : vector<1x128xf32>
    %89 = arith.mulf %75, %88 : vector<1x128xf32>
    %90 = arith.subf %69, %89 : vector<1x128xf32>
    %91 = vector.broadcast %88 : vector<1x128xf32> to vector<160x128xf32>
    %92 = arith.mulf %67, %91 : vector<160x128xf32>
    %93 = vector.broadcast %90 : vector<1x128xf32> to vector<160x128xf32>
    %94 = arith.addf %92, %93 : vector<160x128xf32>
    %cst_61 = arith.constant 0.000000e+00 : f32
    %95 = vector.broadcast %cst_61 : f32 to vector<160x128xf32>
    %96 = arith.maximumf %94, %95 : vector<160x128xf32>
    %97 = vector.broadcast %0 : vector<160x1xf32> to vector<160x128xf32>
    %98 = arith.mulf %96, %97 : vector<160x128xf32>
    %99 = arith.truncf %98 : vector<160x128xf32> to vector<160x128xbf16>
    %c16_62 = arith.constant 16 : index
    %c0_63 = arith.constant 0 : index
    %100 = vector.load %arg16[%c16_62, %c0_63] : memref<192x128xbf16, #tpu.memory_space<vmem>>, vector<160x128xbf16>
    tpu.vector_store %arg16[%c16_62, %c0_63], %99 {strides = array<i32>} : memref<192x128xbf16, #tpu.memory_space<vmem>>, vector<160x128xbf16>,
    %cst_64 = arith.constant 0.000000e+00 : bf16
    %101 = vector.broadcast %cst_64 : bf16 to vector<16x128xbf16>
    %c0_65 = arith.constant 0 : index
    %c0_66 = arith.constant 0 : index
    %102 = vector.load %arg16[%c0_65, %c0_66] : memref<192x128xbf16, #tpu.memory_space<vmem>>, vector<16x128xbf16>
    tpu.vector_store %arg16[%c0_65, %c0_66], %101 {strides = array<i32>} : memref<192x128xbf16, #tpu.memory_space<vmem>>, vector<16x128xbf16>,
    %c176_67 = arith.constant 176 : index
    %c0_68 = arith.constant 0 : index
    %103 = vector.load %arg16[%c176_67, %c0_68] : memref<192x128xbf16, #tpu.memory_space<vmem>>, vector<16x128xbf16>
    tpu.vector_store %arg16[%c176_67, %c0_68], %101 {strides = array<i32>} : memref<192x128xbf16, #tpu.memory_space<vmem>>, vector<16x128xbf16>,
    %c7_69 = arith.constant 7 : index
    %c0_70 = arith.constant 0 : index
    %104 = vector.load %arg16[%c7_69, %c0_70] : memref<192x128xbf16, #tpu.memory_space<vmem>>, vector<160x128xbf16>
    %c0_71 = arith.constant 0 : index
    %c0_72 = arith.constant 0 : index
    %c0_73 = arith.constant 0 : index
    %105 = vector.load %arg7[%c0_71, %c0_72, %c0_73] : memref<9x128x128xbf16, #tpu.memory_space<vmem>>, vector<1x128x128xbf16>
    %106 = vector.shape_cast %105 : vector<1x128x128xbf16> to vector<128x128xbf16>
    %cst_74 = arith.constant dense<0.000000e+00> : vector<160x128xf32>
    %107 = tpu.matmul %104, %106, %cst_74 {dimension_numbers = #tpu.dot_dimension_numbers<[1], [0], [0], [1], [0, 0, 1, 1], [], []>} : vector<160x128xbf16>, vector<128x128xbf16>, vector<160x128xf32> -> vector<160x128xf32>
    %c15_75 = arith.constant 15 : index
    %c0_76 = arith.constant 0 : index
    %108 = vector.load %arg16[%c15_75, %c0_76] : memref<192x128xbf16, #tpu.memory_space<vmem>>, vector<160x128xbf16>
    %c3_77 = arith.constant 3 : index
    %c0_78 = arith.constant 0 : index
    %c0_79 = arith.constant 0 : index
    %109 = vector.load %arg7[%c3_77, %c0_78, %c0_79] : memref<9x128x128xbf16, #tpu.memory_space<vmem>>, vector<1x128x128xbf16>
    %110 = vector.shape_cast %109 : vector<1x128x128xbf16> to vector<128x128xbf16>
    %cst_80 = arith.constant dense<0.000000e+00> : vector<160x128xf32>
    %111 = tpu.matmul %108, %110, %cst_80 {dimension_numbers = #tpu.dot_dimension_numbers<[1], [0], [0], [1], [0, 0, 1, 1], [], []>} : vector<160x128xbf16>, vector<128x128xbf16>, vector<160x128xf32> -> vector<160x128xf32>
    %112 = arith.addf %107, %111 : vector<160x128xf32>
    %c23_81 = arith.constant 23 : index
    %c0_82 = arith.constant 0 : index
    %113 = vector.load %arg16[%c23_81, %c0_82] : memref<192x128xbf16, #tpu.memory_space<vmem>>, vector<160x128xbf16>
    %c6 = arith.constant 6 : index
    %c0_83 = arith.constant 0 : index
    %c0_84 = arith.constant 0 : index
    %114 = vector.load %arg7[%c6, %c0_83, %c0_84] : memref<9x128x128xbf16, #tpu.memory_space<vmem>>, vector<1x128x128xbf16>
    %115 = vector.shape_cast %114 : vector<1x128x128xbf16> to vector<128x128xbf16>
    %cst_85 = arith.constant dense<0.000000e+00> : vector<160x128xf32>
    %116 = tpu.matmul %113, %115, %cst_85 {dimension_numbers = #tpu.dot_dimension_numbers<[1], [0], [0], [1], [0, 0, 1, 1], [], []>} : vector<160x128xbf16>, vector<128x128xbf16>, vector<160x128xf32> -> vector<160x128xf32>
    %117 = arith.addf %112, %116 : vector<160x128xf32>
    %cst_86 = arith.constant 0.000000e+00 : f32
    %118 = vector.shape_cast %3 : vector<160x1xi1> to vector<160x1xi1>
    %119 = vector.broadcast %118 : vector<160x1xi1> to vector<160x128xi1>
    %120 = vector.broadcast %cst_86 : f32 to vector<160x128xf32>
    %121 = arith.select %119, %117, %120 : vector<160x128xi1>, vector<160x128xf32>
    %c8_87 = arith.constant 8 : index
    %c0_88 = arith.constant 0 : index
    %122 = vector.load %arg16[%c8_87, %c0_88] : memref<192x128xbf16, #tpu.memory_space<vmem>>, vector<160x128xbf16>
    %c1_89 = arith.constant 1 : index
    %c0_90 = arith.constant 0 : index
    %c0_91 = arith.constant 0 : index
    %123 = vector.load %arg7[%c1_89, %c0_90, %c0_91] : memref<9x128x128xbf16, #tpu.memory_space<vmem>>, vector<1x128x128xbf16>
    %124 = vector.shape_cast %123 : vector<1x128x128xbf16> to vector<128x128xbf16>
    %cst_92 = arith.constant dense<0.000000e+00> : vector<160x128xf32>
    %125 = tpu.matmul %122, %124, %cst_92 {dimension_numbers = #tpu.dot_dimension_numbers<[1], [0], [0], [1], [0, 0, 1, 1], [], []>} : vector<160x128xbf16>, vector<128x128xbf16>, vector<160x128xf32> -> vector<160x128xf32>
    %c16_93 = arith.constant 16 : index
    %c0_94 = arith.constant 0 : index
    %126 = vector.load %arg16[%c16_93, %c0_94] : memref<192x128xbf16, #tpu.memory_space<vmem>>, vector<160x128xbf16>
    %c4 = arith.constant 4 : index
    %c0_95 = arith.constant 0 : index
    %c0_96 = arith.constant 0 : index
    %127 = vector.load %arg7[%c4, %c0_95, %c0_96] : memref<9x128x128xbf16, #tpu.memory_space<vmem>>, vector<1x128x128xbf16>
    %128 = vector.shape_cast %127 : vector<1x128x128xbf16> to vector<128x128xbf16>
    %cst_97 = arith.constant dense<0.000000e+00> : vector<160x128xf32>
    %129 = tpu.matmul %126, %128, %cst_97 {dimension_numbers = #tpu.dot_dimension_numbers<[1], [0], [0], [1], [0, 0, 1, 1], [], []>} : vector<160x128xbf16>, vector<128x128xbf16>, vector<160x128xf32> -> vector<160x128xf32>
    %130 = arith.addf %125, %129 : vector<160x128xf32>
    %c24_98 = arith.constant 24 : index
    %c0_99 = arith.constant 0 : index
    %131 = vector.load %arg16[%c24_98, %c0_99] : memref<192x128xbf16, #tpu.memory_space<vmem>>, vector<160x128xbf16>
    %c7_100 = arith.constant 7 : index
    %c0_101 = arith.constant 0 : index
    %c0_102 = arith.constant 0 : index
    %132 = vector.load %arg7[%c7_100, %c0_101, %c0_102] : memref<9x128x128xbf16, #tpu.memory_space<vmem>>, vector<1x128x128xbf16>
    %133 = vector.shape_cast %132 : vector<1x128x128xbf16> to vector<128x128xbf16>
    %cst_103 = arith.constant dense<0.000000e+00> : vector<160x128xf32>
    %134 = tpu.matmul %131, %133, %cst_103 {dimension_numbers = #tpu.dot_dimension_numbers<[1], [0], [0], [1], [0, 0, 1, 1], [], []>} : vector<160x128xbf16>, vector<128x128xbf16>, vector<160x128xf32> -> vector<160x128xf32>
    %135 = arith.addf %130, %134 : vector<160x128xf32>
    %136 = arith.addf %121, %135 : vector<160x128xf32>
    %c9_104 = arith.constant 9 : index
    %c0_105 = arith.constant 0 : index
    %137 = vector.load %arg16[%c9_104, %c0_105] : memref<192x128xbf16, #tpu.memory_space<vmem>>, vector<160x128xbf16>
    %c2_106 = arith.constant 2 : index
    %c0_107 = arith.constant 0 : index
    %c0_108 = arith.constant 0 : index
    %138 = vector.load %arg7[%c2_106, %c0_107, %c0_108] : memref<9x128x128xbf16, #tpu.memory_space<vmem>>, vector<1x128x128xbf16>
    %139 = vector.shape_cast %138 : vector<1x128x128xbf16> to vector<128x128xbf16>
    %cst_109 = arith.constant dense<0.000000e+00> : vector<160x128xf32>
    %140 = tpu.matmul %137, %139, %cst_109 {dimension_numbers = #tpu.dot_dimension_numbers<[1], [0], [0], [1], [0, 0, 1, 1], [], []>} : vector<160x128xbf16>, vector<128x128xbf16>, vector<160x128xf32> -> vector<160x128xf32>
    %c17_110 = arith.constant 17 : index
    %c0_111 = arith.constant 0 : index
    %141 = vector.load %arg16[%c17_110, %c0_111] : memref<192x128xbf16, #tpu.memory_space<vmem>>, vector<160x128xbf16>
    %c5 = arith.constant 5 : index
    %c0_112 = arith.constant 0 : index
    %c0_113 = arith.constant 0 : index
    %142 = vector.load %arg7[%c5, %c0_112, %c0_113] : memref<9x128x128xbf16, #tpu.memory_space<vmem>>, vector<1x128x128xbf16>
    %143 = vector.shape_cast %142 : vector<1x128x128xbf16> to vector<128x128xbf16>
    %cst_114 = arith.constant dense<0.000000e+00> : vector<160x128xf32>
    %144 = tpu.matmul %141, %143, %cst_114 {dimension_numbers = #tpu.dot_dimension_numbers<[1], [0], [0], [1], [0, 0, 1, 1], [], []>} : vector<160x128xbf16>, vector<128x128xbf16>, vector<160x128xf32> -> vector<160x128xf32>
    %145 = arith.addf %140, %144 : vector<160x128xf32>
    %c25_115 = arith.constant 25 : index
    %c0_116 = arith.constant 0 : index
    %146 = vector.load %arg16[%c25_115, %c0_116] : memref<192x128xbf16, #tpu.memory_space<vmem>>, vector<160x128xbf16>
    %c8_117 = arith.constant 8 : index
    %c0_118 = arith.constant 0 : index
    %c0_119 = arith.constant 0 : index
    %147 = vector.load %arg7[%c8_117, %c0_118, %c0_119] : memref<9x128x128xbf16, #tpu.memory_space<vmem>>, vector<1x128x128xbf16>
    %148 = vector.shape_cast %147 : vector<1x128x128xbf16> to vector<128x128xbf16>
    %cst_120 = arith.constant dense<0.000000e+00> : vector<160x128xf32>
    %149 = tpu.matmul %146, %148, %cst_120 {dimension_numbers = #tpu.dot_dimension_numbers<[1], [0], [0], [1], [0, 0, 1, 1], [], []>} : vector<160x128xbf16>, vector<128x128xbf16>, vector<160x128xf32> -> vector<160x128xf32>
    %150 = arith.addf %145, %149 : vector<160x128xf32>
    %cst_121 = arith.constant 0.000000e+00 : f32
    %151 = vector.shape_cast %6 : vector<160x1xi1> to vector<160x1xi1>
    %152 = vector.broadcast %151 : vector<160x1xi1> to vector<160x128xi1>
    %153 = vector.broadcast %cst_121 : f32 to vector<160x128xf32>
    %154 = arith.select %152, %150, %153 : vector<160x128xi1>, vector<160x128xf32>
    %155 = arith.addf %136, %154 : vector<160x128xf32>
    %c0_122 = arith.constant 0 : index
    %c0_123 = arith.constant 0 : index
    %156 = vector.load %arg8[%c0_122, %c0_123] : memref<1x128xf32, #tpu.memory_space<vmem>>, vector<1x128xf32>
    %c0_124 = arith.constant 0 : index
    %c0_125 = arith.constant 0 : index
    %157 = vector.load %arg9[%c0_124, %c0_125] : memref<1x128xf32, #tpu.memory_space<vmem>>, vector<1x128xf32>
    %158 = vector.broadcast %0 : vector<160x1xf32> to vector<160x128xf32>
    %159 = arith.mulf %155, %158 : vector<160x128xf32>
    %cst_126 = arith.constant dense<0.000000e+00> : vector<128xf32>
    %160 = vector.multi_reduction <add>, %159, %cst_126 [0] : vector<160x128xf32> to vector<128xf32>
    %161 = vector.shape_cast %160 : vector<128xf32> to vector<1x128xf32>
    %cst_127 = arith.constant 1.280000e+02 : f32
    %162 = vector.broadcast %cst_127 : f32 to vector<1x128xf32>
    %163 = arith.divf %161, %162 : vector<1x128xf32>
    %164 = vector.broadcast %163 : vector<1x128xf32> to vector<160x128xf32>
    %165 = arith.subf %155, %164 : vector<160x128xf32>
    %166 = vector.broadcast %0 : vector<160x1xf32> to vector<160x128xf32>
    %167 = arith.mulf %165, %166 : vector<160x128xf32>
    %168 = arith.mulf %167, %167 : vector<160x128xf32>
    %cst_128 = arith.constant dense<0.000000e+00> : vector<128xf32>
    %169 = vector.multi_reduction <add>, %168, %cst_128 [0] : vector<160x128xf32> to vector<128xf32>
    %170 = vector.shape_cast %169 : vector<128xf32> to vector<1x128xf32>
    %cst_129 = arith.constant 1.280000e+02 : f32
    %171 = vector.broadcast %cst_129 : f32 to vector<1x128xf32>
    %172 = arith.divf %170, %171 : vector<1x128xf32>
    %cst_130 = arith.constant 9.99999974E-6 : f32
    %173 = vector.broadcast %cst_130 : f32 to vector<1x128xf32>
    %174 = arith.addf %172, %173 : vector<1x128xf32>
    %175 = math.rsqrt %174 : vector<1x128xf32>
    %176 = arith.mulf %156, %175 : vector<1x128xf32>
    %177 = arith.mulf %163, %176 : vector<1x128xf32>
    %178 = arith.subf %157, %177 : vector<1x128xf32>
    %179 = vector.broadcast %176 : vector<1x128xf32> to vector<160x128xf32>
    %180 = arith.mulf %155, %179 : vector<160x128xf32>
    %181 = vector.broadcast %178 : vector<1x128xf32> to vector<160x128xf32>
    %182 = arith.addf %180, %181 : vector<160x128xf32>
    %cst_131 = arith.constant 0.000000e+00 : f32
    %183 = vector.broadcast %cst_131 : f32 to vector<160x128xf32>
    %184 = arith.maximumf %182, %183 : vector<160x128xf32>
    %c0_132 = arith.constant 0 : index
    %c0_133 = arith.constant 0 : index
    %185 = vector.load %arg10[%c0_132, %c0_133] : memref<8x16xf32, #tpu.memory_space<vmem>>, vector<8x16xf32>
    %c0_134 = arith.constant 0 : index
    %c0_135 = arith.constant 0 : index
    %186 = vector.load %arg11[%c0_134, %c0_135] : memref<16x128xf32, #tpu.memory_space<vmem>>, vector<16x128xf32>
    %cst_136 = arith.constant dense<0.000000e+00> : vector<8x128xf32>
    %187 = tpu.matmul %185, %186, %cst_136 {dimension_numbers = #tpu.dot_dimension_numbers<[1], [0], [0], [1], [0, 0, 1, 1], [], []>} : vector<8x16xf32>, vector<16x128xf32>, vector<8x128xf32> -> vector<8x128xf32>
    %c0_137 = arith.constant 0 : index
    %c0_138 = arith.constant 0 : index
    %188 = vector.load %arg12[%c0_137, %c0_138] : memref<1x128xf32, #tpu.memory_space<vmem>>, vector<1x128xf32>
    %189 = vector.broadcast %188 : vector<1x128xf32> to vector<8x128xf32>
    %190 = arith.addf %187, %189 : vector<8x128xf32>
    %191 = vector.extract_strided_slice %184 {offsets = [0, 0], sizes = [64, 128], strides = [1, 1]} : vector<160x128xf32> to vector<64x128xf32>
    %192 = vector.extract_strided_slice %190 {offsets = [0, 0], sizes = [1, 128], strides = [1, 1]} : vector<8x128xf32> to vector<1x128xf32>
    %193 = vector.broadcast %192 : vector<1x128xf32> to vector<64x128xf32>
    %194 = arith.addf %191, %193 : vector<64x128xf32>
    %c0_139 = arith.constant 0 : index
    %c0_140 = arith.constant 0 : index
    %c0_141 = arith.constant 0 : index
    %195 = vector.load %arg13[%c0_139, %c0_140, %c0_141] : memref<2x64x128xf32, #tpu.memory_space<vmem>>, vector<1x64x128xf32>
    %196 = vector.shape_cast %195 : vector<1x64x128xf32> to vector<64x128xf32>
    %197 = vector.shape_cast %194 : vector<64x128xf32> to vector<1x64x128xf32>
    tpu.vector_store %arg13[%c0_139, %c0_140, %c0_141], %197 {strides = array<i32>} : memref<2x64x128xf32, #tpu.memory_space<vmem>>, vector<1x64x128xf32>,
    %198 = vector.extract_strided_slice %184 {offsets = [80, 0], sizes = [64, 128], strides = [1, 1]} : vector<160x128xf32> to vector<64x128xf32>
    %199 = vector.extract_strided_slice %190 {offsets = [1, 0], sizes = [1, 128], strides = [1, 1]} : vector<8x128xf32> to vector<1x128xf32>
    %200 = vector.broadcast %199 : vector<1x128xf32> to vector<64x128xf32>
    %201 = arith.addf %198, %200 : vector<64x128xf32>
    %c1_142 = arith.constant 1 : index
    %c0_143 = arith.constant 0 : index
    %c0_144 = arith.constant 0 : index
    %202 = vector.load %arg13[%c1_142, %c0_143, %c0_144] : memref<2x64x128xf32, #tpu.memory_space<vmem>>, vector<1x64x128xf32>
    %203 = vector.shape_cast %202 : vector<1x64x128xf32> to vector<64x128xf32>
    %204 = vector.shape_cast %201 : vector<64x128xf32> to vector<1x64x128xf32>
    tpu.vector_store %arg13[%c1_142, %c0_143, %c0_144], %204 {strides = array<i32>} : memref<2x64x128xf32, #tpu.memory_space<vmem>>, vector<1x64x128xf32>,
    return
  }
}

</mosaic_0001>

<bundles_post_ra>
// kernel: tile.18
= control target key start
LH: loop header
LB: loop body
LE: loop exit
PB: predicated region body
PF: predicated region fallthrough
CT: control target
= control target key end

     0   :  { %s22_s0 = inlined_call_operand.vmem [shape: f32[80], index: 0, kind: input, shape index: {}]   ;;  %s23_s1 = inlined_call_operand.vmem [shape: f32[2,80], index: 1, kind: output, shape index: {}]  }
   0x1   :  { %v4_v0 = vld [vmem:[%s22_s0] ss:$0 sm:$0xff] }
   0x2   :  { %5 = vst [vmem:[%s23_s1] sm:$0x3] %v4_v0 }

// kernel: tile.2
= control target key start
LH: loop header
LB: loop body
LE: loop exit
PB: predicated region body
PF: predicated region fallthrough
CT: control target
= control target key end

     0   :  { %s707_s8 = smov 125   ;;  %s708_s9 = smov 126   ;;  %vm8_vm0 = vcmask 7168   ;;  %s1118_s0 = inlined_call_operand.vmem [shape: f32[2,80], index: 0, kind: input, shape index: {}]   ;;  %s1119_s1 = inlined_call_operand.vmem [shape: f32[160,1], index: 1, kind: output, shape index: {}]  }
   0x1   :  { %v5_v0 = vld [vmem:[%s1118_s0] sm:$0x3]  ;;  %s706_s0 = smov 127   ;;  %s709_s10 = smov 124  }
   0x2   :  { %6 = vst [vmem:[#allocation0] sm:$0x3] %v5_v0  ;;  %s710_s11 = smov 123   ;;  %s711_s12 = smov 122  }
   0x3   :  { %s712_s13 = smov 121   ;;  %s713_s14 = smov 120  }
   0x4   :  { %s714_s15 = smov 119   ;;  %s715_s16 = smov 118  }
   0x5   :  { %s716_s17 = smov 117   ;;  %s717_s18 = smov 116  }
   0x6   :  { %s101_s19 = smov 3  ;;  %s718_s20 = smov 115  }
   0x7   :  { %s719_s21 = smov 114   ;;  %s109_s22 = smov 3 }
   0x8   :  { %s117_s23 = smov 3  ;;  %s720_s24 = smov 113  }
   0x9   :  { %v10_v1 = vld [vmem:[#allocation0] sm:$0x3]   ;;  %s721_s25 = smov 112   ;;  %s125_s26 = smov 3 }
   0xa   :  { %v22_v2 = vld [vmem:[#allocation0] sm:$0x3]   ;;  %11 = vrot.lane.b32.xlu0 %v10_v1, %s706_s0  ;;  %s133_s27 = smov 3  ;;  %s722_s28 = smov 111  }
   0xb   :  { %23 = vrot.lane.b32.xlu1 %v22_v2, %s707_s8  ;;  %v16_v3 = vld [vmem:[#allocation0] sm:$0x3]   ;;  %s723_s29 = smov 110   ;;  %s141_s30 = smov 3 }
   0xc   :  { %v28_v4 = vld [vmem:[#allocation0] sm:$0x3]   ;;  %s149_s2 = smov 3  ;;  %s724_s3 = smov 109  }
   0xd   :  { %v34_v5 = vld [vmem:[#allocation0] sm:$0x3]   ;;  %s725_s4 = smov 108   ;;  %s157_s5 = smov 3 }
   0xe   :  { %17 = vrot.lane.b32.xlu0 %v16_v3, %s708_s9  ;;  %v40_v6 = vld [vmem:[#allocation0] sm:$0x3]   ;;  %s165_s6 = smov 3  ;;  %s726_s7 = smov 107  }
   0xf   :  { %29 = vrot.lane.b32.xlu1 %v28_v4, %s709_s10  ;;  %v46_v7 = vld [vmem:[#allocation0] sm:$0x3]   ;;  %s727_s0 = smov 106   ;;  %s173_s8 = smov 3 }
  0x10   :  { %v52_v8 = vld [vmem:[#allocation0] sm:$0x3]   ;;  %s181_s9 = smov 3  ;;  %s728_s10 = smov 105  }
  0x11   :  { %v58_v9 = vld [vmem:[#allocation0] sm:$0x3]  }
  0x12   :  { %35 = vrot.lane.b32.xlu0 %v34_v5, %s710_s11  ;;  %v64_v10 = vld [vmem:[#allocation0] sm:$0x3]   ;;  %s729_s11 = smov 104  }
  0x13   :  { %41 = vrot.lane.b32.xlu1 %v40_v6, %s711_s12  ;;  %v70_v11 = vld [vmem:[#allocation0] sm:$0x3]   ;;  %s189_s12 = smov 3 }
  0x14   :  { %v76_v12 = vld [vmem:[#allocation0] sm:$0x3]  }
  0x15   :  { %v82_v13 = vld [vmem:[#allocation0] sm:$0x3]  }
  0x16   :  { %47 = vrot.lane.b32.xlu0 %v46_v7, %s712_s13  ;;  %v88_v14 = vld [vmem:[#allocation0] sm:$0x3]   ;;  %s197_s13 = smov 3 }
  0x17   :  { %53 = vrot.lane.b32.xlu1 %v52_v8, %s713_s14  ;;  %v94_v15 = vld [vmem:[#allocation0] sm:$0x3]   ;;  %s730_s14 = smov 103  }
  0x18   :  { %v102_v16 = vld [vmem:[#allocation0 + $0x1] ss:$-1 sm:%s101_s19]   ;;  %s733_s19 = smov 100  }
  0x19   :  { %v110_v17 = vld [vmem:[#allocation0 + $0x1] ss:$-1 sm:%s109_s22]   ;;  %s735_s22 = smov 98  }
  0x1a   :  { %59 = vrot.lane.b32.xlu0 %v58_v9, %s714_s15  ;;  %v118_v18 = vld [vmem:[#allocation0 + $0x1] ss:$-1 sm:%s117_s23]   ;;  %s731_s15 = smov 102   ;;  %s736_s23 = smov 97  }
  0x1b   :  { %65 = vrot.lane.b32.xlu1 %v64_v10, %s715_s16  ;;  %v126_v19 = vld [vmem:[#allocation0 + $0x1] ss:$-1 sm:%s125_s26]   ;;  %s205_s16 = smov 3  ;;  %s739_s26 = smov 94  }
  0x1c   :  { %v134_v20 = vld [vmem:[#allocation0 + $0x1] ss:$-1 sm:%s133_s27]   ;;  %s740_s27 = smov 93  }
  0x1d   :  { %v142_v21 = vld [vmem:[#allocation0 + $0x1] ss:$-1 sm:%s141_s30]   ;;  %s743_s30 = smov 90  }
  0x1e   :  { %71 = vrot.lane.b32.xlu0 %v70_v11, %s716_s17  ;;  %v150_v22 = vld [vmem:[#allocation0 + $0x1] ss:$-1 sm:%s149_s2]   ;;  %s213_s17 = smov 3  ;;  %s744_s2 = smov 89  }
  0x1f   :  { %77 = vrot.lane.b32.xlu1 %v76_v12, %s717_s18  ;;  %v158_v23 = vld [vmem:[#allocation0 + $0x1] ss:$-1 sm:%s157_s5]   ;;  %s732_s18 = smov 101   ;;  %s747_s5 = smov 86  }
  0x20   :  { %v166_v24 = vld [vmem:[#allocation0 + $0x1] ss:$-1 sm:%s165_s6]   ;;  %s748_s6 = smov 85  }
  0x21   :  { %v174_v25 = vld [vmem:[#allocation0 + $0x1] ss:$-1 sm:%s173_s8]   ;;  %s750_s8 = smov 83  }
  0x22   :  { %83 = vrot.lane.b32.xlu0 %v82_v13, %s718_s20  ;;  %v182_v26 = vld [vmem:[#allocation0 + $0x1] ss:$-1 sm:%s181_s9]   ;;  %s221_s20 = smov 3  ;;  %s751_s9 = smov 82  }
  0x23   :  { %89 = vrot.lane.b32.xlu1 %v88_v14, %s719_s21  ;;  %v190_v27 = vld [vmem:[#allocation0 + $0x1] ss:$-1 sm:%s189_s12]   ;;  %s734_s21 = smov 99   ;;  %s752_s12 = smov 81  }
  0x24   :  { %v198_v28 = vld [vmem:[#allocation0 + $0x1] ss:$-1 sm:%s197_s13]   ;;  %s753_s13 = smov 80  }
  0x25   :  { %v206_v29 = vld [vmem:[#allocation0 + $0x1] ss:$-1 sm:%s205_s16]   ;;  %s754_s16 = smov 79  }
  0x26   :  { %95 = vrot.lane.b32.xlu0 %v94_v15, %s720_s24  ;;  %v214_v30 = vld [vmem:[#allocation0 + $0x1] ss:$-1 sm:%s213_s17]   ;;  %s737_s24 = smov 96   ;;  %s755_s17 = smov 78  }
  0x27   :  { %103 = vrot.lane.b32.xlu1 %v102_v16, %s721_s25  ;;  %v222_v31 = vld [vmem:[#allocation0 + $0x1] ss:$-1 sm:%s221_s20]   ;;  %s738_s25 = smov 95   ;;  %s756_s20 = smov 77  }
  0x28   :  { %v228_v32 = vld [vmem:[#allocation0] sm:$0x3]  }
  0x29   :  { %v234_v33 = vld [vmem:[#allocation0] sm:$0x3]  }
  0x2a   :  { %111 = vrot.lane.b32.xlu0 %v110_v17, %s722_s28  ;;  %v240_v34 = vld [vmem:[#allocation0] sm:$0x3]   ;;  %s741_s28 = smov 92  }
  0x2b   :  { %119 = vrot.lane.b32.xlu1 %v118_v18, %s723_s29  ;;  %v246_v35 = vld [vmem:[#allocation0] sm:$0x3]   ;;  %s742_s29 = smov 91  }
  0x2c   :  { %v252_v36 = vld [vmem:[#allocation0] sm:$0x3]  }
  0x2d   :  { %v258_v37 = vld [vmem:[#allocation0] sm:$0x3]  }
  0x2e   :  { %127 = vrot.lane.b32.xlu0 %v126_v19, %s724_s3  ;;  %v264_v38 = vld [vmem:[#allocation0] sm:$0x3]   ;;  %s745_s3 = smov 88  }
  0x2f   :  { %135 = vrot.lane.b32.xlu1 %v134_v20, %s725_s4  ;;  %v270_v39 = vld [vmem:[#allocation0] sm:$0x3]   ;;  %s746_s4 = smov 87  }
  0x30   :  { %v276_v40 = vld [vmem:[#allocation0] sm:$0x3]  }
  0x31   :  { %v282_v41 = vld [vmem:[#allocation0] sm:$0x3]  }
  0x32   :  { %143 = vrot.lane.b32.xlu0 %v142_v21, %s726_s7  ;;  %v288_v42 = vld [vmem:[#allocation0] sm:$0x3]   ;;  %s749_s7 = smov 84  }
  0x33   :  { %151 = vrot.lane.b32.xlu1 %v150_v22, %s727_s0  ;;  %v294_v43 = vld [vmem:[#allocation0] sm:$0x3]   ;;  %s325_s0 = smov 3 }
  0x34   :  { %v300_v44 = vld [vmem:[#allocation0] sm:$0x3]  }
  0x35   :  { %v306_v45 = vld [vmem:[#allocation0] sm:$0x3]  }
  0x36   :  { %159 = vrot.lane.b32.xlu0 %v158_v23, %s728_s10  ;;  %v312_v46 = vld [vmem:[#allocation0] sm:$0x3]   ;;  %s333_s10 = smov 3 }
  0x37   :  { %167 = vrot.lane.b32.xlu1 %v166_v24, %s729_s11  ;;  %v318_v47 = vld [vmem:[#allocation0] sm:$0x3]   ;;  %s341_s11 = smov 3 }
  0x38   :  { %v326_v48 = vld [vmem:[#allocation0 + $0x1] ss:$-1 sm:%s325_s0]   ;;  %s782_s0 = smov 51  }
  0x39   :  { %v334_v49 = vld [vmem:[#allocation0 + $0x1] ss:$-1 sm:%s333_s10]   ;;  %s764_s10 = smov 69  }
  0x3a   :  { %175 = vrot.lane.b32.xlu0 %v174_v25, %s730_s14  ;;  %v342_v50 = vld [vmem:[#allocation0 + $0x1] ss:$-1 sm:%s341_s11]   ;;  %s349_s14 = smov 3  ;;  %s765_s11 = smov 68  }
  0x3b   :  { %183 = vrot.lane.b32.xlu1 %v182_v26, %s731_s15  ;;  %s357_s15 = smov 3  ;;  %v350_v51 = vld [vmem:[#allocation0 + $0x1] ss:$-1 sm:%s349_s14]  }
  0x3c   :  { %v358_v52 = vld [vmem:[#allocation0 + $0x1] ss:$-1 sm:%s357_s15]  }
  0x3d   :  { %v452_v4 = vld [vmem:[#allocation0] sm:$0x3]  }
  0x3e   :  { %191 = vrot.lane.b32.xlu0 %v190_v27, %s732_s18  ;;  %s365_s18 = smov 3  ;;  %v458_v7 = vld [vmem:[#allocation0] sm:$0x3]  }
  0x3f   :  { %199 = vrot.lane.b32.xlu1 %v198_v28, %s733_s19  ;;  %s373_s19 = smov 3  ;;  %v366_v53 = vld [vmem:[#allocation0 + $0x1] ss:$-1 sm:%s365_s18]   ;;  %s767_s18 = smov 66  }
  0x40   :  { %v374_v54 = vld [vmem:[#allocation0 + $0x1] ss:$-1 sm:%s373_s19]  }
  0x41   :  { %v464_v8 = vld [vmem:[#allocation0] sm:$0x3]  }
  0x42   :  { %207 = vrot.lane.b32.xlu0 %v206_v29, %s734_s21  ;;  %s757_s21 = smov 76   ;;  %v470_v11 = vld [vmem:[#allocation0] sm:$0x3]  }
  0x43   :  { %215 = vrot.lane.b32.xlu1 %v214_v30, %s735_s22  ;;  %s381_s22 = smov 3  ;;  %v476_v12 = vld [vmem:[#allocation0] sm:$0x3]  }
  0x44   :  { %v382_v55 = vld [vmem:[#allocation0 + $0x1] ss:$-1 sm:%s381_s22]  }
  0x45   :  { %v482_v15 = vld [vmem:[#allocation0] sm:$0x3]  }
  0x46   :  { %223 = vrot.lane.b32.xlu0 %v222_v31, %s736_s23  ;;  %s389_s23 = smov 3  ;;  %v488_v16 = vld [vmem:[#allocation0] sm:$0x3]  }
  0x47   :  { %229 = vrot.lane.b32.xlu1 %v228_v32, %s737_s24  ;;  %s758_s24 = smov 75   ;;  %v390_v56 = vld [vmem:[#allocation0 + $0x1] ss:$-1 sm:%s389_s23]   ;;  %s768_s23 = smov 65  }
  0x48   :  { %v494_v19 = vld [vmem:[#allocation0] sm:$0x3]  }
  0x49   :  { %v500_v20 = vld [vmem:[#allocation0] sm:$0x3]  }
  0x4a   :  { %235 = vrot.lane.b32.xlu0 %v234_v33, %s738_s25  ;;  %s759_s25 = smov 74   ;;  %v506_v23 = vld [vmem:[#allocation0] sm:$0x3]  }
  0x4b   :  { %241 = vrot.lane.b32.xlu1 %v240_v34, %s739_s26  ;;  %s397_s26 = smov 3  ;;  %v512_v24 = vld [vmem:[#allocation0] sm:$0x3]  }
  0x4c   :  { %v398_v57 = vld [vmem:[#allocation0 + $0x1] ss:$-1 sm:%s397_s26]   ;;  %s779_s26 = smov 54  }
  0x4d   :  { %v7_v27 = vld [vmem:[#allocation0] sm:$0x3]  }
  0x4e   :  { %247 = vrot.lane.b32.xlu0 %v246_v35, %s740_s27  ;;  %s405_s27 = smov 3  ;;  %9 = vst.msk [vmem:[%s1119_s1] ss:$80 sm:$0x3] %vm8_vm0, %v7_v27   ;;  %v518_v28 = vld [vmem:[#allocation0] sm:$0x3]  }
  0x4f   :  { %253 = vrot.lane.b32.xlu1 %v252_v36, %s741_s28  ;;  %s760_s28 = smov 73   ;;  %v406_v58 = vld [vmem:[#allocation0 + $0x1] ss:$-1 sm:%s405_s27]  }
  0x50   :  { %v524_v29 = vld [vmem:[#allocation0] sm:$0x3]  }
  0x51   :  { %v530_v32 = vld [vmem:[#allocation0] sm:$0x3]  }
  0x52   :  { %259 = vrot.lane.b32.xlu0 %v258_v37, %s742_s29  ;;  %s761_s29 = smov 72   ;;  %v536_v33 = vld [vmem:[#allocation0] sm:$0x3]  }
  0x53   :  { %265 = vrot.lane.b32.xlu1 %v264_v38, %s743_s30  ;;  %s413_s30 = smov 3  ;;  %v542_v36 = vld [vmem:[#allocation0] sm:$0x3]  }
  0x54   :  { %v414_v59 = vld [vmem:[#allocation0 + $0x1] ss:$-1 sm:%s413_s30]   ;;  %s771_s30 = smov 62  }
  0x56   :  { %271 = vrot.lane.b32.xlu0 %v270_v39, %s744_s2  ;;  %s421_s2 = smov 3 }
  0x57   :  { %277 = vrot.lane.b32.xlu1 %v276_v40, %s745_s3  ;;  %s762_s3 = smov 71   ;;  %v422_v60 = vld [vmem:[#allocation0 + $0x1] ss:$-1 sm:%s421_s2]   ;;  %s780_s2 = smov 53  }
  0x5a   :  { %283 = vrot.lane.b32.xlu0 %v282_v41, %s746_s4  ;;  %s763_s4 = smov 70  }
  0x5b   :  { %289 = vrot.lane.b32.xlu1 %v288_v42, %s747_s5  ;;  %s429_s5 = smov 3 }
  0x5c   :  { %v430_v63 = vld [vmem:[#allocation0 + $0x1] ss:$-1 sm:%s429_s5]  }
  0x5e   :  { %295 = vrot.lane.b32.xlu0 %v294_v43, %s748_s6  ;;  %s437_s6 = smov 3 }
  0x5f   :  { %301 = vrot.lane.b32.xlu1 %v300_v44, %s749_s7  ;;  %v438_v0 = vld [vmem:[#allocation0 + $0x1] ss:$-1 sm:%s437_s6]   ;;  %s772_s6 = smov 61   ;;  %s773_s7 = smov 60  }
  0x62   :  { %307 = vrot.lane.b32.xlu0 %v306_v45, %s750_s8  ;;  %s783_s8 = smov 50  }
  0x63   :  { %313 = vrot.lane.b32.xlu1 %v312_v46, %s751_s9 }
  0x66   :  { %319 = vrot.lane.b32.xlu0 %v318_v47, %s752_s12  ;;  %s445_s12 = smov 3 }
  0x67   :  { %327 = vrot.lane.b32.xlu1 %v326_v48, %s753_s13  ;;  %v446_v3 = vld [vmem:[#allocation0 + $0x1] ss:$-1 sm:%s445_s12]   ;;  %s775_s12 = smov 58   ;;  %s784_s13 = smov 49  }
  0x6a   :  { %335 = vrot.lane.b32.xlu0 %v334_v49, %s754_s16 }
  0x6b   :  { %343 = vrot.lane.b32.xlu1 %v342_v50, %s755_s17  ;;  %s766_s17 = smov 67  }
  0x6e   :  { %351 = vrot.lane.b32.xlu0 %v350_v51, %s756_s20 }
  0x6f   :  { %359 = vrot.lane.b32.xlu1 %v358_v52, %s757_s21 }
  0x72   :  { %367 = vrot.lane.b32.xlu0 %v366_v53, %s758_s24  ;;  %s769_s24 = smov 64  }
  0x73   :  { %375 = vrot.lane.b32.xlu1 %v374_v54, %s759_s25  ;;  %s778_s25 = smov 55  }
  0x76   :  { %383 = vrot.lane.b32.xlu0 %v382_v55, %s760_s28 }
  0x77   :  { %391 = vrot.lane.b32.xlu1 %v390_v56, %s761_s29  ;;  %s770_s29 = smov 63  }
  0x7a   :  { %399 = vrot.lane.b32.xlu0 %v398_v57, %s762_s3  ;;  %s781_s3 = smov 52  }
  0x7b   :  { %407 = vrot.lane.b32.xlu1 %v406_v58, %s763_s4 }
  0x7c   :  { %v12_v61 = vpop.permute.xlu0 %11  }
  0x7d   :  { %v24_v62 = vpop.permute.xlu1 %23   ;;  %548 = vst.msk [vmem:[%s1119_s1 + $0x1] ss:$80 sm:$0x3] %vm8_vm0, %v12_v61  }
  0x7e   :  { %550 = vst.msk [vmem:[%s1119_s1 + $0x3] ss:$80 sm:$0x3] %vm8_vm0, %v24_v62   ;;  %415 = vrot.lane.b32.xlu0 %v414_v59, %s764_s10 }
  0x7f   :  { %423 = vrot.lane.b32.xlu1 %v422_v60, %s765_s11  ;;  %s774_s11 = smov 59  }
  0x80   :  { %v18_v1 = vpop.permute.xlu0 %17  }
  0x81   :  { %v30_v2 = vpop.permute.xlu1 %29   ;;  %549 = vst.msk [vmem:[%s1119_s1 + $0x2] ss:$80 sm:$0x3] %vm8_vm0, %v18_v1  }
  0x82   :  { %551 = vst.msk [vmem:[%s1119_s1 + $0x4] ss:$80 sm:$0x3] %vm8_vm0, %v30_v2   ;;  %431 = vrot.lane.b32.xlu0 %v430_v63, %s766_s17  ;;  %s776_s17 = smov 57  }
  0x83   :  { %439 = vrot.lane.b32.xlu1 %v438_v0, %s767_s18  ;;  %s777_s18 = smov 56  }
  0x84   :  { %v36_v5 = vpop.permute.xlu0 %35  }
  0x85   :  { %v42_v6 = vpop.permute.xlu1 %41   ;;  %552 = vst.msk [vmem:[%s1119_s1 + $0x5] ss:$80 sm:$0x3] %vm8_vm0, %v36_v5  }
  0x86   :  { %553 = vst.msk [vmem:[%s1119_s1 + $0x6] ss:$80 sm:$0x3] %vm8_vm0, %v42_v6   ;;  %447 = vrot.lane.b32.xlu0 %v446_v3, %s768_s23 }
  0x87   :  { %453 = vrot.lane.b32.xlu1 %v452_v4, %s769_s24 }
  0x88   :  { %v48_v9 = vpop.permute.xlu0 %47  }
  0x89   :  { %v54_v10 = vpop.permute.xlu1 %53   ;;  %554 = vst.msk [vmem:[%s1119_s1 + $0x7] ss:$80 sm:$0x3] %vm8_vm0, %v48_v9  }
  0x8a   :  { %555 = vst.msk [vmem:[%s1119_s1 + $0x8] ss:$80 sm:$0x3] %vm8_vm0, %v54_v10   ;;  %459 = vrot.lane.b32.xlu0 %v458_v7, %s770_s29 }
  0x8b   :  { %465 = vrot.lane.b32.xlu1 %v464_v8, %s771_s30 }
  0x8c   :  { %v60_v13 = vpop.permute.xlu0 %59  }
  0x8d   :  { %v66_v14 = vpop.permute.xlu1 %65   ;;  %556 = vst.msk [vmem:[%s1119_s1 + $0x9] ss:$80 sm:$0x3] %vm8_vm0, %v60_v13  }
  0x8e   :  { %557 = vst.msk [vmem:[%s1119_s1 + $0xa] ss:$80 sm:$0x3] %vm8_vm0, %v66_v14   ;;  %471 = vrot.lane.b32.xlu0 %v470_v11, %s772_s6 }
  0x8f   :  { %477 = vrot.lane.b32.xlu1 %v476_v12, %s773_s7 }
  0x90   :  { %v72_v17 = vpop.permute.xlu0 %71  }
  0x91   :  { %v78_v18 = vpop.permute.xlu1 %77   ;;  %558 = vst.msk [vmem:[%s1119_s1 + $0xb] ss:$80 sm:$0x3] %vm8_vm0, %v72_v17  }
  0x92   :  { %559 = vst.msk [vmem:[%s1119_s1 + $0xc] ss:$80 sm:$0x3] %vm8_vm0, %v78_v18   ;;  %483 = vrot.lane.b32.xlu0 %v482_v15, %s774_s11 }
  0x93   :  { %489 = vrot.lane.b32.xlu1 %v488_v16, %s775_s12 }
  0x94   :  { %v84_v21 = vpop.permute.xlu0 %83  }
  0x95   :  { %v90_v22 = vpop.permute.xlu1 %89   ;;  %560 = vst.msk [vmem:[%s1119_s1 + $0xd] ss:$80 sm:$0x3] %vm8_vm0, %v84_v21  }
  0x96   :  { %561 = vst.msk [vmem:[%s1119_s1 + $0xe] ss:$80 sm:$0x3] %vm8_vm0, %v90_v22   ;;  %495 = vrot.lane.b32.xlu0 %v494_v19, %s776_s17 }
  0x97   :  { %501 = vrot.lane.b32.xlu1 %v500_v20, %s777_s18 }
  0x98   :  { %v96_v25 = vpop.permute.xlu0 %95  }
  0x99   :  { %v104_v26 = vpop.permute.xlu1 %103   ;;  %562 = vst.msk [vmem:[%s1119_s1 + $0xf] ss:$80 sm:$0x3] %vm8_vm0, %v96_v25  }
  0x9a   :  { %563 = vst.msk [vmem:[%s1119_s1 + $0x60] ss:$-80 sm:$0x3] %vm8_vm0, %v104_v26   ;;  %507 = vrot.lane.b32.xlu0 %v506_v23, %s778_s25 }
  0x9b   :  { %513 = vrot.lane.b32.xlu1 %v512_v24, %s779_s26 }
  0x9c   :  { %v112_v30 = vpop.permute.xlu0 %111  }
  0x9d   :  { %v120_v31 = vpop.permute.xlu1 %119   ;;  %564 = vst.msk [vmem:[%s1119_s1 + $0x61] ss:$-80 sm:$0x3] %vm8_vm0, %v112_v30  }
  0x9e   :  { %565 = vst.msk [vmem:[%s1119_s1 + $0x62] ss:$-80 sm:$0x3] %vm8_vm0, %v120_v31   ;;  %519 = vrot.lane.b32.xlu0 %v518_v28, %s780_s2 }
  0x9f   :  { %525 = vrot.lane.b32.xlu1 %v524_v29, %s781_s3 }
  0xa0   :  { %v128_v34 = vpop.permute.xlu0 %127  }
  0xa1   :  { %v136_v35 = vpop.permute.xlu1 %135   ;;  %566 = vst.msk [vmem:[%s1119_s1 + $0x63] ss:$-80 sm:$0x3] %vm8_vm0, %v128_v34  }
  0xa2   :  { %567 = vst.msk [vmem:[%s1119_s1 + $0x64] ss:$-80 sm:$0x3] %vm8_vm0, %v136_v35   ;;  %531 = vrot.lane.b32.xlu0 %v530_v32, %s782_s0 }
  0xa3   :  { %537 = vrot.lane.b32.xlu1 %v536_v33, %s783_s8 }
  0xa4   :  { %v144_v37 = vpop.permute.xlu0 %143  }
  0xa5   :  { %v152_v38 = vpop.permute.xlu1 %151   ;;  %568 = vst.msk [vmem:[%s1119_s1 + $0x65] ss:$-80 sm:$0x3] %vm8_vm0, %v144_v37  }
  0xa6   :  { %569 = vst.msk [vmem:[%s1119_s1 + $0x66] ss:$-80 sm:$0x3] %vm8_vm0, %v152_v38   ;;  %543 = vrot.lane.b32.xlu0 %v542_v36, %s784_s13 }
  0xa8   :  { %v160_v39 = vpop.permute.xlu0 %159  }
  0xa9   :  { %v168_v40 = vpop.permute.xlu1 %167   ;;  %570 = vst.msk [vmem:[%s1119_s1 + $0x67] ss:$-80 sm:$0x3] %vm8_vm0, %v160_v39  }
  0xaa   :  { %571 = vst.msk [vmem:[%s1119_s1 + $0x68] ss:$-80 sm:$0x3] %vm8_vm0, %v168_v40  }
  0xac   :  { %v176_v41 = vpop.permute.xlu0 %175  }
  0xad   :  { %v184_v42 = vpop.permute.xlu1 %183   ;;  %572 = vst.msk [vmem:[%s1119_s1 + $0x69] ss:$-80 sm:$0x3] %vm8_vm0, %v176_v41  }
  0xae   :  { %573 = vst.msk [vmem:[%s1119_s1 + $0x6a] ss:$-80 sm:$0x3] %vm8_vm0, %v184_v42  }
  0xb0   :  { %v192_v43 = vpop.permute.xlu0 %191  }
  0xb1   :  { %v200_v44 = vpop.permute.xlu1 %199   ;;  %574 = vst.msk [vmem:[%s1119_s1 + $0x6b] ss:$-80 sm:$0x3] %vm8_vm0, %v192_v43  }
  0xb2   :  { %575 = vst.msk [vmem:[%s1119_s1 + $0x6c] ss:$-80 sm:$0x3] %vm8_vm0, %v200_v44  }
  0xb4   :  { %v208_v45 = vpop.permute.xlu0 %207  }
  0xb5   :  { %v216_v46 = vpop.permute.xlu1 %215   ;;  %576 = vst.msk [vmem:[%s1119_s1 + $0x6d] ss:$-80 sm:$0x3] %vm8_vm0, %v208_v45  }
  0xb6   :  { %577 = vst.msk [vmem:[%s1119_s1 + $0x6e] ss:$-80 sm:$0x3] %vm8_vm0, %v216_v46  }
  0xb8   :  { %v224_v47 = vpop.permute.xlu0 %223  }
  0xb9   :  { %v230_v48 = vpop.permute.xlu1 %229   ;;  %578 = vst.msk [vmem:[%s1119_s1 + $0x6f] ss:$-80 sm:$0x3] %vm8_vm0, %v224_v47  }
  0xba   :  { %579 = vst.msk [vmem:[%s1119_s1 + $0x20] ss:$80 sm:$0x3] %vm8_vm0, %v230_v48  }
  0xbc   :  { %v236_v49 = vpop.permute.xlu0 %235  }
  0xbd   :  { %v242_v50 = vpop.permute.xlu1 %241   ;;  %580 = vst.msk [vmem:[%s1119_s1 + $0x21] ss:$80 sm:$0x3] %vm8_vm0, %v236_v49  }
  0xbe   :  { %581 = vst.msk [vmem:[%s1119_s1 + $0x22] ss:$80 sm:$0x3] %vm8_vm0, %v242_v50  }
  0xc0   :  { %v248_v51 = vpop.permute.xlu0 %247  }
  0xc1   :  { %v254_v52 = vpop.permute.xlu1 %253   ;;  %582 = vst.msk [vmem:[%s1119_s1 + $0x23] ss:$80 sm:$0x3] %vm8_vm0, %v248_v51  }
  0xc2   :  { %583 = vst.msk [vmem:[%s1119_s1 + $0x24] ss:$80 sm:$0x3] %vm8_vm0, %v254_v52  }
  0xc4   :  { %v260_v53 = vpop.permute.xlu0 %259  }
  0xc5   :  { %v266_v54 = vpop.permute.xlu1 %265   ;;  %584 = vst.msk [vmem:[%s1119_s1 + $0x25] ss:$80 sm:$0x3] %vm8_vm0, %v260_v53  }
  0xc6   :  { %585 = vst.msk [vmem:[%s1119_s1 + $0x26] ss:$80 sm:$0x3] %vm8_vm0, %v266_v54  }
  0xc8   :  { %v272_v55 = vpop.permute.xlu0 %271  }
  0xc9   :  { %v278_v56 = vpop.permute.xlu1 %277   ;;  %586 = vst.msk [vmem:[%s1119_s1 + $0x27] ss:$80 sm:$0x3] %vm8_vm0, %v272_v55  }
  0xca   :  { %587 = vst.msk [vmem:[%s1119_s1 + $0x28] ss:$80 sm:$0x3] %vm8_vm0, %v278_v56  }
  0xcc   :  { %v284_v57 = vpop.permute.xlu0 %283  }
  0xcd   :  { %v290_v58 = vpop.permute.xlu1 %289   ;;  %588 = vst.msk [vmem:[%s1119_s1 + $0x29] ss:$80 sm:$0x3] %vm8_vm0, %v284_v57  }
  0xce   :  { %589 = vst.msk [vmem:[%s1119_s1 + $0x2a] ss:$80 sm:$0x3] %vm8_vm0, %v290_v58  }
  0xd0   :  { %v296_v59 = vpop.permute.xlu0 %295  }
  0xd1   :  { %v302_v60 = vpop.permute.xlu1 %301   ;;  %590 = vst.msk [vmem:[%s1119_s1 + $0x2b] ss:$80 sm:$0x3] %vm8_vm0, %v296_v59  }
  0xd2   :  { %591 = vst.msk [vmem:[%s1119_s1 + $0x2c] ss:$80 sm:$0x3] %vm8_vm0, %v302_v60  }
  0xd4   :  { %v308_v61 = vpop.permute.xlu0 %307  }
  0xd5   :  { %v314_v62 = vpop.permute.xlu1 %313   ;;  %592 = vst.msk [vmem:[%s1119_s1 + $0x2d] ss:$80 sm:$0x3] %vm8_vm0, %v308_v61  }
  0xd6   :  { %593 = vst.msk [vmem:[%s1119_s1 + $0x2e] ss:$80 sm:$0x3] %vm8_vm0, %v314_v62  }
  0xd8   :  { %v320_v63 = vpop.permute.xlu0 %319  }
  0xd9   :  { %v328_v0 = vpop.permute.xlu1 %327   ;;  %594 = vst.msk [vmem:[%s1119_s1 + $0x2f] ss:$80 sm:$0x3] %vm8_vm0, %v320_v63  }
  0xda   :  { %595 = vst.msk [vmem:[%s1119_s1 + $0x80] ss:$-80 sm:$0x3] %vm8_vm0, %v328_v0  }
  0xdc   :  { %v336_v1 = vpop.permute.xlu0 %335  }
  0xdd   :  { %v344_v2 = vpop.permute.xlu1 %343   ;;  %596 = vst.msk [vmem:[%s1119_s1 + $0x81] ss:$-80 sm:$0x3] %vm8_vm0, %v336_v1  }
  0xde   :  { %597 = vst.msk [vmem:[%s1119_s1 + $0x82] ss:$-80 sm:$0x3] %vm8_vm0, %v344_v2  }
  0xe0   :  { %v352_v3 = vpop.permute.xlu0 %351  }
  0xe1   :  { %v360_v4 = vpop.permute.xlu1 %359   ;;  %598 = vst.msk [vmem:[%s1119_s1 + $0x83] ss:$-80 sm:$0x3] %vm8_vm0, %v352_v3  }
  0xe2   :  { %599 = vst.msk [vmem:[%s1119_s1 + $0x84] ss:$-80 sm:$0x3] %vm8_vm0, %v360_v4  }
  0xe4   :  { %v368_v5 = vpop.permute.xlu0 %367  }
  0xe5   :  { %v376_v6 = vpop.permute.xlu1 %375   ;;  %600 = vst.msk [vmem:[%s1119_s1 + $0x85] ss:$-80 sm:$0x3] %vm8_vm0, %v368_v5  }
  0xe6   :  { %601 = vst.msk [vmem:[%s1119_s1 + $0x86] ss:$-80 sm:$0x3] %vm8_vm0, %v376_v6  }
  0xe8   :  { %v384_v7 = vpop.permute.xlu0 %383  }
  0xe9   :  { %v392_v8 = vpop.permute.xlu1 %391   ;;  %602 = vst.msk [vmem:[%s1119_s1 + $0x87] ss:$-80 sm:$0x3] %vm8_vm0, %v384_v7  }
  0xea   :  { %603 = vst.msk [vmem:[%s1119_s1 + $0x88] ss:$-80 sm:$0x3] %vm8_vm0, %v392_v8  }
  0xec   :  { %v400_v9 = vpop.permute.xlu0 %399  }
  0xed   :  { %v408_v10 = vpop.permute.xlu1 %407   ;;  %604 = vst.msk [vmem:[%s1119_s1 + $0x89] ss:$-80 sm:$0x3] %vm8_vm0, %v400_v9  }
  0xee   :  { %605 = vst.msk [vmem:[%s1119_s1 + $0x8a] ss:$-80 sm:$0x3] %vm8_vm0, %v408_v10  }
  0xf0   :  { %v416_v11 = vpop.permute.xlu0 %415  }
  0xf1   :  { %v424_v12 = vpop.permute.xlu1 %423   ;;  %606 = vst.msk [vmem:[%s1119_s1 + $0x8b] ss:$-80 sm:$0x3] %vm8_vm0, %v416_v11  }
  0xf2   :  { %607 = vst.msk [vmem:[%s1119_s1 + $0x8c] ss:$-80 sm:$0x3] %vm8_vm0, %v424_v12  }
  0xf4   :  { %v432_v13 = vpop.permute.xlu0 %431  }
  0xf5   :  { %v440_v14 = vpop.permute.xlu1 %439   ;;  %608 = vst.msk [vmem:[%s1119_s1 + $0x8d] ss:$-80 sm:$0x3] %vm8_vm0, %v432_v13  }
  0xf6   :  { %609 = vst.msk [vmem:[%s1119_s1 + $0x8e] ss:$-80 sm:$0x3] %vm8_vm0, %v440_v14  }
  0xf8   :  { %v448_v15 = vpop.permute.xlu0 %447  }
  0xf9   :  { %v454_v16 = vpop.permute.xlu1 %453   ;;  %610 = vst.msk [vmem:[%s1119_s1 + $0x8f] ss:$-80 sm:$0x3] %vm8_vm0, %v448_v15  }
  0xfa   :  { %611 = vst.msk [vmem:[%s1119_s1 + $0x40] ss:$80 sm:$0x3] %vm8_vm0, %v454_v16  }
  0xfc   :  { %v460_v17 = vpop.permute.xlu0 %459  }
  0xfd   :  { %v466_v18 = vpop.permute.xlu1 %465   ;;  %612 = vst.msk [vmem:[%s1119_s1 + $0x41] ss:$80 sm:$0x3] %vm8_vm0, %v460_v17  }
  0xfe   :  { %613 = vst.msk [vmem:[%s1119_s1 + $0x42] ss:$80 sm:$0x3] %vm8_vm0, %v466_v18  }
 0x100   :  { %v472_v19 = vpop.permute.xlu0 %471  }
 0x101   :  { %v478_v20 = vpop.permute.xlu1 %477   ;;  %614 = vst.msk [vmem:[%s1119_s1 + $0x43] ss:$80 sm:$0x3] %vm8_vm0, %v472_v19  }
 0x102   :  { %615 = vst.msk [vmem:[%s1119_s1 + $0x44] ss:$80 sm:$0x3] %vm8_vm0, %v478_v20  }
 0x104   :  { %v484_v21 = vpop.permute.xlu0 %483  }
 0x105   :  { %v490_v22 = vpop.permute.xlu1 %489   ;;  %616 = vst.msk [vmem:[%s1119_s1 + $0x45] ss:$80 sm:$0x3] %vm8_vm0, %v484_v21  }
 0x106   :  { %617 = vst.msk [vmem:[%s1119_s1 + $0x46] ss:$80 sm:$0x3] %vm8_vm0, %v490_v22  }
 0x108   :  { %v496_v23 = vpop.permute.xlu0 %495  }
 0x109   :  { %v502_v24 = vpop.permute.xlu1 %501   ;;  %618 = vst.msk [vmem:[%s1119_s1 + $0x47] ss:$80 sm:$0x3] %vm8_vm0, %v496_v23  }
 0x10a   :  { %619 = vst.msk [vmem:[%s1119_s1 + $0x48] ss:$80 sm:$0x3] %vm8_vm0, %v502_v24  }
 0x10c   :  { %v508_v25 = vpop.permute.xlu0 %507  }
 0x10d   :  { %v514_v26 = vpop.permute.xlu1 %513   ;;  %620 = vst.msk [vmem:[%s1119_s1 + $0x49] ss:$80 sm:$0x3] %vm8_vm0, %v508_v25  }
 0x10e   :  { %621 = vst.msk [vmem:[%s1119_s1 + $0x4a] ss:$80 sm:$0x3] %vm8_vm0, %v514_v26  }
 0x110   :  { %v520_v27 = vpop.permute.xlu0 %519  }
 0x111   :  { %v526_v28 = vpop.permute.xlu1 %525   ;;  %622 = vst.msk [vmem:[%s1119_s1 + $0x4b] ss:$80 sm:$0x3] %vm8_vm0, %v520_v27  }
 0x112   :  { %623 = vst.msk [vmem:[%s1119_s1 + $0x4c] ss:$80 sm:$0x3] %vm8_vm0, %v526_v28  }
 0x114   :  { %v532_v29 = vpop.permute.xlu0 %531  }
 0x115   :  { %v538_v30 = vpop.permute.xlu1 %537   ;;  %624 = vst.msk [vmem:[%s1119_s1 + $0x4d] ss:$80 sm:$0x3] %vm8_vm0, %v532_v29  }
 0x116   :  { %625 = vst.msk [vmem:[%s1119_s1 + $0x4e] ss:$80 sm:$0x3] %vm8_vm0, %v538_v30  }
 0x118   :  { %v544_v31 = vpop.permute.xlu0 %543  }
 0x119   :  { %626 = vst.msk [vmem:[%s1119_s1 + $0x4f] ss:$80 sm:$0x3] %vm8_vm0, %v544_v31  }

// kernel: down_forward.1
= control target key start
LH: loop header
LB: loop body
LE: loop exit
PB: predicated region body
PF: predicated region fallthrough
CT: control target
= control target key end

     0   :  { %vm12977_vm0 = vcmask 125952   ;;  %v12880_v0 = vmov 0   ;;  %s8131_s15 = smov 16   ;;  %s8132_s22 = smov 64   ;;  %s12853_s3 = inlined_call_operand.vmem [shape: f32[160,1], index: 3, kind: input, shape index: {}]   ;;  %s12854_s2 = inlined_call_operand.vmem [shape: f32[160,1], index: 2, kind: input, shape index: {}]   ;;  %s12855_s0 = inlined_call_operand.vmem [shape: f32[4,160,16], index: 0, kind: input, shape index: {}]   ;;  %s12856_s4 = inlined_call_operand.vmem [shape: bf16[144,128], index: 4, kind: input, shape index: {}]   ;;  %s12857_s1 = inlined_call_operand.vmem [shape: f32[160,1], index: 1, kind: input, shape index: {}]   ;;  %s12858_s7 = inlined_call_operand.vmem [shape: bf16[9,128,128], index: 7, kind: input, shape index: {}]   ;;  %s12859_s5 = inlined_call_operand.vmem [shape: f32[1,128], index: 5, kind: input, shape index: {}]   ;;  %s12860_s6 = inlined_call_operand.vmem [shape: f32[1,128], index: 6, kind: input, shape index: {}]   ;;  %s12861_s11 = inlined_call_operand.vmem [shape: f32[16,128], index: 11, kind: input, shape index: {}]   ;;  %s12862_s10 = inlined_call_operand.vmem [shape: f32[8,16], index: 10, kind: input, shape index: {}]   ;;  %s12863_s12 = inlined_call_operand.vmem [shape: f32[1,128], index: 12, kind: input, shape index: {}]   ;;  %s12864_s8 = inlined_call_operand.vmem [shape: f32[1,128], index: 8, kind: input, shape index: {}]   ;;  %s12865_s9 = inlined_call_operand.vmem [shape: f32[1,128], index: 9, kind: input, shape index: {}]   ;;  %s12866_s13 = inlined_call_operand.vmem [shape: f32[2,64,128], index: 13, kind: output, shape index: {}]  }
   0x1   :  { %7964 = vset.pattern.permute.xlu1 %v12880_v0  ;;  %4042 = vst [vmem:[#allocation4] sm:$0xf] %v12880_v0  ;;  %4043 = vst [vmem:[#allocation4 + $0x4] sm:$0xf] %v12880_v0  ;;  %7963 = vset.pattern.permute.xlu0 %v12880_v0  ;;  %v107_v1 = vld [vmem:[%s12853_s3] sm:$0xff]  ;;  %v108_v3 = vld [vmem:[%s12853_s3 + $0x8] sm:$0xff] }
   0x2   :  { %4044 = vst [vmem:[#allocation4 + $0x58] sm:$0xf] %v12880_v0  ;;  %4045 = vst [vmem:[#allocation4 + $0x5c] sm:$0xf] %v12880_v0  ;;  %v67_v2 = vld [vmem:[%s12854_s2] sm:$0xff]  ;;  %vm127_vm1 = vcmp.gt.f32.partialorder %v107_v1, 0.5  ;;  %3497 = vmatprep.subr.bf16.mxu0 %v12880_v0 }
   0x3   :  { %392 = vst.msk [vmem:[#allocation2 + $0x4] sm:$0xf] %vm12977_vm0, %v12880_v0  ;;  %391 = vst.msk [vmem:[#allocation2] sm:$0xf] %vm12977_vm0, %v12880_v0  ;;  %vm87_vm2 = vcmp.gt.f32.partialorder %v67_v2, 0.5  ;;  %vm128_vm3 = vcmp.gt.f32.partialorder %v108_v3, 0.5 }
   0x4   :  { %393 = vst.msk [vmem:[#allocation2 + $0x58] sm:$0xf] %vm12977_vm0, %v12880_v0  ;;  %394 = vst.msk [vmem:[#allocation2 + $0x5c] sm:$0xf] %vm12977_vm0, %v12880_v0  ;;  %v68_v4 = vld [vmem:[%s12854_s2 + $0x8] sm:$0xff]  ;;  %v1169_v5 = vsel %vm127_vm1, 1, %v12880_v0 }
   0x5   :  { %v416_v6 = vsel %vm87_vm2, 1, %v12880_v0  ;;  %vm88_vm4 = vcmp.gt.f32.partialorder %v68_v4, 0.5  ;;  %v109_v7 = vld [vmem:[%s12853_s3 + $0x10] sm:$0xff]  ;;  %1190 = vperm.xlu0 %7963, %v1169_v5   ;;  %v1170_v9 = vsel %vm128_vm3, 1, %v12880_v0  ;;  %v110_v11 = vld [vmem:[%s12853_s3 + $0x18] sm:$0xff]  ;;  %v111_v15 = vld [vmem:[%s12853_s3 + $0x20] sm:$0xff] }
   0x6   :  { %v69_v8 = vld [vmem:[%s12854_s2 + $0x10] sm:$0xff]  ;;  %437 = vperm.xlu1 %7964, %v416_v6   ;;  %v417_v10 = vsel %vm88_vm4, 1, %v12880_v0  ;;  %vm129_vm5 = vcmp.gt.f32.partialorder %v109_v7, 0.5  ;;  %v70_v12 = vld [vmem:[%s12854_s2 + $0x18] sm:$0xff]  ;;  %vm130_vm7 = vcmp.gt.f32.partialorder %v110_v11, 0.5  ;;  %v71_v16 = vld [vmem:[%s12854_s2 + $0x20] sm:$0xff] }
   0x7   :  { %vm89_vm6 = vcmp.gt.f32.partialorder %v69_v8, 0.5  ;;  %v1171_v13 = vsel %vm129_vm5, 1, %v12880_v0  ;;  %vm90_vm8 = vcmp.gt.f32.partialorder %v70_v12, 0.5  ;;  %v1172_v17 = vsel %vm130_vm7, 1, %v12880_v0  ;;  %v112_v19 = vld [vmem:[%s12853_s3 + $0x28] sm:$0xff]  ;;  %v113_v23 = vld [vmem:[%s12853_s3 + $0x30] sm:$0xff] }
   0x8   :  { %v418_v14 = vsel %vm89_vm6, 1, %v12880_v0  ;;  %v419_v18 = vsel %vm90_vm8, 1, %v12880_v0  ;;  %vm131_vm9 = vcmp.gt.f32.partialorder %v111_v15, 0.5  ;;  %vm91_vm10 = vcmp.gt.f32.partialorder %v71_v16, 0.5  ;;  %v72_v20 = vld [vmem:[%s12854_s2 + $0x28] sm:$0xff]  ;;  %v73_v24 = vld [vmem:[%s12854_s2 + $0x30] sm:$0xff] }
   0x9   :  { %1193 = vperm.xlu0 %7963, %v1170_v9   ;;  %v1173_v21 = vsel %vm131_vm9, 1, %v12880_v0  ;;  %v420_v22 = vsel %vm91_vm10, 1, %v12880_v0  ;;  %vm132_vm11 = vcmp.gt.f32.partialorder %v112_v19, 0.5  ;;  %vm92_vm12 = vcmp.gt.f32.partialorder %v72_v20, 0.5  ;;  %v114_v25 = vld [vmem:[%s12853_s3 + $0x38] sm:$0xff]  ;;  %v147_v29 = vld [vmem:[%s12855_s0] sm:$0xff] }
   0xa   :  { %440 = vperm.xlu1 %7964, %v417_v10   ;;  %v1174_v26 = vsel %vm132_vm11, 1, %v12880_v0  ;;  %v421_v27 = vsel %vm92_vm12, 1, %v12880_v0  ;;  %v74_v28 = vld [vmem:[%s12854_s2 + $0x38] sm:$0xff]  ;;  %v6929_v30 = vld [vmem:[%s12855_s0 + $0xa0] sm:$0xff]  ;;  %vm133_vm13 = vcmp.gt.f32.partialorder %v113_v23, 0.5  ;;  %vm93_vm14 = vcmp.gt.f32.partialorder %v73_v24, 0.5 }
   0xb   :  { %v188_v31 = vmax.f32 %v147_v29, %v6929_v30  ;;  %v6949_v32 = vld [vmem:[%s12855_s0 + $0x140] sm:$0xff]  ;;  %v148_v34 = vld [vmem:[%s12855_s0 + $0x8] sm:$0xff]  ;;  %v149_v41 = vld [vmem:[%s12855_s0 + $0x10] sm:$0xff]  ;;  %v1175_v42 = vsel %vm133_vm13, 1, %v12880_v0  ;;  %v422_v43 = vsel %vm93_vm14, 1, %v12880_v0  ;;  %vm134_vm15 = vcmp.gt.f32.partialorder %v114_v25, 0.5 }
   0xc   :  { %v6969_v33 = vld [vmem:[%s12855_s0 + $0x1e0] sm:$0xff]  ;;  %v6930_v36 = vld [vmem:[%s12855_s0 + $0xa8] sm:$0xff]  ;;  %v6931_v45 = vld [vmem:[%s12855_s0 + $0xb0] sm:$0xff]  ;;  %vm94_vm1 = vcmp.gt.f32.partialorder %v74_v28, 0.5  ;;  %v1176_v1 = vsel %vm134_vm15, 1, %v12880_v0  ;;  %s8133_s29 = smov 112  }
   0xd   :  { %1196 = vperm.xlu0 %7963, %v1171_v13   ;;  %v250_v35 = vmax.f32 %v6949_v32, %v6969_v33  ;;  %v6950_v37 = vld [vmem:[%s12855_s0 + $0x148] sm:$0xff]  ;;  %v189_v39 = vmax.f32 %v148_v34, %v6930_v36  ;;  %v6951_v46 = vld [vmem:[%s12855_s0 + $0x150] sm:$0xff]  ;;  %v115_v48 = vld [vmem:[%s12853_s3 + $0x40] sm:$0xff]  ;;  %v190_v51 = vmax.f32 %v149_v41, %v6931_v45  ;;  %v423_v2 = vsel %vm94_vm1, 1, %v12880_v0  ;;  %s8134_s23 = smov 32   ;;  %s8137_s24 = smov 96  }
   0xe   :  { %443 = vperm.xlu1 %7964, %v418_v14   ;;  %v6970_v38 = vld [vmem:[%s12855_s0 + $0x1e8] sm:$0xff]  ;;  %v6971_v47 = vld [vmem:[%s12855_s0 + $0x1f0] sm:$0xff]  ;;  %v75_v49 = vld [vmem:[%s12854_s2 + $0x40] sm:$0xff]  ;;  %vm135_vm2 = vcmp.gt.f32.partialorder %v115_v48, 0.5 }
   0xf   :  { %v251_v40 = vmax.f32 %v6950_v37, %v6970_v38  ;;  %v270_v44 = vmax.f32 %v188_v31, %v250_v35  ;;  %v252_v52 = vmax.f32 %v6951_v46, %v6971_v47  ;;  %v150_v53 = vld [vmem:[%s12855_s0 + $0x18] sm:$0xff]  ;;  %v151_v61 = vld [vmem:[%s12855_s0 + $0x20] sm:$0xff]  ;;  %v116_v3 = vld [vmem:[%s12853_s3 + $0x48] sm:$0xff]  ;;  %vm95_vm3 = vcmp.gt.f32.partialorder %v75_v49, 0.5 }
  0x10   :  { %v6932_v55 = vld [vmem:[%s12855_s0 + $0xb8] sm:$0xff]  ;;  %v6933_v62 = vld [vmem:[%s12855_s0 + $0xc0] sm:$0xff]  ;;  %v76_v4 = vld [vmem:[%s12854_s2 + $0x48] sm:$0xff]  ;;  %v424_v19 = vsel %vm95_vm3, 1, %v12880_v0  ;;  %vm136_vm4 = vcmp.gt.f32.partialorder %v116_v3, 0.5 }
  0x11   :  { %1199 = vperm.xlu0 %7963, %v1172_v17   ;;  %v271_v50 = vmax.f32 %v189_v39, %v251_v40  ;;  %v7341_v54 = vpack.c.bf16 %v270_v44, %v270_v44  ;;  %v6952_v56 = vld [vmem:[%s12855_s0 + $0x158] sm:$0xff]  ;;  %v272_v59 = vmax.f32 %v190_v51, %v252_v52  ;;  %v191_v60 = vmax.f32 %v150_v53, %v6932_v55  ;;  %v6953_v63 = vld [vmem:[%s12855_s0 + $0x160] sm:$0xff]  ;;  %v152_v8 = vld [vmem:[%s12855_s0 + $0x28] sm:$0xff] }
  0x12   :  { %446 = vperm.xlu1 %7964, %v419_v18   ;;  %v6972_v57 = vld [vmem:[%s12855_s0 + $0x1f8] sm:$0xff]  ;;  %v192_v6 = vmax.f32 %v151_v61, %v6933_v62  ;;  %v6973_v7 = vld [vmem:[%s12855_s0 + $0x200] sm:$0xff]  ;;  %v6934_v11 = vld [vmem:[%s12855_s0 + $0xc8] sm:$0xff]  ;;  %v1177_v18 = vsel %vm135_vm2, 1, %v12880_v0  ;;  %vm96_vm5 = vcmp.gt.f32.partialorder %v76_v4, 0.5 }
  0x13   :  { %v7342_v58 = vpack.c.bf16 %v271_v50, %v271_v50  ;;  %371 = vst.msk [vmem:[#allocation2 + $0x8] sm:$0xf] %vm12977_vm0, %v7341_v54  ;;  %v253_v5 = vmax.f32 %v6952_v56, %v6972_v57  ;;  %v7343_v9 = vpack.c.bf16 %v272_v59, %v272_v59  ;;  %v254_v10 = vmax.f32 %v6953_v63, %v6973_v7  ;;  %v6954_v12 = vld [vmem:[%s12855_s0 + $0x168] sm:$0xff]  ;;  %v117_v23 = vld [vmem:[%s12853_s3 + $0x50] sm:$0xff]  ;;  %v118_v28 = vld [vmem:[%s12853_s3 + $0x58] sm:$0xff] }
  0x14   :  { %v6974_v13 = vld [vmem:[%s12855_s0 + $0x208] sm:$0xff]  ;;  %v193_v15 = vmax.f32 %v152_v8, %v6934_v11  ;;  %v77_v24 = vld [vmem:[%s12854_s2 + $0x50] sm:$0xff]  ;;  %vm137_vm6 = vcmp.gt.f32.partialorder %v117_v23, 0.5  ;;  %v78_v29 = vld [vmem:[%s12854_s2 + $0x58] sm:$0xff]  ;;  %vm138_vm8 = vcmp.gt.f32.partialorder %v118_v28, 0.5 }
  0x15   :  { %1202 = vperm.xlu0 %7963, %v1173_v21   ;;  %372 = vst.msk [vmem:[#allocation2 + $0xc] sm:$0xf] %vm12977_vm0, %v7342_v58  ;;  %v273_v14 = vmax.f32 %v191_v60, %v253_v5  ;;  %v255_v16 = vmax.f32 %v6954_v12, %v6974_v13  ;;  %373 = vst.msk [vmem:[#allocation2 + $0x10] sm:$0xf] %vm12977_vm0, %v7343_v9  ;;  %v274_v17 = vmax.f32 %v192_v6, %v254_v10  ;;  %v119_v32 = vld [vmem:[%s12853_s3 + $0x60] sm:$0xff]  ;;  %v120_v36 = vld [vmem:[%s12853_s3 + $0x68] sm:$0xff] }
  0x16   :  { %449 = vperm.xlu1 %7964, %v420_v22   ;;  %vm97_vm7 = vcmp.gt.f32.partialorder %v77_v24, 0.5  ;;  %v1179_v30 = vsel %vm137_vm6, 1, %v12880_v0  ;;  %vm98_vm9 = vcmp.gt.f32.partialorder %v78_v29, 0.5  ;;  %v79_v33 = vld [vmem:[%s12854_s2 + $0x60] sm:$0xff]  ;;  %v1180_v34 = vsel %vm138_vm8, 1, %v12880_v0  ;;  %v80_v37 = vld [vmem:[%s12854_s2 + $0x68] sm:$0xff] }
  0x17   :  { %v7344_v20 = vpack.c.bf16 %v273_v14, %v273_v14  ;;  %v275_v21 = vmax.f32 %v193_v15, %v255_v16  ;;  %v7345_v22 = vpack.c.bf16 %v274_v17, %v274_v17  ;;  %v426_v31 = vsel %vm97_vm7, 1, %v12880_v0  ;;  %v121_v40 = vld [vmem:[%s12853_s3 + $0x70] sm:$0xff]  ;;  %v122_v44 = vld [vmem:[%s12853_s3 + $0x78] sm:$0xff]  ;;  %v123_v55 = vld [vmem:[%s12853_s3 + $0x80] sm:$0xff] }
  0x18   :  { %v427_v35 = vsel %vm98_vm9, 1, %v12880_v0  ;;  %vm139_vm10 = vcmp.gt.f32.partialorder %v119_v32, 0.5  ;;  %vm99_vm11 = vcmp.gt.f32.partialorder %v79_v33, 0.5  ;;  %vm140_vm12 = vcmp.gt.f32.partialorder %v120_v36, 0.5  ;;  %v81_v41 = vld [vmem:[%s12854_s2 + $0x70] sm:$0xff]  ;;  %v82_v47 = vld [vmem:[%s12854_s2 + $0x78] sm:$0xff] }
  0x19   :  { %1205 = vperm.xlu0 %7963, %v1174_v26   ;;  %374 = vst.msk [vmem:[#allocation2 + $0x14] sm:$0xf] %vm12977_vm0, %v7344_v20  ;;  %v7346_v25 = vpack.c.bf16 %v275_v21, %v275_v21  ;;  %375 = vst.msk [vmem:[#allocation2 + $0x18] sm:$0xf] %vm12977_vm0, %v7345_v22  ;;  %v1178_v26 = vsel %vm136_vm4, 1, %v12880_v0  ;;  %v1181_v38 = vsel %vm139_vm10, 1, %v12880_v0 }
  0x1a   :  { %452 = vperm.xlu1 %7964, %v421_v27   ;;  %v425_v27 = vsel %vm96_vm5, 1, %v12880_v0  ;;  %v428_v39 = vsel %vm99_vm11, 1, %v12880_v0  ;;  %vm100_vm13 = vcmp.gt.f32.partialorder %v80_v37, 0.5  ;;  %vm141_vm14 = vcmp.gt.f32.partialorder %v121_v40, 0.5  ;;  %v153_v45 = vld [vmem:[%s12855_s0 + $0x30] sm:$0xff]  ;;  %v83_v56 = vld [vmem:[%s12854_s2 + $0x80] sm:$0xff] }
  0x1b   :  { %376 = vst.msk [vmem:[#allocation2 + $0x1c] sm:$0xf] %vm12977_vm0, %v7346_v25  ;;  %vm101_vm15 = vcmp.gt.f32.partialorder %v81_v41, 0.5  ;;  %v6935_v46 = vld [vmem:[%s12855_s0 + $0xd0] sm:$0xff]  ;;  %v1183_v52 = vsel %vm141_vm14, 1, %v12880_v0  ;;  %vm142_vm1 = vcmp.gt.f32.partialorder %v122_v44, 0.5 }
  0x1c   :  { %v194_v48 = vmax.f32 %v153_v45, %v6935_v46  ;;  %v6955_v49 = vld [vmem:[%s12855_s0 + $0x170] sm:$0xff]  ;;  %v430_v53 = vsel %vm101_vm15, 1, %v12880_v0  ;;  %vm102_vm2 = vcmp.gt.f32.partialorder %v82_v47, 0.5  ;;  %v1184_v58 = vsel %vm142_vm1, 1, %v12880_v0  ;;  %v124_v60 = vld [vmem:[%s12853_s3 + $0x88] sm:$0xff]  ;;  %v154_v3 = vld [vmem:[%s12855_s0 + $0x38] sm:$0xff] }
  0x1d   :  { %1208 = vperm.xlu0 %7963, %v1175_v42   ;;  %v1182_v42 = vsel %vm140_vm12, 1, %v12880_v0  ;;  %v6975_v50 = vld [vmem:[%s12855_s0 + $0x210] sm:$0xff]  ;;  %v431_v59 = vsel %vm102_vm2, 1, %v12880_v0  ;;  %vm143_vm3 = vcmp.gt.f32.partialorder %v123_v55, 0.5  ;;  %vm103_vm4 = vcmp.gt.f32.partialorder %v83_v56, 0.5  ;;  %v84_v61 = vld [vmem:[%s12854_s2 + $0x88] sm:$0xff] }
  0x1e   :  { %455 = vperm.xlu1 %7964, %v422_v43   ;;  %v429_v43 = vsel %vm100_vm13, 1, %v12880_v0  ;;  %v256_v51 = vmax.f32 %v6955_v49, %v6975_v50  ;;  %v1185_v62 = vsel %vm143_vm3, 1, %v12880_v0  ;;  %v432_v63 = vsel %vm103_vm4, 1, %v12880_v0  ;;  %v6936_v4 = vld [vmem:[%s12855_s0 + $0xd8] sm:$0xff]  ;;  %v157_v10 = vld [vmem:[%s12855_s0 + $0x50] sm:$0xff]  ;;  %v6937_v36 = vld [vmem:[%s12855_s0 + $0xe0] sm:$0xff] }
  0x1f   :  { %vm144_vm5 = vcmp.gt.f32.partialorder %v124_v60, 0.5  ;;  %vm104_vm6 = vcmp.gt.f32.partialorder %v84_v61, 0.5  ;;  %v6956_v5 = vld [vmem:[%s12855_s0 + $0x178] sm:$0xff]  ;;  %v195_v8 = vmax.f32 %v154_v3, %v6936_v4  ;;  %v6939_v11 = vld [vmem:[%s12855_s0 + $0xf0] sm:$0xff]  ;;  %v1028_v28 = vld [vmem:[#allocation2 + $0x8] sm:$0xf] }
  0x20   :  { %v276_v54 = vmax.f32 %v194_v48, %v256_v51  ;;  %v1186_v6 = vsel %vm144_vm5, 1, %v12880_v0  ;;  %v433_v7 = vsel %vm104_vm6, 1, %v12880_v0  ;;  %v6976_v9 = vld [vmem:[%s12855_s0 + $0x218] sm:$0xff]  ;;  %v6959_v12 = vld [vmem:[%s12855_s0 + $0x190] sm:$0xff]  ;;  %v198_v16 = vmax.f32 %v157_v10, %v6939_v11  ;;  %v6957_v37 = vld [vmem:[%s12855_s0 + $0x180] sm:$0xff] }
  0x21   :  { %1211 = vperm.xlu0 %7963, %v1176_v1   ;;  %v125_v1 = vld [vmem:[%s12853_s3 + $0x90] sm:$0xff]  ;;  %v257_v13 = vmax.f32 %v6956_v5, %v6976_v9  ;;  %v126_v14 = vld [vmem:[%s12853_s3 + $0x98] sm:$0xff]  ;;  %v6977_v41 = vld [vmem:[%s12855_s0 + $0x220] sm:$0xff]  ;;  %vm800_vm4 = vsmask.f32 256  ;;  %s8136_s3 = smov 48  }
  0x22   :  { %458 = vperm.xlu1 %7964, %v423_v2   ;;  %v7347_v57 = vpack.c.bf16 %v276_v54, %v276_v54  ;;  %v85_v2 = vld [vmem:[%s12854_s2 + $0x90] sm:$0xff]  ;;  %vm145_vm7 = vcmp.gt.f32.partialorder %v125_v1, 0.5  ;;  %v86_v15 = vld [vmem:[%s12854_s2 + $0x98] sm:$0xff]  ;;  %vm146_vm9 = vcmp.gt.f32.partialorder %v126_v14, 0.5  ;;  %v2877_v46 = vld [vmem:[#allocation2 + $0xc] sm:$0xf] }
  0x23   :  { %vm105_vm8 = vcmp.gt.f32.partialorder %v85_v2, 0.5  ;;  %v6979_v17 = vld [vmem:[%s12855_s0 + $0x230] sm:$0xff]  ;;  %v1187_v20 = vsel %vm145_vm7, 1, %v12880_v0  ;;  %vm106_vm10 = vcmp.gt.f32.partialorder %v86_v15, 0.5  ;;  %v1188_v25 = vsel %vm146_vm9, 1, %v12880_v0  ;;  %v158_v29 = vld [vmem:[%s12855_s0 + $0x58] sm:$0xff] }
  0x24   :  { %377 = vst.msk [vmem:[#allocation2 + $0x20] sm:$0xf] %vm12977_vm0, %v7347_v57  ;;  %v434_v21 = vsel %vm105_vm8, 1, %v12880_v0  ;;  %v6980_v33 = vld [vmem:[%s12855_s0 + $0x238] sm:$0xff]  ;;  %v2878_v47 = vld [vmem:[#allocation2 + $0x10] sm:$0xf] }
  0x25   :  { %1214 = vperm.xlu0 %7963, %v1177_v18   ;;  %v260_v18 = vmax.f32 %v6959_v12, %v6979_v17  ;;  %v156_v49 = vld [vmem:[%s12855_s0 + $0x48] sm:$0xff]  ;;  %v1030_v56 = vld [vmem:[#allocation2 + $0x10] sm:$0xf]  ;;  %v6941_v60 = vld [vmem:[%s12855_s0 + $0x100] sm:$0xff]  ;;  %vm801_vm5 = vsmask.f32 4368 }
  0x26   :  { %461 = vperm.xlu1 %7964, %v424_v19   ;;  %v277_v19 = vmax.f32 %v195_v8, %v257_v13  ;;  %v6938_v50 = vld [vmem:[%s12855_s0 + $0xe8] sm:$0xff]  ;;  %v6961_v1 = vld [vmem:[%s12855_s0 + $0x1a0] sm:$0xff]  ;;  %v2879_v5 = vld [vmem:[#allocation2 + $0x14] sm:$0xf]  ;;  %s8135_s2 = smov 80  }
  0x27   :  { %v280_v22 = vmax.f32 %v198_v16, %v260_v18  ;;  %v6958_v51 = vld [vmem:[%s12855_s0 + $0x188] sm:$0xff]  ;;  %v6981_v2 = vld [vmem:[%s12855_s0 + $0x240] sm:$0xff]  ;;  %v1031_v8 = vld [vmem:[#allocation2 + $0x14] sm:$0xf] }
  0x28   :  { %v7348_v23 = vpack.c.bf16 %v277_v19, %v277_v19  ;;  %v1029_v55 = vld [vmem:[#allocation2 + $0xc] sm:$0xf]  ;;  %v262_v3 = vmax.f32 %v6961_v1, %v6981_v2  ;;  %v1032_v9 = vld [vmem:[#allocation2 + $0x18] sm:$0xf]  ;;  %v2127_v13 = vld [vmem:[#allocation2 + $0x1c] sm:$0xf] }
  0x29   :  { %1217 = vperm.xlu0 %7963, %v1178_v26   ;;  %v7351_v24 = vpack.c.bf16 %v280_v22, %v280_v22  ;;  %v435_v26 = vsel %vm106_vm10, 1, %v12880_v0  ;;  %v2126_v10 = vld [vmem:[#allocation2 + $0x18] sm:$0xf]  ;;  %v160_v11 = vld [vmem:[%s12855_s0 + $0x68] sm:$0xff]  ;;  %vm8638_vm8 = vmor %vm800_vm4, %vm801_vm5 }
  0x2a   :  { %464 = vperm.xlu1 %7964, %v425_v27   ;;  %378 = vst.msk [vmem:[#allocation2 + $0x24] sm:$0xf] %vm12977_vm0, %v7348_v23  ;;  %v1027_v27 = vld [vmem:[#allocation2 + $0x4] sm:$0xf]  ;;  %v6942_v12 = vld [vmem:[%s12855_s0 + $0x108] sm:$0xff]  ;;  %v6963_v23 = vld [vmem:[%s12855_s0 + $0x1b0] sm:$0xff] }
  0x2b   :  { %381 = vst.msk [vmem:[#allocation2 + $0x30] sm:$0xf] %vm12977_vm0, %v7351_v24  ;;  %v201_v14 = vmax.f32 %v160_v11, %v6942_v12  ;;  %v6962_v15 = vld [vmem:[%s12855_s0 + $0x1a8] sm:$0xff]  ;;  %v6983_v24 = vld [vmem:[%s12855_s0 + $0x250] sm:$0xff] }
  0x2c   :  { %v6982_v16 = vld [vmem:[%s12855_s0 + $0x248] sm:$0xff] }
  0x2d   :  { %1220 = vperm.xlu0 %7963, %v1179_v30   ;;  %v6940_v30 = vld [vmem:[%s12855_s0 + $0xf8] sm:$0xff]  ;;  %v263_v17 = vmax.f32 %v6962_v15, %v6982_v16  ;;  %v1149_v1 = vld [vmem:[#allocation2 + $0x8] sm:$0xf] }
  0x2e   :  { %467 = vperm.xlu1 %7964, %v426_v31   ;;  %v6960_v31 = vld [vmem:[%s12855_s0 + $0x198] sm:$0xff]  ;;  %v199_v32 = vmax.f32 %v158_v29, %v6940_v30 }
  0x2f   :  { %v283_v18 = vmax.f32 %v201_v14, %v263_v17 }
  0x31   :  { %1223 = vperm.xlu0 %7963, %v1180_v34   ;;  %v155_v34 = vld [vmem:[%s12855_s0 + $0x40] sm:$0xff]  ;;  %v7354_v19 = vpack.c.bf16 %v283_v18, %v283_v18 }
  0x32   :  { %470 = vperm.xlu1 %7964, %v427_v35   ;;  %v261_v35 = vmax.f32 %v6960_v31, %v6980_v33  ;;  %v196_v40 = vmax.f32 %v155_v34, %v6937_v36 }
  0x33   :  { %384 = vst.msk [vmem:[#allocation2 + $0x3c] sm:$0xf] %vm12977_vm0, %v7354_v19 }
  0x35   :  { %1226 = vperm.xlu0 %7963, %v1181_v38   ;;  %v2122_v38 = vld [vmem:[#allocation2 + $0x8] sm:$0xf] }
  0x36   :  { %473 = vperm.xlu1 %7964, %v428_v39   ;;  %v2123_v39 = vld [vmem:[#allocation2 + $0xc] sm:$0xf] }
  0x39   :  { %1229 = vperm.xlu0 %7963, %v1182_v42   ;;  %v281_v42 = vmax.f32 %v199_v32, %v261_v35 }
  0x3a   :  { %476 = vperm.xlu1 %7964, %v429_v43   ;;  %v258_v43 = vmax.f32 %v6957_v37, %v6977_v41 }
  0x3b   :  { %v7352_v44 = vpack.c.bf16 %v281_v42, %v281_v42 }
  0x3c   :  { %v278_v45 = vmax.f32 %v196_v40, %v258_v43 }
  0x3d   :  { %1232 = vperm.xlu0 %7963, %v1183_v52   ;;  %382 = vst.msk [vmem:[#allocation2 + $0x34] sm:$0xf] %vm12977_vm0, %v7352_v44  ;;  %v197_v52 = vmax.f32 %v156_v49, %v6938_v50 }
  0x3e   :  { %479 = vperm.xlu1 %7964, %v430_v53   ;;  %v7349_v48 = vpack.c.bf16 %v278_v45, %v278_v45  ;;  %v6978_v53 = vld [vmem:[%s12855_s0 + $0x228] sm:$0xff] }
  0x3f   :  { %v259_v54 = vmax.f32 %v6958_v51, %v6978_v53 }
  0x40   :  { %379 = vst.msk [vmem:[#allocation2 + $0x28] sm:$0xf] %vm12977_vm0, %v7349_v48  ;;  %v1148_v48 = vld [vmem:[#allocation2 + $0x4] sm:$0xf] }
  0x41   :  { %1235 = vperm.xlu0 %7963, %v1184_v58   ;;  %v279_v57 = vmax.f32 %v197_v52, %v259_v54  ;;  %v2124_v58 = vld [vmem:[#allocation2 + $0x10] sm:$0xf] }
  0x42   :  { %482 = vperm.xlu1 %7964, %v431_v59   ;;  %v159_v59 = vld [vmem:[%s12855_s0 + $0x60] sm:$0xff] }
  0x43   :  { %v7350_v61 = vpack.c.bf16 %v279_v57, %v279_v57 }
  0x45   :  { %1238 = vperm.xlu0 %7963, %v1185_v62   ;;  %v2125_v62 = vld [vmem:[#allocation2 + $0x14] sm:$0xf]  ;;  %380 = vst.msk [vmem:[#allocation2 + $0x2c] sm:$0xf] %vm12977_vm0, %v7350_v61 }
  0x46   :  { %485 = vperm.xlu1 %7964, %v432_v63   ;;  %v200_v63 = vmax.f32 %v159_v59, %v6941_v60 }
  0x48   :  { %v282_v4 = vmax.f32 %v200_v63, %v262_v3 }
  0x49   :  { %1241 = vperm.xlu0 %7963, %v1186_v6   ;;  %v2880_v6 = vld [vmem:[#allocation2 + $0x18] sm:$0xf] }
  0x4a   :  { %488 = vperm.xlu1 %7964, %v433_v7   ;;  %v7353_v7 = vpack.c.bf16 %v282_v4, %v282_v4 }
  0x4c   :  { %383 = vst.msk [vmem:[#allocation2 + $0x38] sm:$0xf] %vm12977_vm0, %v7353_v7 }
  0x4d   :  { %1244 = vperm.xlu0 %7963, %v1187_v20   ;;  %v161_v20 = vld [vmem:[%s12855_s0 + $0x70] sm:$0xff] }
  0x4e   :  { %491 = vperm.xlu1 %7964, %v434_v21   ;;  %v6943_v21 = vld [vmem:[%s12855_s0 + $0x110] sm:$0xff] }
  0x4f   :  { %v202_v22 = vmax.f32 %v161_v20, %v6943_v21 }
  0x51   :  { %1247 = vperm.xlu0 %7963, %v1188_v25   ;;  %v264_v25 = vmax.f32 %v6963_v23, %v6983_v24 }
  0x52   :  { %494 = vperm.xlu1 %7964, %v435_v26  }
  0x53   :  { %v284_v26 = vmax.f32 %v202_v22, %v264_v25  ;;  %v2244_v22 = vld [vmem:[#allocation2 + $0xc] sm:$0xf] }
  0x55   :  { %1067 = vrot.lane.b32.xlu0 %v1027_v27, %s8131_s15  ;;  %v7355_v27 = vpack.c.bf16 %v284_v26, %v284_v26 }
  0x56   :  { %1069 = vrot.lane.b32.xlu1 %v1028_v28, %s8131_s15 }
  0x57   :  { %385 = vst.msk [vmem:[#allocation2 + $0x40] sm:$0xf] %vm12977_vm0, %v7355_v27  ;;  %v47_v27 = vld [vmem:[%s12857_s1] sm:$0xff] }
  0x59   :  { %2162 = vrot.lane.b32.xlu0 %v2122_v38, %s8132_s22  ;;  %v2998_v38 = vld [vmem:[#allocation2 + $0xc] sm:$0xf] }
  0x5a   :  { %2164 = vrot.lane.b32.xlu1 %v2123_v39, %s8132_s22 }
  0x5d   :  { %2917 = vrot.lane.b32.xlu0 %v2877_v46, %s8133_s29 }
  0x5e   :  { %2919 = vrot.lane.b32.xlu1 %v2878_v47, %s8133_s29 }
  0x61   :  { %1071 = vrot.lane.b32.xlu0 %v1029_v55, %s8131_s15 }
  0x62   :  { %1073 = vrot.lane.b32.xlu1 %v1030_v56, %s8131_s15 }
  0x65   :  { %2166 = vrot.lane.b32.xlu0 %v2124_v58, %s8132_s22 }
  0x66   :  { %2168 = vrot.lane.b32.xlu1 %v2125_v62, %s8132_s22 }
  0x69   :  { %2921 = vrot.lane.b32.xlu0 %v2879_v5, %s8133_s29  ;;  %v2999_v5 = vld [vmem:[#allocation2 + $0x10] sm:$0xf] }
  0x6a   :  { %2923 = vrot.lane.b32.xlu1 %v2880_v6, %s8133_s29  ;;  %v2243_v6 = vld [vmem:[#allocation2 + $0x8] sm:$0xf] }
  0x6d   :  { %1075 = vrot.lane.b32.xlu0 %v1031_v8, %s8131_s15 }
  0x6e   :  { %1077 = vrot.lane.b32.xlu1 %v1032_v9, %s8131_s15 }
  0x71   :  { %2170 = vrot.lane.b32.xlu0 %v2126_v10, %s8132_s22 }
  0x72   :  { %2172 = vrot.lane.b32.xlu1 %v2127_v13, %s8132_s22 }
  0x80   :  { %v8597_v28 = vpop.permute.xlu0 %1190 }
  0x81   :  { %13054 = vst [vmem:[#allocation5_spill] sm:$0xff] %v8597_v28  ;;  %vm12869_vm11 = vcmp.eq.s32.totalorder %v8597_v28, 1  ;;  %v8613_v35 = vpop.permute.xlu1 %437  ;;  %v3003_v28 = vld [vmem:[#allocation2 + $0x20] sm:$0xf] }
  0x82   :  { %vm1269_vm12 = vmpackc.low %vm12869_vm11, %vm12869_vm11  ;;  %13056 = vst [vmem:[#allocation7_spill] sm:$0xff] %v8613_v35  ;;  %vm12878_vm1 = vcmp.eq.s32.totalorder %v8613_v35, 1 }
  0x83   :  { %v1289_v29 = vsel %vm1269_vm12, 65537, %v12880_v0  ;;  %vm516_vm2 = vmpackc.low %vm12878_vm1, %vm12878_vm1  ;;  %vm556_vm12 = vsmask.f32 3328 }
  0x84   :  { %v1310_v30 = vshrl.u32 %v1289_v29, 16  ;;  %v8605_v31 = vpop.permute.xlu0 %1193  ;;  %v1313_v33 = vshll.u32 %v1289_v29, 16  ;;  %v536_v46 = vsel %vm516_vm2, 65537, %v12880_v0 }
  0x85   :  { %13055 = vst [vmem:[#allocation6_spill] sm:$0xff] %v8605_v31  ;;  %vm12873_vm13 = vcmp.eq.s32.totalorder %v8605_v31, 1  ;;  %v8627_v42 = vpop.permute.xlu1 %440  ;;  %v560_v50 = vshll.u32 %v536_v46, 16  ;;  %v563_v51 = vshrl.u32 %v536_v46, 16 }
  0x86   :  { %v1312_v32 = vrot.slane %v1310_v30, 7  ;;  %vm1270_vm14 = vmpackc.low %vm12873_vm13, %vm12873_vm13  ;;  %13058 = vst [vmem:[#allocation9_spill] sm:$0xff] %v8627_v42  ;;  %vm12876_vm6 = vcmp.eq.s32.totalorder %v8627_v42, 1 }
  0x87   :  { %v1290_v36 = vsel %vm1270_vm14, 65537, %v12880_v0  ;;  %vm517_vm9 = vmpackc.low %vm12876_vm6, %vm12876_vm6  ;;  %v8654_v61 = vrot.slane %v560_v50, 5  ;;  %v565_v62 = vrot.slane %v563_v51, 4  ;;  %vm557_vm14 = vsmask.f32 7440 }
  0x88   :  { %v8611_v34 = vor.u32 %v1313_v33, %v1312_v32  ;;  %v8616_v37 = vpop.permute.xlu0 %1196  ;;  %v1318_v39 = vshrl.u32 %v1290_v36, 16  ;;  %v1321_v47 = vshll.u32 %v1290_v36, 16  ;;  %v1316_v53 = vrot.slane %v1312_v32, 4  ;;  %vm8672_vm5 = vmor %vm556_vm12, %vm557_vm14 }
  0x89   :  { %13057 = vst [vmem:[#allocation8_spill] sm:$0xff] %v8616_v37  ;;  %vm12868_vm3 = vcmp.eq.s32.totalorder %v8616_v37, 1  ;;  %v8650_v59 = vpop.permute.xlu1 %443  ;;  %v537_v63 = vsel %vm517_vm9, 65537, %v12880_v0  ;;  %v566_v16 = vor.u32 %v565_v62, %v8654_v61  ;;  %vm758_vm9 = vcmp.ne.s16.totalorder %v8654_v61, 0 }
  0x8a   :  { %vm1488_vm15 = vcmp.ne.s16.totalorder %v8611_v34, 0  ;;  %v8625_v41 = vrot.slane %v1318_v39, 7  ;;  %vm1271_vm7 = vmpackc.low %vm12868_vm3, %vm12868_vm3  ;;  %13063 = vst [vmem:[#allocation12_spill] sm:$0xff] %v8650_v59  ;;  %vm12897_vm2 = vcmp.eq.s32.totalorder %v8650_v59, 1  ;;  %v569_v7 = vshll.u32 %v537_v63, 16 }
  0x8b   :  { %v3019_v40 = vsel %vm1488_vm15, %v2998_v38, 0  ;;  %v1509_v56 = vsel %vm1488_vm15, %v1148_v48, 0  ;;  %v1291_v57 = vsel %vm1271_vm7, 65537, %v12880_v0  ;;  %v573_v8 = vshrl.u32 %v537_v63, 16  ;;  %vm518_vm4 = vmpackc.low %vm12897_vm2, %vm12897_vm2 }
  0x8c   :  { %v8630_v43 = vpop.permute.xlu0 %1199  ;;  %v3041_v44 = vshrl.u32 %v3019_v40, 16  ;;  %v3044_v45 = vshll.u32 %v3019_v40, 16  ;;  %v1323_v49 = vor.u32 %v1321_v47, %v8625_v41  ;;  %v1327_v3 = vshrl.u32 %v1291_v57, 16 }
  0x8d   :  { %13059 = vst [vmem:[#allocation10_spill] sm:$0xff] %v8630_v43  ;;  %v1531_v4 = vshrl.u32 %v1509_v56, 16  ;;  %v1534_v12 = vshll.u32 %v1509_v56, 16  ;;  %v2264_v19 = vsel %vm1488_vm15, %v2243_v6, 0  ;;  %v571_v23 = vrot.slane %v569_v7, 5 }
  0x8e   :  { %v3043_v54 = vrot.slane %v3041_v44, 4  ;;  %v3046_v55 = vrot.slane %v3044_v45, 5  ;;  %v1324_v60 = vsel %vm8638_vm8, %v1316_v53, %v1323_v49  ;;  %v8663_v17 = vrot.slane %v1327_v3, 7 }
  0x8f   :  { %vm1489_vm10 = vcmp.ne.s16.totalorder %v1324_v60, 0  ;;  %v1533_v11 = vrot.slane %v1531_v4, 4  ;;  %v1536_v20 = vrot.slane %v1534_v12, 5  ;;  %v575_v24 = vrot.slane %v573_v8, 4 }
  0x90   :  { %v8648_v58 = vpop.permute.xlu0 %1202  ;;  %v3047_v2 = vor.u32 %v3046_v55, %v3043_v54  ;;  %v1510_v9 = vsel %vm1489_vm10, %v1149_v1, 0  ;;  %v3020_v14 = vsel %vm1489_vm10, %v2999_v5, 0  ;;  %v1330_v25 = vshll.u32 %v1291_v57, 16  ;;  %v3000_v57 = vld [vmem:[#allocation2 + $0x14] sm:$0xf] }
  0x91   :  { %13062 = vst [vmem:[#allocation11_spill] sm:$0xff] %v8648_v58  ;;  %v1540_v13 = vshll.u32 %v1510_v9, 16  ;;  %v3050_v18 = vshll.u32 %v3020_v14, 16  ;;  %v3054_v21 = vshrl.u32 %v3020_v14, 16  ;;  %v8677_v29 = vsel %vm518_vm4, 65537, %v12880_v0 }
  0x92   :  { %v3048_v15 = vrot.slane %v3047_v2, 4  ;;  %v1537_v30 = vor.u32 %v1536_v20, %v1533_v11  ;;  %v567_v33 = vrot.slane %v566_v16, 4  ;;  %v1332_v34 = vor.u32 %v1330_v25, %v8663_v17  ;;  %v1816_v14 = vld [vmem:[#allocation2 + $0x8] sm:$0xf]  ;;  %v8732_v20 = vpop.permute.xlu1 %446 }
  0x93   :  { %v3052_v26 = vrot.slane %v3050_v18, 5  ;;  %v1542_v32 = vrot.slane %v1540_v13, 5  ;;  %v8683_v38 = vsel %vm1489_vm10, %v2244_v22, 0  ;;  %v3056_v40 = vrot.slane %v3054_v21, 4  ;;  %13071 = vst [vmem:[#allocation16_spill] sm:$0xff] %v8732_v20 }
  0x94   :  { %v8659_v10 = vpop.permute.xlu0 %1205  ;;  %v1538_v39 = vrot.slane %v1537_v30, 4  ;;  %v2286_v45 = vshrl.u32 %v2264_v19, 16  ;;  %v2289_v46 = vshll.u32 %v2264_v19, 16  ;;  %v1325_v47 = vrot.slane %v8625_v41, 4  ;;  %v1150_v41 = vld [vmem:[#allocation2 + $0xc] sm:$0xf] }
  0x95   :  { %13064 = vst [vmem:[#allocation13_spill] sm:$0xff] %v8659_v10  ;;  %v3053_v36 = vsel %vm8672_vm5, %v3048_v15, %v3052_v26  ;;  %v576_v48 = vor.u32 %v575_v24, %v571_v23  ;;  %v579_v49 = vshll.u32 %v8677_v29, 16  ;;  %v1544_v50 = vshrl.u32 %v1510_v9, 16  ;;  %v1815_v9 = vld [vmem:[#allocation2 + $0x4] sm:$0x8] }
  0x96   :  { %3264 = vst.msk [vmem:[#allocation3 + $0x4] sm:$0xf] %vm12977_vm0, %v3053_v36  ;;  %v1543_v51 = vsel %vm8672_vm5, %v1538_v39, %v1542_v32  ;;  %v2288_v53 = vrot.slane %v2286_v45, 4  ;;  %v2291_v54 = vrot.slane %v2289_v46, 5  ;;  %v2295_v55 = vshll.u32 %v8683_v38, 16 }
  0x97   :  { %v572_v56 = vsel %vm8672_vm5, %v567_v33, %v571_v23  ;;  %vm12867_vm15 = vcmp.eq.s32.totalorder %v8630_v43, 1  ;;  %1734 = vrot.lane.b32.xlu0 %v1543_v51, %s8134_s23  ;;  %v3057_v60 = vor.u32 %v3056_v40, %v3052_v26  ;;  %v8701_v1 = vsel %vm8638_vm8, %v1325_v47, %v1332_v34  ;;  %v1817_v39 = vld [vmem:[#allocation2 + $0xc] sm:$0xf] }
  0x98   :  { %v8686_v44 = vpop.permute.xlu0 %1208  ;;  %v2292_v62 = vor.u32 %v2291_v54, %v2288_v53  ;;  %v8697_v63 = vrot.slane %v2295_v55, 5  ;;  %v577_v2 = vrot.slane %v576_v48, 4  ;;  %v8703_v3 = vrot.slane %v579_v49, 5  ;;  %vm1272_vm12 = vmpackc.low %vm12867_vm15, %vm12867_vm15  ;;  %v2570_v53 = vld [vmem:[#allocation2 + $0x8] sm:$0x8] }
  0x99   :  { %13067 = vst [vmem:[#allocation14_spill] sm:$0xff] %v8686_v44  ;;  %vm1490_vm7 = vcmp.ne.s16.totalorder %v8701_v1, 0  ;;  %v1546_v4 = vrot.slane %v1544_v50, 4  ;;  %vm8717_vm10 = vcmp.ne.s16.totalorder %v572_v56, 0  ;;  %v3058_v15 = vrot.slane %v3057_v60, 4  ;;  %v164_v34 = vld [vmem:[%s12855_s0 + $0x88] sm:$0xff] }
  0x9a   :  { %v2293_v5 = vrot.slane %v2292_v62, 4  ;;  %v8708_v6 = vsel %vm1490_vm7, %v1150_v41, 0  ;;  %v8712_v7 = vsel %vm1490_vm7, %v3000_v57, 0  ;;  %v582_v19 = vsel %vm8672_vm5, %v577_v2, %v8703_v3  ;;  %v2571_v56 = vld [vmem:[#allocation2 + $0xc] sm:$0xf] }
  0x9b   :  { %v1547_v12 = vor.u32 %v1546_v4, %v1542_v32  ;;  %v1550_v13 = vshll.u32 %v8708_v6, 16  ;;  %v3060_v18 = vshll.u32 %v8712_v7, 16  ;;  %v1836_v24 = vsel %vm758_vm9, %v1815_v9, 0 }
  0x9c   :  { %v8714_v8 = vpop.permute.xlu0 %1211  ;;  %v2298_v16 = vsel %vm8672_vm5, %v2293_v5, %v8697_v63  ;;  %v1837_v25 = vsel %vm8717_vm10, %v1816_v14, 0  ;;  %v1292_v26 = vsel %vm1272_vm12, 65537, %v12880_v0  ;;  %v1858_v32 = vshrl.u32 %v1836_v24, 16 }
  0x9d   :  { %13068 = vst [vmem:[#allocation15_spill] sm:$0xff] %v8714_v8  ;;  %2489 = vrot.lane.b32.xlu0 %v2298_v16, %s8135_s2  ;;  %v1548_v21 = vrot.slane %v1547_v12, 4  ;;  %v8735_v22 = vrot.slane %v1550_v13, 5  ;;  %v8737_v23 = vrot.slane %v3060_v18, 5  ;;  %v1863_v33 = vshrl.u32 %v1837_v25, 16 }
  0x9e   :  { %vm8747_vm14 = vcmp.ne.s16.totalorder %v582_v19, 0  ;;  %vm12877_vm4 = vcmp.eq.s32.totalorder %v8732_v20, 1  ;;  %v1866_v46 = vshll.u32 %v1837_v25, 16  ;;  %v583_v47 = vshrl.u32 %v8677_v29, 16  ;;  %v1820_v20 = vld [vmem:[#allocation2 + $0x18] sm:$0xf] }
  0x9f   :  { %v1553_v30 = vsel %vm8672_vm5, %v1548_v21, %v8735_v22  ;;  %v3063_v36 = vsel %vm8672_vm5, %v3058_v15, %v8737_v23  ;;  %v1865_v45 = vrot.slane %v1863_v33, 7  ;;  %v1336_v48 = vshrl.u32 %v1292_v26, 16  ;;  %vm519_vm12 = vmpackc.low %vm12877_vm4, %vm12877_vm4  ;;  %v2245_v21 = vld [vmem:[#allocation2 + $0x10] sm:$0xf] }
  0xa0   :  { %1736 = vrot.lane.b32.xlu1 %v1553_v30, %s8134_s23  ;;  %v8756_v40 = vpop.permute.xlu0 %1214  ;;  %3265 = vst.msk [vmem:[#allocation3 + $0xc] sm:$0xf] %vm12977_vm0, %v3063_v36  ;;  %v7010_v49 = vrot.slane %v1858_v32, 11  ;;  %v1838_v51 = vsel %vm8747_vm14, %v1817_v39, 0  ;;  %v585_v41 = vrot.slane %v583_v47, 4  ;;  %v8773_v57 = vsel %vm519_vm12, 65537, %v12880_v0  ;;  %v8803_v36 = vpop.permute.xlu1 %449 }
  0xa1   :  { %13074 = vst [vmem:[#allocation17_spill] sm:$0xff] %v8756_v40  ;;  %v1868_v50 = vor.u32 %v1866_v46, %v1865_v45  ;;  %vm12871_vm15 = vcmp.eq.s32.totalorder %v8756_v40, 1  ;;  %v1872_v54 = vshrl.u32 %v1838_v51, 16  ;;  %vm12872_vm11 = vcmp.eq.s32.totalorder %v8648_v58, 1  ;;  %13078 = vst [vmem:[#allocation19_spill] sm:$0xff] %v8803_v36 }
  0xa2   :  { %vm1277_vm3 = vmpackc.low %vm12871_vm15, %vm12871_vm15  ;;  %v8777_v62 = vrot.slane %v1336_v48, 7  ;;  %v1875_v4 = vshll.u32 %v1838_v51, 16  ;;  %v2591_v5 = vsel %vm758_vm9, %v2570_v53, 0  ;;  %v2299_v9 = vshrl.u32 %v8683_v38, 16 }
  0xa3   :  { %v1869_v29 = vsel %vm8638_vm8, %v7010_v49, %v1868_v50  ;;  %v1297_v55 = vsel %vm1277_vm3, 65537, %v12880_v0  ;;  %v8779_v2 = vrot.slane %v1872_v54, 7  ;;  %v2592_v14 = vsel %vm8717_vm10, %v2571_v56, 0  ;;  %vm8799_vm3 = vmpackc.low %vm12872_vm11, %vm12872_vm11 }
  0xa4   :  { %2041 = vrot.lane.b32.xlu0 %v1869_v29, %s8136_s3  ;;  %v1381_v60 = vshrl.u32 %v1297_v55, 16  ;;  %v1384_v13 = vshll.u32 %v1297_v55, 16  ;;  %v1870_v15 = vrot.slane %v1865_v45, 4  ;;  %v2613_v18 = vshrl.u32 %v2591_v5, 16  ;;  %v8794_v38 = vpop.permute.xlu0 %1217  ;;  %v8836_v5 = vpop.permute.xlu1 %452 }
  0xa5   :  { %v1877_v16 = vor.u32 %v1875_v4, %v8779_v2  ;;  %v2618_v19 = vshrl.u32 %v2592_v14, 16  ;;  %v586_v24 = vor.u32 %v585_v41, %v8703_v3  ;;  %v1339_v25 = vshll.u32 %v1292_v26, 16  ;;  %13075 = vst [vmem:[#allocation18_spill] sm:$0xff] %v8794_v38  ;;  %13079 = vst [vmem:[#allocation20_spill] sm:$0xff] %v8836_v5 }
  0xa6   :  { %v8784_v12 = vrot.slane %v1381_v60, 7  ;;  %v589_v30 = vshll.u32 %v8773_v57, 16  ;;  %v3064_v39 = vshrl.u32 %v8712_v7, 16  ;;  %v2621_v45 = vshll.u32 %v2592_v14, 16  ;;  %v2572_v60 = vld [vmem:[#allocation2 + $0x10] sm:$0xf] }
  0xa7   :  { %v1878_v3 = vsel %vm8638_vm8, %v1870_v15, %v1877_v16  ;;  %v8808_v26 = vrot.slane %v2618_v19, 7  ;;  %v1341_v46 = vor.u32 %v1339_v25, %v8777_v62  ;;  %v1554_v47 = vshrl.u32 %v8708_v6, 16 }
  0xa8   :  { %v8792_v32 = vor.u32 %v1384_v13, %v8784_v12  ;;  %2043 = vrot.lane.b32.xlu1 %v1878_v3, %s8136_s3  ;;  %v8815_v48 = vsel %vm1490_vm7, %v2245_v21, 0  ;;  %v2301_v49 = vrot.slane %v2299_v9, 4  ;;  %v7011_v50 = vrot.slane %v2613_v18, 11  ;;  %v1151_v9 = vld [vmem:[#allocation2 + $0x10] sm:$0xf] }
  0xa9   :  { %v2623_v7 = vor.u32 %v2621_v45, %v8808_v26  ;;  %v2305_v51 = vshll.u32 %v8815_v48, 16  ;;  %vm12870_vm12 = vcmp.eq.s32.totalorder %v8794_v38, 1  ;;  %v1334_v53 = vrot.slane %v8663_v17, 4  ;;  %v3001_v21 = vld [vmem:[#allocation2 + $0x18] sm:$0xf] }
  0xaa   :  { %v1293_v6 = vsel %vm8799_vm3, 65537, %v12880_v0  ;;  %v2302_v29 = vor.u32 %v2301_v49, %v8697_v63  ;;  %vm1278_vm7 = vmpackc.low %vm12870_vm12, %vm12870_vm12  ;;  %v3066_v1 = vrot.slane %v3064_v39, 4  ;;  %v587_v4 = vrot.slane %v586_v24, 4 }
  0xab   :  { %v2624_v54 = vsel %vm8638_vm8, %v7011_v50, %v2623_v7  ;;  %v8830_v55 = vrot.slane %v2305_v51, 5  ;;  %v1298_v56 = vsel %vm1278_vm7, 65537, %v12880_v0  ;;  %v8834_v63 = vrot.slane %v589_v30, 5  ;;  %v8873_v7 = vpop.permute.xlu1 %455 }
  0xac   :  { %2796 = vrot.lane.b32.xlu0 %v2624_v54, %s8137_s24  ;;  %v2303_v17 = vrot.slane %v2302_v29, 4  ;;  %v1390_v41 = vshrl.u32 %v1298_v56, 16  ;;  %v8840_v13 = vsel %vm8638_vm8, %v1334_v53, %v1341_v46  ;;  %v1556_v14 = vrot.slane %v1554_v47, 4  ;;  %13080 = vst [vmem:[#allocation21_spill] sm:$0xff] %v8873_v7  ;;  %v8876_v29 = vpop.permute.xlu0 %1220 }
  0xad   :  { %v1345_v15 = vshrl.u32 %v1293_v6, 16  ;;  %v1393_v19 = vshll.u32 %v1298_v56, 16  ;;  %v3067_v24 = vor.u32 %v3066_v1, %v8737_v23  ;;  %vm1491_vm3 = vcmp.ne.s16.totalorder %v8840_v13, 0  ;;  %v3007_v23 = vld [vmem:[#allocation2 + $0x30] sm:$0xf]  ;;  %13081 = vst [vmem:[#allocation22_spill] sm:$0xff] %v8876_v29 }
  0xae   :  { %v2308_v16 = vsel %vm8672_vm5, %v2303_v17, %v8830_v55  ;;  %v8845_v18 = vrot.slane %v1390_v41, 7  ;;  %v1557_v25 = vor.u32 %v1556_v14, %v8735_v22  ;;  %v2593_v30 = vsel %vm8747_vm14, %v2572_v60, 0  ;;  %v1818_v14 = vld [vmem:[#allocation2 + $0x10] sm:$0xf] }
  0xaf   :  { %2491 = vrot.lane.b32.xlu1 %v2308_v16, %s8135_s2  ;;  %v593_v33 = vshrl.u32 %v8773_v57, 16  ;;  %v1388_v39 = vrot.slane %v8784_v12, 4  ;;  %v592_v45 = vsel %vm8672_vm5, %v587_v4, %v8834_v63  ;;  %vm12874_vm7 = vcmp.eq.s32.totalorder %v8803_v36, 1 }
  0xb0   :  { %v1395_v3 = vor.u32 %v1393_v19, %v8845_v18  ;;  %v8862_v46 = vsel %vm1491_vm3, %v1151_v9, 0  ;;  %v3022_v22 = vsel %vm1491_vm3, %v3001_v21, 0  ;;  %v1558_v12 = vrot.slane %v1557_v25, 4  ;;  %vm520_vm11 = vmpackc.low %vm12874_vm7, %vm12874_vm7 }
  0xb1   :  { %v1560_v47 = vshll.u32 %v8862_v46, 16  ;;  %v2627_v49 = vshrl.u32 %v2593_v30, 16  ;;  %v8871_v50 = vrot.slane %v1345_v15, 7  ;;  %v3068_v51 = vrot.slane %v3067_v24, 4 }
  0xb2   :  { %v8868_v57 = vsel %vm8638_vm8, %v1388_v39, %v1395_v3  ;;  %v3070_v53 = vshll.u32 %v3022_v22, 16  ;;  %vm8878_vm15 = vcmp.ne.s16.totalorder %v592_v45, 0  ;;  %v1348_v54 = vshll.u32 %v1293_v6, 16  ;;  %v8911_v45 = vpop.permute.xlu1 %458 }
  0xb3   :  { %vm1497_vm12 = vcmp.ne.s16.totalorder %v8868_v57, 0  ;;  %v8887_v17 = vrot.slane %v1560_v47, 5  ;;  %v3074_v9 = vshrl.u32 %v3022_v22, 16  ;;  %v8892_v16 = vrot.slane %v2627_v49, 7  ;;  %13084 = vst [vmem:[#allocation23_spill] sm:$0xff] %v8911_v45 }
  0xb4   :  { %v3028_v56 = vsel %vm1497_vm12, %v3007_v23, 0  ;;  %v3072_v4 = vrot.slane %v3070_v53, 5  ;;  %v2630_v6 = vshll.u32 %v2593_v30, 16  ;;  %vm12875_vm13 = vcmp.eq.s32.totalorder %v8876_v29, 1 }
  0xb5   :  { %v3130_v41 = vshll.u32 %v3028_v56, 16  ;;  %v3134_v60 = vshrl.u32 %v3028_v56, 16  ;;  %v1563_v15 = vsel %vm8672_vm5, %v1558_v12, %v8887_v17  ;;  %v595_v19 = vrot.slane %v593_v33, 4  ;;  %vm1279_vm7 = vmpackc.low %vm12875_vm13, %vm12875_vm13 }
  0xb6   :  { %v1350_v21 = vor.u32 %v1348_v54, %v8871_v50  ;;  %v8897_v24 = vsel %vm520_vm11, 65537, %v12880_v0  ;;  %v3073_v25 = vsel %vm8672_vm5, %v3068_v51, %v3072_v4  ;;  %1738 = vrot.lane.b32.xlu0 %v1563_v15, %s8134_s23  ;;  %v2625_v30 = vrot.slane %v8808_v26, 4 }
  0xb7   :  { %3266 = vst.msk [vmem:[#allocation3 + $0x14] sm:$0xf] %vm12977_vm0, %v3073_v25  ;;  %v2632_v33 = vor.u32 %v2630_v6, %v8892_v16  ;;  %v1299_v39 = vsel %vm1279_vm7, 65537, %v12880_v0  ;;  %v1839_v3 = vsel %vm8878_vm15, %v1818_v14, 0  ;;  %v8913_v23 = vrot.slane %v3130_v41, 5 }
  0xb8   :  { %v3136_v22 = vrot.slane %v3134_v60, 4  ;;  %v3076_v12 = vrot.slane %v3074_v9, 4  ;;  %v1399_v47 = vshrl.u32 %v1299_v39, 16  ;;  %v1343_v49 = vrot.slane %v8777_v62, 4  ;;  %v1152_v60 = vld [vmem:[#allocation2 + $0x14] sm:$0xf] }
  0xb9   :  { %v1564_v51 = vshrl.u32 %v8862_v46, 16  ;;  %v2633_v26 = vsel %vm8638_vm8, %v2625_v30, %v2632_v33  ;;  %v1881_v53 = vshrl.u32 %v1839_v3, 16  ;;  %v596_v54 = vor.u32 %v595_v19, %v8834_v63  ;;  %v3008_v25 = vld [vmem:[#allocation2 + $0x34] sm:$0xf] }
  0xba   :  { %v599_v56 = vshll.u32 %v8897_v24, 16  ;;  %2798 = vrot.lane.b32.xlu1 %v2633_v26, %s8137_s24  ;;  %v8922_v14 = vrot.slane %v1399_v47, 7  ;;  %v1402_v41 = vshll.u32 %v1299_v39, 16  ;;  %v1397_v9 = vrot.slane %v8845_v18, 4 }
  0xbb   :  { %v8925_v15 = vrot.slane %v1881_v53, 7  ;;  %v1884_v62 = vshll.u32 %v1839_v3, 16  ;;  %v8929_v46 = vsel %vm8638_vm8, %v1343_v49, %v1350_v21  ;;  %v3137_v6 = vor.u32 %v3136_v22, %v8913_v23  ;;  %v8941_v21 = vpop.permute.xlu1 %461  ;;  %v3002_v22 = vld [vmem:[#allocation2 + $0x1c] sm:$0xf]  ;;  %v8953_v49 = vpop.permute.xlu0 %1223 }
  0xbc   :  { %v3077_v63 = vor.u32 %v3076_v12, %v3072_v4  ;;  %v1404_v19 = vor.u32 %v1402_v41, %v8922_v14  ;;  %vm1492_vm11 = vcmp.ne.s16.totalorder %v8929_v46, 0  ;;  %v1879_v30 = vrot.slane %v8779_v2, 4  ;;  %13085 = vst [vmem:[#allocation24_spill] sm:$0xff] %v8941_v21  ;;  %13086 = vst [vmem:[#allocation25_spill] sm:$0xff] %v8953_v49 }
  0xbd   :  { %v1886_v33 = vor.u32 %v1884_v62, %v8925_v15  ;;  %v8938_v18 = vsel %vm1492_vm11, %v1152_v60, 0  ;;  %v1566_v39 = vrot.slane %v1564_v51, 4  ;;  %vm12888_vm7 = vcmp.eq.s32.totalorder %v8659_v10, 1  ;;  %v2247_v10 = vld [vmem:[#allocation2 + $0x18] sm:$0xf] }
  0xbe   :  { %v8945_v4 = vsel %vm8638_vm8, %v1397_v9, %v1404_v19  ;;  %v1570_v3 = vshll.u32 %v8938_v18, 16  ;;  %v597_v12 = vrot.slane %v596_v54, 4  ;;  %v8948_v2 = vrot.slane %v599_v56, 5  ;;  %vm1274_vm6 = vmpackc.low %vm12888_vm7, %vm12888_vm7 }
  0xbf   :  { %vm12919_vm13 = vcmp.ne.s16.totalorder %v8945_v4, 0  ;;  %v1887_v47 = vsel %vm8638_vm8, %v1879_v30, %v1886_v33  ;;  %v2309_v51 = vshrl.u32 %v8815_v48, 16  ;;  %v1567_v53 = vor.u32 %v1566_v39, %v8887_v17  ;;  %v2246_v17 = vld [vmem:[#allocation2 + $0x14] sm:$0xf]  ;;  %v8978_v30 = vpop.permute.xlu1 %464 }
  0xc0   :  { %v3029_v26 = vsel %vm12919_vm13, %v3008_v25, 0  ;;  %2045 = vrot.lane.b32.xlu0 %v1887_v47, %s8136_s3  ;;  %v8960_v41 = vrot.slane %v1570_v3, 5  ;;  %v3138_v54 = vrot.slane %v3137_v6, 4  ;;  %v3078_v56 = vrot.slane %v3077_v63, 4  ;;  %13087 = vst [vmem:[#allocation26_spill] sm:$0xff] %v8978_v30 }
  0xc1   :  { %v3140_v60 = vshll.u32 %v3029_v26, 16  ;;  %v8964_v9 = vsel %vm1492_vm11, %v3002_v22, 0  ;;  %v3144_v48 = vshrl.u32 %v3029_v26, 16  ;;  %v1568_v62 = vrot.slane %v1567_v53, 4 }
  0xc2   :  { %v3080_v19 = vshll.u32 %v8964_v9, 16  ;;  %vm12879_vm4 = vcmp.eq.s32.totalorder %v8953_v49, 1  ;;  %v603_v25 = vshrl.u32 %v8897_v24, 16  ;;  %v602_v63 = vsel %vm8672_vm5, %v597_v12, %v8948_v2 }
  0xc3   :  { %v3142_v6 = vrot.slane %v3140_v60, 5  ;;  %vm1280_vm1 = vmpackc.low %vm12879_vm4, %vm12879_vm4  ;;  %v1573_v33 = vsel %vm8672_vm5, %v1568_v62, %v8960_v41  ;;  %v8987_v24 = vsel %vm1274_vm6, 65537, %v12880_v0  ;;  %v8994_v12 = vsel %vm1491_vm3, %v2246_v17, 0 }
  0xc4   :  { %v8983_v39 = vrot.slane %v3080_v19, 5  ;;  %v1300_v3 = vsel %vm1280_vm1, 65537, %v12880_v0  ;;  %1740 = vrot.lane.b32.xlu1 %v1573_v33, %s8134_s23  ;;  %vm12895_vm4 = vcmp.eq.s32.totalorder %v8836_v5, 1  ;;  %v3146_v26 = vrot.slane %v3144_v48, 4  ;;  %v1819_v19 = vld [vmem:[#allocation2 + $0x14] sm:$0xf] }
  0xc5   :  { %v3143_v22 = vsel %vm8672_vm5, %v3138_v54, %v3142_v6  ;;  %v1408_v47 = vshrl.u32 %v1300_v3, 16  ;;  %v2311_v60 = vrot.slane %v2309_v51, 4  ;;  %vm9001_vm1 = vcmp.ne.s16.totalorder %v602_v63, 0  ;;  %v9015_v51 = vld [vmem:[%s12855_s0 + $0x78] sm:$0xff]  ;;  %vm521_vm6 = vmpackc.low %vm12895_vm4, %vm12895_vm4 }
  0xc6   :  { %3273 = vst.msk [vmem:[#allocation3 + $0x4c] sm:$0xf] %vm12977_vm0, %v3143_v22  ;;  %v3083_v53 = vsel %vm8672_vm5, %v3078_v56, %v8983_v39  ;;  %v1411_v13 = vshll.u32 %v1300_v3, 16  ;;  %v9008_v17 = vrot.slane %v603_v25, 4  ;;  %v2315_v33 = vshll.u32 %v8994_v12, 16  ;;  %v9020_v56 = vld [vmem:[%s12855_s0 + $0x118] sm:$0xff]  ;;  %v9028_v3 = vpop.permute.xlu0 %1226 }
  0xc7   :  { %3267 = vst.msk [vmem:[#allocation3 + $0x1c] sm:$0xf] %vm12977_vm0, %v3083_v53  ;;  %v9006_v54 = vrot.slane %v1408_v47, 7  ;;  %v2312_v48 = vor.u32 %v2311_v60, %v8830_v55  ;;  %v1354_v63 = vshrl.u32 %v8987_v24, 16  ;;  %v1406_v55 = vrot.slane %v8922_v14, 4  ;;  %13090 = vst [vmem:[#allocation27_spill] sm:$0xff] %v9028_v3  ;;  %v9030_v47 = vpop.permute.xlu1 %467 }
  0xc8   :  { %v3147_v22 = vor.u32 %v3146_v26, %v3142_v6  ;;  %13091 = vst [vmem:[#allocation28_spill] sm:$0xff] %v9030_v47  ;;  %v3009_v53 = vld [vmem:[#allocation2 + $0x38] sm:$0xf]  ;;  %v9032_v0 = vrot.slane %v2315_v33, 5  ;;  %v1840_v38 = vsel %vm9001_vm1, %v1819_v19, 0  ;;  %v1357_v49 = vshll.u32 %v8987_v24, 16 }
  0xc9   :  { %v1413_v25 = vor.u32 %v1411_v13, %v9006_v54  ;;  %v2313_v60 = vrot.slane %v2312_v48, 4  ;;  %v1890_v14 = vshrl.u32 %v1840_v38, 16  ;;  %v606_v6 = vor.u32 %v9008_v17, %v8948_v2  ;;  %v2573_v19 = vld [vmem:[#allocation2 + $0x14] sm:$0xf] }
  0xca   :  { %v13093_v26 = vmov 0   ;;  %v9052_v33 = vrot.slane %v1354_v63, 7  ;;  %v1893_v2 = vshll.u32 %v1840_v38, 16  ;;  %v3148_v17 = vrot.slane %v3147_v22, 4  ;;  %v9068_v38 = vpop.permute.xlu0 %1229 }
  0xcb   :  { %v9039_v29 = vsel %vm8638_vm8, %v1406_v55, %v1413_v25  ;;  %v9046_v48 = vsel %vm521_vm6, 65537, %v13093_v26  ;;  %v2318_v24 = vsel %vm8672_vm5, %v2313_v60, %v9032_v0  ;;  %v9057_v25 = vrot.slane %v1890_v14, 7  ;;  %13094 = vst [vmem:[#allocation30_spill] sm:$0xff] %v9068_v38 }
  0xcc   :  { %13092 = vst [vmem:[#allocation29_spill] sm:$0xff] %v9039_v29  ;;  %vm12918_vm3 = vcmp.ne.s16.totalorder %v9039_v29, 0  ;;  %2493 = vrot.lane.b32.xlu0 %v2318_v24, %s8135_s2  ;;  %vm12891_vm6 = vcmp.eq.s32.totalorder %v9028_v3, 1  ;;  %v2319_v5 = vshrl.u32 %v8994_v12, 16  ;;  %v1888_v60 = vrot.slane %v8925_v15, 4  ;;  %v9071_v24 = vpop.permute.xlu1 %470 }
  0xcd   :  { %v3030_v55 = vsel %vm12918_vm3, %v3009_v53, 0  ;;  %v1895_v63 = vor.u32 %v1893_v2, %v9057_v25  ;;  %vm1281_vm7 = vmpackc.low %vm12891_vm6, %vm12891_vm6  ;;  %v2594_v53 = vsel %vm8878_vm15, %v2573_v19, 0  ;;  %v609_v22 = vshll.u32 %v9046_v48, 16  ;;  %13095 = vst [vmem:[#allocation31_spill] sm:$0xff] %v9071_v24 }
  0xce   :  { %v3150_v13 = vshll.u32 %v3030_v55, 16  ;;  %v3154_v40 = vshrl.u32 %v3030_v55, 16  ;;  %v1301_v12 = vsel %vm1281_vm7, 65537, %v13093_v26  ;;  %v2636_v55 = vshrl.u32 %v2594_v53, 16 }
  0xcf   :  { %v1896_v2 = vsel %vm8638_vm8, %v1888_v60, %v1895_v63  ;;  %v1417_v3 = vshrl.u32 %v1301_v12, 16  ;;  %v9078_v58 = vsel %vm1492_vm11, %v2247_v10, 0  ;;  %v1359_v19 = vor.u32 %v1357_v49, %v9052_v33 }
  0xd0   :  { %v3152_v14 = vrot.slane %v3150_v13, 5  ;;  %v3156_v15 = vrot.slane %v3154_v40, 4  ;;  %vm12896_vm6 = vcmp.eq.s32.totalorder %v8686_v44, 1  ;;  %2047 = vrot.lane.b32.xlu1 %v1896_v2, %s8136_s3  ;;  %v1420_v36 = vshll.u32 %v1301_v12, 16 }
  0xd1   :  { %v9086_v40 = vrot.slane %v1417_v3, 7  ;;  %v9088_v60 = vrot.slane %v2636_v55, 7  ;;  %v2639_v63 = vshll.u32 %v2594_v53, 16  ;;  %v2321_v46 = vrot.slane %v2319_v5, 4  ;;  %v9103_v55 = vpop.permute.xlu1 %473  ;;  %vm9118_vm11 = vmpackc.low %vm12896_vm6, %vm12896_vm6 }
  0xd2   :  { %v3153_v13 = vsel %vm8672_vm5, %v3148_v17, %v3152_v14  ;;  %v3084_v10 = vshrl.u32 %v8964_v9, 16  ;;  %v1415_v49 = vrot.slane %v9006_v54, 4  ;;  %v2634_v43 = vrot.slane %v8892_v16, 4  ;;  %v3010_v54 = vld [vmem:[#allocation2 + $0x3c] sm:$0xf]  ;;  %13097 = vst [vmem:[#allocation33_spill] sm:$0xff] %v9103_v55 }
  0xd3   :  { %3274 = vst.msk [vmem:[#allocation3 + $0x54] sm:$0xf] %vm12977_vm0, %v3153_v13  ;;  %v2325_v37 = vshll.u32 %v9078_v58, 16  ;;  %v3157_v17 = vor.u32 %v3156_v15, %v3152_v14  ;;  %v1422_v2 = vor.u32 %v1420_v36, %v9086_v40  ;;  %v2641_v12 = vor.u32 %v2639_v63, %v9088_v60  ;;  %v9097_v13 = vpop.permute.xlu0 %1232 }
  0xd4   :  { %v2322_v3 = vor.u32 %v2321_v46, %v9032_v0  ;;  %13096 = vst [vmem:[#allocation32_spill] sm:$0xff] %v9097_v13  ;;  %v1352_v53 = vrot.slane %v8871_v50, 4  ;;  %v9100_v5 = vrot.slane %v606_v6, 4  ;;  %v613_v9 = vshrl.u32 %v9046_v48, 16  ;;  %v1153_v48 = vld [vmem:[#allocation2 + $0x18] sm:$0xf] }
  0xd5   :  { %v9105_v16 = vrot.slane %v2325_v37, 5  ;;  %v9107_v14 = vrot.slane %v609_v22, 5  ;;  %v9111_v36 = vsel %vm8638_vm8, %v1415_v49, %v1422_v2  ;;  %v2642_v0 = vsel %vm8638_vm8, %v2634_v43, %v2641_v12 }
  0xd6   :  { %13098 = vst [vmem:[#allocation34_spill] sm:$0xff] %v9111_v36  ;;  %v2323_v15 = vrot.slane %v2322_v3, 4  ;;  %v1574_v37 = vshrl.u32 %v8938_v18, 16  ;;  %v3086_v6 = vrot.slane %v3084_v10, 4  ;;  %vm12912_vm7 = vcmp.ne.s16.totalorder %v9111_v36, 0  ;;  %2800 = vrot.lane.b32.xlu0 %v2642_v0, %s8137_s24 }
  0xd7   :  { %vm12904_vm4 = vcmp.eq.s32.totalorder %v9068_v38, 1  ;;  %v3158_v22 = vrot.slane %v3157_v17, 4  ;;  %v3031_v43 = vsel %vm12912_vm7, %v3010_v54, 0  ;;  %v9136_v18 = vsel %vm8638_vm8, %v1352_v53, %v1359_v19  ;;  %v6964_v19 = vld [vmem:[%s12855_s0 + $0x1b8] sm:$0xff]  ;;  %v9156_v54 = vpop.permute.xlu0 %1235 }
  0xd8   :  { %v2328_v63 = vsel %vm8672_vm5, %v2323_v15, %v9105_v16  ;;  %vm1282_vm6 = vmpackc.low %vm12904_vm4, %vm12904_vm4  ;;  %v3160_v46 = vshll.u32 %v3031_v43, 16  ;;  %v3164_v10 = vshrl.u32 %v3031_v43, 16  ;;  %vm1493_vm2 = vcmp.ne.s16.totalorder %v9136_v18, 0  ;;  %v6984_v53 = vld [vmem:[%s12855_s0 + $0x258] sm:$0xff]  ;;  %13101 = vst [vmem:[#allocation35_spill] sm:$0xff] %v9156_v54  ;;  %v9160_v43 = vpop.permute.xlu1 %476 }
  0xd9   :  { %2495 = vrot.lane.b32.xlu1 %v2328_v63, %s8135_s2  ;;  %v1302_v49 = vsel %vm1282_vm6, 65537, %v13093_v26  ;;  %v9141_v17 = vrot.slane %v613_v9, 4  ;;  %v1295_v2 = vsel %vm9118_vm11, 65537, %v13093_v26  ;;  %v9148_v3 = vsel %vm1493_vm2, %v1153_v48, 0  ;;  %v395_v9 = vld [vmem:[#allocation2] sm:$0x8] }
  0xda   :  { %v1426_v12 = vshrl.u32 %v1302_v49, 16  ;;  %vm12906_vm6 = vcmp.eq.s32.totalorder %v8873_v7, 1  ;;  %v3087_v0 = vor.u32 %v3086_v6, %v8983_v39  ;;  %v3162_v15 = vrot.slane %v3160_v46, 5  ;;  %13102 = vst [vmem:[#allocation36_spill] sm:$0xff] %v9160_v43  ;;  %v2574_v7 = vld [vmem:[#allocation2 + $0x18] sm:$0xf] }
  0xdb   :  { %v3166_v50 = vrot.slane %v3164_v10, 4  ;;  %v1429_v63 = vshll.u32 %v1302_v49, 16  ;;  %v1576_v38 = vrot.slane %v1574_v37, 4  ;;  %v1580_v44 = vshll.u32 %v9148_v3, 16  ;;  %vm9174_vm11 = vmpackc.low %vm12906_vm6, %vm12906_vm6 }
  0xdc   :  { %v9162_v48 = vrot.slane %v1426_v12, 7  ;;  %v612_v31 = vsel %vm8672_vm5, %v9100_v5, %v9107_v14  ;;  %v1363_v42 = vshrl.u32 %v1295_v2, 16  ;;  %v3163_v39 = vsel %vm8672_vm5, %v3158_v22, %v3162_v15 }
  0xdd   :  { %v265_v6 = vmax.f32 %v6964_v19, %v6984_v53  ;;  %v1424_v37 = vrot.slane %v9086_v40, 4  ;;  %3275 = vst.msk [vmem:[#allocation3 + $0x5c] sm:$0xf] %vm12977_vm0, %v3163_v39  ;;  %v1577_v5 = vor.u32 %v1576_v38, %v8960_v41  ;;  %v9182_v49 = vrot.slane %v1580_v44, 5  ;;  %v3011_v53 = vld [vmem:[#allocation2 + $0x40] sm:$0xf]  ;;  %v9196_v38 = vpop.permute.xlu0 %1238 }
  0xde   :  { %v1431_v10 = vor.u32 %v1429_v63, %v9162_v48  ;;  %v9186_v22 = vsel %vm758_vm9, %v395_v9, 0  ;;  %v616_v12 = vor.u32 %v9141_v17, %v9107_v14  ;;  %v3167_v19 = vor.u32 %v3166_v50, %v3162_v15  ;;  %13106 = vst [vmem:[#allocation38_spill] sm:$0xff] %v9196_v38  ;;  %v9210_v17 = vpop.permute.xlu1 %479  ;;  %v7965_v15 = vld [vmem:[%s12856_s4 + $0x38] sm:$0xff]  }
  0xdf   :  { %v3024_v40 = vsel %vm1493_vm2, %v3003_v28, 0  ;;  %v3088_v39 = vrot.slane %v3087_v0, 4  ;;  %v1578_v44 = vrot.slane %v1577_v5, 4  ;;  %vm9198_vm9 = vcmp.ne.s16.totalorder %v612_v31, 0  ;;  %13109 = vst [vmem:[#allocation39_spill] sm:$0xff] %v9210_v17  ;;  %3498 = vmatpush1.bf16.msra.mxu0 %v7965_v15 }
  0xe0   :  { %v9194_v63 = vsel %vm8638_vm8, %v1424_v37, %v1431_v10  ;;  %v3090_v41 = vshll.u32 %v3024_v40, 16  ;;  %v9202_v14 = vrot.slane %v1363_v42, 7  ;;  %v9207_v28 = vsel %vm9174_vm11, 65537, %v13093_v26  ;;  %3499 = vmatprep.subr.bf16.mxu0 %v13093_v26 }
  0xe1   :  { %13105 = vst [vmem:[#allocation37_spill] sm:$0xff] %v9194_v63  ;;  %vm12911_vm4 = vcmp.ne.s16.totalorder %v9194_v63, 0  ;;  %v1583_v31 = vsel %vm8672_vm5, %v1578_v44, %v9182_v49  ;;  %v2595_v42 = vsel %vm9001_vm1, %v2574_v7, 0  ;;  %v1366_v50 = vshll.u32 %v1295_v2, 16 }
  0xe2   :  { %v3032_v9 = vsel %vm12911_vm4, %v3011_v53, 0  ;;  %v9217_v0 = vrot.slane %v3090_v41, 5  ;;  %v3168_v46 = vrot.slane %v3167_v19, 4  ;;  %1742 = vrot.lane.b32.xlu0 %v1583_v31, %s8134_s23  ;;  %v619_v5 = vshll.u32 %v9207_v28, 16 }
  0xe3   :  { %v3170_v37 = vshll.u32 %v3032_v9, 16  ;;  %v3174_v10 = vshrl.u32 %v3032_v9, 16  ;;  %v2645_v44 = vshrl.u32 %v2595_v42, 16  ;;  %v13110_v7 = vmax.f32 %v9015_v51, %v9020_v56 }
  0xe4   :  { %v3093_v53 = vsel %vm8672_vm5, %v3088_v39, %v9217_v0  ;;  %v1368_v2 = vor.u32 %v1366_v50, %v9202_v14  ;;  %v3094_v9 = vshrl.u32 %v3024_v40, 16  ;;  %vm12910_vm11 = vcmp.eq.s32.totalorder %v9097_v13, 1  ;;  %v7966_v39 = vld [vmem:[%s12856_s4 + $0x30] sm:$0xff]   ;;  %v9247_v40 = vpop.permute.xlu0 %1241 }
  0xe5   :  { %v285_v41 = vmax.f32 %v13110_v7, %v265_v6  ;;  %v9233_v19 = vrot.slane %v3170_v37, 5  ;;  %3268 = vst.msk [vmem:[#allocation3 + $0x24] sm:$0xf] %vm12977_vm0, %v3093_v53  ;;  %v1584_v51 = vshrl.u32 %v9148_v3, 16  ;;  %v9242_v56 = vrot.slane %v2645_v44, 7  ;;  %vm1283_vm6 = vmpackc.low %vm12910_vm11, %vm12910_vm11  ;;  %v9255_v53 = vpop.permute.xlu1 %482  ;;  %3500 = vmatpush1.bf16.msra.mxu0 %v7966_v39 }
  0xe6   :  { %v2648_v6 = vshll.u32 %v2595_v42, 16  ;;  %13111 = vst [vmem:[#allocation40_spill] sm:$0xff] %v9247_v40  ;;  %v3176_v50 = vrot.slane %v3174_v10, 4  ;;  %v1303_v37 = vsel %vm1283_vm6, 65537, %v13093_v26  ;;  %v1841_v3 = vsel %vm9198_vm9, %v1820_v20, 0  ;;  %13112 = vst [vmem:[#allocation41_spill] sm:$0xff] %v9255_v53  ;;  %3501 = vmatprep.subr.bf16.mxu0 %v13093_v26 }
  0xe7   :  { %v7356_v31 = vpack.c.bf16 %v285_v41, %v285_v41  ;;  %v3173_v15 = vsel %vm8672_vm5, %v3168_v46, %v9233_v19  ;;  %v2643_v44 = vrot.slane %v9088_v60, 4  ;;  %v1435_v41 = vshrl.u32 %v1303_v37, 16  ;;  %v1154_v42 = vld [vmem:[#allocation2 + $0x1c] sm:$0xf] }
  0xe8   :  { %3276 = vst.msk [vmem:[#allocation3 + $0x64] sm:$0xf] %vm12977_vm0, %v3173_v15  ;;  %v2650_v7 = vor.u32 %v2648_v6, %v9242_v56  ;;  %v1361_v46 = vrot.slane %v9052_v33, 4  ;;  %v9263_v10 = vrot.slane %v616_v12, 4  ;;  %v9265_v13 = vrot.slane %v619_v5, 5  ;;  %v7967_v15 = vld [vmem:[%s12856_s4 + $0x28] sm:$0xff]  }
  0xe9   :  { %386 = vst.msk [vmem:[#allocation2 + $0x44] sm:$0xf] %vm12977_vm0, %v7356_v31  ;;  %v3096_v20 = vrot.slane %v3094_v9, 4  ;;  %v9273_v6 = vrot.slane %v1435_v41, 7  ;;  %v1438_v31 = vshll.u32 %v1303_v37, 16  ;;  %v1899_v39 = vshrl.u32 %v1841_v3, 16  ;;  %3502 = vmatpush1.bf16.msra.mxu0 %v7967_v15 }
  0xea   :  { %v2651_v60 = vsel %vm8638_vm8, %v2643_v44, %v2650_v7  ;;  %v1433_v33 = vrot.slane %v9162_v48, 4  ;;  %v3177_v12 = vor.u32 %v3176_v50, %v9233_v19  ;;  %v9280_v5 = vsel %vm8638_vm8, %v1361_v46, %v1368_v2  ;;  %v3004_v37 = vld [vmem:[#allocation2 + $0x24] sm:$0xf]  ;;  %v9286_v7 = vpop.permute.xlu0 %1244  ;;  %v9298_v50 = vpop.permute.xlu1 %485  ;;  %3503 = vmatprep.subr.bf16.mxu0 %v13093_v26 }
  0xeb   :  { %2802 = vrot.lane.b32.xlu1 %v2651_v60, %s8137_s24  ;;  %v1586_v9 = vrot.slane %v1584_v51, 4  ;;  %v1440_v35 = vor.u32 %v1438_v31, %v9273_v6  ;;  %v9283_v59 = vrot.slane %v1899_v39, 7  ;;  %v1902_v44 = vshll.u32 %v1841_v3, 16  ;;  %13113 = vst [vmem:[#allocation42_spill] sm:$0xff] %v9286_v7  ;;  %v163_v51 = vld [vmem:[%s12855_s0 + $0x80] sm:$0xff]  ;;  %13114 = vst [vmem:[#allocation43_spill] sm:$0xff] %v9298_v50 }
  0xec   :  { %vm1494_vm6 = vcmp.ne.s16.totalorder %v9280_v5, 0  ;;  %vm12916_vm11 = vcmp.eq.s32.totalorder %v8911_v45, 1  ;;  %v3097_v48 = vor.u32 %v3096_v20, %v9217_v0  ;;  %v7968_v3 = vld [vmem:[%s12856_s4 + $0x20] sm:$0xff]   ;;  %v2329_v15 = vshrl.u32 %v9078_v58, 16 }
  0xed   :  { %v9292_v2 = vsel %vm1494_vm6, %v1154_v42, 0  ;;  %v1587_v19 = vor.u32 %v1586_v9, %v9182_v49  ;;  %v9306_v0 = vsel %vm8638_vm8, %v1433_v33, %v1440_v35  ;;  %v1897_v42 = vrot.slane %v9057_v25, 4  ;;  %v6945_v46 = vld [vmem:[%s12855_s0 + $0x120] sm:$0xff]  ;;  %3504 = vmatpush1.bf16.msra.mxu0 %v7968_v3  ;;  %vm9335_vm7 = vmpackc.low %vm12916_vm11, %vm12916_vm11  ;;  %v7969_v3 = vld [vmem:[%s12856_s4 + $0x18] sm:$0xff]  }
  0xee   :  { %13115 = vst [vmem:[#allocation44_spill] sm:$0xff] %v9306_v0  ;;  %v1904_v49 = vor.u32 %v1902_v44, %v9283_v59  ;;  %v1590_v41 = vshll.u32 %v9292_v2, 16  ;;  %v6965_v20 = vld [vmem:[%s12855_s0 + $0x1c0] sm:$0xff]  ;;  %v622_v35 = vsel %vm8672_vm5, %v9263_v10, %v9265_v13  ;;  %vm12917_vm4 = vcmp.ne.s16.totalorder %v9306_v0, 0  ;;  %3505 = vmatprep.subr.bf16.mxu0 %v13093_v26  ;;  %v9352_v0 = vpop.permute.xlu0 %1247 }
  0xef   :  { %v1588_v60 = vrot.slane %v1587_v19, 4  ;;  %v6985_v31 = vld [vmem:[%s12855_s0 + $0x260] sm:$0xff]  ;;  %v3178_v39 = vrot.slane %v3177_v12, 4  ;;  %v9342_v12 = vsel %vm1494_vm6, %v3004_v37, 0  ;;  %13118 = vst [vmem:[#allocation45_spill] sm:$0xff] %v9352_v0  ;;  %v623_v37 = vshrl.u32 %v9207_v28, 16 }
  0xf0   :  { %v3012_v25 = vld [vmem:[#allocation2 + $0x44] sm:$0xf]  ;;  %v1905_v9 = vsel %vm8638_vm8, %v1897_v42, %v1904_v49  ;;  %v9330_v44 = vrot.slane %v1590_v41, 5  ;;  %v397_v49 = vld [vmem:[#allocation2 + $0x8] sm:$0xf]  ;;  %v3098_v41 = vrot.slane %v3097_v48, 4  ;;  %v266_v45 = vmax.f32 %v6965_v20, %v6985_v31 }
  0xf1   :  { %v3033_v33 = vsel %vm12917_vm4, %v3012_v25, 0  ;;  %2049 = vrot.lane.b32.xlu0 %v1905_v9, %s8136_s3  ;;  %v204_v25 = vmax.f32 %v163_v51, %v6945_v46  ;;  %v396_v42 = vld [vmem:[#allocation2 + $0x4] sm:$0xf]  ;;  %v3100_v9 = vshll.u32 %v9342_v12, 16  ;;  %vm12952_vm11 = vcmp.eq.s32.totalorder %v8714_v8, 1  ;;  %v9360_v46 = vpop.permute.xlu1 %488  ;;  %3506 = vmatpush1.bf16.msra.mxu0 %v7969_v3 }
  0xf2   :  { %v3180_v10 = vshll.u32 %v3033_v33, 16  ;;  %v3184_v19 = vshrl.u32 %v3033_v33, 16  ;;  %v1593_v33 = vsel %vm8672_vm5, %v1588_v60, %v9330_v44  ;;  %vm12945_vm4 = vcmp.eq.s32.totalorder %v9156_v54, 1  ;;  %v2248_v48 = vld [vmem:[#allocation2 + $0x1c] sm:$0xf]  ;;  %13119 = vst [vmem:[#allocation46_spill] sm:$0xff] %v9360_v46  ;;  %3507 = vmatprep.subr.bf16.mxu0 %v13093_v26 }
  0xf3   :  { %1744 = vrot.lane.b32.xlu1 %v1593_v33, %s8134_s23  ;;  %vm9362_vm3 = vcmp.ne.s16.totalorder %v622_v35, 0  ;;  %v543_v20 = vsel %vm9335_vm7, 65537, %v13093_v26  ;;  %v9369_v28 = vrot.slane %v3100_v9, 5  ;;  %v286_v31 = vmax.f32 %v204_v25, %v266_v45  ;;  %vm1284_vm13 = vmpackc.low %vm12945_vm4, %vm12945_vm4  ;;  %v7970_v45 = vld [vmem:[%s12856_s4 + $0x10] sm:$0xff]   ;;  %v1821_v3 = vld [vmem:[#allocation2 + $0x1c] sm:$0xf]  ;;  %v9397_v9 = vpop.permute.xlu0 %1067 }
  0xf4   :  { %v9356_v51 = vrot.slane %v3180_v10, 5  ;;  %v398_v10 = vld [vmem:[#allocation2 + $0xc] sm:$0xf]  ;;  %v3186_v33 = vrot.slane %v3184_v19, 4  ;;  %v1304_v63 = vsel %vm1284_vm13, 65537, %v13093_v26  ;;  %v2331_v46 = vrot.slane %v2329_v15, 4  ;;  %vm9385_vm7 = vmpackc.low %vm12952_vm11, %vm12952_vm11 }
  0xf5   :  { %v7357_v15 = vpack.c.bf16 %v286_v31, %v286_v31  ;;  %v1444_v19 = vshrl.u32 %v1304_v63, 16  ;;  %v9395_v25 = vsel %vm1493_vm2, %v2248_v48, 0  ;;  %v9401_v54 = vsel %vm8717_vm10, %v396_v42, 0  ;;  %3508 = vmatpush1.bf16.msra.mxu0 %v7970_v45  ;;  %v7971_v31 = vld [vmem:[%s12856_s4 + $0x8] sm:$0xff]  }
  0xf6   :  { %v3183_v35 = vsel %vm8672_vm5, %v3178_v39, %v9356_v51  ;;  %v3103_v39 = vsel %vm8672_vm5, %v3098_v41, %v9369_v28  ;;  %v629_v8 = vshll.u32 %v543_v20, 16  ;;  %v2332_v41 = vor.u32 %v2331_v46, %v9105_v16  ;;  %v9432_v46 = vpop.permute.xlu1 %491  ;;  %3509 = vmatprep.subr.bf16.mxu0 %v13093_v26 }
  0xf7   :  { %3277 = vst.msk [vmem:[#allocation3 + $0x6c] sm:$0xf] %vm12977_vm0, %v3183_v35  ;;  %v9405_v35 = vsel %vm8747_vm14, %v397_v49, 0  ;;  %3269 = vst.msk [vmem:[#allocation3 + $0x2c] sm:$0xf] %vm12977_vm0, %v3103_v39  ;;  %v9411_v18 = vsel %vm8878_vm15, %v398_v10, 0  ;;  %v3187_v58 = vor.u32 %v3186_v33, %v9356_v51 }
  0xf8   :  { %v9413_v48 = vrot.slane %v623_v37, 4  ;;  %387 = vst.msk [vmem:[#allocation2 + $0x48] sm:$0xf] %vm12977_vm0, %v7357_v15  ;;  %v9416_v11 = vrot.slane %v1444_v19, 7  ;;  %v1447_v42 = vshll.u32 %v1304_v63, 16  ;;  %v9424_v16 = vsel %vm9385_vm7, 65537, %v13093_v26 }
  0xf9   :  { %v2333_v1 = vrot.slane %v2332_v41, 4  ;;  %v2335_v49 = vshll.u32 %v9395_v25, 16  ;;  %v1842_v37 = vsel %vm9362_vm3, %v1821_v3, 0  ;;  %v6946_v63 = vld [vmem:[%s12855_s0 + $0x128] sm:$0xff]  ;;  %13124 = vst [vmem:[#allocation47_spill] sm:$0xff] %v9432_v46  ;;  %v633_v10 = vshrl.u32 %v543_v20, 16  ;;  %v9458_v46 = vpop.permute.xlu0 %2162  ;;  %3510 = vmatpush1.bf16.msra.mxu0 %v7971_v31 }
  0xfa   :  { %v1442_v45 = vrot.slane %v9273_v6, 4  ;;  %v1449_v39 = vor.u32 %v1447_v42, %v9416_v11  ;;  %v6966_v15 = vld [vmem:[%s12855_s0 + $0x1c8] sm:$0xff]  ;;  %v2575_v3 = vld [vmem:[#allocation2 + $0x1c] sm:$0xf]  ;;  %v9447_v41 = vrot.slane %v629_v8, 5  ;;  %vm12951_vm13 = vcmp.eq.s32.totalorder %v8941_v21, 1  ;;  %3511 = vmatprep.subr.bf16.mxu0 %v13093_v26 }
  0xfb   :  { %v6986_v19 = vld [vmem:[%s12855_s0 + $0x268] sm:$0xff]  ;;  %v9450_v20 = vrot.slane %v2335_v49, 5  ;;  %v1908_v6 = vshrl.u32 %v1842_v37, 16  ;;  %v205_v42 = vmax.f32 %v164_v34, %v6946_v63  ;;  %13126 = vst [vmem:[#allocation49_spill] sm:$0xff] %v9458_v46  ;;  %v1911_v50 = vshll.u32 %v1842_v37, 16  ;;  %vm9487_vm14 = vmpackc.low %vm12951_vm13, %vm12951_vm13 }
  0xfc   :  { %v9456_v33 = vsel %vm8638_vm8, %v1442_v45, %v1449_v39  ;;  %v7972_v45 = vld [vmem:[%s12856_s4] sm:$0xff]   ;;  %v9470_v39 = vrot.slane %v633_v10, 4  ;;  %v3188_v34 = vrot.slane %v3187_v58, 4  ;;  %v267_v63 = vmax.f32 %v6966_v15, %v6986_v19  ;;  %v9482_v58 = vpop.permute.xlu1 %494  ;;  %v399_v46 = vld [vmem:[#allocation2 + $0x10] sm:$0xf] }
  0xfd   :  { %13125 = vst [vmem:[#allocation48_spill] sm:$0xff] %v9456_v33  ;;  %vm12975_vm2 = vcmp.ne.s16.totalorder %v9456_v33, 0  ;;  %v2338_v8 = vsel %vm8672_vm5, %v2333_v1, %v9450_v20  ;;  %v9464_v49 = vrot.slane %v1908_v6, 7  ;;  %vm12944_vm15 = vcmp.eq.s32.totalorder %v9196_v38, 1  ;;  %13127 = vst [vmem:[#allocation50_spill] sm:$0xff] %v9482_v58  ;;  %3512 = vmatpush1.bf16.msra.mxu0 %v7972_v45  ;;  %v7973_v58 = vld [vmem:[%s12856_s4 + $0x40] sm:$0xff]  }
  0xfe   :  { %2497 = vrot.lane.b32.xlu0 %v2338_v8, %s8135_s2  ;;  %v2339_v1 = vshrl.u32 %v9395_v25, 16  ;;  %v1906_v6 = vrot.slane %v9283_v59, 4  ;;  %vm1285_vm10 = vmpackc.low %vm12944_vm15, %vm12944_vm15  ;;  %v2596_v10 = vsel %vm9198_vm9, %v2575_v3, 0  ;;  %v2249_v21 = vld [vmem:[#allocation2 + $0x20] sm:$0xf]  ;;  %3527 = vmatprep.subr.bf16.mxu0 %v13093_v26  ;;  %vm12950_vm7 = vcmp.eq.s32.totalorder %v8978_v30, 1 }
  0xff   :  { %v3013_v31 = vld [vmem:[#allocation2 + $0x48] sm:$0xf]  ;;  %v1913_v37 = vor.u32 %v1911_v50, %v9464_v49  ;;  %v287_v50 = vmax.f32 %v205_v42, %v267_v63  ;;  %v1305_v25 = vsel %vm1285_vm10, 65537, %v13093_v26  ;;  %v2654_v19 = vshrl.u32 %v2596_v10, 16 }
 0x100   :  { %v3034_v59 = vsel %vm12975_vm2, %v3013_v31, 0  ;;  %v1453_v38 = vshrl.u32 %v1305_v25, 16  ;;  %v1372_v31 = vshrl.u32 %v9424_v16, 16  ;;  %v636_v42 = vor.u32 %v9470_v39, %v9447_v41  ;;  %v9513_v53 = vpop.permute.xlu1 %1069 }
 0x101   :  { %v3190_v8 = vshll.u32 %v3034_v59, 16  ;;  %v3194_v51 = vshrl.u32 %v3034_v59, 16  ;;  %v1914_v3 = vsel %vm8638_vm8, %v1906_v6, %v1913_v37  ;;  %v7358_v45 = vpack.c.bf16 %v287_v50, %v287_v50  ;;  %v9506_v59 = vpop.permute.xlu0 %2917  ;;  %13131 = vst [vmem:[#allocation52_spill] sm:$0xff] %v9513_v53  ;;  %3528 = vmatpush2.bf16.msra.mxu0 %v7973_v58  ;;  %v6987_v58 = vld [vmem:[%s12855_s0 + $0x270] sm:$0xff] }
 0x102   :  { %2051 = vrot.lane.b32.xlu1 %v1914_v3, %s8136_s3  ;;  %v9504_v63 = vrot.slane %v2654_v19, 7  ;;  %13130 = vst [vmem:[#allocation51_spill] sm:$0xff] %v9506_v59  ;;  %v544_v6 = vsel %vm9487_vm14, 65537, %v13093_v26  ;;  %v9511_v33 = vrot.slane %v1453_v38, 7  ;;  %v1456_v36 = vshll.u32 %v1305_v25, 16 }
 0x103   :  { %v3192_v37 = vrot.slane %v3190_v8, 5  ;;  %v3196_v29 = vrot.slane %v3194_v51, 4  ;;  %388 = vst.msk [vmem:[#allocation2 + $0x4c] sm:$0xf] %vm12977_vm0, %v7358_v45  ;;  %v2657_v39 = vshll.u32 %v2596_v10, 16  ;;  %v9518_v50 = vsel %vm1494_vm6, %v2249_v21, 0 }
 0x104   :  { %v2341_v19 = vrot.slane %v2339_v1, 4  ;;  %v1451_v15 = vrot.slane %v9416_v11, 4  ;;  %v1458_v25 = vor.u32 %v1456_v36, %v9511_v33  ;;  %v639_v8 = vshll.u32 %v544_v6, 16  ;;  %v165_v1 = vld [vmem:[%s12855_s0 + $0x90] sm:$0xff] }
 0x105   :  { %v3193_v38 = vsel %vm8672_vm5, %v3188_v34, %v3192_v37  ;;  %v2652_v51 = vrot.slane %v9242_v56, 4  ;;  %v2659_v5 = vor.u32 %v2657_v39, %v9504_v63  ;;  %v6947_v11 = vld [vmem:[%s12855_s0 + $0x130] sm:$0xff]  ;;  %v9537_v36 = vsel %vm9001_vm1, %v399_v46, 0  ;;  %vm9560_vm1 = vmpackc.low %vm12950_vm7, %vm12950_vm7 }
 0x106   :  { %3278 = vst.msk [vmem:[#allocation3 + $0x74] sm:$0xf] %vm12977_vm0, %v3193_v38  ;;  %v2342_v21 = vor.u32 %v2341_v19, %v9450_v20  ;;  %13132 = vst [vmem:[#allocation53_spill] sm:$0xff] %v9537_v36  ;;  %v643_v34 = vshrl.u32 %v544_v6, 16  ;;  %v9541_v56 = vsel %vm8638_vm8, %v1451_v15, %v1458_v25  ;;  %v2345_v10 = vshll.u32 %v9518_v50, 16  ;;  %v6967_v20 = vld [vmem:[%s12855_s0 + $0x1d0] sm:$0xff]  ;;  %v9566_v15 = vpop.permute.xlu0 %1071  ;;  %v9572_v38 = vpop.permute.xlu1 %2164 }
 0x107   :  { %13133 = vst [vmem:[#allocation54_spill] sm:$0xff] %v9541_v56  ;;  %v13134_v62 = vor.u32 %v9413_v48, %v9265_v13  ;;  %v9555_v3 = vrot.slane %v1372_v31, 7  ;;  %v3197_v6 = vor.u32 %v3196_v29, %v3192_v37  ;;  %v2660_v39 = vsel %vm8638_vm8, %v2652_v51, %v2659_v5  ;;  %v2576_v19 = vld [vmem:[#allocation2 + $0x20] sm:$0xf]  ;;  %13137 = vst [vmem:[#allocation55_spill] sm:$0xff] %v9566_v15 }
 0x108   :  { %vm12974_vm6 = vcmp.ne.s16.totalorder %v9541_v56, 0  ;;  %2804 = vrot.lane.b32.xlu0 %v2660_v39, %s8137_s24  ;;  %v2343_v13 = vrot.slane %v2342_v21, 4  ;;  %v9570_v48 = vrot.slane %v2345_v10, 5  ;;  %v206_v31 = vmax.f32 %v165_v1, %v6947_v11  ;;  %13138 = vst [vmem:[#allocation56_spill] sm:$0xff] %v9572_v38  ;;  %v2881_v37 = vld [vmem:[#allocation2 + $0x1c] sm:$0xf] }
 0x109   :  { %v9553_v46 = vrot.slane %v13134_v62, 4  ;;  %v9574_v25 = vrot.slane %v636_v42, 4  ;;  %v9576_v62 = vrot.slane %v639_v8, 5  ;;  %v268_v29 = vmax.f32 %v6967_v20, %v6987_v58  ;;  %v166_v20 = vld [vmem:[%s12855_s0 + $0x98] sm:$0xff]  ;;  %v400_v53 = vld [vmem:[#allocation2 + $0x14] sm:$0xf] }
 0x10a   :  { %vm12943_vm10 = vcmp.eq.s32.totalorder %v9247_v40, 1  ;;  %v9579_v51 = vrot.slane %v643_v34, 4  ;;  %v545_v5 = vsel %vm9560_vm1, 65537, %v13093_v26  ;;  %v3014_v21 = vld [vmem:[#allocation2 + $0x4c] sm:$0xf]  ;;  %v2348_v1 = vsel %vm8672_vm5, %v2343_v13, %v9570_v48  ;;  %v6948_v58 = vld [vmem:[%s12855_s0 + $0x138] sm:$0xff]  ;;  %v9615_v17 = vpop.permute.xlu1 %2919 }
 0x10b   :  { %vm1286_vm14 = vmpackc.low %vm12943_vm10, %vm12943_vm10  ;;  %v2597_v42 = vsel %vm9362_vm3, %v2576_v19, 0  ;;  %v3035_v8 = vsel %vm12974_vm6, %v3014_v21, 0  ;;  %2499 = vrot.lane.b32.xlu1 %v2348_v1, %s8135_s2  ;;  %v288_v11 = vmax.f32 %v206_v31, %v268_v29  ;;  %v3198_v45 = vrot.slane %v3197_v6, 4  ;;  %v6968_v31 = vld [vmem:[%s12855_s0 + $0x1d8] sm:$0xff]  ;;  %v9611_v6 = vpop.permute.xlu0 %2166 }
 0x10c   :  { %v1306_v34 = vsel %vm1286_vm14, 65537, %v13093_v26  ;;  %v2663_v10 = vshrl.u32 %v2597_v42, 16  ;;  %v3200_v39 = vshll.u32 %v3035_v8, 16  ;;  %v3204_v19 = vshrl.u32 %v3035_v8, 16  ;;  %2925 = vrot.lane.b32.xlu0 %v2881_v37, %s8133_s29  ;;  %v6988_v29 = vld [vmem:[%s12855_s0 + $0x278] sm:$0xff] }
 0x10d   :  { %v1462_v13 = vshrl.u32 %v1306_v34, 16  ;;  %v649_v21 = vshll.u32 %v545_v5, 16  ;;  %v7359_v1 = vpack.c.bf16 %v288_v11, %v288_v11  ;;  %v2666_v30 = vshll.u32 %v2597_v42, 16  ;;  %v1033_v56 = vld [vmem:[#allocation2 + $0x1c] sm:$0xf] }
 0x10e   :  { %v9609_v40 = vrot.slane %v2663_v10, 7  ;;  %v653_v8 = vshrl.u32 %v545_v5, 16  ;;  %v3202_v59 = vrot.slane %v3200_v39, 5  ;;  %v1465_v37 = vshll.u32 %v1306_v34, 16 }
 0x10f   :  { %v9613_v38 = vrot.slane %v1462_v13, 7  ;;  %389 = vst.msk [vmem:[#allocation2 + $0x50] sm:$0xf] %vm12977_vm0, %v7359_v1  ;;  %v2661_v15 = vrot.slane %v9504_v63, 4  ;;  %v207_v11 = vmax.f32 %v166_v20, %v6948_v58  ;;  %v269_v10 = vmax.f32 %v6968_v31, %v6988_v29 }
 0x110   :  { %v2668_v36 = vor.u32 %v2666_v30, %v9609_v40  ;;  %v1460_v42 = vrot.slane %v9511_v33, 4  ;;  %v3203_v5 = vsel %vm8672_vm5, %v3198_v45, %v3202_v59  ;;  %v3206_v39 = vrot.slane %v3204_v19, 4  ;;  %1079 = vrot.lane.b32.xlu0 %v1033_v56, %s8131_s15  ;;  %v2882_v45 = vld [vmem:[#allocation2 + $0x20] sm:$0xf]  ;;  %v9648_v19 = vpop.permute.xlu0 %2921 }
 0x111   :  { %v1467_v13 = vor.u32 %v1465_v37, %v9613_v38  ;;  %v646_v34 = vor.u32 %v9579_v51, %v9576_v62  ;;  %vm12964_vm1 = vcmp.eq.s32.totalorder %v9030_v47, 1  ;;  %3279 = vst.msk [vmem:[#allocation3 + $0x7c] sm:$0xf] %vm12977_vm0, %v3203_v5  ;;  %v289_v63 = vmax.f32 %v207_v11, %v269_v10 }
 0x112   :  { %v2669_v30 = vsel %vm8638_vm8, %v2661_v15, %v2668_v36  ;;  %v9631_v33 = vrot.slane %v649_v21, 5  ;;  %v655_v20 = vrot.slane %v653_v8, 4  ;;  %vm12948_vm14 = vcmp.eq.s32.totalorder %v9286_v7, 1  ;;  %vm9653_vm15 = vmpackc.low %vm12964_vm1, %vm12964_vm1 }
 0x113   :  { %v9635_v58 = vsel %vm8638_vm8, %v1460_v42, %v1467_v13  ;;  %2806 = vrot.lane.b32.xlu1 %v2669_v30, %s8137_s24  ;;  %v9641_v56 = vsel %vm9198_vm9, %v400_v53, 0  ;;  %v1370_v51 = vrot.slane %v9202_v14, 4  ;;  %v1375_v36 = vshll.u32 %v9424_v16, 16  ;;  %vm1287_vm10 = vmpackc.low %vm12948_vm14, %vm12948_vm14  ;;  %v9660_v53 = vpop.permute.xlu1 %1073 }
 0x114   :  { %13139 = vst [vmem:[#allocation57_spill] sm:$0xff] %v9635_v58  ;;  %v7360_v15 = vpack.c.bf16 %v289_v63, %v289_v63  ;;  %v3207_v61 = vor.u32 %v3206_v39, %v3202_v59  ;;  %vm12969_vm9 = vcmp.ne.s16.totalorder %v9635_v58, 0  ;;  %v1307_v14 = vsel %vm1287_vm10, 65537, %v13093_v26  ;;  %v1034_v39 = vld [vmem:[#allocation2 + $0x20] sm:$0xf] }
 0x115   :  { %vm12946_vm4 = vcmp.eq.s32.totalorder %v9352_v0, 1  ;;  %v1377_v16 = vor.u32 %v1375_v36, %v9555_v3  ;;  %v632_v21 = vsel %vm8672_vm5, %v9553_v46, %v9447_v41  ;;  %v1471_v59 = vshrl.u32 %v1307_v14, 16 }
 0x116   :  { %390 = vst.msk [vmem:[#allocation2 + $0x54] sm:$0xf] %vm12977_vm0, %v7360_v15  ;;  %vm1288_vm10 = vmpackc.low %vm12946_vm4, %vm12946_vm4  ;;  %v9676_v8 = vrot.slane %v646_v34, 4  ;;  %v656_v37 = vor.u32 %v655_v20, %v9631_v33  ;;  %v3015_v11 = vld [vmem:[#allocation2 + $0x50] sm:$0xf]  ;;  %v9684_v46 = vsel %vm9653_vm15, 65537, %v13093_v26 }
 0x117   :  { %2927 = vrot.lane.b32.xlu1 %v2882_v45, %s8133_s29  ;;  %v1308_v41 = vsel %vm1288_vm10, 65537, %v13093_v26  ;;  %v3036_v10 = vsel %vm12969_vm9, %v3015_v11, 0  ;;  %v1473_v42 = vrot.slane %v1471_v59, 7  ;;  %v1474_v5 = vshll.u32 %v1307_v14, 16  ;;  %v9691_v45 = vpop.permute.xlu0 %1075 }
 0x118   :  { %v3208_v13 = vrot.slane %v3207_v61, 4  ;;  %v3210_v34 = vshll.u32 %v3036_v10, 16  ;;  %v3214_v30 = vshrl.u32 %v3036_v10, 16  ;;  %v1480_v63 = vshrl.u32 %v1308_v41, 16  ;;  %v9696_v61 = vpop.permute.xlu1 %2168 }
 0x119   :  { %vm12961_vm4 = vcmp.eq.s32.totalorder %v9071_v24, 1  ;;  %v3104_v20 = vshrl.u32 %v9342_v12, 16  ;;  %v1469_v36 = vrot.slane %v9613_v38, 4  ;;  %v1476_v15 = vor.u32 %v1474_v5, %v1473_v42 }
 0x11a   :  { %v9693_v31 = vrot.slane %v656_v37, 4  ;;  %v3212_v29 = vrot.slane %v3210_v34, 5  ;;  %v3216_v11 = vrot.slane %v3214_v30, 4  ;;  %v1482_v59 = vrot.slane %v1480_v63, 7  ;;  %vm9707_vm15 = vmpackc.low %vm12961_vm4, %vm12961_vm4 }
 0x11b   :  { %1081 = vrot.lane.b32.xlu1 %v1034_v39, %s8131_s15  ;;  %v659_v14 = vshll.u32 %v9684_v46, 16  ;;  %v663_v10 = vshrl.u32 %v9684_v46, 16  ;;  %v9702_v12 = vsel %vm8638_vm8, %v1469_v36, %v1476_v15  ;;  %v1483_v38 = vshll.u32 %v1308_v41, 16  ;;  %v3017_v36 = vld [vmem:[#allocation2 + $0x58] sm:$0xf] }
 0x11c   :  { %13142 = vst [vmem:[#allocation58_spill] sm:$0xff] %v9702_v12  ;;  %v3213_v5 = vsel %vm8672_vm5, %v3208_v13, %v3212_v29  ;;  %v3217_v39 = vor.u32 %v3216_v11, %v3212_v29  ;;  %vm12968_vm10 = vcmp.ne.s16.totalorder %v9702_v12, 0  ;;  %v9716_v46 = vsel %vm8638_vm8, %v1370_v51, %v1377_v16  ;;  %v3018_v29 = vld [vmem:[#allocation2 + $0x5c] sm:$0x1] }
 0x11d   :  { %v3016_v34 = vld [vmem:[#allocation2 + $0x54] sm:$0xf]  ;;  %v3106_v30 = vrot.slane %v3104_v20, 4  ;;  %3280 = vst.msk [vmem:[#allocation3 + $0x84] sm:$0xf] %vm12977_vm0, %v3213_v5  ;;  %v1478_v41 = vrot.slane %v1473_v42, 4  ;;  %v1485_v15 = vor.u32 %v1483_v38, %v1482_v59  ;;  %v9735_v20 = vpop.permute.xlu0 %2170  ;;  %v9742_v5 = vpop.permute.xlu1 %2923 }
 0x11e   :  { %v3037_v63 = vsel %vm12968_vm10, %v3016_v34, 0  ;;  %v3218_v1 = vrot.slane %v3217_v39, 4  ;;  %v1487_v11 = vrot.slane %v1482_v59, 4  ;;  %vm9721_vm14 = vcmp.ne.s16.totalorder %v632_v21, 0  ;;  %13148 = vst [vmem:[#allocation60_spill] sm:$0xff] %v9735_v20 }
 0x11f   :  { %v3220_v0 = vshll.u32 %v3037_v63, 16  ;;  %v3224_v13 = vshrl.u32 %v3037_v63, 16  ;;  %v9725_v51 = vrot.slane %v659_v14, 5  ;;  %v547_v16 = vsel %vm9707_vm15, 65537, %v13093_v26  ;;  %v1155_v14 = vld [vmem:[#allocation2 + $0x20] sm:$0xf] }
 0x120   :  { %v9732_v42 = vsel %vm8638_vm8, %v1478_v41, %v1485_v15  ;;  %vm1495_vm7 = vcmp.ne.s16.totalorder %v9716_v46, 0  ;;  %vm9738_vm11 = vcmp.ne.s16.totalorder %v1487_v11, 0  ;;  %v13149_v21 = vmov 0 }
 0x121   :  { %13147 = vst [vmem:[#allocation59_spill] sm:$0xff] %v9732_v42  ;;  %v3222_v38 = vrot.slane %v3220_v0, 5  ;;  %v3226_v59 = vrot.slane %v3224_v13, 4  ;;  %vm12965_vm13 = vcmp.ne.s16.totalorder %v9732_v42, 0  ;;  %v13150_v21 = vsel %vm9738_vm11, 4294967295, %v13149_v21  ;;  %v9774_v47 = vpop.permute.xlu0 %1734 }
 0x122   :  { %13151 = vst [vmem:[#allocation61_spill] sm:$0xff] %v13150_v21  ;;  %v1594_v37 = vshrl.u32 %v9292_v2, 16  ;;  %v3107_v39 = vor.u32 %v3106_v30, %v9369_v28  ;;  %v3038_v34 = vsel %vm12965_vm13, %v3017_v36, 0  ;;  %v3039_v0 = vsel %vm9738_vm11, %v3018_v29, 0  ;;  %v3006_v42 = vld [vmem:[#allocation2 + $0x2c] sm:$0xf] }
 0x123   :  { %v3223_v41 = vsel %vm8672_vm5, %v3218_v1, %v3222_v38  ;;  %v3227_v63 = vor.u32 %v3226_v59, %v3222_v38  ;;  %v3230_v15 = vshll.u32 %v3038_v34, 16  ;;  %v3234_v13 = vshrl.u32 %v3038_v34, 16 }
 0x124   :  { %v13152_v11 = vsel %vm8672_vm5, %v9574_v25, %v9576_v62  ;;  %v13153_v2 = vmov 0  ;;  %v9769_v30 = vrot.slane %v663_v10, 4  ;;  %3281 = vst.msk [vmem:[#allocation3 + $0x8c] sm:$0xf] %vm12977_vm0, %v3223_v41  ;;  %v1516_v25 = vsel %vm1495_vm7, %v1155_v14, 0  ;;  %v9780_v14 = vpop.permute.xlu1 %1077 }
 0x125   :  { %vm9757_vm15 = vcmp.ne.s16.totalorder %v13152_v11, 0  ;;  %v3005_v62 = vld [vmem:[#allocation2 + $0x28] sm:$0xf]  ;;  %v3228_v36 = vrot.slane %v3227_v63, 4  ;;  %v3232_v29 = vrot.slane %v3230_v15, 5  ;;  %v3236_v38 = vrot.slane %v3234_v13, 4 }
 0x126   :  { %v13154_v2 = vsel %vm9757_vm15, 4294967295, %v13153_v2  ;;  %v3240_v59 = vshll.u32 %v3039_v0, 16  ;;  %v669_v34 = vshll.u32 %v547_v16, 16  ;;  %v673_v11 = vshrl.u32 %v547_v16, 16 }
 0x127   :  { %13155 = vst [vmem:[#allocation62_spill] sm:$0xff] %v13154_v2  ;;  %v1596_v28 = vrot.slane %v1594_v37, 4  ;;  %v1600_v24 = vshll.u32 %v1516_v25, 16  ;;  %v3108_v21 = vrot.slane %v3107_v39, 4  ;;  %v3233_v10 = vsel %vm8672_vm5, %v3228_v36, %v3232_v29  ;;  %v1822_v37 = vld [vmem:[#allocation2 + $0x20] sm:$0xf] }
 0x128   :  { %v3237_v1 = vor.u32 %v3236_v38, %v3232_v29  ;;  %v3026_v41 = vsel %vm1495_vm7, %v3005_v62, 0  ;;  %3282 = vst.msk [vmem:[#allocation3 + $0x94] sm:$0xf] %vm12977_vm0, %v3233_v10  ;;  %v13156_v15 = vrot.slane %v9555_v3, 4  ;;  %v3242_v36 = vrot.slane %v3240_v59, 5 }
 0x129   :  { %v1597_v0 = vor.u32 %v1596_v28, %v9330_v44  ;;  %v1602_v63 = vrot.slane %v1600_v24, 5  ;;  %v3110_v16 = vshll.u32 %v3026_v41, 16  ;;  %v1604_v29 = vshrl.u32 %v1516_v25, 16  ;;  %v1156_v38 = vld [vmem:[#allocation2 + $0x24] sm:$0xf] }
 0x12a   :  { %v9789_v39 = vsel %vm8638_vm8, %v13156_v15, %v8792_v32  ;;  %v3238_v62 = vrot.slane %v3237_v1, 4  ;;  %v9793_v10 = vrot.slane %v669_v34, 5  ;;  %v3114_v28 = vshrl.u32 %v3026_v41, 16  ;;  %v9807_v41 = vpop.permute.xlu0 %2489 }
 0x12b   :  { %v1598_v44 = vrot.slane %v1597_v0, 4  ;;  %v3112_v24 = vrot.slane %v3110_v16, 5  ;;  %v9795_v12 = vrot.slane %v673_v11, 4  ;;  %v1843_v32 = vsel %vm9721_vm14, %v1822_v37, 0  ;;  %v1823_v11 = vld [vmem:[#allocation2 + $0x24] sm:$0xf] }
 0x12c   :  { %v3243_v3 = vsel %vm8672_vm5, %v3238_v62, %v3242_v36  ;;  %vm1496_vm4 = vcmp.ne.s16.totalorder %v9789_v39, 0  ;;  %v3116_v59 = vrot.slane %v3114_v28, 4  ;;  %v1917_v34 = vshrl.u32 %v1843_v32, 16 }
 0x12d   :  { %3283 = vst.msk [vmem:[#allocation3 + $0x9c] sm:$0xf] %vm12977_vm0, %v3243_v3  ;;  %v1603_v1 = vsel %vm8672_vm5, %v1598_v44, %v1602_v63  ;;  %v3113_v25 = vsel %vm8672_vm5, %v3108_v21, %v3112_v24  ;;  %v2349_v0 = vshrl.u32 %v9518_v50, 16  ;;  %v9814_v16 = vsel %vm1496_vm4, %v1156_v38, 0  ;;  %v9818_v21 = vpop.permute.xlu1 %2172 }
 0x12e   :  { %3270 = vst.msk [vmem:[#allocation3 + $0x34] sm:$0xf] %vm12977_vm0, %v3113_v25  ;;  %1746 = vrot.lane.b32.xlu0 %v1603_v1, %s8134_s23  ;;  %v1606_v37 = vrot.slane %v1604_v29, 4  ;;  %v3027_v15 = vsel %vm1496_vm4, %v3006_v42, 0  ;;  %13157 = vst [vmem:[#allocation63_spill] sm:$0xff] %v9818_v21  ;;  %v3117_v62 = vor.u32 %v3116_v59, %v3112_v24  ;;  %v1919_v36 = vrot.slane %v1917_v34, 7  ;;  %v9830_v21 = vpop.permute.xlu0 %2041 }
 0x12f   :  { %v1920_v44 = vshll.u32 %v1843_v32, 16  ;;  %v1610_v28 = vshll.u32 %v9814_v16, 16  ;;  %v3120_v3 = vshll.u32 %v3027_v15, 16  ;;  %v3124_v25 = vshrl.u32 %v3027_v15, 16  ;;  %v2250_v42 = vld [vmem:[#allocation2 + $0x24] sm:$0xf] }
 0x130   :  { %v1607_v50 = vor.u32 %v1606_v37, %v1602_v63  ;;  %v1844_v1 = vsel %vm9757_vm15, %v1823_v11, 0  ;;  %v3118_v13 = vrot.slane %v3117_v62, 4  ;;  %v1915_v38 = vrot.slane %v9464_v49, 4  ;;  %v2577_v34 = vld [vmem:[#allocation2 + $0x24] sm:$0xf] }
 0x131   :  { %v1922_v29 = vor.u32 %v1920_v44, %v1919_v36  ;;  %v9824_v58 = vrot.slane %v1610_v28, 5  ;;  %vm12966_vm1 = vcmp.eq.s32.totalorder %v9103_v55, 1  ;;  %v3122_v59 = vrot.slane %v3120_v3, 5  ;;  %v2251_v62 = vld [vmem:[#allocation2 + $0x28] sm:$0xf]  ;;  %v9840_v3 = vpop.permute.xlu1 %1736 }
 0x132   :  { %v1608_v24 = vrot.slane %v1607_v50, 4  ;;  %v3126_v32 = vrot.slane %v3124_v25, 4  ;;  %v1614_v37 = vshrl.u32 %v9814_v16, 16  ;;  %v1926_v15 = vshrl.u32 %v1844_v1, 16  ;;  %v2128_v16 = vld [vmem:[#allocation2 + $0x20] sm:$0xf]  ;;  %vm9892_vm13 = vmpackc.low %vm12966_vm1, %vm12966_vm1 }
 0x133   :  { %v1923_v63 = vsel %vm8638_vm8, %v1915_v38, %v1922_v29  ;;  %v1929_v11 = vshll.u32 %v1844_v1, 16  ;;  %v3123_v44 = vsel %vm8672_vm5, %v3118_v13, %v3122_v59  ;;  %v2271_v50 = vsel %vm1495_vm7, %v2250_v42, 0 }
 0x134   :  { %2053 = vrot.lane.b32.xlu0 %v1923_v63, %s8136_s3  ;;  %v1613_v49 = vsel %vm8672_vm5, %v1608_v24, %v9824_v58  ;;  %v3127_v28 = vor.u32 %v3126_v32, %v3122_v59  ;;  %3271 = vst.msk [vmem:[#allocation3 + $0x3c] sm:$0xf] %vm12977_vm0, %v3123_v44  ;;  %v9844_v25 = vrot.slane %v1926_v15, 7  ;;  %v2351_v1 = vrot.slane %v2349_v0, 4  ;;  %v2578_v15 = vld [vmem:[#allocation2 + $0x28] sm:$0xf]  ;;  %v9873_v44 = vpop.permute.xlu0 %2796 }
 0x135   :  { %1748 = vrot.lane.b32.xlu1 %v1613_v49, %s8134_s23  ;;  %v2355_v38 = vshll.u32 %v2271_v50, 16  ;;  %v2359_v29 = vshrl.u32 %v2271_v50, 16  ;;  %v1924_v63 = vrot.slane %v1919_v36, 4  ;;  %v2598_v13 = vsel %vm9721_vm14, %v2577_v34, 0 }
 0x136   :  { %v3128_v24 = vrot.slane %v3127_v28, 4  ;;  %v9850_v46 = vsel %vm1496_vm4, %v2251_v62, 0  ;;  %v1931_v42 = vor.u32 %v1929_v11, %v9844_v25  ;;  %v2352_v59 = vor.u32 %v2351_v1, %v9570_v48 }
 0x137   :  { %v2357_v32 = vrot.slane %v2355_v38, 5  ;;  %v2672_v49 = vshrl.u32 %v2598_v13, 16  ;;  %v13158_v0 = vsel %vm8672_vm5, %v9676_v8, %v9631_v33  ;;  %v2361_v34 = vrot.slane %v2359_v29, 4  ;;  %v9899_v29 = vpop.permute.xlu1 %2043 }
 0x138   :  { %vm9859_vm7 = vcmp.ne.s16.totalorder %v13158_v0, 0  ;;  %v3133_v39 = vsel %vm8672_vm5, %v3128_v24, %v8913_v23  ;;  %2174 = vrot.lane.b32.xlu0 %v2128_v16, %s8132_s22  ;;  %v2365_v48 = vshll.u32 %v9850_v46, 16  ;;  %v1932_v11 = vsel %vm8638_vm8, %v1924_v63, %v1931_v42  ;;  %v2129_v63 = vld [vmem:[#allocation2 + $0x24] sm:$0xf]  ;;  %v1157_v42 = vld [vmem:[#allocation2 + $0x28] sm:$0xf] }
 0x139   :  { %3272 = vst.msk [vmem:[#allocation3 + $0x44] sm:$0xf] %vm12977_vm0, %v3133_v39  ;;  %v2353_v62 = vrot.slane %v2352_v59, 4  ;;  %v9871_v33 = vrot.slane %v2672_v49, 7  ;;  %v2675_v8 = vshll.u32 %v2598_v13, 16  ;;  %v13161_v28 = vor.u32 %v9769_v30, %v9725_v51  ;;  %2055 = vrot.lane.b32.xlu1 %v1932_v11, %s8136_s3 }
 0x13a   :  { %v13162_v50 = vsel %vm8672_vm5, %v9693_v31, %v9725_v51  ;;  %v2362_v30 = vor.u32 %v2361_v34, %v2357_v32  ;;  %v2599_v38 = vsel %vm9757_vm15, %v2578_v15, 0  ;;  %v1616_v51 = vrot.slane %v1614_v37, 4  ;;  %v1824_v34 = vld [vmem:[#allocation2 + $0x28] sm:$0xf] }
 0x13b   :  { %v9878_v23 = vrot.slane %v13161_v28, 4  ;;  %vm9885_vm4 = vcmp.ne.s16.totalorder %v13162_v50, 0  ;;  %v2358_v24 = vsel %vm8672_vm5, %v2353_v62, %v2357_v32  ;;  %v2677_v13 = vor.u32 %v2675_v8, %v9871_v33 }
 0x13c   :  { %2501 = vrot.lane.b32.xlu0 %v2358_v24, %s8135_s2  ;;  %v2670_v59 = vrot.slane %v9609_v40, 4  ;;  %v2363_v49 = vrot.slane %v2362_v30, 4  ;;  %v9908_v0 = vrot.slane %v2365_v48, 5  ;;  %v2681_v15 = vshrl.u32 %v2599_v38, 16  ;;  %v9926_v30 = vpop.permute.xlu0 %1738 }
 0x13d   :  { %v9913_v39 = vsel %vm9892_vm13, 65537, %v13093_v26  ;;  %vm12972_vm1 = vcmp.eq.s32.totalorder %v9160_v43, 1  ;;  %v2684_v37 = vshll.u32 %v2599_v38, 16  ;;  %v809_v32 = vshrl.u32 %v9401_v54, 16  ;;  %2176 = vrot.lane.b32.xlu1 %v2129_v63, %s8132_s22  ;;  %v2883_v63 = vld [vmem:[#allocation2 + $0x24] sm:$0xf] }
 0x13e   :  { %v2678_v40 = vsel %vm8638_vm8, %v2670_v59, %v2677_v13  ;;  %v9920_v11 = vrot.slane %v2681_v15, 7  ;;  %v812_v48 = vshll.u32 %v9401_v54, 16  ;;  %v1518_v62 = vsel %vm1497_vm12, %v1157_v42, 0  ;;  %v9939_v59 = vpop.permute.xlu1 %2491  ;;  %vm9964_vm9 = vmpackc.low %vm12972_vm1, %vm12972_vm1 }
 0x13f   :  { %v811_v8 = vrot.slane %v809_v32, 7  ;;  %v1620_v28 = vshll.u32 %v1518_v62, 16  ;;  %v1624_v50 = vshrl.u32 %v1518_v62, 16  ;;  %v818_v1 = vshrl.u32 %v9405_v35, 16  ;;  %v1825_v62 = vld [vmem:[#allocation2 + $0x2c] sm:$0xf] }
 0x140   :  { %v1617_v38 = vor.u32 %v1616_v51, %v9824_v58  ;;  %2808 = vrot.lane.b32.xlu0 %v2678_v40, %s8137_s24  ;;  %v2368_v24 = vsel %vm8672_vm5, %v2363_v49, %v9908_v0  ;;  %v13167_v54 = vshrl.u32 %v9186_v22, 16  ;;  %v9937_v42 = vsel %vm9859_vm7, %v1824_v34, 0  ;;  %v1158_v40 = vld [vmem:[#allocation2 + $0x2c] sm:$0xf]  ;;  %v401_v34 = vld [vmem:[#allocation2 + $0x18] sm:$0xf] }
 0x141   :  { %v2686_v15 = vor.u32 %v2684_v37, %v9920_v11  ;;  %v814_v32 = vor.u32 %v812_v48, %v811_v8  ;;  %v9942_v58 = vrot.slane %v818_v1, 7  ;;  %v821_v51 = vshll.u32 %v9405_v35, 16  ;;  %2503 = vrot.lane.b32.xlu1 %v2368_v24, %s8135_s2 }
 0x142   :  { %v7009_v13 = vrot.slane %v13167_v54, 11  ;;  %v2679_v22 = vrot.slane %v9871_v33, 4  ;;  %vm12976_vm13 = vcmask 257152   ;;  %v1622_v49 = vrot.slane %v1620_v28, 5  ;;  %v9992_v60 = vpop.permute.xlu1 %2798 }
 0x143   :  { %v816_v54 = vrot.slane %v811_v8, 4  ;;  %v823_v37 = vor.u32 %v821_v51, %v9942_v58  ;;  %v1935_v48 = vshrl.u32 %v9937_v42, 16  ;;  %v1626_v1 = vrot.slane %v1624_v50, 4  ;;  %v1035_v50 = vld [vmem:[#allocation2 + $0x24] sm:$0xf] }
 0x144   :  { %v815_v31 = vsel %vm8638_vm8, %v7009_v13, %v814_v32  ;;  %v679_v35 = vshll.u32 %v9913_v39, 16  ;;  %v2369_v55 = vshrl.u32 %v9850_v46, 16  ;;  %2929 = vrot.lane.b32.xlu0 %v2883_v63, %s8133_s29  ;;  %vm13168_vm10 = vcmp.ne.s16.totalorder %v8945_v4, 0  ;;  %v9974_v13 = vpop.permute.xlu0 %2045 }
 0x145   :  { %1007 = vst.msk [vmem:[#allocation3] sm:$0xf] %vm12977_vm0, %v815_v31  ;;  %v9957_v33 = vsel %vm13168_vm10, %v1158_v40, 0  ;;  %v1846_v8 = vsel %vm9885_vm4, %v1825_v62, 0  ;;  %v2687_v46 = vsel %vm8638_vm8, %v2679_v22, %v2686_v15  ;;  %v1618_v31 = vrot.slane %v1617_v38, 4  ;;  %v13172_v22 = vld [vmem:[#allocation52_spill] sm:$0xff] }
 0x146   :  { %1128 = vst.msk [vmem:[#allocation3] sm:$0xf] %vm12976_vm13, %v9397_v9  ;;  %v824_v24 = vsel %vm8638_vm8, %v816_v54, %v823_v37  ;;  %v1944_v63 = vshrl.u32 %v1846_v8, 16  ;;  %v9978_v32 = vsel %vm9362_vm3, %v401_v34, 0  ;;  %v13171_v51 = vor.u32 %v9795_v12, %v9793_v10  ;;  %2810 = vrot.lane.b32.xlu1 %v2687_v46, %s8137_s24  ;;  %v2884_v38 = vld [vmem:[#allocation2 + $0x28] sm:$0xf] }
 0x147   :  { %1008 = vst.msk [vmem:[#allocation3 + $0x8] sm:$0xf] %vm12977_vm0, %v824_v24  ;;  %v827_v40 = vshrl.u32 %v9411_v18, 16  ;;  %v683_v62 = vshrl.u32 %v9913_v39, 16  ;;  %v9997_v54 = vrot.slane %v1935_v48, 7  ;;  %v1627_v34 = vor.u32 %v1626_v1, %v1622_v49 }
 0x148   :  { %v9987_v9 = vrot.slane %v13171_v51, 4  ;;  %1129 = vst.msk [vmem:[#allocation3 + $0x8] sm:$0xf] %vm12976_vm13, %v13172_v22  ;;  %v1630_v12 = vshll.u32 %v9957_v33, 16  ;;  %v2252_v37 = vld [vmem:[#allocation2 + $0x2c] sm:$0xf]  ;;  %1083 = vrot.lane.b32.xlu0 %v1035_v50, %s8131_s15  ;;  %v1623_v48 = vsel %vm8672_vm5, %v1618_v31, %v1622_v49  ;;  %v10022_v31 = vpop.permute.xlu0 %2493 }
 0x149   :  { %v10000_v51 = vrot.slane %v679_v35, 5  ;;  %v10005_v46 = vsel %vm9964_vm9, 65537, %v13093_v26  ;;  %v829_v24 = vrot.slane %v827_v40, 7  ;;  %v830_v39 = vshll.u32 %v9411_v18, 16  ;;  %v2579_v35 = vld [vmem:[#allocation2 + $0x2c] sm:$0xf]  ;;  %vm13179_vm9 = vmmov %vm13168_vm10 }
 0x14a   :  { %v2371_v15 = vrot.slane %v2369_v55, 4  ;;  %v1938_v1 = vshll.u32 %v9937_v42, 16  ;;  %v10012_v22 = vrot.slane %v1944_v63, 7  ;;  %2931 = vrot.lane.b32.xlu1 %v2884_v38, %s8133_s29  ;;  %v825_v28 = vrot.slane %v9942_v58, 4  ;;  %v13173_v40 = vld [vmem:[#allocation53_spill] sm:$0xff] }
 0x14b   :  { %v832_v43 = vor.u32 %v830_v39, %v829_v24  ;;  %v2273_v50 = vsel %vm1497_vm12, %v2252_v37, 0  ;;  %v836_v20 = vshrl.u32 %v13173_v40, 16  ;;  %v1036_v18 = vld [vmem:[#allocation2 + $0x28] sm:$0xf]  ;;  %v1628_v2 = vrot.slane %v1627_v34, 4  ;;  %v1741_v37 = vpop.permute.xlu1 %1740 }
 0x14c   :  { %v1940_v55 = vor.u32 %v1938_v1, %v9997_v54  ;;  %v10020_v49 = vrot.slane %v1630_v12, 5  ;;  %v1947_v42 = vshll.u32 %v1846_v8, 16  ;;  %1750 = vrot.lane.b32.xlu0 %v1623_v48, %s8134_s23  ;;  %v839_v57 = vshll.u32 %v13173_v40, 16  ;;  %v13175_v40 = vld [vmem:[#allocation39_spill] sm:$0xff] }
 0x14d   :  { %v833_v63 = vsel %vm8638_vm8, %v825_v28, %v832_v43  ;;  %v10027_v58 = vrot.slane %v836_v20, 7  ;;  %v10032_v38 = vsel %vm9859_vm7, %v2579_v35, 0  ;;  %v10034_v34 = vrot.slane %v683_v62, 4  ;;  %v13174_v20 = vld [vmem:[#allocation55_spill] sm:$0xff] }
 0x14e   :  { %v1933_v8 = vrot.slane %v9844_v25, 4  ;;  %1009 = vst.msk [vmem:[#allocation3 + $0x10] sm:$0xf] %vm12977_vm0, %v833_v63  ;;  %v2375_v12 = vshll.u32 %v2273_v50, 16  ;;  %v2379_v39 = vshrl.u32 %v2273_v50, 16  ;;  %v2372_v48 = vor.u32 %v2371_v15, %v9908_v0  ;;  %1085 = vrot.lane.b32.xlu1 %v1036_v18, %s8131_s15 }
 0x14f   :  { %v1949_v43 = vor.u32 %v1947_v42, %v10012_v22  ;;  %1130 = vst.msk [vmem:[#allocation3 + $0x10] sm:$0xf] %vm12976_vm13, %v13174_v20  ;;  %v834_v1 = vrot.slane %v829_v24, 4  ;;  %v841_v35 = vor.u32 %v839_v57, %v10027_v58  ;;  %v2253_v62 = vld [vmem:[#allocation2 + $0x30] sm:$0xf]  ;;  %v682_v25 = vsel %vm8672_vm5, %v9987_v9, %v10000_v51  ;;  %v10075_v20 = vpop.permute.xlu0 %2800 }
 0x150   :  { %v689_v28 = vshll.u32 %v10005_v46, 16  ;;  %v1941_v0 = vsel %vm8638_vm8, %v1933_v8, %v1940_v55  ;;  %v2690_v15 = vshrl.u32 %v10032_v38, 16  ;;  %v2580_v50 = vld [vmem:[#allocation2 + $0x30] sm:$0xf]  ;;  %vm12973_vm12 = vcmp.eq.s32.totalorder %v13175_v40, 1 }
 0x151   :  { %2057 = vrot.lane.b32.xlu0 %v1941_v0, %s8136_s3  ;;  %v1633_v24 = vsel %vm8672_vm5, %v1628_v2, %v10020_v49  ;;  %v1942_v18 = vrot.slane %v9997_v54, 4  ;;  %v842_v9 = vsel %vm8638_vm8, %v834_v1, %v841_v35  ;;  %v13176_v55 = vsel %vm8672_vm5, %v9878_v23, %v9793_v10  ;;  %v2130_v63 = vld [vmem:[#allocation2 + $0x28] sm:$0xf]  ;;  %vm10090_vm10 = vmpackc.low %vm12973_vm12, %vm12973_vm12 }
 0x152   :  { %vm10065_vm3 = vcmp.ne.s16.totalorder %v13176_v55, 0  ;;  %v2377_v57 = vrot.slane %v2375_v12, 5  ;;  %1010 = vst.msk [vmem:[#allocation3 + $0x18] sm:$0xf] %vm12977_vm0, %v842_v9  ;;  %v10072_v2 = vsel %vm13179_vm9, %v2253_v62, 0  ;;  %v2381_v54 = vrot.slane %v2379_v39, 4  ;;  %1752 = vrot.lane.b32.xlu1 %v1633_v24, %s8134_s23  ;;  %v2048_v39 = vpop.permute.xlu1 %2047 }
 0x153   :  { %v845_v8 = vshrl.u32 %v9641_v56, 16  ;;  %v1950_v10 = vsel %vm8638_vm8, %v1942_v18, %v1949_v43  ;;  %v2373_v23 = vrot.slane %v2372_v48, 4  ;;  %1131 = vst.msk [vmem:[#allocation3 + $0x18] sm:$0xf] %vm12976_vm13, %v9660_v53  ;;  %v10084_v12 = vsel %vm9885_vm4, %v2580_v50, 0 }
 0x154   :  { %v854_v4 = vshrl.u32 %v9978_v32, 16  ;;  %v10094_v35 = vrot.slane %v2690_v15, 7  ;;  %v2693_v48 = vshll.u32 %v10032_v38, 16  ;;  %v848_v53 = vshll.u32 %v9641_v56, 16  ;;  %v1159_v38 = vld [vmem:[#allocation2 + $0x30] sm:$0xf] }
 0x155   :  { %v847_v43 = vrot.slane %v845_v8, 7  ;;  %2178 = vrot.lane.b32.xlu0 %v2130_v63, %s8132_s22  ;;  %v2385_v62 = vshll.u32 %v10072_v2, 16  ;;  %v857_v50 = vshll.u32 %v9978_v32, 16  ;;  %vm1794_vm9 = vcmask 388352   ;;  %v2131_v55 = vld [vmem:[#allocation2 + $0x2c] sm:$0xf] }
 0x156   :  { %v10100_v0 = vrot.slane %v854_v4, 7  ;;  %v2382_v24 = vor.u32 %v2381_v54, %v2377_v57  ;;  %v2699_v18 = vshrl.u32 %v10084_v12, 16  ;;  %v843_v15 = vrot.slane %v10027_v58, 4  ;;  %1795 = vst.msk [vmem:[#allocation3] sm:$0xf] %vm1794_vm9, %v9774_v47  ;;  %2059 = vrot.lane.b32.xlu1 %v1950_v10, %s8136_s3  ;;  %v1743_v54 = vpop.permute.xlu0 %1742 }
 0x157   :  { %v850_v9 = vor.u32 %v848_v53, %v847_v43  ;;  %1796 = vst.msk [vmem:[#allocation3 + $0x8] sm:$0xf] %vm1794_vm9, %v9840_v3  ;;  %1797 = vst.msk [vmem:[#allocation3 + $0x10] sm:$0xf] %vm1794_vm9, %v9926_v30  ;;  %v693_v56 = vshrl.u32 %v10005_v46, 16  ;;  %v10116_v32 = vsel %vm10090_vm10, 65537, %v13093_v26  ;;  %v2378_v30 = vsel %vm8672_vm5, %v2373_v23, %v2377_v57  ;;  %v2496_v23 = vpop.permute.xlu1 %2495 }
 0x158   :  { %1798 = vst.msk [vmem:[#allocation3 + $0x18] sm:$0xf] %vm1794_vm9, %v1741_v37  ;;  %v852_v58 = vrot.slane %v847_v43, 4  ;;  %v859_v47 = vor.u32 %v857_v50, %v10100_v0  ;;  %v1634_v3 = vshrl.u32 %v9957_v33, 16  ;;  %v2695_v37 = vor.u32 %v2693_v48, %v10094_v35 }
 0x159   :  { %v851_v63 = vsel %vm8638_vm8, %v843_v15, %v850_v9  ;;  %v686_v8 = vor.u32 %v10034_v34, %v10000_v51  ;;  %vm10128_vm10 = vcmp.ne.s16.totalorder %v682_v25, 0  ;;  %2505 = vrot.lane.b32.xlu0 %v2378_v30, %s8135_s2  ;;  %v2688_v33 = vrot.slane %v9920_v11, 4  ;;  %v13184_v51 = vld [vmem:[#allocation29_spill] sm:$0xff]  ;;  %v1826_v11 = vld [vmem:[#allocation2 + $0x30] sm:$0xf]  ;;  %v13192_v30 = vld [vmem:[#allocation34_spill] sm:$0xff] }
 0x15a   :  { %1011 = vst.msk [vmem:[#allocation3 + $0x20] sm:$0xf] %vm12977_vm0, %v851_v63  ;;  %v860_v57 = vsel %vm8638_vm8, %v852_v58, %v859_v47  ;;  %v2383_v4 = vrot.slane %v2382_v24, 4  ;;  %v10137_v1 = vrot.slane %v2385_v62, 5  ;;  %v10139_v48 = vrot.slane %v2699_v18, 7  ;;  %2180 = vrot.lane.b32.xlu1 %v2131_v55, %s8132_s22  ;;  %v13186_v24 = vld [vmem:[#allocation49_spill] sm:$0xff] }
 0x15b   :  { %1132 = vst.msk [vmem:[#allocation3 + $0x20] sm:$0xf] %vm12976_vm13, %v9691_v45  ;;  %vm13185_vm1 = vcmp.ne.s16.totalorder %v13184_v51, 0  ;;  %v10148_v25 = vrot.slane %v689_v28, 5  ;;  %v10150_v43 = vrot.slane %v693_v56, 4  ;;  %v699_v53 = vshll.u32 %v10116_v32, 16 }
 0x15c   :  { %1012 = vst.msk [vmem:[#allocation3 + $0x28] sm:$0xf] %vm12977_vm0, %v860_v57  ;;  %v1520_v34 = vsel %vm13185_vm1, %v1159_v38, 0  ;;  %vm2101_vm12 = vcmask 519552   ;;  %v2696_v45 = vsel %vm8638_vm8, %v2688_v33, %v2695_v37  ;;  %v2702_v62 = vshll.u32 %v10084_v12, 16  ;;  %v13199_v57 = vld [vmem:[#allocation43_spill] sm:$0xff] }
 0x15d   :  { %1133 = vst.msk [vmem:[#allocation3 + $0x28] sm:$0xf] %vm12976_vm13, %v9780_v14  ;;  %v1636_v46 = vrot.slane %v1634_v3, 4  ;;  %vm2222_vm1 = vcmask 650752   ;;  %v703_v14 = vshrl.u32 %v10116_v32, 16  ;;  %2812 = vrot.lane.b32.xlu0 %v2696_v45, %s8137_s24  ;;  %v1640_v28 = vshll.u32 %v1520_v34, 16 }
 0x15e   :  { %1799 = vst.msk [vmem:[#allocation3 + $0x20] sm:$0xf] %vm1794_vm9, %v1743_v54  ;;  %v1644_v50 = vshrl.u32 %v1520_v34, 16  ;;  %v10171_v12 = vsel %vm10065_vm3, %v1826_v11, 0  ;;  %v2704_v18 = vor.u32 %v2702_v62, %v10139_v48  ;;  %vm12978_vm2 = vcmask 781952  }
 0x15f   :  { %2102 = vst.msk [vmem:[#allocation3] sm:$0xf] %vm2101_vm12, %v9830_v21  ;;  %2103 = vst.msk [vmem:[#allocation3 + $0x8] sm:$0xf] %vm2101_vm12, %v9899_v29  ;;  %v13187_v21 = vld [vmem:[#allocation56_spill] sm:$0xff]  ;;  %v13188_v29 = vld [vmem:[#allocation41_spill] sm:$0xff]  ;;  %v1637_v58 = vor.u32 %v1636_v46, %v10020_v49 }
 0x160   :  { %2104 = vst.msk [vmem:[#allocation3 + $0x10] sm:$0xf] %vm2101_vm12, %v9974_v13  ;;  %2105 = vst.msk [vmem:[#allocation3 + $0x18] sm:$0xf] %vm2101_vm12, %v2048_v39  ;;  %vm12979_vm6 = vcmp.eq.s32.totalorder %v13188_v29, 1  ;;  %v2388_v13 = vsel %vm8672_vm5, %v2383_v4, %v10137_v1  ;;  %v10186_v15 = vrot.slane %v686_v8, 4 }
 0x161   :  { %2223 = vst.msk [vmem:[#allocation3] sm:$0xf] %vm2222_vm1, %v13186_v24  ;;  %2224 = vst.msk [vmem:[#allocation3 + $0x8] sm:$0xf] %vm2222_vm1, %v13187_v21  ;;  %v2885_v39 = vld [vmem:[#allocation2 + $0x2c] sm:$0xf]  ;;  %2507 = vrot.lane.b32.xlu1 %v2388_v13, %s8135_s2 }
 0x162   :  { %2225 = vst.msk [vmem:[#allocation3 + $0x10] sm:$0xf] %vm2222_vm1, %v9611_v6  ;;  %2226 = vst.msk [vmem:[#allocation3 + $0x18] sm:$0xf] %vm2222_vm1, %v9696_v61  ;;  %v1160_v9 = vld [vmem:[#allocation2 + $0x34] sm:$0xf]  ;;  %v2803_v6 = vpop.permute.xlu1 %2802  ;;  %2933 = vrot.lane.b32.xlu0 %v2885_v39, %s8133_s29 }
 0x163   :  { %v1827_v56 = vld [vmem:[#allocation2 + $0x34] sm:$0xf]  ;;  %2550 = vst.msk [vmem:[#allocation3] sm:$0xf] %vm12978_vm2, %v9807_v41  ;;  %vm2856_vm13 = vcmask 913152   ;;  %v2697_v32 = vrot.slane %v10094_v35, 4  ;;  %v2050_v11 = vpop.permute.xlu0 %2049 }
 0x164   :  { %2551 = vst.msk [vmem:[#allocation3 + $0x8] sm:$0xf] %vm12978_vm2, %v9939_v59  ;;  %2552 = vst.msk [vmem:[#allocation3 + $0x10] sm:$0xf] %vm12978_vm2, %v10022_v31  ;;  %v402_v61 = vld [vmem:[#allocation2 + $0x1c] sm:$0xf]  ;;  %v696_v59 = vor.u32 %v10150_v43, %v10148_v25 }
 0x165   :  { %2553 = vst.msk [vmem:[#allocation3 + $0x18] sm:$0xf] %vm12978_vm2, %v2496_v23  ;;  %v1953_v47 = vshrl.u32 %v10171_v12, 16  ;;  %vm2977_vm0 = vcmask 1044352   ;;  %v403_v41 = vld [vmem:[#allocation2 + $0x20] sm:$0xf]  ;;  %vm10213_vm2 = vmpackc.low %vm12979_vm6, %vm12979_vm6  ;;  %v2705_v38 = vsel %vm8638_vm8, %v2697_v32, %v2704_v18 }
 0x166   :  { %2857 = vst.msk [vmem:[#allocation3] sm:$0xf] %vm2856_vm13, %v9873_v44  ;;  %2858 = vst.msk [vmem:[#allocation3 + $0x8] sm:$0xf] %vm2856_vm13, %v9992_v60  ;;  %v10208_v31 = vrot.slane %v699_v53, 5  ;;  %v1642_v44 = vrot.slane %v1640_v28, 5  ;;  %2814 = vrot.lane.b32.xlu1 %v2705_v38, %s8137_s24  ;;  %v1745_v13 = vpop.permute.xlu1 %1744 }
 0x167   :  { %2859 = vst.msk [vmem:[#allocation3 + $0x10] sm:$0xf] %vm2856_vm13, %v10075_v20  ;;  %2860 = vst.msk [vmem:[#allocation3 + $0x18] sm:$0xf] %vm2856_vm13, %v2803_v6  ;;  %v1646_v60 = vrot.slane %v1644_v50, 4  ;;  %v13191_v20 = vld [vmem:[#allocation51_spill] sm:$0xff] }
 0x168   :  { %2978 = vst.msk [vmem:[#allocation3] sm:$0xf] %vm2977_vm0, %v13191_v20  ;;  %2979 = vst.msk [vmem:[#allocation3 + $0x8] sm:$0xf] %vm2977_vm0, %v9615_v17  ;;  %v10226_v35 = vrot.slane %v703_v14, 4  ;;  %vm13193_vm6 = vcmp.ne.s16.totalorder %v13192_v30, 0 }
 0x169   :  { %2980 = vst.msk [vmem:[#allocation3 + $0x10] sm:$0xf] %vm2977_vm0, %v9648_v19  ;;  %2981 = vst.msk [vmem:[#allocation3 + $0x18] sm:$0xf] %vm2977_vm0, %v9742_v5  ;;  %v1037_v3 = vld [vmem:[#allocation2 + $0x2c] sm:$0xf]  ;;  %v1647_v7 = vor.u32 %v1646_v60, %v1642_v44 }
 0x16a   :  { %v10232_v55 = vsel %vm13193_vm6, %v1160_v9, 0  ;;  %v10236_v37 = vsel %vm10128_vm10, %v1827_v56, 0  ;;  %v10240_v17 = vsel %vm9721_vm14, %v402_v61, 0  ;;  %v2886_v19 = vld [vmem:[#allocation2 + $0x30] sm:$0xf]  ;;  %v551_v5 = vsel %vm10213_vm2, 65537, %v13093_v26  ;;  %1087 = vrot.lane.b32.xlu0 %v1037_v3, %s8131_s15 }
 0x16b   :  { %v2389_v63 = vshrl.u32 %v10072_v2, 16  ;;  %v1638_v54 = vrot.slane %v1637_v58, 4  ;;  %v10247_v8 = vrot.slane %v1953_v47, 7  ;;  %v2254_v33 = vld [vmem:[#allocation2 + $0x34] sm:$0xf]  ;;  %v10251_v23 = vsel %vm9757_vm15, %v403_v41, 0  ;;  %2935 = vrot.lane.b32.xlu1 %v2886_v19, %s8133_s29 }
 0x16c   :  { %v1650_v4 = vshll.u32 %v10232_v55, 16  ;;  %v1962_v34 = vshrl.u32 %v10236_v37, 16  ;;  %v404_v43 = vld [vmem:[#allocation2 + $0x24] sm:$0xf]  ;;  %v692_v2 = vsel %vm8672_vm5, %v10186_v15, %v10148_v25  ;;  %v697_v53 = vrot.slane %v696_v59, 4  ;;  %v13196_v25 = vld [vmem:[#allocation60_spill] sm:$0xff] }
 0x16d   :  { %v706_v45 = vor.u32 %v10226_v35, %v10208_v31  ;;  %v1956_v62 = vshll.u32 %v10171_v12, 16  ;;  %v2581_v46 = vld [vmem:[#allocation2 + $0x34] sm:$0xf]  ;;  %2106 = vst.msk [vmem:[#allocation3 + $0x20] sm:$0xf] %vm2101_vm12, %v2050_v11  ;;  %v709_v14 = vshll.u32 %v551_v5, 16  ;;  %v1643_v12 = vsel %vm8672_vm5, %v1638_v54, %v1642_v44 }
 0x16e   :  { %v713_v28 = vshrl.u32 %v551_v5, 16  ;;  %v1038_v50 = vld [vmem:[#allocation2 + $0x30] sm:$0xf]  ;;  %v1951_v24 = vrot.slane %v10012_v22, 4  ;;  %vm13195_vm2 = vcmp.ne.s16.totalorder %v13184_v51, 0  ;;  %v2391_v18 = vrot.slane %v2389_v63, 4  ;;  %1754 = vrot.lane.b32.xlu0 %v1643_v12, %s8134_s23 }
 0x16f   :  { %v2275_v21 = vsel %vm13195_vm2, %v2254_v33, 0  ;;  %2227 = vst.msk [vmem:[#allocation3 + $0x20] sm:$0xf] %vm2222_vm1, %v13196_v25  ;;  %v1958_v39 = vor.u32 %v1956_v62, %v10247_v8  ;;  %v7974_v15 = vld [vmem:[#allocation3] ss:$8 sps:$4 sm:$0xff]   ;;  %vm3466_vm6 = vcmask 130048   ;;  %1089 = vrot.lane.b32.xlu1 %v1038_v50, %s8131_s15  ;;  %v702_v54 = vsel %vm8672_vm5, %v697_v53, %v10208_v31 }
 0x170   :  { %1800 = vst.msk [vmem:[#allocation3 + $0x28] sm:$0xf] %vm1794_vm9, %v1745_v13  ;;  %v1648_v22 = vrot.slane %v1647_v7, 4  ;;  %v10275_v9 = vrot.slane %v1650_v4, 5  ;;  %v10277_v51 = vrot.slane %v1962_v34, 7  ;;  %v10281_v56 = vsel %vm10065_vm3, %v2581_v46, 0 }
 0x171   :  { %v7976_v6 = vld [vmem:[#allocation3 + $0x4] ss:$8 sps:$4 sm:$0xff]   ;;  %v405_v61 = vld [vmem:[#allocation2 + $0x28] sm:$0xf]  ;;  %v2395_v32 = vshll.u32 %v2275_v21, 16  ;;  %v2399_v58 = vshrl.u32 %v2275_v21, 16  ;;  %v1959_v35 = vsel %vm8638_vm8, %v1951_v24, %v1958_v39  ;;  %v2392_v36 = vor.u32 %v2391_v18, %v10137_v1  ;;  %v2498_v39 = vpop.permute.xlu0 %2497 }
 0x172   :  { %v7977_v47 = vld [vmem:[#allocation3 + $0x14] ss:$8 sps:$4 sm:$0xff]   ;;  %v10285_v41 = vsel %vm9859_vm7, %v404_v43, 0  ;;  %vm10287_vm14 = vcmp.ne.s16.totalorder %v692_v2, 0  ;;  %v711_v49 = vrot.slane %v709_v14, 5  ;;  %v715_v44 = vrot.slane %v713_v28, 4  ;;  %7041 = vmatprep.mubr.msk.bf16.mxu0 %vm3466_vm6, %v7976_v6  ;;  %2061 = vrot.lane.b32.xlu0 %v1959_v35, %s8136_s3 }
 0x173   :  { %v2255_v60 = vld [vmem:[#allocation2 + $0x38] sm:$0xf]  ;;  %v406_v20 = vld [vmem:[#allocation2 + $0x2c] sm:$0xf]  ;;  %v1965_v38 = vshll.u32 %v10236_v37, 16  ;;  %v2708_v3 = vshrl.u32 %v10281_v56, 16  ;;  %3530 = vmatmul.mubr.bf16.vlgmr.msra.gmra.mxu0 %v7974_v15  ;;  %v1653_v37 = vsel %vm8672_vm5, %v1648_v22, %v10275_v9 }
 0x174   :  { %v2582_v19 = vld [vmem:[#allocation2 + $0x38] sm:$0xf]  ;;  %v407_v5 = vld [vmem:[#allocation2 + $0x30] sm:$0xf]  ;;  %v408_v63 = vld [vmem:[#allocation2 + $0x34] sm:$0xf]  ;;  %7042 = vmatprep.mubr.msk.bf16.mxu0 %vm3466_vm6, %v7977_v47  ;;  %v716_v53 = vor.u32 %v715_v44, %v711_v49  ;;  %1756 = vrot.lane.b32.xlu1 %v1653_v37, %s8134_s23 }
 0x175   :  { %v707_v33 = vrot.slane %v706_v45, 4  ;;  %vm12980_vm15 = vcmp.eq.s32.totalorder %v13199_v57, 1  ;;  %v2132_v1 = vld [vmem:[#allocation2 + $0x30] sm:$0xf]  ;;  %v1967_v7 = vor.u32 %v1965_v38, %v10277_v51  ;;  %v2397_v4 = vrot.slane %v2395_v32, 5 }
 0x176   :  { %vm13200_vm7 = vcmp.ne.s16.totalorder %v13192_v30, 0  ;;  %v2401_v31 = vrot.slane %v2399_v58, 4  ;;  %v10314_v11 = vsel %vm9885_vm4, %v405_v61, 0  ;;  %v10318_v43 = vsel %vm10065_vm3, %v406_v20, 0  ;;  %v409_v2 = vld [vmem:[#allocation2 + $0x38] sm:$0xf]  ;;  %vm10332_vm4 = vmpackc.low %vm12980_vm15, %vm12980_vm15  ;;  %2182 = vrot.lane.b32.xlu0 %v2132_v1, %s8132_s22 }
 0x177   :  { %v10310_v34 = vsel %vm13200_vm7, %v2255_v60, 0  ;;  %v10323_v45 = vsel %vm10128_vm10, %v2582_v19, 0  ;;  %vm10325_vm2 = vcmp.ne.s16.totalorder %v702_v54, 0  ;;  %v1960_v42 = vrot.slane %v10247_v8, 4  ;;  %v7979_v14 = vld [vmem:[#allocation3 + $0x10] ss:$8 sps:$4 sm:$0xff]   ;;  %v2052_v19 = vpop.permute.xlu1 %2051 }
 0x178   :  { %v2393_v62 = vrot.slane %v2392_v36, 4  ;;  %v10337_v46 = vrot.slane %v2708_v3, 7  ;;  %v10341_v28 = vsel %vm10128_vm10, %v407_v5, 0  ;;  %v10345_v50 = vsel %vm10287_vm14, %v408_v63, 0  ;;  %v1161_v12 = vld [vmem:[#allocation2 + $0x38] sm:$0xf] }
 0x179   :  { %v712_v24 = vsel %vm8672_vm5, %v707_v33, %v711_v49  ;;  %v2405_v21 = vshll.u32 %v10310_v34, 16  ;;  %v1968_v8 = vsel %vm8638_vm8, %v1960_v42, %v1967_v7  ;;  %v2711_v25 = vshll.u32 %v10281_v56, 16  ;;  %v13206_v56 = vld [vmem:[#allocation46_spill] sm:$0xff]  ;;  %v2133_v32 = vld [vmem:[#allocation2 + $0x34] sm:$0xf]  ;;  %v13210_v20 = vld [vmem:[#allocation37_spill] sm:$0xff] }
 0x17a   :  { %v2402_v13 = vor.u32 %v2401_v31, %v2397_v4  ;;  %v2717_v10 = vshrl.u32 %v10323_v45, 16  ;;  %v10357_v18 = vsel %vm10325_vm2, %v409_v2, 0  ;;  %v10359_v15 = vrot.slane %v716_v53, 4  ;;  %2063 = vrot.lane.b32.xlu1 %v1968_v8, %s8136_s3  ;;  %v1828_v3 = vld [vmem:[#allocation2 + $0x38] sm:$0xf] }
 0x17b   :  { %v10364_v22 = vsel %vm10332_vm4, 65537, %v13093_v26  ;;  %v1654_v6 = vshrl.u32 %v10232_v55, 16  ;;  %vm13205_vm3 = vcmask 781952   ;;  %vm12981_vm10 = vcmp.eq.s32.totalorder %v13206_v56, 1  ;;  %3538 = vmatmul.mubr.bf16.gmra.mxu0 %v7979_v14  ;;  %v13209_v55 = vld [vmem:[#allocation47_spill] sm:$0xff] }
 0x17c   :  { %2554 = vst.msk [vmem:[#allocation3 + $0x20] sm:$0xf] %vm13205_vm3, %v2498_v39  ;;  %v2398_v61 = vsel %vm8672_vm5, %v2393_v62, %v2397_v4  ;;  %v2713_v58 = vor.u32 %v2711_v25, %v10337_v46  ;;  %v863_v47 = vshrl.u32 %v10240_v17, 16  ;;  %vm10374_vm7 = vcmp.ne.s16.totalorder %v712_v24, 0  ;;  %v13214_v4 = vld [vmem:[#allocation63_spill] sm:$0xff] }
 0x17d   :  { %vm12982_vm4 = vcmp.eq.s32.totalorder %v13209_v55, 1  ;;  %2509 = vrot.lane.b32.xlu0 %v2398_v61, %s8135_s2  ;;  %v2706_v44 = vrot.slane %v10139_v48, 4  ;;  %v10381_v60 = vrot.slane %v2405_v21, 5  ;;  %vm13211_vm3 = vcmp.ne.s16.totalorder %v13210_v20, 0  ;;  %2107 = vst.msk [vmem:[#allocation3 + $0x28] sm:$0xf] %vm2101_vm12, %v2052_v19 }
 0x17e   :  { %v1522_v35 = vsel %vm13211_vm3, %v1161_v12, 0  ;;  %v2403_v38 = vrot.slane %v2402_v13, 4  ;;  %v10385_v36 = vrot.slane %v2717_v10, 7  ;;  %v865_v5 = vrot.slane %v863_v47, 7  ;;  %2184 = vrot.lane.b32.xlu1 %v2133_v32, %s8132_s22  ;;  %vm10396_vm3 = vmpackc.low %vm12981_vm10, %vm12981_vm10  ;;  %2228 = vst.msk [vmem:[#allocation3 + $0x28] sm:$0xf] %vm2222_vm1, %v13214_v4 }
 0x17f   :  { %v866_v63 = vshll.u32 %v10240_v17, 16  ;;  %v719_v54 = vshll.u32 %v10364_v22, 16  ;;  %v2720_v33 = vshll.u32 %v10323_v45, 16  ;;  %v1656_v48 = vrot.slane %v1654_v6, 4  ;;  %vm10408_vm15 = vmpackc.low %vm12982_vm4, %vm12982_vm4  ;;  %v2887_v24 = vld [vmem:[#allocation2 + $0x34] sm:$0xf] }
 0x180   :  { %v872_v37 = vshrl.u32 %v10251_v23, 16  ;;  %v2714_v17 = vsel %vm8638_vm8, %v2706_v44, %v2713_v58  ;;  %v1660_v7 = vshll.u32 %v1522_v35, 16  ;;  %v861_v31 = vrot.slane %v10100_v0, 4  ;;  %v13217_v13 = vld [vmem:[#allocation50_spill] sm:$0xff]  ;;  %v1829_v32 = vld [vmem:[#allocation2 + $0x3c] sm:$0xf] }
 0x181   :  { %v868_v2 = vor.u32 %v866_v63, %v865_v5  ;;  %2816 = vrot.lane.b32.xlu0 %v2714_v17, %s8137_s24  ;;  %v1664_v45 = vshrl.u32 %v1522_v35, 16  ;;  %v10415_v16 = vsel %vm10287_vm14, %v1828_v3, 0  ;;  %v875_v62 = vshll.u32 %v10251_v23, 16  ;;  %v1162_v23 = vld [vmem:[#allocation2 + $0x3c] sm:$0xf] }
 0x182   :  { %v10417_v42 = vrot.slane %v872_v37, 7  ;;  %v723_v0 = vshrl.u32 %v10364_v22, 16  ;;  %v2408_v14 = vsel %vm8672_vm5, %v2403_v38, %v10381_v60  ;;  %v2722_v21 = vor.u32 %v2720_v33, %v10385_v36  ;;  %v410_v58 = vld [vmem:[#allocation2 + $0x3c] sm:$0xf]  ;;  %v2805_v38 = vpop.permute.xlu0 %2804  ;;  %v1039_v63 = vld [vmem:[#allocation2 + $0x34] sm:$0xf] }
 0x183   :  { %v869_v8 = vsel %vm8638_vm8, %v861_v31, %v868_v2  ;;  %v553_v25 = vsel %vm10396_vm3, 65537, %v13093_v26  ;;  %vm12983_vm10 = vcmp.eq.s32.totalorder %v13217_v13, 1  ;;  %2511 = vrot.lane.b32.xlu1 %v2408_v14, %s8135_s2  ;;  %vm13218_vm4 = vcmask 125952   ;;  %2861 = vst.msk [vmem:[#allocation3 + $0x20] sm:$0xf] %vm2856_vm13, %v2805_v38 }
 0x184   :  { %1013 = vst.msk [vmem:[#allocation3 + $0x30] sm:$0xf] %vm13218_vm4, %v869_v8  ;;  %v870_v10 = vrot.slane %v865_v5, 4  ;;  %v877_v12 = vor.u32 %v875_v62, %v10417_v42  ;;  %v554_v39 = vsel %vm10408_vm15, 65537, %v13093_v26  ;;  %v2715_v22 = vrot.slane %v10337_v46, 4  ;;  %vm10450_vm15 = vmpackc.low %vm12983_vm10, %vm12983_vm10  ;;  %v2500_v62 = vpop.permute.xlu1 %2499 }
 0x185   :  { %v1657_v6 = vor.u32 %v1656_v48, %v10275_v9  ;;  %v1971_v61 = vshrl.u32 %v10415_v16, 16  ;;  %v10440_v47 = vrot.slane %v719_v54, 5  ;;  %2937 = vrot.lane.b32.xlu0 %v2887_v24, %s8133_s29  ;;  %v1662_v44 = vrot.slane %v1660_v7, 5  ;;  %v13221_v54 = vld [vmem:[#allocation44_spill] sm:$0xff] }
 0x186   :  { %v1666_v35 = vrot.slane %v1664_v45, 4  ;;  %v878_v3 = vsel %vm8638_vm8, %v870_v10, %v877_v12  ;;  %v10445_v19 = vrot.slane %v723_v0, 4  ;;  %v729_v5 = vshll.u32 %v553_v25, 16  ;;  %v2256_v7 = vld [vmem:[#allocation2 + $0x3c] sm:$0xf] }
 0x187   :  { %v2723_v46 = vsel %vm8638_vm8, %v2715_v22, %v2722_v21  ;;  %vm13222_vm4 = vcmp.ne.s16.totalorder %v13221_v54, 0  ;;  %vm13223_vm3 = vcmask 125952   ;;  %v733_v48 = vshrl.u32 %v553_v25, 16  ;;  %v2888_v2 = vld [vmem:[#allocation2 + $0x38] sm:$0xf]  ;;  %v2926_v21 = vpop.permute.xlu0 %2925 }
 0x188   :  { %v10458_v33 = vsel %vm13222_vm4, %v1162_v23, 0  ;;  %1014 = vst.msk [vmem:[#allocation3 + $0x38] sm:$0xf] %vm13223_vm3, %v878_v3  ;;  %v739_v37 = vshll.u32 %v554_v39, 16  ;;  %v2409_v1 = vshrl.u32 %v10310_v34, 16  ;;  %2818 = vrot.lane.b32.xlu1 %v2723_v46, %s8137_s24  ;;  %v1850_v17 = vsel %vm10325_vm2, %v1829_v32, 0 }
 0x189   :  { %v10468_v4 = vsel %vm10374_vm7, %v410_v58, 0  ;;  %v743_v31 = vshrl.u32 %v554_v39, 16  ;;  %v1658_v53 = vrot.slane %v1657_v6, 4  ;;  %v10470_v45 = vrot.slane %v1971_v61, 7  ;;  %1091 = vrot.lane.b32.xlu0 %v1039_v63, %s8131_s15  ;;  %v2583_v12 = vld [vmem:[#allocation2 + $0x3c] sm:$0xf] }
 0x18a   :  { %v722_v34 = vsel %vm8672_vm5, %v10359_v15, %v10440_v47  ;;  %v10479_v0 = vsel %vm10450_vm15, 65537, %v13093_v26  ;;  %v1667_v14 = vor.u32 %v1666_v35, %v1662_v44  ;;  %v1670_v24 = vshll.u32 %v10458_v33, 16  ;;  %2982 = vst.msk [vmem:[#allocation3 + $0x20] sm:$0xf] %vm2977_vm0, %v2926_v21  ;;  %v1040_v32 = vld [vmem:[#allocation2 + $0x38] sm:$0xf] }
 0x18b   :  { %vm13224_vm4 = vcmask 781952   ;;  %v726_v8 = vor.u32 %v10445_v19, %v10440_v47  ;;  %v1974_v25 = vshll.u32 %v10415_v16, 16  ;;  %v1980_v23 = vshrl.u32 %v1850_v17, 16  ;;  %v1080_v9 = vpop.permute.xlu0 %1079  ;;  %v2134_v21 = vld [vmem:[#allocation2 + $0x38] sm:$0xf] }
 0x18c   :  { %2555 = vst.msk [vmem:[#allocation3 + $0x28] sm:$0xf] %vm13224_vm4, %v2500_v62  ;;  %vm13225_vm3 = vcmp.ne.s16.totalorder %v13210_v20, 0  ;;  %v10490_v26 = vrot.slane %v729_v5, 5  ;;  %v10492_v39 = vrot.slane %v733_v48, 4  ;;  %v10494_v22 = vrot.slane %v739_v37, 5  ;;  %2939 = vrot.lane.b32.xlu1 %v2888_v2, %s8133_s29  ;;  %v2807_v2 = vpop.permute.xlu1 %2806 }
 0x18d   :  { %v2277_v10 = vsel %vm13225_vm3, %v2256_v7, 0  ;;  %v2411_v6 = vrot.slane %v2409_v1, 4  ;;  %v10497_v61 = vrot.slane %v743_v31, 4  ;;  %v749_v16 = vshll.u32 %v10479_v0, 16  ;;  %v2584_v37 = vld [vmem:[#allocation2 + $0x40] sm:$0xf] }
 0x18e   :  { %v1663_v20 = vsel %vm8672_vm5, %v1658_v53, %v1662_v44  ;;  %v1976_v58 = vor.u32 %v1974_v25, %v10470_v45  ;;  %v1668_v35 = vrot.slane %v1667_v14, 4  ;;  %v10504_v38 = vrot.slane %v1670_v24, 5  ;;  %v2257_v62 = vld [vmem:[#allocation2 + $0x40] sm:$0xf]  ;;  %2862 = vst.msk [vmem:[#allocation3 + $0x28] sm:$0xf] %vm2856_vm13, %v2807_v2 }
 0x18f   :  { %1758 = vrot.lane.b32.xlu0 %v1663_v20, %s8134_s23  ;;  %v2415_v3 = vshll.u32 %v2277_v10, 16  ;;  %v2604_v5 = vsel %vm10287_vm14, %v2583_v12, 0  ;;  %v1969_v46 = vrot.slane %v10277_v51, 4  ;;  %v10509_v63 = vrot.slane %v1980_v23, 7  ;;  %v2135_v2 = vld [vmem:[#allocation2 + $0x3c] sm:$0xf] }
 0x190   :  { %v2419_v48 = vshrl.u32 %v2277_v10, 16  ;;  %vm13226_vm15 = vcmask 257152   ;;  %v881_v44 = vshrl.u32 %v10285_v41, 16  ;;  %v753_v1 = vshrl.u32 %v10479_v0, 16  ;;  %1093 = vrot.lane.b32.xlu1 %v1040_v32, %s8131_s15  ;;  %v2928_v20 = vpop.permute.xlu1 %2927 }
 0x191   :  { %1134 = vst.msk [vmem:[#allocation3 + $0x30] sm:$0xf] %vm13226_vm15, %v1080_v9  ;;  %v1674_v7 = vshrl.u32 %v10458_v33, 16  ;;  %v1983_v31 = vshll.u32 %v1850_v17, 16  ;;  %v2412_v59 = vor.u32 %v2411_v6, %v10381_v60  ;;  %v1977_v51 = vsel %vm8638_vm8, %v1969_v46, %v1976_v58  ;;  %v1163_v46 = vld [vmem:[#allocation2 + $0x40] sm:$0xf]  ;;  %vm13231_vm3 = vmmov %vm13226_vm15 }
 0x192   :  { %v2726_v53 = vshrl.u32 %v2604_v5, 16  ;;  %v883_v14 = vrot.slane %v881_v44, 7  ;;  %v884_v24 = vshll.u32 %v10285_v41, 16  ;;  %v1673_v33 = vsel %vm8672_vm5, %v1668_v35, %v10504_v38  ;;  %2983 = vst.msk [vmem:[#allocation3 + $0x28] sm:$0xf] %vm2977_vm0, %v2928_v20 }
 0x193   :  { %2065 = vrot.lane.b32.xlu0 %v1977_v51, %s8136_s3  ;;  %v2417_v17 = vrot.slane %v2415_v3, 5  ;;  %v2605_v60 = vsel %vm10325_vm2, %v2584_v37, 0  ;;  %v890_v0 = vshrl.u32 %v10314_v11, 16  ;;  %v1985_v25 = vor.u32 %v1983_v31, %v10509_v63 }
 0x194   :  { %v2421_v23 = vrot.slane %v2419_v48, 4  ;;  %v879_v10 = vrot.slane %v10417_v42, 4  ;;  %v886_v12 = vor.u32 %v884_v24, %v883_v14  ;;  %1760 = vrot.lane.b32.xlu1 %v1673_v33, %s8134_s23  ;;  %v2413_v41 = vrot.slane %v2412_v59, 4  ;;  %v1082_v51 = vpop.permute.xlu1 %1081 }
 0x195   :  { %vm13227_vm14 = vcmp.ne.s16.totalorder %v13221_v54, 0  ;;  %v10535_v32 = vrot.slane %v890_v0, 7  ;;  %v893_v30 = vshll.u32 %v10314_v11, 16  ;;  %v1978_v58 = vrot.slane %v10470_v45, 4  ;;  %1135 = vst.msk [vmem:[#allocation3 + $0x38] sm:$0xf] %vm13231_vm3, %v1082_v51 }
 0x196   :  { %v10533_v6 = vsel %vm13227_vm14, %v2257_v62, 0  ;;  %v10539_v35 = vrot.slane %v2726_v53, 7  ;;  %v2735_v3 = vshrl.u32 %v2605_v60, 16  ;;  %v887_v42 = vsel %vm8638_vm8, %v879_v10, %v886_v12 }
 0x197   :  { %v736_v54 = vor.u32 %v10492_v39, %v10490_v26  ;;  %v746_v9 = vor.u32 %v10497_v61, %v10494_v22  ;;  %2186 = vrot.lane.b32.xlu0 %v2134_v21, %s8132_s22  ;;  %vm13228_vm2 = vcmask 125952   ;;  %v888_v11 = vrot.slane %v883_v14, 4 }
 0x198   :  { %1015 = vst.msk [vmem:[#allocation3 + $0x40] sm:$0xf] %vm13228_vm2, %v887_v42  ;;  %v895_v45 = vor.u32 %v893_v30, %v10535_v32  ;;  %v1986_v48 = vsel %vm8638_vm8, %v1978_v58, %v1985_v25  ;;  %v2729_v37 = vshll.u32 %v2604_v5, 16  ;;  %v2422_v44 = vor.u32 %v2421_v23, %v2417_v17  ;;  %v13229_v5 = vld [vmem:[#allocation48_spill] sm:$0xff]  ;;  %vm13232_vm15 = vmmov %vm13228_vm2  ;;  %v2258_v23 = vld [vmem:[#allocation2 + $0x44] sm:$0xf] }
 0x199   :  { %v2425_v31 = vshll.u32 %v10533_v6, 16  ;;  %v10554_v59 = vrot.slane %v749_v16, 5  ;;  %v755_v39 = vrot.slane %v753_v1, 4  ;;  %2067 = vrot.lane.b32.xlu1 %v1986_v48, %s8136_s3  ;;  %v2418_v61 = vsel %vm8672_vm5, %v2413_v41, %v2417_v17  ;;  %v1830_v1 = vld [vmem:[#allocation2 + $0x40] sm:$0xf]  ;;  %v3289_v12 = vld [vmem:[#allocation3 + $0x28] sm:$0xff] }
 0x19a   :  { %v896_v53 = vsel %vm8638_vm8, %v888_v11, %v895_v45  ;;  %v2731_v62 = vor.u32 %v2729_v37, %v10539_v35  ;;  %v10562_v14 = vrot.slane %v2735_v3, 7  ;;  %vm13230_vm4 = vcmp.ne.s16.totalorder %v13229_v5, 0  ;;  %v7980_v41 = vld [vmem:[#allocation3 + $0x24] ss:$8 sps:$4 sm:$0xff]   ;;  %v2889_v11 = vld [vmem:[#allocation2 + $0x3c] sm:$0xf] }
 0x19b   :  { %v1524_v24 = vsel %vm13230_vm4, %v1163_v46, 0  ;;  %v1676_v16 = vrot.slane %v1674_v7, 4  ;;  %1016 = vst.msk [vmem:[#allocation3 + $0x48] sm:$0xf] %vm13232_vm15, %v896_v53  ;;  %v727_v33 = vrot.slane %v726_v8, 4  ;;  %vm10576_vm14 = vcmp.ne.s16.totalorder %v722_v34, 0  ;;  %2513 = vrot.lane.b32.xlu0 %v2418_v61, %s8135_s2  ;;  %7043 = vmatprep.mubr.msk.bf16.mxu0 %vm3466_vm6, %v7980_v41  ;;  %vm13235_vm2 = vmmov %vm13230_vm4 }
 0x19c   :  { %v10580_v0 = vrot.slane %v736_v54, 4  ;;  %v10582_v7 = vrot.slane %v746_v9, 4  ;;  %v2724_v21 = vrot.slane %v10385_v36, 4  ;;  %v2423_v25 = vrot.slane %v2422_v44, 4  ;;  %v3288_v34 = vld [vmem:[#allocation3 + $0x20] sm:$0xff] }
 0x19d   :  { %v10586_v19 = vrot.slane %v2425_v31, 5  ;;  %v2738_v8 = vshll.u32 %v2605_v60, 16  ;;  %v756_v10 = vor.u32 %v755_v39, %v10554_v59  ;;  %2188 = vrot.lane.b32.xlu1 %v2135_v2, %s8132_s22  ;;  %v1680_v15 = vshll.u32 %v1524_v24, 16  ;;  %v1164_v30 = vld [vmem:[#allocation2 + $0x44] sm:$0xf]  ;;  %v13236_v31 = vld [vmem:[#allocation54_spill] sm:$0xff] }
 0x19e   :  { %v10592_v47 = vsel %vm10374_vm7, %v1830_v1, 0  ;;  %v2732_v36 = vsel %vm8638_vm8, %v2724_v21, %v2731_v62  ;;  %v1677_v60 = vor.u32 %v1676_v16, %v10504_v38  ;;  %v7016_v58 = vcombine.low %v3288_v34, %v3289_v12  ;;  %v1831_v9 = vld [vmem:[#allocation2 + $0x44] sm:$0xf]  ;;  %v2586_v5 = vld [vmem:[#allocation2 + $0x48] sm:$0xf] }
 0x19f   :  { %v2740_v20 = vor.u32 %v2738_v8, %v10562_v14  ;;  %v732_v3 = vsel %vm8672_vm5, %v727_v33, %v10490_v26  ;;  %v742_v42 = vsel %vm8672_vm5, %v10580_v0, %v10494_v22  ;;  %2820 = vrot.lane.b32.xlu0 %v2732_v36, %s8137_s24  ;;  %v1684_v54 = vshrl.u32 %v1524_v24, 16  ;;  %v2585_v39 = vld [vmem:[#allocation2 + $0x44] sm:$0xf]  ;;  %v1041_v16 = vld [vmem:[#allocation2 + $0x3c] sm:$0xf] }
 0x1a0   :  { %v2279_v38 = vsel %vm13235_vm2, %v2258_v23, 0  ;;  %v752_v46 = vsel %vm8672_vm5, %v10582_v7, %v10554_v59  ;;  %v2428_v26 = vsel %vm8672_vm5, %v2423_v25, %v10586_v19  ;;  %v2733_v22 = vrot.slane %v10539_v35, 4  ;;  %3546 = vmatmul.mubr.bf16.gmra.mxu0 %v7016_v58  ;;  %v2259_v23 = vld [vmem:[#allocation2 + $0x48] sm:$0xf] }
 0x1a1   :  { %v1989_v45 = vshrl.u32 %v10592_v47, 16  ;;  %v10618_v48 = vrot.slane %v756_v10, 4  ;;  %v2429_v37 = vshrl.u32 %v10533_v6, 16  ;;  %2515 = vrot.lane.b32.xlu1 %v2428_v26, %s8135_s2  ;;  %v10622_v44 = vrot.slane %v1680_v15, 5  ;;  %v1042_v26 = vld [vmem:[#allocation2 + $0x40] sm:$0xf] }
 0x1a2   :  { %vm13237_vm4 = vcmp.ne.s16.totalorder %v13236_v31, 0  ;;  %v2741_v61 = vsel %vm8638_vm8, %v2733_v22, %v2740_v20  ;;  %v1678_v35 = vrot.slane %v1677_v60, 4  ;;  %v10632_v2 = vsel %vm10576_vm14, %v1831_v9, 0  ;;  %v1747_v31 = vpop.permute.xlu0 %1746 }
 0x1a3   :  { %v10626_v59 = vsel %vm13237_vm4, %v1164_v30, 0  ;;  %v2435_v51 = vshll.u32 %v2279_v38, 16  ;;  %2941 = vrot.lane.b32.xlu0 %v2889_v11, %s8133_s29  ;;  %v1992_v6 = vshll.u32 %v10592_v47, 16  ;;  %v1686_v53 = vrot.slane %v1684_v54, 4  ;;  %v2890_v47 = vld [vmem:[#allocation2 + $0x40] sm:$0xf]  ;;  %vm13242_vm15 = vmmov %vm13237_vm4 }
 0x1a4   :  { %v2439_v62 = vshrl.u32 %v2279_v38, 16  ;;  %v899_v24 = vshrl.u32 %v10318_v43, 16  ;;  %v10637_v1 = vrot.slane %v1989_v45, 7  ;;  %v1690_v33 = vshll.u32 %v10626_v59, 16  ;;  %v415_v38 = vld [vmem:[#allocation2 + $0x50] sm:$0xf] }
 0x1a5   :  { %v10642_v0 = vsel %vm10374_vm7, %v2585_v39, 0  ;;  %v908_v7 = vshrl.u32 %v10341_v28, 16  ;;  %vm10645_vm3 = vcmp.ne.s16.totalorder %v732_v3, 0  ;;  %2822 = vrot.lane.b32.xlu1 %v2741_v61, %s8137_s24  ;;  %v1998_v25 = vshrl.u32 %v10632_v2, 16  ;;  %1801 = vst.msk [vmem:[#allocation3 + $0x30] sm:$0xf] %vm1794_vm9, %v1747_v31 }
 0x1a6   :  { %v2431_v8 = vrot.slane %v2429_v37, 4  ;;  %v901_v10 = vrot.slane %v899_v24, 7  ;;  %v902_v15 = vshll.u32 %v10318_v43, 16  ;;  %v10652_v34 = vrot.slane %v2435_v51, 5  ;;  %v1165_v51 = vld [vmem:[#allocation2 + $0x48] sm:$0xf] }
 0x1a7   :  { %v10656_v49 = vsel %vm10576_vm14, %v2586_v5, 0  ;;  %v10658_v12 = vrot.slane %v908_v7, 7  ;;  %v911_v41 = vshll.u32 %v10341_v28, 16  ;;  %vm10661_vm7 = vcmp.ne.s16.totalorder %v742_v42, 0  ;;  %1095 = vrot.lane.b32.xlu0 %v1041_v16, %s8131_s15  ;;  %v412_v5 = vld [vmem:[#allocation2 + $0x44] sm:$0xf] }
 0x1a8   :  { %v2744_v20 = vshrl.u32 %v10642_v0, 16  ;;  %v2441_v43 = vrot.slane %v2439_v62, 4  ;;  %v897_v60 = vrot.slane %v10535_v32, 4  ;;  %v904_v30 = vor.u32 %v902_v15, %v901_v10  ;;  %v414_v15 = vld [vmem:[#allocation2 + $0x4c] sm:$0xf] }
 0x1a9   :  { %v1687_v58 = vor.u32 %v1686_v53, %v10622_v44  ;;  %v10671_v3 = vsel %vm13242_vm15, %v2259_v23, 0  ;;  %v906_v54 = vrot.slane %v901_v10, 4  ;;  %v913_v28 = vor.u32 %v911_v41, %v10658_v12  ;;  %2943 = vrot.lane.b32.xlu1 %v2890_v47, %s8133_s29  ;;  %v13247_v23 = vld [vmem:[#allocation57_spill] sm:$0xff] }
 0x1aa   :  { %vm12984_vm2 = vcmp.ne.s16.totalorder %v10618_v48, 0  ;;  %v1683_v42 = vsel %vm8672_vm5, %v1678_v35, %v10622_v44  ;;  %v2753_v32 = vshrl.u32 %v10656_v49, 16  ;;  %v905_v9 = vsel %vm8638_vm8, %v897_v60, %v904_v30  ;;  %v2136_v30 = vld [vmem:[#allocation2 + $0x40] sm:$0xf] }
 0x1ab   :  { %v1994_v11 = vor.u32 %v1992_v6, %v10637_v1  ;;  %v10683_v22 = vrot.slane %v1998_v25, 7  ;;  %v2432_v45 = vor.u32 %v2431_v8, %v10586_v19  ;;  %vm13243_vm4 = vcmask 125952   ;;  %1762 = vrot.lane.b32.xlu0 %v1683_v42, %s8134_s23  ;;  %v411_v19 = vld [vmem:[#allocation2 + $0x40] sm:$0xf]  ;;  %v413_v8 = vld [vmem:[#allocation2 + $0x48] sm:$0xf] }
 0x1ac   :  { %1017 = vst.msk [vmem:[#allocation3 + $0x50] sm:$0xf] %vm13243_vm4, %v905_v9  ;;  %v914_v37 = vsel %vm8638_vm8, %v906_v54, %v913_v28  ;;  %vm10689_vm15 = vcmp.ne.s16.totalorder %v752_v46, 0  ;;  %v2746_v39 = vrot.slane %v2744_v20, 7  ;;  %v2442_v61 = vor.u32 %v2441_v43, %v10652_v34  ;;  %vm13246_vm10 = vmmov %vm13243_vm4  ;;  %v2054_v54 = vpop.permute.xlu0 %2053 }
 0x1ad   :  { %v2445_v35 = vshll.u32 %v10671_v3, 16  ;;  %1018 = vst.msk [vmem:[#allocation3 + $0x58] sm:$0xf] %vm13246_vm10, %v914_v37  ;;  %v1987_v6 = vrot.slane %v10509_v63, 4  ;;  %v1688_v46 = vrot.slane %v1687_v58, 4  ;;  %v10699_v53 = vrot.slane %v1690_v33, 5  ;;  %1097 = vrot.lane.b32.xlu1 %v1042_v26, %s8131_s15 }
 0x1ae   :  { %v2001_v62 = vshll.u32 %v10632_v2, 16  ;;  %v10704_v24 = vsel %vm12984_vm2, %v415_v38, 0  ;;  %v1694_v16 = vshrl.u32 %v10626_v59, 16  ;;  %v2747_v7 = vshll.u32 %v10642_v0, 16  ;;  %2108 = vst.msk [vmem:[#allocation3 + $0x30] sm:$0xf] %vm2101_vm12, %v2054_v54 }
 0x1af   :  { %v10709_v25 = vrot.slane %v2753_v32, 7  ;;  %v1995_v63 = vsel %vm8638_vm8, %v1987_v6, %v1994_v11  ;;  %v2433_v2 = vrot.slane %v2432_v45, 4  ;;  %vm13248_vm10 = vcmp.ne.s16.totalorder %v13247_v23, 0  ;;  %v1832_v32 = vld [vmem:[#allocation2 + $0x48] sm:$0xf] }
 0x1b0   :  { %v2003_v33 = vor.u32 %v2001_v62, %v10683_v22  ;;  %v10716_v10 = vsel %vm13248_vm10, %v1165_v51, 0  ;;  %2069 = vrot.lane.b32.xlu0 %v1995_v63, %s8136_s3  ;;  %v2749_v47 = vor.u32 %v2747_v7, %v2746_v39  ;;  %v10719_v59 = vrot.slane %v2442_v61, 4  ;;  %vm13250_vm10 = vmmov %vm13243_vm4 }
 0x1b1   :  { %v10721_v0 = vrot.slane %v2445_v35, 5  ;;  %v2756_v41 = vshll.u32 %v10656_v49, 16  ;;  %v10726_v20 = vsel %vm10576_vm14, %v411_v19, 0  ;;  %v10730_v43 = vsel %vm10645_vm3, %v412_v5, 0  ;;  %v2137_v5 = vld [vmem:[#allocation2 + $0x44] sm:$0xf] }
 0x1b2   :  { %v1693_v60 = vsel %vm8672_vm5, %v1688_v46, %v10699_v53  ;;  %v1996_v58 = vrot.slane %v10637_v1, 4  ;;  %v2742_v49 = vrot.slane %v10562_v14, 4  ;;  %v10739_v28 = vrot.slane %v1694_v16, 4  ;;  %v1749_v14 = vpop.permute.xlu1 %1748 }
 0x1b3   :  { %1764 = vrot.lane.b32.xlu1 %v1693_v60, %s8134_s23  ;;  %v2758_v17 = vor.u32 %v2756_v41, %v10709_v25  ;;  %v1700_v42 = vshll.u32 %v10716_v10, 16  ;;  %v10744_v9 = vsel %vm10661_vm7, %v413_v8, 0  ;;  %v10748_v38 = vsel %vm10689_vm15, %v414_v15, 0  ;;  %1802 = vst.msk [vmem:[#allocation3 + $0x38] sm:$0xf] %vm1794_vm9, %v1749_v14 }
 0x1b4   :  { %v980_v1 = vshrl.u32 %v10704_v24, 16  ;;  %v2004_v26 = vsel %vm8638_vm8, %v1996_v58, %v2003_v33  ;;  %2190 = vrot.lane.b32.xlu0 %v2136_v30, %s8132_s22  ;;  %v2438_v11 = vsel %vm8672_vm5, %v2433_v2, %v10652_v34  ;;  %v2750_v45 = vsel %vm8638_vm8, %v2742_v49, %v2749_v47  ;;  %v2175_v34 = vpop.permute.xlu0 %2174  ;;  %v1833_v14 = vld [vmem:[#allocation2 + $0x4c] sm:$0xf] }
 0x1b5   :  { %v2448_v37 = vsel %vm8672_vm5, %v10719_v59, %v10721_v0  ;;  %v2751_v31 = vrot.slane %v2746_v39, 4  ;;  %v1704_v61 = vshrl.u32 %v10716_v10, 16  ;;  %v10768_v35 = vsel %vm10645_vm3, %v1832_v32, 0  ;;  %2229 = vst.msk [vmem:[#allocation3 + $0x30] sm:$0xf] %vm2222_vm1, %v2175_v34 }
 0x1b6   :  { %v917_v51 = vshrl.u32 %v10345_v50, 16  ;;  %v926_v19 = vshrl.u32 %v10357_v18, 16  ;;  %v1697_v39 = vor.u32 %v10739_v28, %v10699_v53  ;;  %v10779_v46 = vrot.slane %v1700_v42, 5  ;;  %v2056_v33 = vpop.permute.xlu1 %2055 }
 0x1b7   :  { %2071 = vrot.lane.b32.xlu1 %v2004_v26, %s8136_s3  ;;  %v10775_v6 = vsel %vm8638_vm8, %v2751_v31, %v2758_v17  ;;  %v935_v62 = vshrl.u32 %v10468_v4, 16  ;;  %v920_v7 = vshll.u32 %v10345_v50, 16  ;;  %v929_v63 = vshll.u32 %v10357_v18, 16  ;;  %2109 = vst.msk [vmem:[#allocation3 + $0x38] sm:$0xf] %vm2101_vm12, %v2056_v33 }
 0x1b8   :  { %v919_v16 = vrot.slane %v917_v51, 7  ;;  %v928_v8 = vrot.slane %v926_v19, 7  ;;  %2517 = vrot.lane.b32.xlu0 %v2438_v11, %s8135_s2  ;;  %v2007_v2 = vshrl.u32 %v10768_v35, 16  ;;  %v938_v15 = vshll.u32 %v10468_v4, 16  ;;  %v2502_v18 = vpop.permute.xlu0 %2501 }
 0x1b9   :  { %v937_v10 = vrot.slane %v935_v62, 7  ;;  %v944_v47 = vshrl.u32 %v10726_v20, 16  ;;  %v915_v59 = vrot.slane %v10658_v12, 4  ;;  %v947_v49 = vshll.u32 %v10726_v20, 16 }
 0x1ba   :  { %v922_v41 = vor.u32 %v920_v7, %v919_v16  ;;  %v924_v60 = vrot.slane %v919_v16, 4  ;;  %v931_v50 = vor.u32 %v929_v63, %v928_v8  ;;  %v933_v30 = vrot.slane %v928_v8, 4  ;;  %v2177_v32 = vpop.permute.xlu1 %2176  ;;  %v1166_v63 = vld [vmem:[#allocation2 + $0x4c] sm:$0xf] }
 0x1bb   :  { %2192 = vrot.lane.b32.xlu1 %v2137_v5, %s8132_s22  ;;  %v940_v58 = vor.u32 %v938_v15, %v937_v10  ;;  %v946_v54 = vrot.slane %v944_v47, 7  ;;  %vm13249_vm14 = vcmask 781952   ;;  %v10794_v4 = vrot.slane %v1704_v61, 4  ;;  %2230 = vst.msk [vmem:[#allocation3 + $0x38] sm:$0xf] %vm2222_vm1, %v2177_v32 }
 0x1bc   :  { %2556 = vst.msk [vmem:[#allocation3 + $0x30] sm:$0xf] %vm13249_vm14, %v2502_v18  ;;  %v923_v17 = vsel %vm8638_vm8, %v915_v59, %v922_v41  ;;  %v932_v12 = vsel %vm8638_vm8, %v924_v60, %v931_v50  ;;  %v953_v42 = vshrl.u32 %v10730_v43, 16  ;;  %2824 = vrot.lane.b32.xlu0 %v2750_v45, %s8137_s24  ;;  %v942_v26 = vrot.slane %v937_v10, 4  ;;  %v2891_v61 = vld [vmem:[#allocation2 + $0x44] sm:$0xf]  ;;  %vm13251_vm14 = vmmov %vm13243_vm4  ;;  %v2809_v62 = vpop.permute.xlu0 %2808 }
 0x1bd   :  { %1019 = vst.msk [vmem:[#allocation3 + $0x60] sm:$0xf] %vm13243_vm4, %v923_v17  ;;  %v941_v20 = vsel %vm8638_vm8, %v933_v30, %v940_v58  ;;  %v949_v11 = vor.u32 %v947_v49, %v946_v54  ;;  %v962_v31 = vshrl.u32 %v10744_v9, 16  ;;  %v956_v45 = vshll.u32 %v10730_v43, 16  ;;  %v1043_v59 = vld [vmem:[#allocation2 + $0x44] sm:$0xf] }
 0x1be   :  { %1020 = vst.msk [vmem:[#allocation3 + $0x68] sm:$0xf] %vm13250_vm10, %v932_v12  ;;  %v955_v51 = vrot.slane %v953_v42, 7  ;;  %v965_v19 = vshll.u32 %v10744_v9, 16  ;;  %v971_v34 = vshrl.u32 %v10748_v38, 16  ;;  %v982_v7 = vrot.slane %v980_v1, 7  ;;  %v2504_v10 = vpop.permute.xlu1 %2503 }
 0x1bf   :  { %1021 = vst.msk [vmem:[#allocation3 + $0x70] sm:$0xf] %vm13251_vm14, %v941_v20  ;;  %2519 = vrot.lane.b32.xlu1 %v2448_v37, %s8135_s2  ;;  %v950_v5 = vsel %vm8638_vm8, %v942_v26, %v949_v11  ;;  %v964_v16 = vrot.slane %v962_v31, 7  ;;  %v983_v8 = vshll.u32 %v10704_v24, 16  ;;  %v951_v43 = vrot.slane %v946_v54, 4  ;;  %v13253_v58 = vld [vmem:[#allocation58_spill] sm:$0xff] }
 0x1c0   :  { %2863 = vst.msk [vmem:[#allocation3 + $0x30] sm:$0xf] %vm2856_vm13, %v2809_v62  ;;  %v958_v9 = vor.u32 %v956_v45, %v955_v51  ;;  %v973_v33 = vrot.slane %v971_v34, 7  ;;  %v974_v37 = vshll.u32 %v10748_v38, 16  ;;  %2945 = vrot.lane.b32.xlu0 %v2891_v61, %s8133_s29  ;;  %v10824_v15 = vsel %vm10661_vm7, %v1833_v14, 0  ;;  %v2930_v30 = vpop.permute.xlu0 %2929 }
 0x1c1   :  { %1022 = vst.msk [vmem:[#allocation3 + $0x78] sm:$0xf] %vm13243_vm4, %v950_v5  ;;  %v960_v1 = vrot.slane %v955_v51, 4  ;;  %v967_v47 = vor.u32 %v965_v19, %v964_v16  ;;  %v985_v24 = vor.u32 %v983_v8, %v982_v7  ;;  %vm13252_vm10 = vcmask 781952   ;;  %v2892_v17 = vld [vmem:[#allocation2 + $0x48] sm:$0xf] }
 0x1c2   :  { %2557 = vst.msk [vmem:[#allocation3 + $0x38] sm:$0xf] %vm13252_vm10, %v2504_v10  ;;  %v959_v41 = vsel %vm8638_vm8, %v951_v43, %v958_v9  ;;  %v969_v60 = vrot.slane %v964_v16, 4  ;;  %v976_v50 = vor.u32 %v974_v37, %v973_v33  ;;  %v978_v18 = vrot.slane %v973_v33, 4  ;;  %v2260_v12 = vld [vmem:[#allocation2 + $0x4c] sm:$0xf]  ;;  %vm13255_vm10 = vmmov %vm13243_vm4  ;;  %v2811_v14 = vpop.permute.xlu1 %2810 }
 0x1c3   :  { %v2449_v38 = vshrl.u32 %v10671_v3, 16  ;;  %2826 = vrot.lane.b32.xlu1 %v10775_v6, %s8137_s24  ;;  %vm13254_vm14 = vcmp.ne.s16.totalorder %v13253_v58, 0  ;;  %1023 = vst.msk [vmem:[#allocation3 + $0x80] sm:$0xf] %vm13243_vm4, %v959_v41  ;;  %v968_v49 = vsel %vm8638_vm8, %v960_v1, %v967_v47  ;;  %v1698_v3 = vrot.slane %v1697_v39, 4 }
 0x1c4   :  { %v10834_v54 = vsel %vm13254_vm14, %v1166_v63, 0  ;;  %2984 = vst.msk [vmem:[#allocation3 + $0x30] sm:$0xf] %vm2977_vm0, %v2930_v30  ;;  %v2009_v6 = vrot.slane %v2007_v2, 7  ;;  %v977_v42 = vsel %vm8638_vm8, %v969_v60, %v976_v50  ;;  %v986_v32 = vsel %vm8638_vm8, %v978_v18, %v985_v24  ;;  %1099 = vrot.lane.b32.xlu0 %v1043_v59, %s8131_s15  ;;  %vm13256_vm14 = vmmov %vm13243_vm4  ;;  %v2587_v2 = vld [vmem:[#allocation2 + $0x4c] sm:$0xf]  ;;  %v1084_v26 = vpop.permute.xlu0 %1083 }
 0x1c5   :  { %1024 = vst.msk [vmem:[#allocation3 + $0x88] sm:$0xf] %vm13255_vm10, %v968_v49  ;;  %v2016_v20 = vshrl.u32 %v10824_v15, 16  ;;  %v2010_v53 = vshll.u32 %v10768_v35, 16  ;;  %v1707_v28 = vor.u32 %v10794_v4, %v10779_v46  ;;  %v1710_v39 = vshll.u32 %v10834_v54, 16 }
 0x1c6   :  { %1025 = vst.msk [vmem:[#allocation3 + $0x90] sm:$0xf] %vm13256_vm14, %v977_v42  ;;  %vm13257_vm10 = vcmp.ne.s16.totalorder %v13247_v23, 0  ;;  %vm13258_vm2 = vcmask 257152   ;;  %v1703_v31 = vsel %vm8672_vm5, %v1698_v3, %v10779_v46  ;;  %v1044_v61 = vld [vmem:[#allocation2 + $0x48] sm:$0xf]  ;;  %v2932_v45 = vpop.permute.xlu1 %2931 }
 0x1c7   :  { %1026 = vst.msk [vmem:[#allocation3 + $0x98] sm:$0xf] %vm13243_vm4, %v986_v32  ;;  %2947 = vrot.lane.b32.xlu1 %v2892_v17, %s8133_s29  ;;  %v2281_v11 = vsel %vm13257_vm10, %v2260_v12, 0  ;;  %v2012_v35 = vor.u32 %v2010_v53, %v2009_v6  ;;  %v2451_v51 = vrot.slane %v2449_v38, 4  ;;  %v2005_v4 = vrot.slane %v10683_v22, 4 }
 0x1c8   :  { %2864 = vst.msk [vmem:[#allocation3 + $0x38] sm:$0xf] %vm2856_vm13, %v2811_v14  ;;  %1766 = vrot.lane.b32.xlu0 %v1703_v31, %s8134_s23  ;;  %v10868_v19 = vrot.slane %v2016_v20, 7  ;;  %v2608_v23 = vsel %vm10645_vm3, %v2587_v2, 0  ;;  %v1708_v34 = vrot.slane %v1707_v28, 4  ;;  %v10873_v62 = vrot.slane %v1710_v39, 5  ;;  %v1751_v16 = vpop.permute.xlu0 %1750  ;;  %vm13259_vm3 = vmmov %vm13258_vm2 }
 0x1c9   :  { %1136 = vst.msk [vmem:[#allocation3 + $0x40] sm:$0xf] %vm13258_vm2, %v1084_v26  ;;  %v2455_v5 = vshll.u32 %v2281_v11, 16  ;;  %v2459_v46 = vshrl.u32 %v2281_v11, 16  ;;  %v2019_v7 = vshll.u32 %v10824_v15, 16  ;;  %v2013_v22 = vsel %vm8638_vm8, %v2005_v4, %v2012_v35 }
 0x1ca   :  { %2985 = vst.msk [vmem:[#allocation3 + $0x38] sm:$0xf] %vm2977_vm0, %v2932_v45  ;;  %v2452_v21 = vor.u32 %v2451_v51, %v10721_v0  ;;  %v2762_v8 = vshrl.u32 %v2608_v23, 16  ;;  %v2261_v63 = vld [vmem:[#allocation2 + $0x50] sm:$0xf]  ;;  %v1086_v9 = vpop.permute.xlu1 %1085  ;;  %v1713_v37 = vsel %vm8672_vm5, %v1708_v34, %v10873_v62  ;;  %v2014_v47 = vrot.slane %v2009_v6, 4 }
 0x1cb   :  { %1101 = vrot.lane.b32.xlu1 %v1044_v61, %s8131_s15  ;;  %1803 = vst.msk [vmem:[#allocation3 + $0x40] sm:$0xf] %vm1794_vm9, %v1751_v16  ;;  %v2588_v43 = vld [vmem:[#allocation2 + $0x50] sm:$0xf]  ;;  %v2021_v33 = vor.u32 %v2019_v7, %v10868_v19  ;;  %v2138_v10 = vld [vmem:[#allocation2 + $0x48] sm:$0xf] }
 0x1cc   :  { %2073 = vrot.lane.b32.xlu0 %v2013_v22, %s8136_s3  ;;  %1137 = vst.msk [vmem:[#allocation3 + $0x48] sm:$0xf] %vm13259_vm3, %v1086_v9  ;;  %v2457_v15 = vrot.slane %v2455_v5, 5  ;;  %v2461_v1 = vrot.slane %v2459_v46, 4  ;;  %v2058_v0 = vpop.permute.xlu0 %2057  ;;  %vm13260_vm2 = vcmp.ne.s16.totalorder %v13253_v58, 0  ;;  %v2609_v59 = vsel %vm10661_vm7, %v2588_v43, 0 }
 0x1cd   :  { %v10890_v24 = vsel %vm13260_vm2, %v2261_v63, 0  ;;  %2110 = vst.msk [vmem:[#allocation3 + $0x40] sm:$0xf] %vm2101_vm12, %v2058_v0  ;;  %v2453_v41 = vrot.slane %v2452_v21, 4  ;;  %v2764_v60 = vrot.slane %v2762_v8, 7  ;;  %v2022_v18 = vsel %vm8638_vm8, %v2014_v47, %v2021_v33  ;;  %v3290_v38 = vld [vmem:[#allocation3 + $0x30] sm:$0xff] }
 0x1ce   :  { %v1753_v50 = vpop.permute.xlu1 %1752  ;;  %v7982_v49 = vld [vmem:[#allocation3 + $0x34] ss:$8 sps:$4 sm:$0xff]   ;;  %v2765_v17 = vshll.u32 %v2608_v23, 16  ;;  %v2462_v3 = vor.u32 %v2461_v1, %v2457_v15  ;;  %v2465_v36 = vshll.u32 %v10890_v24, 16  ;;  %v2771_v6 = vshrl.u32 %v2609_v59, 16 }
 0x1cf   :  { %1768 = vrot.lane.b32.xlu1 %v1713_v37, %s8134_s23  ;;  %1804 = vst.msk [vmem:[#allocation3 + $0x48] sm:$0xf] %vm1794_vm9, %v1753_v50  ;;  %7044 = vmatprep.mubr.msk.bf16.mxu0 %vm3466_vm6, %v7982_v49  ;;  %v1714_v42 = vshrl.u32 %v10834_v54, 16  ;;  %v2458_v32 = vsel %vm8672_vm5, %v2453_v41, %v2457_v15  ;;  %v2139_v14 = vld [vmem:[#allocation2 + $0x4c] sm:$0xf]  ;;  %v2760_v39 = vrot.slane %v10709_v25, 4 }
 0x1d0   :  { %2194 = vrot.lane.b32.xlu0 %v2138_v10, %s8132_s22  ;;  %v2179_v12 = vpop.permute.xlu0 %2178  ;;  %v2767_v20 = vor.u32 %v2765_v17, %v2764_v60  ;;  %v1167_v53 = vld [vmem:[#allocation2 + $0x50] sm:$0xf]  ;;  %v2463_v2 = vrot.slane %v2462_v3, 4  ;;  %v10909_v26 = vrot.slane %v2465_v36, 5  ;;  %v10911_v54 = vrot.slane %v2771_v6, 7 }
 0x1d1   :  { %v3291_v30 = vld [vmem:[#allocation3 + $0x38] sm:$0xff]  ;;  %2231 = vst.msk [vmem:[#allocation3 + $0x40] sm:$0xf] %vm2222_vm1, %v2179_v12  ;;  %v1834_v11 = vld [vmem:[#allocation2 + $0x50] sm:$0xf]  ;;  %vm13263_vm14 = vcmask 781952  }
 0x1d2   :  { %v7018_v58 = vcombine.low %v3290_v38, %v3291_v30  ;;  %v2060_v28 = vpop.permute.xlu1 %2059  ;;  %v13261_v61 = vld [vmem:[#allocation59_spill] sm:$0xff]  ;;  %v2768_v51 = vsel %vm8638_vm8, %v2760_v39, %v2767_v20  ;;  %v2774_v45 = vshll.u32 %v2609_v59, 16  ;;  %v1716_v4 = vrot.slane %v1714_v42, 4  ;;  %v2893_v5 = vld [vmem:[#allocation2 + $0x4c] sm:$0xf]  ;;  %vm13264_vm4 = vmmov %vm13263_vm14 }
 0x1d3   :  { %2075 = vrot.lane.b32.xlu1 %v2022_v18, %s8136_s3  ;;  %2111 = vst.msk [vmem:[#allocation3 + $0x48] sm:$0xf] %vm2101_vm12, %v2060_v28  ;;  %vm13262_vm7 = vcmp.ne.s16.totalorder %v13261_v61, 0  ;;  %v1855_v23 = vsel %vm10689_vm15, %v1834_v11, 0  ;;  %v2468_v34 = vsel %vm8672_vm5, %v2463_v2, %v10909_v26  ;;  %v1835_v21 = vld [vmem:[#allocation2 + $0x54] sm:$0xf] }
 0x1d4   :  { %3554 = vmatmul.mubr.bf16.gmra.mxu0 %v7018_v58  ;;  %2521 = vrot.lane.b32.xlu0 %v2458_v32, %s8135_s2  ;;  %v2506_v31 = vpop.permute.xlu0 %2505  ;;  %v1528_v35 = vsel %vm13262_vm7, %v1167_v53, 0  ;;  %v2776_v46 = vor.u32 %v2774_v45, %v10911_v54  ;;  %v2769_v8 = vrot.slane %v2764_v60, 4  ;;  %v1717_v63 = vor.u32 %v1716_v4, %v10873_v62  ;;  %v1045_v37 = vld [vmem:[#allocation2 + $0x4c] sm:$0xf]  ;;  %v1168_v15 = vld [vmem:[#allocation2 + $0x54] sm:$0x1]  ;;  %vm13267_vm3 = vmmov %vm13262_vm7 }
 0x1d5   :  { %2558 = vst.msk [vmem:[#allocation3 + $0x40] sm:$0xf] %vm13263_vm14, %v2506_v31  ;;  %v1720_v16 = vshll.u32 %v1528_v35, 16  ;;  %v1724_v7 = vshrl.u32 %v1528_v35, 16  ;;  %v2025_v43 = vshrl.u32 %v1855_v23, 16  ;;  %vm13265_vm10 = vcmp.ne.s16.totalorder %v10618_v48, 0  ;;  %vm13272_vm14 = vmmov %vm13264_vm4 }
 0x1d6   :  { %v2181_v25 = vpop.permute.xlu1 %2180  ;;  %v2777_v33 = vsel %vm8638_vm8, %v2769_v8, %v2776_v46  ;;  %v1856_v0 = vsel %vm13265_vm10, %v1835_v21, 0  ;;  %v2262_v62 = vld [vmem:[#allocation2 + $0x54] sm:$0xf]  ;;  %v2469_v59 = vshrl.u32 %v10890_v24, 16  ;;  %v2894_v41 = vld [vmem:[#allocation2 + $0x50] sm:$0xf]  ;;  %vm13270_vm7 = vmmov %vm13265_vm10 }
 0x1d7   :  { %2196 = vrot.lane.b32.xlu1 %v2139_v14, %s8132_s22  ;;  %2232 = vst.msk [vmem:[#allocation3 + $0x48] sm:$0xf] %vm2222_vm1, %v2181_v25  ;;  %v1722_v10 = vrot.slane %v1720_v16, 5  ;;  %v1726_v1 = vrot.slane %v1724_v7, 4  ;;  %v1718_v60 = vrot.slane %v1717_v63, 4  ;;  %v2027_v50 = vrot.slane %v2025_v43, 7  ;;  %vm13275_vm10 = vmmov %vm13264_vm4 }
 0x1d8   :  { %2828 = vrot.lane.b32.xlu0 %v2768_v51, %s8137_s24  ;;  %v2813_v22 = vpop.permute.xlu0 %2812  ;;  %v1529_v30 = vsel %vm9738_vm11, %v1168_v15, 0  ;;  %v2028_v49 = vshll.u32 %v1855_v23, 16  ;;  %v2034_v58 = vshrl.u32 %v1856_v0, 16  ;;  %v2589_v3 = vld [vmem:[#allocation2 + $0x54] sm:$0xf]  ;;  %v2283_v36 = vsel %vm13267_vm3, %v2262_v62, 0 }
 0x1d9   :  { %2865 = vst.msk [vmem:[#allocation3 + $0x40] sm:$0xf] %vm2856_vm13, %v2813_v22  ;;  %v1727_v17 = vor.u32 %v1726_v1, %v1722_v10  ;;  %vm13268_vm2 = vcmask 257152   ;;  %v1723_v6 = vsel %vm8672_vm5, %v1718_v60, %v1722_v10  ;;  %v1046_v12 = vld [vmem:[#allocation2 + $0x50] sm:$0xf]  ;;  %v1730_v32 = vshll.u32 %v1529_v30, 16 }
 0x1da   :  { %v2508_v9 = vpop.permute.xlu1 %2507  ;;  %v2030_v42 = vor.u32 %v2028_v49, %v2027_v50  ;;  %v2471_v14 = vrot.slane %v2469_v59, 4  ;;  %v2023_v53 = vrot.slane %v10868_v19, 4  ;;  %v2610_v28 = vsel %vm10689_vm15, %v2589_v3, 0  ;;  %v2590_v51 = vld [vmem:[#allocation2 + $0x58] sm:$0xf]  ;;  %vm13269_vm15 = vmmov %vm13268_vm2 }
 0x1db   :  { %2523 = vrot.lane.b32.xlu1 %v2468_v34, %s8135_s2  ;;  %2559 = vst.msk [vmem:[#allocation3 + $0x48] sm:$0xf] %vm13264_vm4, %v2508_v9  ;;  %v1728_v39 = vrot.slane %v1727_v17, 4  ;;  %v2036_v2 = vrot.slane %v2034_v58, 7  ;;  %v2475_v11 = vshll.u32 %v2283_v36, 16  ;;  %v2479_v31 = vshrl.u32 %v2283_v36, 16  ;;  %vm13276_vm3 = vmmov %vm13268_vm2 }
 0x1dc   :  { %2949 = vrot.lane.b32.xlu0 %v2893_v5, %s8133_s29  ;;  %v2934_v47 = vpop.permute.xlu0 %2933  ;;  %v2037_v35 = vshll.u32 %v1856_v0, 16  ;;  %v2031_v45 = vsel %vm8638_vm8, %v2023_v53, %v2030_v42  ;;  %v1732_v19 = vrot.slane %v1730_v32, 5  ;;  %v2472_v44 = vor.u32 %v2471_v14, %v10909_v26  ;;  %v2140_v34 = vld [vmem:[#allocation2 + $0x50] sm:$0xf]  ;;  %v2263_v16 = vld [vmem:[#allocation2 + $0x58] sm:$0x1] }
 0x1dd   :  { %2986 = vst.msk [vmem:[#allocation3 + $0x40] sm:$0xf] %vm2977_vm0, %v2934_v47  ;;  %v2780_v4 = vshrl.u32 %v2610_v28, 16  ;;  %v2477_v46 = vrot.slane %v2475_v11, 5  ;;  %v2481_v7 = vrot.slane %v2479_v31, 4  ;;  %v2611_v22 = vsel %vm13270_vm7, %v2590_v51, 0  ;;  %vm13278_vm7 = vmmov %vm13264_vm4 }
 0x1de   :  { %v2815_v18 = vpop.permute.xlu1 %2814  ;;  %v1733_v23 = vsel %vm8672_vm5, %v1728_v39, %v1732_v19  ;;  %v2039_v5 = vor.u32 %v2037_v35, %v2036_v2  ;;  %v2032_v21 = vrot.slane %v2027_v50, 4  ;;  %v2473_v8 = vrot.slane %v2472_v44, 4  ;;  %v49_v2 = vld [vmem:[%s12857_s1 + $0x10] sm:$0xff]  ;;  %v48_v11 = vld [vmem:[%s12857_s1 + $0x8] sm:$0xff]  ;;  %v50_v51 = vld [vmem:[%s12857_s1 + $0x18] sm:$0xff] }
 0x1df   :  { %2830 = vrot.lane.b32.xlu1 %v2777_v33, %s8137_s24  ;;  %2866 = vst.msk [vmem:[#allocation3 + $0x48] sm:$0xf] %vm2856_vm13, %v2815_v18  ;;  %v2782_v63 = vrot.slane %v2780_v4, 7  ;;  %v2783_v10 = vshll.u32 %v2610_v28, 16  ;;  %v2284_v15 = vsel %vm9738_vm11, %v2263_v16, 0  ;;  %v2482_v0 = vor.u32 %v2481_v7, %v2477_v46  ;;  %vm13271_vm11 = vmmov %vm13264_vm4  ;;  %v53_v19 = vld [vmem:[%s12857_s1 + $0x30] sm:$0xff] }
 0x1e0   :  { %1103 = vrot.lane.b32.xlu0 %v1045_v37, %s8131_s15  ;;  %v1088_v24 = vpop.permute.xlu0 %1087  ;;  %v7984_v37 = vld [vmem:[#allocation3 + $0x44] ss:$8 sps:$4 sm:$0xff]   ;;  %v2040_v48 = vsel %vm8638_vm8, %v2032_v21, %v2039_v5  ;;  %v2789_v47 = vshrl.u32 %v2611_v22, 16  ;;  %v2478_v59 = vsel %vm8672_vm5, %v2473_v8, %v2477_v46  ;;  %v2485_v50 = vshll.u32 %v2284_v15, 16  ;;  %v2896_v28 = vld [vmem:[#allocation2 + $0x58] sm:$0xf] }
 0x1e1   :  { %1138 = vst.msk [vmem:[#allocation3 + $0x50] sm:$0xf] %vm13268_vm2, %v1088_v24  ;;  %7045 = vmatprep.mubr.msk.bf16.mxu0 %vm3466_vm6, %v7984_v37  ;;  %v2785_v60 = vor.u32 %v2783_v10, %v2782_v63  ;;  %v2778_v38 = vrot.slane %v10911_v54, 4  ;;  %v2483_v30 = vrot.slane %v2482_v0, 4  ;;  %v2792_v24 = vshll.u32 %v2611_v22, 16  ;;  %v52_v4 = vld [vmem:[%s12857_s1 + $0x28] sm:$0xff] }
 0x1e2   :  { %v2936_v20 = vpop.permute.xlu1 %2935  ;;  %v2791_v49 = vrot.slane %v2789_v47, 7  ;;  %v2487_v3 = vrot.slane %v2485_v50, 5  ;;  %v2787_v32 = vrot.slane %v2782_v63, 4  ;;  %v7986_v5 = vld [vmem:[#allocation3 + $0x54] ss:$8 sps:$4 sm:$0xff]   ;;  %v55_v16 = vld [vmem:[%s12857_s1 + $0x40] sm:$0xff] }
 0x1e3   :  { %2951 = vrot.lane.b32.xlu1 %v2894_v41, %s8133_s29  ;;  %2987 = vst.msk [vmem:[#allocation3 + $0x48] sm:$0xf] %vm2977_vm0, %v2936_v20  ;;  %v2141_v41 = vld [vmem:[#allocation2 + $0x54] sm:$0xf]  ;;  %v2786_v58 = vsel %vm8638_vm8, %v2778_v38, %v2785_v60  ;;  %v54_v22 = vld [vmem:[%s12857_s1 + $0x38] sm:$0xff]  ;;  %v56_v63 = vld [vmem:[%s12857_s1 + $0x48] sm:$0xff] }
 0x1e4   :  { %1770 = vrot.lane.b32.xlu0 %v1723_v6, %s8134_s23  ;;  %v1755_v61 = vpop.permute.xlu0 %1754  ;;  %v3292_v9 = vld [vmem:[#allocation3 + $0x40] sm:$0xff]  ;;  %v2488_v54 = vsel %vm8672_vm5, %v2483_v30, %v2487_v3  ;;  %v2895_v6 = vld [vmem:[#allocation2 + $0x54] sm:$0xf]  ;;  %vm13274_vm5 = vmmov %vm13268_vm2 }
 0x1e5   :  { %1805 = vst.msk [vmem:[#allocation3 + $0x50] sm:$0xf] %vm1794_vm9, %v1755_v61  ;;  %v51_v61 = vld [vmem:[%s12857_s1 + $0x20] sm:$0xff]  ;;  %v57_v21 = vld [vmem:[%s12857_s1 + $0x50] sm:$0xff]  ;;  %v58_v37 = vld [vmem:[%s12857_s1 + $0x58] sm:$0xff] }
 0x1e6   :  { %v1090_v25 = vpop.permute.xlu1 %1089  ;;  %v61_v15 = vld [vmem:[%s12857_s1 + $0x70] sm:$0xff]  ;;  %v63_v47 = vld [vmem:[%s12857_s1 + $0x80] sm:$0xff] }
 0x1e7   :  { %1105 = vrot.lane.b32.xlu1 %v1046_v12, %s8131_s15  ;;  %1139 = vst.msk [vmem:[#allocation3 + $0x58] sm:$0xf] %vm13269_vm15, %v1090_v25  ;;  %v2794_v12 = vor.u32 %v2792_v24, %v2791_v49  ;;  %v65_v60 = vld [vmem:[%s12857_s1 + $0x90] sm:$0xff]  ;;  %v66_v49 = vld [vmem:[%s12857_s1 + $0x98] sm:$0xff]  ;;  %v7988_v24 = vld [vmem:[#allocation3 + $0x64] ss:$8 sps:$4 sm:$0xff]  }
 0x1e8   :  { %2077 = vrot.lane.b32.xlu0 %v2031_v45, %s8136_s3  ;;  %v2062_v26 = vpop.permute.xlu0 %2061  ;;  %vm13277_vm15 = vmmov %vm13264_vm4 }
 0x1e9   :  { %2112 = vst.msk [vmem:[#allocation3 + $0x50] sm:$0xf] %vm2101_vm12, %v2062_v26  ;;  %v2795_v20 = vsel %vm8638_vm8, %v2787_v32, %v2794_v12  ;;  %vm13273_vm8 = vmmov %vm13268_vm2 }
 0x1ea   :  { %v1757_v43 = vpop.permute.xlu1 %1756  ;;  %v3293_v33 = vld [vmem:[#allocation3 + $0x48] sm:$0xff] }
 0x1eb   :  { %1772 = vrot.lane.b32.xlu1 %v1733_v23, %s8134_s23  ;;  %1806 = vst.msk [vmem:[#allocation3 + $0x58] sm:$0xf] %vm1794_vm9, %v1757_v43  ;;  %v7020_v1 = vcombine.low %v3292_v9, %v3293_v33  ;;  %v59_v9 = vld [vmem:[%s12857_s1 + $0x60] sm:$0xff] }
 0x1ec   :  { %2198 = vrot.lane.b32.xlu0 %v2140_v34, %s8132_s22  ;;  %v2183_v62 = vpop.permute.xlu0 %2182 }
 0x1ed   :  { %2233 = vst.msk [vmem:[#allocation3 + $0x50] sm:$0xf] %vm2222_vm1, %v2183_v62  ;;  %3562 = vmatmul.mubr.bf16.gmra.mxu0 %v7020_v1  ;;  %v60_v1 = vld [vmem:[%s12857_s1 + $0x68] sm:$0xff] }
 0x1ee   :  { %v2064_v18 = vpop.permute.xlu1 %2063  ;;  %7046 = vmatprep.mubr.msk.bf16.mxu0 %vm3466_vm6, %v7986_v5 }
 0x1ef   :  { %2079 = vrot.lane.b32.xlu1 %v2040_v48, %s8136_s3  ;;  %2113 = vst.msk [vmem:[#allocation3 + $0x58] sm:$0xf] %vm2101_vm12, %v2064_v18  ;;  %v64_v18 = vld [vmem:[%s12857_s1 + $0x88] sm:$0xff] }
 0x1f0   :  { %2525 = vrot.lane.b32.xlu0 %v2478_v59, %s8135_s2  ;;  %v2510_v17 = vpop.permute.xlu0 %2509  ;;  %v62_v59 = vld [vmem:[%s12857_s1 + $0x78] sm:$0xff] }
 0x1f1   :  { %2560 = vst.msk [vmem:[#allocation3 + $0x50] sm:$0xf] %vm13271_vm11, %v2510_v17  ;;  %vm13279_vm11 = vmmov %vm13268_vm2 }
 0x1f2   :  { %v2185_v36 = vpop.permute.xlu1 %2184 }
 0x1f3   :  { %2200 = vrot.lane.b32.xlu1 %v2141_v41, %s8132_s22  ;;  %2234 = vst.msk [vmem:[#allocation3 + $0x58] sm:$0xf] %vm2222_vm1, %v2185_v36 }
 0x1f4   :  { %2832 = vrot.lane.b32.xlu0 %v2786_v58, %s8137_s24  ;;  %v2817_v42 = vpop.permute.xlu0 %2816 }
 0x1f5   :  { %2867 = vst.msk [vmem:[#allocation3 + $0x50] sm:$0xf] %vm2856_vm13, %v2817_v42 }
 0x1f6   :  { %v2512_v14 = vpop.permute.xlu1 %2511 }
 0x1f7   :  { %2527 = vrot.lane.b32.xlu1 %v2488_v54, %s8135_s2  ;;  %2561 = vst.msk [vmem:[#allocation3 + $0x58] sm:$0xf] %vm13272_vm14, %v2512_v14  ;;  %vm13280_vm14 = vmmov %vm13268_vm2 }
 0x1f8   :  { %2953 = vrot.lane.b32.xlu0 %v2895_v6, %s8133_s29  ;;  %v2938_v53 = vpop.permute.xlu0 %2937 }
 0x1f9   :  { %2988 = vst.msk [vmem:[#allocation3 + $0x50] sm:$0xf] %vm2977_vm0, %v2938_v53 }
 0x1fa   :  { %v2819_v39 = vpop.permute.xlu1 %2818 }
 0x1fb   :  { %2834 = vrot.lane.b32.xlu1 %v2795_v20, %s8137_s24  ;;  %2868 = vst.msk [vmem:[#allocation3 + $0x58] sm:$0xf] %vm2856_vm13, %v2819_v39 }
 0x1fc   :  { %3614 = vperm.xlu0 %7963, %v47_v27   ;;  %v1092_v52 = vpop.permute.xlu0 %1091 }
 0x1fd   :  { %1140 = vst.msk [vmem:[#allocation3 + $0x60] sm:$0xf] %vm13273_vm8, %v1092_v52  ;;  %vm13281_vm8 = vmmov %vm13264_vm4 }
 0x1fe   :  { %v2940_v31 = vpop.permute.xlu1 %2939 }
 0x1ff   :  { %2955 = vrot.lane.b32.xlu1 %v2896_v28, %s8133_s29  ;;  %2989 = vst.msk [vmem:[#allocation3 + $0x58] sm:$0xf] %vm2977_vm0, %v2940_v31 }
 0x200   :  { %3624 = vperm.xlu0 %7963, %v49_v2   ;;  %v3294_v23 = vld [vmem:[#allocation3 + $0x50] sm:$0xff] }
 0x201   :  { %v1759_v35 = vpop.permute.xlu0 %1758 }
 0x202   :  { %1807 = vst.msk [vmem:[#allocation3 + $0x60] sm:$0xf] %vm1794_vm9, %v1759_v35  ;;  %v1094_v45 = vpop.permute.xlu1 %1093 }
 0x203   :  { %3619 = vperm.xlu1 %7964, %v48_v11   ;;  %1141 = vst.msk [vmem:[#allocation3 + $0x68] sm:$0xf] %vm13274_vm5, %v1094_v45  ;;  %vm13282_vm5 = vmmov %vm13264_vm4 }
 0x204   :  { %3634 = vperm.xlu0 %7963, %v51_v61  }
 0x205   :  { %v2066_v44 = vpop.permute.xlu0 %2065 }
 0x206   :  { %2114 = vst.msk [vmem:[#allocation3 + $0x60] sm:$0xf] %vm2101_vm12, %v2066_v44  ;;  %v1761_v25 = vpop.permute.xlu1 %1760  ;;  %v3295_v34 = vld [vmem:[#allocation3 + $0x58] sm:$0xff] }
 0x207   :  { %3629 = vperm.xlu1 %7964, %v50_v51   ;;  %1808 = vst.msk [vmem:[#allocation3 + $0x68] sm:$0xf] %vm1794_vm9, %v1761_v25  ;;  %v7022_v46 = vcombine.low %v3294_v23, %v3295_v34 }
 0x208   :  { %3644 = vperm.xlu0 %7963, %v53_v19  }
 0x209   :  { %v2187_v7 = vpop.permute.xlu0 %2186  ;;  %3570 = vmatmul.mubr.bf16.gmra.mxu0 %v7022_v46 }
 0x20a   :  { %2235 = vst.msk [vmem:[#allocation3 + $0x60] sm:$0xf] %vm2222_vm1, %v2187_v7  ;;  %7047 = vmatprep.mubr.msk.bf16.mxu0 %vm3466_vm6, %v7988_v24 }
 0x20b   :  { %3639 = vperm.xlu1 %7964, %v52_v4   ;;  %v2068_v26 = vpop.permute.xlu1 %2067  ;;  %v7990_v4 = vld [vmem:[#allocation3 + $0x74] ss:$8 sps:$4 sm:$0xff]  }
 0x20c   :  { %3654 = vperm.xlu0 %7963, %v55_v16   ;;  %2115 = vst.msk [vmem:[#allocation3 + $0x68] sm:$0xf] %vm2101_vm12, %v2068_v26 }
 0x20d   :  { %v2514_v8 = vpop.permute.xlu0 %2513 }
 0x20e   :  { %2562 = vst.msk [vmem:[#allocation3 + $0x60] sm:$0xf] %vm13264_vm4, %v2514_v8  ;;  %vm13283_vm4 = vmmov %vm13268_vm2 }
 0x20f   :  { %3649 = vperm.xlu1 %7964, %v54_v22   ;;  %v2189_v43 = vpop.permute.xlu1 %2188 }
 0x210   :  { %3664 = vperm.xlu0 %7963, %v57_v21   ;;  %2236 = vst.msk [vmem:[#allocation3 + $0x68] sm:$0xf] %vm2222_vm1, %v2189_v43 }
 0x211   :  { %v2821_v33 = vpop.permute.xlu0 %2820 }
 0x212   :  { %2869 = vst.msk [vmem:[#allocation3 + $0x60] sm:$0xf] %vm2856_vm13, %v2821_v33 }
 0x213   :  { %3659 = vperm.xlu1 %7964, %v56_v63   ;;  %v2516_v10 = vpop.permute.xlu1 %2515 }
 0x214   :  { %3674 = vperm.xlu0 %7963, %v59_v9   ;;  %2563 = vst.msk [vmem:[#allocation3 + $0x68] sm:$0xf] %vm13275_vm10, %v2516_v10  ;;  %vm13284_vm10 = vmmov %vm13268_vm2 }
 0x215   :  { %v2942_v48 = vpop.permute.xlu0 %2941 }
 0x216   :  { %2990 = vst.msk [vmem:[#allocation3 + $0x60] sm:$0xf] %vm2977_vm0, %v2942_v48 }
 0x217   :  { %3669 = vperm.xlu1 %7964, %v58_v37   ;;  %v2823_v0 = vpop.permute.xlu1 %2822 }
 0x218   :  { %3684 = vperm.xlu0 %7963, %v61_v15   ;;  %2870 = vst.msk [vmem:[#allocation3 + $0x68] sm:$0xf] %vm2856_vm13, %v2823_v0  ;;  %v7992_v0 = vld [vmem:[#allocation3 + $0x84] ss:$8 sps:$4 sm:$0xff]  }
 0x219   :  { %v1096_v62 = vpop.permute.xlu0 %1095 }
 0x21a   :  { %1142 = vst.msk [vmem:[#allocation3 + $0x70] sm:$0xf] %vm13276_vm3, %v1096_v62  ;;  %vm13285_vm3 = vmmov %vm13282_vm5 }
 0x21b   :  { %3679 = vperm.xlu1 %7964, %v60_v1   ;;  %v2944_v41 = vpop.permute.xlu1 %2943 }
 0x21c   :  { %3694 = vperm.xlu0 %7963, %v63_v47   ;;  %2991 = vst.msk [vmem:[#allocation3 + $0x68] sm:$0xf] %vm2977_vm0, %v2944_v41 }
 0x21d   :  { %v1763_v50 = vpop.permute.xlu0 %1762  ;;  %v3296_v58 = vld [vmem:[#allocation3 + $0x60] sm:$0xff] }
 0x21e   :  { %1809 = vst.msk [vmem:[#allocation3 + $0x70] sm:$0xf] %vm1794_vm9, %v1763_v50 }
 0x21f   :  { %3689 = vperm.xlu1 %7964, %v62_v59   ;;  %v1098_v38 = vpop.permute.xlu1 %1097 }
 0x220   :  { %3704 = vperm.xlu0 %7963, %v65_v60   ;;  %1143 = vst.msk [vmem:[#allocation3 + $0x78] sm:$0xf] %vm13268_vm2, %v1098_v38 }
 0x222   :  { %v2070_v30 = vpop.permute.xlu0 %2069 }
 0x223   :  { %3699 = vperm.xlu1 %7964, %v64_v18   ;;  %2116 = vst.msk [vmem:[#allocation3 + $0x70] sm:$0xf] %vm2101_vm12, %v2070_v30  ;;  %v3297_v3 = vld [vmem:[#allocation3 + $0x68] sm:$0xff] }
 0x224   :  { %v7024_v36 = vcombine.low %v3296_v58, %v3297_v3 }
 0x225   :  { %v1765_v17 = vpop.permute.xlu1 %1764 }
 0x226   :  { %1810 = vst.msk [vmem:[#allocation3 + $0x78] sm:$0xf] %vm1794_vm9, %v1765_v17  ;;  %v2191_v54 = vpop.permute.xlu0 %2190  ;;  %3578 = vmatmul.mubr.bf16.gmra.mxu0 %v7024_v36  ;;  %v7994_v36 = vld [vmem:[#allocation3 + $0x94] ss:$8 sps:$4 sm:$0xff]  }
 0x227   :  { %3709 = vperm.xlu1 %7964, %v66_v49   ;;  %2237 = vst.msk [vmem:[#allocation3 + $0x70] sm:$0xf] %vm2222_vm1, %v2191_v54  ;;  %7048 = vmatprep.mubr.msk.bf16.mxu0 %vm3466_vm6, %v7990_v4 }
 0x229   :  { %v2072_v6 = vpop.permute.xlu1 %2071 }
 0x22a   :  { %2117 = vst.msk [vmem:[#allocation3 + $0x78] sm:$0xf] %vm2101_vm12, %v2072_v6  ;;  %v2518_v12 = vpop.permute.xlu0 %2517 }
 0x22b   :  { %2564 = vst.msk [vmem:[#allocation3 + $0x70] sm:$0xf] %vm13277_vm15, %v2518_v12 }
 0x22d   :  { %v2193_v42 = vpop.permute.xlu1 %2192 }
 0x22e   :  { %2238 = vst.msk [vmem:[#allocation3 + $0x78] sm:$0xf] %vm2222_vm1, %v2193_v42  ;;  %v2825_v32 = vpop.permute.xlu0 %2824 }
 0x22f   :  { %2871 = vst.msk [vmem:[#allocation3 + $0x70] sm:$0xf] %vm2856_vm13, %v2825_v32 }
 0x231   :  { %v2520_v14 = vpop.permute.xlu1 %2519 }
 0x232   :  { %2565 = vst.msk [vmem:[#allocation3 + $0x78] sm:$0xf] %vm13278_vm7, %v2520_v14  ;;  %v2946_v20 = vpop.permute.xlu0 %2945 }
 0x233   :  { %2992 = vst.msk [vmem:[#allocation3 + $0x70] sm:$0xf] %vm2977_vm0, %v2946_v20  ;;  %v11090_v28 = vpop.f32.mrf.mxu0 }
 0x235   :  { %v2827_v27 = vpop.permute.xlu1 %2826  ;;  %v3533_v2 = vpop.f32.mrf.mxu0 }
 0x236   :  { %2872 = vst.msk [vmem:[#allocation3 + $0x78] sm:$0xf] %vm2856_vm13, %v2827_v27  ;;  %v1100_v53 = vpop.permute.xlu0 %1099 }
 0x237   :  { %1144 = vst.msk [vmem:[#allocation3 + $0x80] sm:$0xf] %vm13279_vm11, %v1100_v53  ;;  %v11094_v11 = vpop.f32.mrf.mxu0 }
 0x239   :  { %v2948_v39 = vpop.permute.xlu1 %2947  ;;  %v3536_v61 = vpop.f32.mrf.mxu0 }
 0x23a   :  { %2993 = vst.msk [vmem:[#allocation3 + $0x78] sm:$0xf] %vm2977_vm0, %v2948_v39  ;;  %v1767_v52 = vpop.permute.xlu0 %1766  ;;  %v3298_v19 = vld [vmem:[#allocation3 + $0x70] sm:$0xff] }
 0x23b   :  { %1811 = vst.msk [vmem:[#allocation3 + $0x80] sm:$0xf] %vm1794_vm9, %v1767_v52  ;;  %v11098_v51 = vpop.f32.mrf.mxu0 }
 0x23d   :  { %v1102_v31 = vpop.permute.xlu1 %1101  ;;  %v3541_v23 = vpop.f32.mrf.mxu0 }
 0x23e   :  { %1145 = vst.msk [vmem:[#allocation3 + $0x88] sm:$0xf] %vm13280_vm14, %v1102_v31  ;;  %v2074_v35 = vpop.permute.xlu0 %2073 }
 0x23f   :  { %2118 = vst.msk [vmem:[#allocation3 + $0x80] sm:$0xf] %vm2101_vm12, %v2074_v35  ;;  %v11103_v5 = vpop.f32.mrf.mxu0 }
 0x241   :  { %v1769_v45 = vpop.permute.xlu1 %1768  ;;  %v3299_v44 = vld [vmem:[#allocation3 + $0x78] sm:$0xff]  ;;  %v3544_v16 = vpop.f32.mrf.mxu0 }
 0x242   :  { %1812 = vst.msk [vmem:[#allocation3 + $0x88] sm:$0xf] %vm1794_vm9, %v1769_v45  ;;  %v7026_v25 = vcombine.low %v3298_v19, %v3299_v44  ;;  %v2195_v34 = vpop.permute.xlu0 %2194 }
 0x243   :  { %2239 = vst.msk [vmem:[#allocation3 + $0x80] sm:$0xf] %vm2222_vm1, %v2195_v34 }
 0x244   :  { %3586 = vmatmul.mubr.bf16.gmra.mxu0 %v7026_v25 }
 0x245   :  { %v2076_v46 = vpop.permute.xlu1 %2075  ;;  %7049 = vmatprep.mubr.msk.bf16.mxu0 %vm3466_vm6, %v7992_v0 }
 0x246   :  { %2119 = vst.msk [vmem:[#allocation3 + $0x88] sm:$0xf] %vm2101_vm12, %v2076_v46  ;;  %v2522_v7 = vpop.permute.xlu0 %2521 }
 0x247   :  { %2566 = vst.msk [vmem:[#allocation3 + $0x80] sm:$0xf] %vm13281_vm8, %v2522_v7 }
 0x249   :  { %v2197_v22 = vpop.permute.xlu1 %2196 }
 0x24a   :  { %2240 = vst.msk [vmem:[#allocation3 + $0x88] sm:$0xf] %vm2222_vm1, %v2197_v22  ;;  %v2829_v26 = vpop.permute.xlu0 %2828 }
 0x24b   :  { %2873 = vst.msk [vmem:[#allocation3 + $0x80] sm:$0xf] %vm2856_vm13, %v2829_v26 }
 0x24d   :  { %v2524_v21 = vpop.permute.xlu1 %2523 }
 0x24e   :  { %2567 = vst.msk [vmem:[#allocation3 + $0x88] sm:$0xf] %vm13282_vm5, %v2524_v21  ;;  %v2950_v8 = vpop.permute.xlu0 %2949 }
 0x24f   :  { %2994 = vst.msk [vmem:[#allocation3 + $0x80] sm:$0xf] %vm2977_vm0, %v2950_v8 }
 0x251   :  { %v2831_v63 = vpop.permute.xlu1 %2830 }
 0x252   :  { %2874 = vst.msk [vmem:[#allocation3 + $0x88] sm:$0xf] %vm2856_vm13, %v2831_v63  ;;  %v1104_v43 = vpop.permute.xlu0 %1103 }
 0x253   :  { %1146 = vst.msk [vmem:[#allocation3 + $0x90] sm:$0xf] %vm13283_vm4, %v1104_v43 }
 0x255   :  { %v2952_v9 = vpop.permute.xlu1 %2951 }
 0x256   :  { %2995 = vst.msk [vmem:[#allocation3 + $0x88] sm:$0xf] %vm2977_vm0, %v2952_v9  ;;  %v1771_v33 = vpop.permute.xlu0 %1770  ;;  %v3300_v48 = vld [vmem:[#allocation3 + $0x80] sm:$0xff] }
 0x257   :  { %1813 = vst.msk [vmem:[#allocation3 + $0x90] sm:$0xf] %vm1794_vm9, %v1771_v33 }
 0x259   :  { %v1106_v37 = vpop.permute.xlu1 %1105 }
 0x25a   :  { %1147 = vst.msk [vmem:[#allocation3 + $0x98] sm:$0xf] %vm13284_vm10, %v1106_v37  ;;  %v2078_v10 = vpop.permute.xlu0 %2077 }
 0x25b   :  { %2120 = vst.msk [vmem:[#allocation3 + $0x90] sm:$0xf] %vm2101_vm12, %v2078_v10 }
 0x25d   :  { %v1773_v15 = vpop.permute.xlu1 %1772  ;;  %v3301_v1 = vld [vmem:[#allocation3 + $0x88] sm:$0xff] }
 0x25e   :  { %1814 = vst.msk [vmem:[#allocation3 + $0x98] sm:$0xf] %vm1794_vm9, %v1773_v15  ;;  %v7028_v47 = vcombine.low %v3300_v48, %v3301_v1  ;;  %v2199_v62 = vpop.permute.xlu0 %2198  ;;  %vm13286_vm9 = vmmov %vm13285_vm3 }
 0x25f   :  { %2241 = vst.msk [vmem:[#allocation3 + $0x90] sm:$0xf] %vm2222_vm1, %v2199_v62 }
 0x260   :  { %3594 = vmatmul.mubr.bf16.gmra.mxu0 %v7028_v47  ;;  %v11121_v41 = vpop.f32.mrf.mxu0 }
 0x261   :  { %v2080_v59 = vpop.permute.xlu1 %2079  ;;  %7050 = vmatprep.mubr.msk.bf16.mxu0 %vm3466_vm6, %v7994_v36 }
 0x262   :  { %2121 = vst.msk [vmem:[#allocation3 + $0x98] sm:$0xf] %vm2101_vm12, %v2080_v59  ;;  %v2526_v60 = vpop.permute.xlu0 %2525  ;;  %v3549_v50 = vpop.f32.mrf.mxu0  ;;  %vm8139_vm12 = vmmov 0  }
 0x263   :  { %2568 = vst.msk [vmem:[#allocation3 + $0x90] sm:$0xf] %vm13285_vm3, %v2526_v60 }
 0x264   :  { %v11125_v38 = vpop.f32.mrf.mxu0 }
 0x265   :  { %v2201_v18 = vpop.permute.xlu1 %2200 }
 0x266   :  { %2242 = vst.msk [vmem:[#allocation3 + $0x98] sm:$0xf] %vm2222_vm1, %v2201_v18  ;;  %v2833_v30 = vpop.permute.xlu0 %2832  ;;  %v3552_v49 = vpop.f32.mrf.mxu0 }
 0x267   :  { %2875 = vst.msk [vmem:[#allocation3 + $0x90] sm:$0xf] %vm2856_vm13, %v2833_v30 }
 0x269   :  { %v2528_v17 = vpop.permute.xlu1 %2527 }
 0x26a   :  { %2569 = vst.msk [vmem:[#allocation3 + $0x98] sm:$0xf] %vm13286_vm9, %v2528_v17  ;;  %v2954_v58 = vpop.permute.xlu0 %2953 }
 0x26b   :  { %2996 = vst.msk [vmem:[#allocation3 + $0x90] sm:$0xf] %vm2977_vm0, %v2954_v58 }
 0x26d   :  { %v2835_v3 = vpop.permute.xlu1 %2834 }
 0x26e   :  { %2876 = vst.msk [vmem:[#allocation3 + $0x98] sm:$0xf] %vm2856_vm13, %v2835_v3  ;;  %vm5769_vm13 = vsmask.f32 7424 }
 0x271   :  { %v2956_v24 = vpop.permute.xlu1 %2955 }
 0x272   :  { %2997 = vst.msk [vmem:[#allocation3 + $0x98] sm:$0xf] %vm2977_vm0, %v2956_v24  ;;  %vm4155_vm0 = vsmask.f32 4352 }
 0x277   :  { %v11151_v4 = vpop.permute.xlu0 %3614 }
 0x278   :  { %13287 = vst [vmem:[#allocation52_spill] sm:$0xff] %v11151_v4  ;;  %v3712_v21 = vmul.f32 %v11151_v4, %v11090_v28 }
 0x279   :  { %v7996_v54 = vld [vmem:[#allocation3 + $0x90] ss:$8 sps:$4 sm:$0xff]  }
 0x27a   :  { %3602 = vmatmul.mubr.bf16.gmra.mxu0 %v7996_v54 }
 0x27b   :  { %v11157_v16 = vpop.permute.xlu0 %3624 }
 0x27c   :  { %13289 = vst [vmem:[#allocation55_spill] sm:$0xff] %v11157_v16  ;;  %v3714_v9 = vmul.f32 %v11157_v16, %v11098_v51 }
 0x27e   :  { %v11155_v34 = vpop.permute.xlu1 %3619 }
 0x27f   :  { %13288 = vst [vmem:[#allocation53_spill] sm:$0xff] %v11155_v34  ;;  %v11161_v22 = vpop.permute.xlu0 %3634  ;;  %v3713_v26 = vmul.f32 %v11155_v34, %v11094_v11 }
 0x280   :  { %13291 = vst [vmem:[#allocation49_spill] sm:$0xff] %v11161_v22  ;;  %v3716_v0 = vmul.f32 %v11161_v22, %v11121_v41 }
 0x281   :  { %v3732_v63 = vadd.f32 %v3713_v26, %v3712_v21 }
 0x282   :  { %v11159_v7 = vpop.permute.xlu1 %3629 }
 0x283   :  { %13290 = vst [vmem:[#allocation29_spill] sm:$0xff] %v11159_v7  ;;  %v11169_v43 = vpop.permute.xlu0 %3644  ;;  %v3715_v33 = vmul.f32 %v11159_v7, %v11103_v5  ;;  %v3733_v37 = vadd.f32 %v3732_v63, %v3714_v9 }
 0x284   :  { %13293 = vst [vmem:[#allocation51_spill] sm:$0xff] %v11169_v43 }
 0x285   :  { %v3734_v48 = vadd.f32 %v3733_v37, %v3715_v33 }
 0x286   :  { %v11167_v8 = vpop.permute.xlu1 %3639 }
 0x287   :  { %13292 = vst [vmem:[#allocation56_spill] sm:$0xff] %v11167_v8  ;;  %v11177_v15 = vpop.permute.xlu0 %3654  ;;  %v3717_v59 = vmul.f32 %v11167_v8, %v11125_v38  ;;  %v3735_v60 = vadd.f32 %v3734_v48, %v3716_v0 }
 0x288   :  { %13295 = vst [vmem:[#allocation62_spill] sm:$0xff] %v11177_v15 }
 0x289   :  { %v3736_v17 = vadd.f32 %v3735_v60, %v3717_v59  ;;  %v7998_v59 = vld [vmem:[%s12858_s7 + $0x130] sm:$0xff]  }
 0x28a   :  { %v11175_v10 = vpop.permute.xlu1 %3649 }
 0x28b   :  { %13294 = vst [vmem:[#allocation34_spill] sm:$0xff] %v11175_v10  ;;  %v11187_v50 = vpop.permute.xlu0 %3664 }
 0x28c   :  { %13297 = vst [vmem:[#allocation37_spill] sm:$0xff] %v11187_v50 }
 0x28e   :  { %v11183_v47 = vpop.permute.xlu1 %3659 }
 0x28f   :  { %13296 = vst [vmem:[#allocation60_spill] sm:$0xff] %v11183_v47  ;;  %v11199_v54 = vpop.permute.xlu0 %3674 }
 0x290   :  { %13300 = vst [vmem:[#allocation48_spill] sm:$0xff] %v11199_v54 }
 0x292   :  { %v11195_v3 = vpop.permute.xlu1 %3669 }
 0x293   :  { %13299 = vst [vmem:[#allocation44_spill] sm:$0xff] %v11195_v3 }
 0x294   :  { %v11133_v6 = vpop.f32.mrf.mxu0 }
 0x295   :  { %v3718_v30 = vmul.f32 %v11169_v43, %v11133_v6 }
 0x296   :  { %v3557_v12 = vpop.f32.mrf.mxu0 }
 0x297   :  { %v3737_v24 = vadd.f32 %v3736_v17, %v3718_v30 }
 0x298   :  { %v11135_v42 = vpop.f32.mrf.mxu0 }
 0x299   :  { %v3719_v58 = vmul.f32 %v11175_v10, %v11135_v42 }
 0x29a   :  { %v3560_v32 = vpop.f32.mrf.mxu0 }
 0x29b   :  { %v3738_v12 = vadd.f32 %v3737_v24, %v3719_v58  ;;  %v8000_v58 = vld [vmem:[%s12858_s7 + $0x128] sm:$0xff]  }
 0x2ad   :  { %v11137_v14 = vpop.f32.mrf.mxu0 }
 0x2ae   :  { %v3720_v36 = vmul.f32 %v11177_v15, %v11137_v14 }
 0x2af   :  { %v3565_v20 = vpop.f32.mrf.mxu0 }
 0x2b0   :  { %v3739_v20 = vadd.f32 %v3738_v12, %v3720_v36  ;;  %v8001_v12 = vld [vmem:[%s12858_s7 + $0xf0] sm:$0xff]  }
 0x2b1   :  { %v11139_v27 = vpop.f32.mrf.mxu0 }
 0x2b2   :  { %v3721_v32 = vmul.f32 %v11183_v47, %v11139_v27 }
 0x2b3   :  { %v3568_v53 = vpop.f32.mrf.mxu0 }
 0x2c9   :  { %v11141_v39 = vpop.f32.mrf.mxu0 }
 0x2ca   :  { %v3722_v53 = vmul.f32 %v11187_v50, %v11141_v39 }
 0x2cb   :  { %v3573_v2 = vpop.f32.mrf.mxu0 }
 0x2cc   :  { %v11205_v2 = vpop.permute.xlu1 %3679 }
 0x2cd   :  { %v11143_v52 = vpop.f32.mrf.mxu0  ;;  %13301 = vst [vmem:[#allocation54_spill] sm:$0xff] %v11205_v2 }
 0x2cf   :  { %v3576_v31 = vpop.f32.mrf.mxu0 }
 0x2d0   :  { %v3740_v31 = vadd.f32 %v3739_v20, %v3721_v32  ;;  %v11215_v63 = vpop.permute.xlu1 %3689 }
 0x2d1   :  { %13303 = vst [vmem:[#allocation58_spill] sm:$0xff] %v11215_v63 }
 0x2d4   :  { %v11234_v17 = vpop.permute.xlu1 %3699 }
 0x2d5   :  { %13305 = vst [vmem:[#allocation61_spill] sm:$0xff] %v11234_v17 }
 0x2e6   :  { %v11145_v61 = vpop.f32.mrf.mxu0 }
 0x2e8   :  { %v3581_v35 = vpop.f32.mrf.mxu0 }
 0x2e9   :  { %v3723_v35 = vmul.f32 %v11195_v3, %v11143_v52 }
 0x2ea   :  { %v11147_v45 = vpop.f32.mrf.mxu0 }
 0x2eb   :  { %v3725_v21 = vmul.f32 %v11205_v2, %v11147_v45 }
 0x2ec   :  { %v3584_v19 = vpop.f32.mrf.mxu0 }
 0x2ed   :  { %v11209_v19 = vpop.permute.xlu0 %3684 }
 0x2ee   :  { %13302 = vst [vmem:[#allocation57_spill] sm:$0xff] %v11209_v19 }
 0x2f1   :  { %v11219_v37 = vpop.permute.xlu0 %3694 }
 0x2f2   :  { %13304 = vst [vmem:[#allocation59_spill] sm:$0xff] %v11219_v37 }
 0x2f5   :  { %v11244_v32 = vpop.permute.xlu0 %3704 }
 0x2f6   :  { %13306 = vst [vmem:[#allocation64_spill] sm:$0xff] %v11244_v32 }
 0x304   :  { %v11149_v44 = vpop.f32.mrf.mxu0 }
 0x305   :  { %v3726_v33 = vmul.f32 %v11209_v19, %v11149_v44 }
 0x306   :  { %v3589_v25 = vpop.f32.mrf.mxu0 }
 0x307   :  { %v3741_v25 = vadd.f32 %v3740_v31, %v3722_v53 }
 0x308   :  { %v11153_v23 = vpop.f32.mrf.mxu0 }
 0x309   :  { %v3742_v26 = vadd.f32 %v3741_v25, %v3723_v35  ;;  %v3727_v0 = vmul.f32 %v11215_v63, %v11153_v23  ;;  %v8003_v35 = vld [vmem:[%s12858_s7 + $0xe8] sm:$0xff]  }
 0x30a   :  { %v3592_v46 = vpop.f32.mrf.mxu0 }
 0x30b   :  { %v3724_v46 = vmul.f32 %v11199_v54, %v11145_v61 }
 0x30d   :  { %v3743_v9 = vadd.f32 %v3742_v26, %v3724_v46  ;;  %v8002_v26 = vld [vmem:[%s12858_s7 + $0x120] sm:$0xff]  }
 0x30f   :  { %v3744_v48 = vadd.f32 %v3743_v9, %v3725_v21  ;;  %v11256_v21 = vpop.permute.xlu1 %3709 }
 0x310   :  { %13307 = vst [vmem:[#allocation65_spill] sm:$0xff] %v11256_v21 }
 0x311   :  { %v3745_v60 = vadd.f32 %v3744_v48, %v3726_v33 }
 0x313   :  { %v3746_v24 = vadd.f32 %v3745_v60, %v3727_v0  ;;  %v8005_v0 = vld [vmem:[%s12858_s7 + $0xe0] sm:$0xff]   ;;  %v8004_v60 = vld [vmem:[%s12858_s7 + $0x118] sm:$0xff]  }
 0x320   :  { %v11179_v1 = vpop.f32.mrf.mxu0 }
 0x321   :  { %v3728_v30 = vmul.f32 %v11219_v37, %v11179_v1 }
 0x322   :  { %v3597_v62 = vpop.f32.mrf.mxu0 }
 0x323   :  { %v7997_v62 = vld [vmem:[%s12858_s7 + $0x138] sm:$0xff]   ;;  %v3747_v53 = vadd.f32 %v3746_v24, %v3728_v30 }
 0x324   :  { %v11189_v18 = vpop.f32.mrf.mxu0  ;;  %7714 = vmatprep.subr.bf16.mxu0 %v7997_v62 }
 0x325   :  { %13298 = vst [vmem:[#allocation63_spill] sm:$0xff] %v11189_v18  ;;  %7715 = vmatpush3.bf16.msra.mxu0 %v7997_v62  ;;  %v3729_v36 = vmul.f32 %v11234_v17, %v11189_v18 }
 0x326   :  { %v3600_v49 = vpop.f32.mrf.mxu0  ;;  %7716 = vmatprep.subr.bf16.mxu0 %v7998_v59 }
 0x327   :  { %v7999_v49 = vld [vmem:[%s12858_s7 + $0xf8] sm:$0xff]   ;;  %v3748_v46 = vadd.f32 %v3747_v53, %v3729_v36  ;;  %v8008_v53 = vld [vmem:[%s12858_s7 + $0x108] sm:$0xff]  }
 0x328   :  { %7606 = vmatprep.subr.bf16.mxu1 %v7999_v49 }
 0x329   :  { %7607 = vmatpush3.bf16.msra.mxu1 %v7999_v49  ;;  %7717 = vmatpush3.bf16.msra.mxu0 %v7998_v59  ;;  %v8007_v49 = vld [vmem:[%s12858_s7 + $0xd8] sm:$0xff]  }
 0x32a   :  { %7608 = vmatprep.subr.bf16.mxu1 %v8001_v12  ;;  %7718 = vmatprep.subr.bf16.mxu0 %v8000_v58 }
 0x32d   :  { %7609 = vmatpush3.bf16.msra.mxu1 %v8001_v12  ;;  %7719 = vmatpush3.bf16.msra.mxu0 %v8000_v58  ;;  %v8006_v58 = vld [vmem:[%s12858_s7 + $0x110] sm:$0xff]  }
 0x32e   :  { %7610 = vmatprep.subr.bf16.mxu1 %v8003_v35  ;;  %7720 = vmatprep.subr.bf16.mxu0 %v8002_v26  ;;  %v8009_v12 = vld [vmem:[%s12858_s7 + $0xd0] sm:$0xff]  }
 0x331   :  { %7611 = vmatpush3.bf16.msra.mxu1 %v8003_v35  ;;  %7721 = vmatpush3.bf16.msra.mxu0 %v8002_v26 }
 0x332   :  { %7612 = vmatprep.subr.bf16.mxu1 %v8005_v0  ;;  %7722 = vmatprep.subr.bf16.mxu0 %v8004_v60 }
 0x335   :  { %7613 = vmatpush3.bf16.msra.mxu1 %v8005_v0  ;;  %7723 = vmatpush3.bf16.msra.mxu0 %v8004_v60  ;;  %v11294_v0 = vld [vmem:[%s12858_s7 + $0x1f8] sm:$0xff]  }
 0x336   :  { %7614 = vmatprep.subr.bf16.mxu1 %v8007_v49  ;;  %7724 = vmatprep.subr.bf16.mxu0 %v8006_v58 }
 0x339   :  { %7615 = vmatpush3.bf16.msra.mxu1 %v8007_v49  ;;  %7725 = vmatpush3.bf16.msra.mxu0 %v8006_v58 }
 0x33a   :  { %v11246_v20 = vpop.f32.mrf.mxu0  ;;  %7616 = vmatprep.subr.bf16.mxu1 %v8009_v12  ;;  %7726 = vmatprep.subr.bf16.mxu0 %v8008_v53 }
 0x33b   :  { %v3730_v31 = vmul.f32 %v11244_v32, %v11246_v20 }
 0x33c   :  { %v3605_v25 = vpop.f32.mrf.mxu0 }
 0x33d   :  { %v3749_v33 = vadd.f32 %v3748_v46, %v3730_v31  ;;  %v8010_v25 = vld [vmem:[%s12858_s7 + $0x100] sm:$0xff]   ;;  %v8011_v46 = vld [vmem:[%s12858_s7 + $0xc8] sm:$0xff]   ;;  %7617 = vmatpush3.bf16.msra.mxu1 %v8009_v12  ;;  %7727 = vmatpush3.bf16.msra.mxu0 %v8008_v53 }
 0x33e   :  { %v11258_v9 = vpop.f32.mrf.mxu0  ;;  %7618 = vmatprep.subr.bf16.mxu1 %v8011_v46  ;;  %7728 = vmatprep.subr.bf16.mxu0 %v8010_v25 }
 0x33f   :  { %v3731_v48 = vmul.f32 %v11256_v21, %v11258_v9 }
 0x340   :  { %v3608_v62 = vpop.f32.mrf.mxu0 }
 0x341   :  { %v3750_v59 = vadd.f32 %v3749_v33, %v3731_v48  ;;  %v8017_v33 = vld [vmem:[%s12858_s7 + $0xc0] sm:$0xff]   ;;  %7619 = vmatpush3.bf16.msra.mxu1 %v8011_v46  ;;  %v11299_v62 = vld [vmem:[%s12858_s7 + $0x38] sm:$0xff]   ;;  %7729 = vmatpush3.bf16.msra.mxu0 %v8010_v25 }
 0x342   :  { %13308 = vst [vmem:[#allocation66_spill] sm:$0xff] %v11299_v62  ;;  %7620 = vmatprep.subr.bf16.mxu1 %v8017_v33  ;;  %7786 = vmatprep.subr.bf16.mxu0 %v11294_v0 }
 0x343   :  { %v3751_v30 = vrot.slane %v3750_v59, 4 }
 0x345   :  { %v3752_v24 = vadd.f32 %v3751_v30, %v3750_v59  ;;  %7621 = vmatpush3.bf16.msra.mxu1 %v8017_v33 }
 0x346   :  { %7642 = vmatprep.subr.bf16.mxu1 %v11299_v62 }
 0x347   :  { %v3753_v36 = vrot.slane %v3752_v24, 2 }
 0x349   :  { %v3754_v31 = vadd.f32 %v3753_v36, %v3752_v24 }
 0x34b   :  { %v3755_v35 = vrot.slane %v3754_v31, 1 }
 0x34d   :  { %v3756_v26 = vadd.f32 %v3755_v35, %v3754_v31 }
 0x34f   :  { %v11289_v48 = vmul.f32 0.0078125, %v3756_v26 }
 0x351   :  { %v3759_v59 = vsub.f32 %v11090_v28, %v11289_v48  ;;  %v3760_v60 = vsub.f32 %v11094_v11, %v11289_v48  ;;  %v3761_v30 = vsub.f32 %v11098_v51, %v11289_v48  ;;  %v3762_v58 = vsub.f32 %v11103_v5, %v11289_v48 }
 0x352   :  { %v3763_v36 = vsub.f32 %v11121_v41, %v11289_v48  ;;  %v3764_v35 = vsub.f32 %v11125_v38, %v11289_v48  ;;  %v3765_v46 = vsub.f32 %v11133_v6, %v11289_v48  ;;  %v3768_v55 = vsub.f32 %v11139_v27, %v11289_v48 }
 0x353   :  { %v3779_v49 = vmul.f32 %v3759_v59, %v11151_v4  ;;  %v3780_v24 = vmul.f32 %v3760_v60, %v11155_v34  ;;  %v3781_v12 = vmul.f32 %v3761_v30, %v11157_v16  ;;  %v3782_v25 = vmul.f32 %v3762_v58, %v11159_v7 }
 0x354   :  { %v3783_v26 = vmul.f32 %v3763_v36, %v11161_v22  ;;  %v3766_v60 = vsub.f32 %v11135_v42, %v11289_v48  ;;  %v3784_v56 = vmul.f32 %v3764_v35, %v11167_v8  ;;  %v3785_v57 = vmul.f32 %v3765_v46, %v11169_v43 }
 0x355   :  { %v3799_v53 = vmul.f32 %v3779_v49, %v3779_v49  ;;  %v3800_v31 = vmul.f32 %v3780_v24, %v3780_v24  ;;  %v3801_v33 = vmul.f32 %v3781_v12, %v3781_v12  ;;  %v3802_v30 = vmul.f32 %v3782_v25, %v3782_v25 }
 0x356   :  { %v3767_v24 = vsub.f32 %v11137_v14, %v11289_v48  ;;  %v3803_v58 = vmul.f32 %v3783_v26, %v3783_v26  ;;  %v3786_v36 = vmul.f32 %v3766_v60, %v11175_v10  ;;  %v3804_v12 = vmul.f32 %v3784_v56, %v3784_v56 }
 0x357   :  { %v3819_v59 = vadd.f32 %v3800_v31, %v3799_v53  ;;  %v3769_v31 = vsub.f32 %v11141_v39, %v11289_v48  ;;  %v3805_v25 = vmul.f32 %v3785_v57, %v3785_v57  ;;  %v3788_v46 = vmul.f32 %v3768_v55, %v11183_v47 }
 0x358   :  { %v3787_v35 = vmul.f32 %v3767_v24, %v11177_v15  ;;  %v3806_v26 = vmul.f32 %v3786_v36, %v3786_v36 }
 0x359   :  { %v3820_v49 = vadd.f32 %v3819_v59, %v3801_v33  ;;  %v3770_v59 = vsub.f32 %v11143_v52, %v11289_v48  ;;  %v3789_v56 = vmul.f32 %v3769_v31, %v11187_v50  ;;  %v3808_v24 = vmul.f32 %v3788_v46, %v3788_v46 }
 0x35b   :  { %v3821_v13 = vadd.f32 %v3820_v49, %v3802_v30  ;;  %v3771_v49 = vsub.f32 %v11145_v61, %v11289_v48  ;;  %v3790_v57 = vmul.f32 %v3770_v59, %v11195_v3  ;;  %v3809_v36 = vmul.f32 %v3789_v56, %v3789_v56 }
 0x35d   :  { %v3822_v53 = vadd.f32 %v3821_v13, %v3803_v58  ;;  %v3807_v13 = vmul.f32 %v3787_v35, %v3787_v35  ;;  %v3772_v58 = vsub.f32 %v11147_v45, %v11289_v48  ;;  %v3791_v55 = vmul.f32 %v3771_v49, %v11199_v54 }
 0x35e   :  { %v3810_v35 = vmul.f32 %v3790_v57, %v3790_v57 }
 0x35f   :  { %v3823_v33 = vadd.f32 %v3822_v53, %v3804_v12  ;;  %v3773_v53 = vsub.f32 %v11149_v44, %v11289_v48  ;;  %v3792_v31 = vmul.f32 %v3772_v58, %v11205_v2  ;;  %v3811_v46 = vmul.f32 %v3791_v55, %v3791_v55 }
 0x361   :  { %v3824_v30 = vadd.f32 %v3823_v33, %v3805_v25  ;;  %v3774_v33 = vsub.f32 %v11153_v23, %v11289_v48  ;;  %v3793_v59 = vmul.f32 %v3773_v53, %v11209_v19  ;;  %v3812_v56 = vmul.f32 %v3792_v31, %v3792_v31 }
 0x363   :  { %v3825_v60 = vadd.f32 %v3824_v30, %v3806_v26  ;;  %v3775_v30 = vsub.f32 %v11179_v1, %v11289_v48  ;;  %v3794_v49 = vmul.f32 %v3774_v33, %v11215_v63  ;;  %v3813_v57 = vmul.f32 %v3793_v59, %v3793_v59 }
 0x365   :  { %v3826_v12 = vadd.f32 %v3825_v60, %v3807_v13  ;;  %v3776_v60 = vsub.f32 %v11189_v18, %v11289_v48  ;;  %v3795_v58 = vmul.f32 %v3775_v30, %v11219_v37  ;;  %v3814_v55 = vmul.f32 %v3794_v49, %v3794_v49 }
 0x367   :  { %v3827_v25 = vadd.f32 %v3826_v12, %v3808_v24  ;;  %v3777_v12 = vsub.f32 %v11246_v20, %v11289_v48  ;;  %v3796_v53 = vmul.f32 %v3776_v60, %v11234_v17  ;;  %v3815_v29 = vmul.f32 %v3795_v58, %v3795_v58 }
 0x369   :  { %v3828_v26 = vadd.f32 %v3827_v25, %v3809_v36  ;;  %v3778_v25 = vsub.f32 %v11258_v9, %v11289_v48 }
 0x36b   :  { %v3829_v13 = vadd.f32 %v3828_v26, %v3810_v35  ;;  %v3797_v26 = vmul.f32 %v3777_v12, %v11244_v32  ;;  %v3798_v31 = vmul.f32 %v3778_v25, %v11256_v21  ;;  %v3851_v12 = vlaneseq }
 0x36d   :  { %v3830_v24 = vadd.f32 %v3829_v13, %v3811_v46  ;;  %v3816_v46 = vmul.f32 %v3796_v53, %v3796_v53  ;;  %v3817_v40 = vmul.f32 %v3797_v26, %v3797_v26  ;;  %v3818_v30 = vmul.f32 %v3798_v31, %v3798_v31 }
 0x36e   :  { %v11363_v58 = vshrl.u32 %v3851_v12, 7 }
 0x36f   :  { %v3831_v36 = vadd.f32 %v3830_v24, %v3812_v56 }
 0x370   :  { %13309 = vst [vmem:[#allocation67_spill] sm:$0xff] %v11363_v58  ;;  %v11369_v25 = vsub.s32 0, %v11363_v58 }
 0x371   :  { %v3832_v35 = vadd.f32 %v3831_v36, %v3813_v57 }
 0x372   :  { %13310 = vst [vmem:[#allocation68_spill] sm:$0xff] %v11369_v25 }
 0x373   :  { %v3833_v33 = vadd.f32 %v3832_v35, %v3814_v55 }
 0x375   :  { %v3834_v13 = vadd.f32 %v3833_v33, %v3815_v29  ;;  %v3610_v29 = vld [vmem:[%s12859_s5] sm:$0x1] }
 0x377   :  { %v3835_v62 = vadd.f32 %v3834_v13, %v3816_v46 }
 0x379   :  { %v3836_v59 = vadd.f32 %v3835_v62, %v3817_v40 }
 0x37b   :  { %v3837_v56 = vadd.f32 %v3836_v59, %v3818_v30 }
 0x37d   :  { %v3838_v24 = vrot.slane %v3837_v56, 4 }
 0x37f   :  { %v3839_v37 = vadd.f32 %v3838_v24, %v3837_v56 }
 0x381   :  { %v3840_v18 = vrot.slane %v3839_v37, 2 }
 0x383   :  { %v3841_v63 = vadd.f32 %v3840_v18, %v3839_v37  ;;  %v3611_v18 = vld [vmem:[%s12860_s6] sm:$0x1] }
 0x385   :  { %v3842_v60 = vrot.slane %v3841_v63, 1 }
 0x387   :  { %v3843_v49 = vadd.f32 %v3842_v60, %v3841_v63 }
 0x389   :  { %v3844_v57 = vmul.f32 0.0078125, %v3843_v49 }
 0x38b   :  { %v3845_v36 = vadd.f32 1e-05, %v3844_v57 }
 0x38d   :  { %8125 = vrsqrt.f32 %v3845_v36 }
 0x39a   :  { %v8126_v40 = vpop.eup %8125 }
 0x39b   :  { %v3847_v62 = vmul.f32 %v8126_v40, %v3610_v29 }
 0x39d   :  { %v3848_v63 = vmul.f32 %v3847_v62, %v11289_v48  ;;  %v11376_v37 = vrot.slane %v3847_v62, %v11369_v25 }
 0x39f   :  { %v3849_v53 = vsub.f32 %v3611_v18, %v3848_v63  ;;  %v3874_v55 = vmul.f32 %v11376_v37, %v11246_v20  ;;  %v3875_v35 = vmul.f32 %v11376_v37, %v11258_v9  ;;  %v3856_v26 = vmul.f32 %v11376_v37, %v11090_v28 }
 0x3a0   :  { %v3857_v33 = vmul.f32 %v11376_v37, %v11094_v11  ;;  %v3858_v31 = vmul.f32 %v11376_v37, %v11098_v51  ;;  %v3859_v48 = vmul.f32 %v11376_v37, %v11103_v5  ;;  %v3860_v46 = vmul.f32 %v11376_v37, %v11121_v41 }
 0x3a1   :  { %v11393_v20 = vrot.slane %v3849_v53, %v11369_v25  ;;  %v3861_v9 = vmul.f32 %v11376_v37, %v11125_v38  ;;  %v3862_v28 = vmul.f32 %v11376_v37, %v11133_v6  ;;  %v3863_v11 = vmul.f32 %v11376_v37, %v11135_v42 }
 0x3a2   :  { %v3864_v51 = vmul.f32 %v11376_v37, %v11137_v14  ;;  %v3865_v5 = vmul.f32 %v11376_v37, %v11139_v27  ;;  %v3866_v41 = vmul.f32 %v11376_v37, %v11141_v39  ;;  %v3867_v13 = vmul.f32 %v11376_v37, %v11143_v52 }
 0x3a3   :  { %v3900_v38 = vadd.f32 %v11393_v20, %v3874_v55  ;;  %v3901_v30 = vadd.f32 %v11393_v20, %v3875_v35  ;;  %v3882_v6 = vadd.f32 %v11393_v20, %v3856_v26  ;;  %v3883_v42 = vadd.f32 %v11393_v20, %v3857_v33 }
 0x3a4   :  { %v3884_v59 = vadd.f32 %v11393_v20, %v3858_v31  ;;  %v3885_v14 = vadd.f32 %v11393_v20, %v3859_v48  ;;  %v3886_v27 = vadd.f32 %v11393_v20, %v3860_v46  ;;  %v3887_v56 = vadd.f32 %v11393_v20, %v3861_v9 }
 0x3a5   :  { %v3920_v39 = vmax.f32 %v3900_v38, 0.0  ;;  %v3921_v24 = vmax.f32 %v3901_v30, 0.0  ;;  %v3902_v60 = vmax.f32 %v3882_v6, 0.0  ;;  %v3903_v52 = vmax.f32 %v3883_v42, 0.0 }
 0x3a6   :  { %v3904_v49 = vmax.f32 %v3884_v59, 0.0  ;;  %v3905_v57 = vmax.f32 %v3885_v14, 0.0  ;;  %v3888_v36 = vadd.f32 %v11393_v20, %v3862_v28  ;;  %v3889_v12 = vadd.f32 %v11393_v20, %v3863_v11 }
 0x3a7   :  { %v3940_v29 = vmul.f32 %v3920_v39, %v11244_v32  ;;  %v3941_v40 = vmul.f32 %v3921_v24, %v11256_v21  ;;  %v3922_v62 = vmul.f32 %v3902_v60, %v11151_v4  ;;  %v3923_v18 = vmul.f32 %v3903_v52, %v11155_v34 }
 0x3a8   :  { %v3924_v63 = vmul.f32 %v3904_v49, %v11157_v16  ;;  %v3925_v53 = vmul.f32 %v3905_v57, %v11159_v7  ;;  %v3906_v55 = vmax.f32 %v3886_v27, 0.0  ;;  %v3907_v35 = vmax.f32 %v3887_v56, 0.0 }
 0x3a9   :  { %v7429_v26 = vpack.c.bf16 %v3941_v40, %v3940_v29  ;;  %v7384_v33 = vpack.c.bf16 %v3923_v18, %v3922_v62  ;;  %v3908_v31 = vmax.f32 %v3888_v36, 0.0  ;;  %v3909_v48 = vmax.f32 %v3889_v12, 0.0 }
 0x3aa   :  { %v7389_v46 = vpack.c.bf16 %v3925_v53, %v3924_v63  ;;  %v3926_v9 = vmul.f32 %v3906_v55, %v11161_v22  ;;  %v3927_v28 = vmul.f32 %v3907_v35, %v11167_v8  ;;  %v3890_v11 = vadd.f32 %v11393_v20, %v3864_v51 }
 0x3ab   :  { %7440 = vst [vmem:[#allocation4 + $0x50] sm:$0xff] %v7429_v26   ;;  %7431 = vst [vmem:[#allocation4 + $0x8] sm:$0xff] %v7384_v33   ;;  %v3928_v38 = vmul.f32 %v3908_v31, %v11169_v43  ;;  %v3929_v30 = vmul.f32 %v3909_v48, %v11175_v10  ;;  %v3891_v6 = vadd.f32 %v11393_v20, %v3865_v5 }
 0x3ac   :  { %v3892_v42 = vadd.f32 %v11393_v20, %v3866_v41  ;;  %7432 = vst [vmem:[#allocation4 + $0x10] sm:$0xff] %v7389_v46   ;;  %v7394_v59 = vpack.c.bf16 %v3927_v28, %v3926_v9  ;;  %v3893_v14 = vadd.f32 %v11393_v20, %v3867_v13  ;;  %v3910_v27 = vmax.f32 %v3890_v11, 0.0 }
 0x3ad   :  { %v3868_v56 = vmul.f32 %v11376_v37, %v11145_v61  ;;  %v7399_v39 = vpack.c.bf16 %v3929_v30, %v3928_v38  ;;  %v3911_v51 = vmax.f32 %v3891_v6, 0.0  ;;  %v3869_v60 = vmul.f32 %v11376_v37, %v11147_v45  ;;  %v4083_v61 = vld [vmem:[#allocation4 + $0x4] sm:$0x8] }
 0x3ae   :  { %v3912_v24 = vmax.f32 %v3892_v42, 0.0  ;;  %7433 = vst [vmem:[#allocation4 + $0x18] sm:$0xff] %v7394_v59   ;;  %v3913_v52 = vmax.f32 %v3893_v14, 0.0  ;;  %v3930_v5 = vmul.f32 %v3910_v27, %v11177_v15  ;;  %v3870_v12 = vmul.f32 %v11376_v37, %v11149_v44 }
 0x3af   :  { %7434 = vst [vmem:[#allocation4 + $0x20] sm:$0xff] %v7399_v39   ;;  %v3931_v41 = vmul.f32 %v3911_v51, %v11183_v47  ;;  %v3894_v13 = vadd.f32 %v11393_v20, %v3868_v56  ;;  %v3895_v57 = vadd.f32 %v11393_v20, %v3869_v60  ;;  %v3871_v53 = vmul.f32 %v11376_v37, %v11153_v23  ;;  %v8025_v23 = vld [vmem:[%s12858_s7 + $0x1f0] sm:$0xff]  }
 0x3b0   :  { %v3932_v49 = vmul.f32 %v3912_v24, %v11187_v50  ;;  %v3933_v36 = vmul.f32 %v3913_v52, %v11195_v3  ;;  %v11450_v55 = vadd.f32 %v11393_v20, %v3870_v12  ;;  %v3872_v27 = vmul.f32 %v11376_v37, %v11179_v1  ;;  %v8028_v1 = vld [vmem:[%s12858_s7 + $0x1e8] sm:$0xff]  }
 0x3b1   :  { %v7404_v45 = vpack.c.bf16 %v3931_v41, %v3930_v5  ;;  %v3914_v29 = vmax.f32 %v3894_v13, 0.0  ;;  %v3915_v40 = vmax.f32 %v3895_v57, 0.0  ;;  %v3897_v28 = vadd.f32 %v11393_v20, %v3871_v53 }
 0x3b2   :  { %v11445_v62 = vld [vmem:[#allocation4 + $0x8] sm:$0xf]  ;;  %v4049_v18 = vld [vmem:[#allocation4 + $0xc] sm:$0xf]  ;;  %v7409_v63 = vpack.c.bf16 %v3933_v36, %v3932_v49  ;;  %v3916_v14 = vmax.f32 %v11450_v55, 0.0  ;;  %v11486_v49 = vadd.f32 %v11393_v20, %v3872_v27 }
 0x3b3   :  { %v4050_v35 = vld [vmem:[#allocation4 + $0x10] sm:$0xf]  ;;  %v4051_v26 = vld [vmem:[#allocation4 + $0x14] sm:$0xf]  ;;  %v11453_v33 = vcombine.low %v11445_v62, %v4049_v18  ;;  %v7087_v44 = vcombine.low %v4083_v61, %v11445_v62  ;;  %7435 = vst [vmem:[#allocation4 + $0x28] sm:$0xff] %v7404_v45   ;;  %v3934_v31 = vmul.f32 %v3914_v29, %v11199_v54  ;;  %v3935_v48 = vmul.f32 %v3915_v40, %v11205_v2 }
 0x3b4   :  { %v11458_v46 = vcombine.low %v4049_v18, %v4050_v35  ;;  %v11460_v9 = vcombine.low %v4050_v35, %v4051_v26  ;;  %7436 = vst [vmem:[#allocation4 + $0x30] sm:$0xff] %v7409_v63   ;;  %v3917_v41 = vmax.f32 %v3897_v28, 0.0 }
 0x3b5   :  { %7730 = vmatprep.mubr.bf16.mxu0 %v11453_v33  ;;  %v4052_v11 = vld [vmem:[#allocation4 + $0x18] sm:$0xf]  ;;  %v4053_v38 = vld [vmem:[#allocation4 + $0x1c] sm:$0xf]  ;;  %v7414_v30 = vpack.c.bf16 %v3935_v48, %v3934_v31  ;;  %v4157_v39 = vshrl.u32 %v7087_v44, 16  ;;  %v4160_v51 = vshll.u32 %v7087_v44, 16 }
 0x3b6   :  { %7731 = vmatmul.mubr.bf16.vlgmr.msra.gmra.mxu0 %v11460_v9  ;;  %v4054_v6 = vld [vmem:[#allocation4 + $0x20] sm:$0xf]  ;;  %v11468_v42 = vcombine.low %v4051_v26, %v4052_v11  ;;  %v11470_v59 = vcombine.low %v4052_v11, %v4053_v38  ;;  %v13009_v24 = vshrl.u32 %v11458_v46, 16  ;;  %v13010_v60 = vshll.u32 %v11458_v46, 16  ;;  %v4055_v5 = vld [vmem:[#allocation4 + $0x24] sm:$0xf] }
 0x3b7   :  { %v11475_v56 = vcombine.low %v4053_v38, %v4054_v6  ;;  %7787 = vmatpush3.bf16.msra.mxu0 %v11294_v0  ;;  %7437 = vst [vmem:[#allocation4 + $0x38] sm:$0xff] %v7414_v30   ;;  %v4159_v13 = vrot.slane %v4157_v39, 3  ;;  %v4162_v57 = vrot.slane %v4160_v51, 4  ;;  %v11499_v53 = vcombine.low %v4054_v6, %v4055_v5  ;;  %v8024_v30 = vld [vmem:[%s12858_s7 + $0x30] sm:$0xff]   ;;  %v8031_v39 = vld [vmem:[%s12858_s7 + $0x1e0] sm:$0xff]  }
 0x3b8   :  { %7734 = vmatprep.mubr.bf16.mxu0 %v11470_v59  ;;  %v13006_v52 = vshrl.u32 %v11468_v42, 16  ;;  %7788 = vmatprep.subr.bf16.mxu0 %v8025_v23  ;;  %v4167_v0 = vrot.slane %v13009_v24, 3  ;;  %v13008_v61 = vshll.u32 %v11468_v42, 16  ;;  %v4170_v36 = vrot.slane %v13010_v60, 4  ;;  %v4713_v21 = vld [vmem:[#allocation4 + $0x18] sm:$0xf] }
 0x3b9   :  { %v13001_v45 = vshrl.u32 %v11475_v56, 16  ;;  %v13007_v29 = vshll.u32 %v11475_v56, 16  ;;  %v4163_v18 = vor.u32 %v4162_v57, %v4159_v13  ;;  %v3936_v6 = vmul.f32 %v3916_v14, %v11209_v19 }
 0x3ba   :  { %v4176_v12 = vrot.slane %v13006_v52, 3  ;;  %v4056_v40 = vld [vmem:[#allocation4 + $0x28] sm:$0xf]  ;;  %v4179_v63 = vrot.slane %v13008_v61, 4  ;;  %v4057_v55 = vld [vmem:[#allocation4 + $0x2c] sm:$0xf]  ;;  %v4171_v44 = vor.u32 %v4170_v36, %v4167_v0 }
 0x3bb   :  { %v4058_v35 = vld [vmem:[#allocation4 + $0x30] sm:$0xf]  ;;  %v11501_v26 = vcombine.low %v4055_v5, %v4056_v40  ;;  %7789 = vmatpush3.bf16.msra.mxu0 %v8025_v23  ;;  %v4185_v31 = vrot.slane %v13001_v45, 3  ;;  %v4188_v48 = vrot.slane %v13007_v29, 4  ;;  %v11509_v38 = vcombine.low %v4056_v40, %v4057_v55  ;;  %v13311_v23 = vld [vmem:[#allocation58_spill] sm:$0xff] }
 0x3bc   :  { %v11507_v28 = vcombine.low %v4057_v55, %v4058_v35  ;;  %7790 = vmatprep.subr.bf16.mxu0 %v8028_v1  ;;  %v4180_v11 = vor.u32 %v4179_v63, %v4176_v12  ;;  %v3937_v27 = vmul.f32 %v3917_v41, %v13311_v23  ;;  %v4172_v51 = vsel %vm4155_vm0, %v4163_v18, %v4171_v44  ;;  %v4059_v0 = vld [vmem:[#allocation4 + $0x34] sm:$0xf]  ;;  %v4711_v52 = vld [vmem:[#allocation4 + $0x10] sm:$0xf] }
 0x3bd   :  { %v4189_v5 = vor.u32 %v4188_v48, %v4185_v31  ;;  %v12998_v13 = vshrl.u32 %v11501_v26, 16  ;;  %v13000_v57 = vshll.u32 %v11501_v26, 16  ;;  %7622 = vmatprep.mubr.bf16.mxu1 %v4172_v51  ;;  %v13312_v12 = vld [vmem:[#allocation63_spill] sm:$0xff] }
 0x3be   :  { %7735 = vmatmul.mubr.bf16.gmra.mxu0 %v11499_v53  ;;  %v4060_v36 = vld [vmem:[#allocation4 + $0x38] sm:$0xf]  ;;  %v4181_v14 = vsel %vm4155_vm0, %v4171_v44, %v4180_v11  ;;  %v12997_v41 = vshrl.u32 %v11507_v28, 16  ;;  %v3873_v40 = vmul.f32 %v11376_v37, %v13312_v12  ;;  %v12999_v31 = vshll.u32 %v11507_v28, 16  ;;  %v13313_v44 = vld [vmem:[#allocation66_spill] sm:$0xff] }
 0x3bf   :  { %7738 = vmatprep.mubr.bf16.mxu0 %v11509_v38  ;;  %7623 = vmatmul.mubr.bf16.vlgmr.msra.gmra.mxu1 %v4181_v14  ;;  %v4190_v18 = vsel %vm4155_vm0, %v4180_v11, %v4189_v5  ;;  %v4194_v63 = vrot.slane %v12998_v13, 3  ;;  %v4197_v55 = vrot.slane %v13000_v57, 4  ;;  %v7419_v51 = vpack.c.bf16 %v3937_v27, %v3936_v6  ;;  %v8034_v11 = vld [vmem:[%s12858_s7 + $0x1d8] sm:$0xff]   ;;  %v13314_v57 = vld [vmem:[#allocation59_spill] sm:$0xff] }
 0x3c0   :  { %7791 = vmatpush3.bf16.msra.mxu0 %v8028_v1  ;;  %7643 = vmatpush3.bf16.msra.mxu1 %v13313_v44  ;;  %v4203_v48 = vrot.slane %v12997_v41, 3  ;;  %v11537_v37 = vcombine.low %v4059_v0, %v4060_v36  ;;  %v3899_v14 = vadd.f32 %v11393_v20, %v3873_v40  ;;  %v4206_v12 = vrot.slane %v12999_v31, 4  ;;  %v8026_v1 = vld [vmem:[%s12858_s7 + $0x28] sm:$0xff]   ;;  %v11921_v4 = vld [vmem:[#allocation4 + $0x34] sm:$0xff]  }
 0x3c1   :  { %7626 = vmatprep.mubr.bf16.mxu1 %v4190_v18  ;;  %7644 = vmatprep.subr.bf16.mxu1 %v8024_v30  ;;  %v4061_v18 = vld [vmem:[#allocation4 + $0x3c] sm:$0xf]  ;;  %v3918_v6 = vmax.f32 %v11486_v49, 0.0  ;;  %v4198_v27 = vor.u32 %v4197_v55, %v4194_v63  ;;  %7438 = vst [vmem:[#allocation4 + $0x40] sm:$0xff] %v7419_v51   ;;  %v11551_v20 = vcombine.low %v4058_v35, %v4059_v0  ;;  %v8032_v49 = vld [vmem:[%s12858_s7 + $0x20] sm:$0xff]  }
 0x3c2   :  { %7792 = vmatprep.subr.bf16.mxu0 %v8031_v39  ;;  %v13002_v44 = vshrl.u32 %v11537_v37, 16  ;;  %v13004_v41 = vshll.u32 %v11537_v37, 16  ;;  %v4207_v13 = vor.u32 %v4206_v12, %v4203_v48  ;;  %v11553_v40 = vcombine.low %v4060_v36, %v4061_v18  ;;  %v8043_v36 = vld [vmem:[%s12858_s7 + $0x1c8] sm:$0xff]   ;;  %v4046_v48 = vld [vmem:[#allocation4] sm:$0x8] }
 0x3c3   :  { %v3919_v31 = vmax.f32 %v3899_v14, 0.0  ;;  %v3938_v45 = vmul.f32 %v3918_v6, %v13314_v57  ;;  %v11574_v14 = vld [vmem:[#allocation4 + $0x4] sm:$0xf] }
 0x3c4   :  { %7793 = vmatpush3.bf16.msra.mxu0 %v8031_v39  ;;  %7645 = vmatpush3.bf16.msra.mxu1 %v8024_v30  ;;  %v4212_v63 = vrot.slane %v13002_v44, 3  ;;  %v4215_v35 = vrot.slane %v13004_v41, 4  ;;  %v8039_v30 = vld [vmem:[%s12858_s7 + $0x1d0] sm:$0xff]   ;;  %v4199_v39 = vsel %vm4155_vm0, %v4189_v5, %v4198_v27  ;;  %v4208_v55 = vsel %vm4155_vm0, %v4198_v27, %v4207_v13 }
 0x3c5   :  { %7794 = vmatprep.subr.bf16.mxu0 %v8034_v11  ;;  %7646 = vmatprep.subr.bf16.mxu1 %v8026_v1  ;;  %v3939_v0 = vmul.f32 %v3919_v31, %v11234_v17  ;;  %v8038_v31 = vld [vmem:[%s12858_s7 + $0x18] sm:$0xff]  }
 0x3c6   :  { %7739 = vmatmul.mubr.bf16.gmra.mxu0 %v11551_v20  ;;  %v4714_v17 = vld [vmem:[#allocation4 + $0x1c] sm:$0xf] }
 0x3c7   :  { %7742 = vmatprep.mubr.bf16.mxu0 %v11553_v40  ;;  %7627 = vmatmul.mubr.bf16.gmra.mxu1 %v4199_v39  ;;  %v7424_v51 = vpack.c.bf16 %v3939_v0, %v3938_v45  ;;  %v4216_v39 = vor.u32 %v4215_v35, %v4212_v63  ;;  %v8050_v0 = vld [vmem:[%s12858_s7 + $0x1c0] sm:$0xff]   ;;  %v11666_v19 = vcombine.low %v4713_v21, %v4714_v17 }
 0x3c8   :  { %7795 = vmatpush3.bf16.msra.mxu0 %v8034_v11  ;;  %7630 = vmatprep.mubr.bf16.mxu1 %v4208_v55  ;;  %v4062_v12 = vld [vmem:[#allocation4 + $0x40] sm:$0xf]  ;;  %v4063_v5 = vld [vmem:[#allocation4 + $0x44] sm:$0xf]  ;;  %v7106_v11 = vcombine.low %v4046_v48, %v11574_v14  ;;  %v11598_v55 = vld [vmem:[#allocation4 + $0x50] sm:$0xf] }
 0x3c9   :  { %7647 = vmatpush3.bf16.msra.mxu1 %v8026_v1  ;;  %7796 = vmatprep.subr.bf16.mxu0 %v8039_v30  ;;  %v11579_v6 = vcombine.low %v4061_v18, %v4062_v12  ;;  %7439 = vst [vmem:[#allocation4 + $0x48] sm:$0xff] %v7424_v51   ;;  %v11581_v27 = vcombine.low %v4062_v12, %v4063_v5  ;;  %v8040_v18 = vld [vmem:[%s12858_s7 + $0x10] sm:$0xff]   ;;  %v8049_v48 = vld [vmem:[%s12858_s7 + $0x8] sm:$0xff]   ;;  %v13317_v2 = vshll.u32 %v11666_v19, 16 }
 0x3ca   :  { %7648 = vmatprep.subr.bf16.mxu1 %v8032_v49  ;;  %v4217_v63 = vsel %vm4155_vm0, %v4207_v13, %v4216_v39  ;;  %v4441_v51 = vshrl.u32 %v7106_v11, 16  ;;  %v4444_v12 = vshll.u32 %v7106_v11, 16  ;;  %v11603_v13 = vld [vmem:[#allocation4 + $0xc] sm:$0xf] }
 0x3cb   :  { %v13003_v45 = vshrl.u32 %v11579_v6, 16  ;;  %v13005_v1 = vshll.u32 %v11579_v6, 16  ;;  %v11710_v54 = vrot.slane %v13317_v2, 1  ;;  %v4720_v2 = vld [vmem:[#allocation4 + $0x34] sm:$0xf] }
 0x3cc   :  { %7797 = vmatpush3.bf16.msra.mxu0 %v8039_v30  ;;  %v4084_v30 = vld [vmem:[#allocation4 + $0x54] sm:$0xf] }
 0x3cd   :  { %7649 = vmatpush3.bf16.msra.mxu1 %v8032_v49  ;;  %7798 = vmatprep.subr.bf16.mxu0 %v8043_v36  ;;  %v4221_v49 = vrot.slane %v13003_v45, 3  ;;  %v4224_v35 = vrot.slane %v13005_v1, 4  ;;  %v7097_v1 = vcombine.low %v4084_v30, %v4084_v30  ;;  %v7192_v11 = vcombine.low %v11598_v55, %v4084_v30 }
 0x3ce   :  { %7743 = vmatmul.mubr.bf16.gmra.mxu0 %v11581_v27  ;;  %7650 = vmatprep.subr.bf16.mxu1 %v8038_v31  ;;  %v4449_v30 = vshrl.u32 %v11453_v33, 16 }
 0x3cf   :  { %7631 = vmatmul.mubr.bf16.gmra.mxu1 %v4217_v63  ;;  %v4225_v44 = vor.u32 %v4224_v35, %v4221_v49  ;;  %v11619_v49 = vrot.slane %v4441_v51, 3  ;;  %v8052_v35 = vld [vmem:[%s12858_s7] sm:$0xff]   ;;  %v4246_v24 = vshrl.u32 %v7097_v1, 16  ;;  %v4249_v60 = vshll.u32 %v7097_v1, 16  ;;  %v11646_v1 = vld [vmem:[%s12858_s7 + $0x1b8] sm:$0xff]  }
 0x3d0   :  { %7799 = vmatpush3.bf16.msra.mxu0 %v8043_v36  ;;  %v4064_v45 = vld [vmem:[#allocation4 + $0x48] sm:$0xf]  ;;  %v4065_v41 = vld [vmem:[#allocation4 + $0x4c] sm:$0xf] }
 0x3d1   :  { %7651 = vmatpush3.bf16.msra.mxu1 %v8038_v31  ;;  %7800 = vmatprep.subr.bf16.mxu0 %v8050_v0  ;;  %v4226_v63 = vsel %vm4155_vm0, %v4216_v39, %v4225_v44  ;;  %v11606_v29 = vcombine.low %v4063_v5, %v4064_v45  ;;  %v11609_v36 = vcombine.low %v4065_v41, %v11598_v55  ;;  %v11616_v31 = vld [vmem:[%s12858_s7 + $0xb8] sm:$0xff]   ;;  %v4251_v57 = vrot.slane %v4249_v60, 4 }
 0x3d2   :  { %7652 = vmatprep.subr.bf16.mxu1 %v8040_v18  ;;  %v11611_v61 = vcombine.low %v4064_v45, %v4065_v41  ;;  %7634 = vmatprep.mubr.bf16.mxu1 %v4226_v63  ;;  %v7226_v41 = vcombine.low %v11603_v13, %v4711_v52  ;;  %v11625_v45 = vrot.slane %v4444_v12, 4 }
 0x3d3   :  { %v13018_v5 = vshrl.u32 %v11606_v29, 16  ;;  %v13021_v39 = vshll.u32 %v11606_v29, 16  ;;  %v13022_v51 = vshrl.u32 %v11609_v36, 16  ;;  %v13023_v63 = vshll.u32 %v11609_v36, 16 }
 0x3d4   :  { %7801 = vmatpush3.bf16.msra.mxu0 %v8050_v0  ;;  %7746 = vmatprep.mubr.bf16.mxu0 %v11611_v61  ;;  %v4452_v0 = vshll.u32 %v11453_v33, 16  ;;  %v13338_v7 = vshrl.u32 %v11611_v61, 16 }
 0x3d5   :  { %7653 = vmatpush3.bf16.msra.mxu1 %v8040_v18  ;;  %v4230_v18 = vrot.slane %v13018_v5, 3  ;;  %v4233_v12 = vrot.slane %v13021_v39, 4  ;;  %7858 = vmatprep.subr.bf16.mxu0 %v11616_v31  ;;  %v4239_v33 = vrot.slane %v13022_v51, 3  ;;  %v4242_v25 = vrot.slane %v13023_v63, 4  ;;  %v4715_v39 = vld [vmem:[#allocation4 + $0x20] sm:$0xf] }
 0x3d6   :  { %7747 = vmatmul.mubr.bf16.gmra.mxu0 %v7192_v11  ;;  %7654 = vmatprep.subr.bf16.mxu1 %v8049_v48  ;;  %v4712_v11 = vld [vmem:[#allocation4 + $0x14] sm:$0xf]  ;;  %v4451_v5 = vrot.slane %v4449_v30, 3  ;;  %v4248_v51 = vrot.slane %v4246_v24, 3  ;;  %v4454_v23 = vrot.slane %v4452_v0, 4  ;;  %v4447_v30 = vor.u32 %v11625_v45, %v11619_v49 }
 0x3d7   :  { %7802 = vmatprep.mubr.bf16.mxu0 %v7226_v41  ;;  %v4234_v58 = vor.u32 %v4233_v12, %v4230_v18  ;;  %v4243_v32 = vor.u32 %v4242_v25, %v4239_v33  ;;  %v4458_v18 = vshrl.u32 %v11460_v9, 16  ;;  %v7227_v25 = vcombine.low %v4712_v11, %v4713_v21  ;;  %v8062_v12 = vld [vmem:[%s12858_s7 + $0xb0] sm:$0xff]   ;;  %v4709_v45 = vld [vmem:[#allocation4 + $0x8] sm:$0x8] }
 0x3d8   :  { %v4461_v33 = vshll.u32 %v11460_v9, 16  ;;  %v4470_v24 = vshll.u32 %v11470_v59, 16  ;;  %v7228_v60 = vcombine.low %v4714_v17, %v4715_v39  ;;  %v4476_v0 = vshrl.u32 %v11499_v53, 16  ;;  %v5744_v63 = vld [vmem:[#allocation4 + $0x8] sm:$0xf] }
 0x3d9   :  { %7655 = vmatpush3.bf16.msra.mxu1 %v8049_v48  ;;  %v4235_v41 = vsel %vm4155_vm0, %v4225_v44, %v4234_v58  ;;  %v4244_v48 = vsel %vm4155_vm0, %v4234_v58, %v4243_v32  ;;  %v4467_v44 = vshrl.u32 %v11470_v59, 16  ;;  %v4479_v58 = vshll.u32 %v11499_v53, 16 }
 0x3da   :  { %7656 = vmatprep.subr.bf16.mxu1 %v8052_v35  ;;  %7635 = vmatmul.mubr.bf16.gmra.mxu1 %v4235_v41  ;;  %v4485_v41 = vshrl.u32 %v11509_v38, 16  ;;  %v11662_v49 = vcombine.low %v4711_v52, %v4712_v11  ;;  %v4488_v9 = vshll.u32 %v11509_v38, 16  ;;  %v4252_v59 = vor.u32 %v4251_v57, %v4248_v51  ;;  %v8066_v52 = vld [vmem:[%s12858_s7 + $0xa8] sm:$0xff]   ;;  %v4719_v11 = vld [vmem:[#allocation4 + $0x30] sm:$0xf] }
 0x3db   :  { %7638 = vmatprep.mubr.bf16.mxu1 %v4244_v48  ;;  %v4455_v48 = vor.u32 %v4454_v23, %v4451_v5  ;;  %v4460_v23 = vrot.slane %v4458_v18, 3  ;;  %v4463_v17 = vrot.slane %v4461_v33, 4  ;;  %v4469_v21 = vrot.slane %v4467_v44, 3  ;;  %v4717_v5 = vld [vmem:[#allocation4 + $0x28] sm:$0xf] }
 0x3dc   :  { %v4472_v57 = vrot.slane %v4470_v24, 4  ;;  %v11681_v51 = vcombine.low %v4709_v45, %v11603_v13  ;;  %v13315_v38 = vshll.u32 %v11458_v46, 16  ;;  %v11689_v18 = vcombine.low %v5744_v63, %v11603_v13 }
 0x3dd   :  { %7657 = vmatpush3.bf16.msra.mxu1 %v8052_v35  ;;  %v4718_v35 = vld [vmem:[#allocation4 + $0x2c] sm:$0xf]  ;;  %v4253_v33 = vsel %vm4155_vm0, %v4243_v32, %v4252_v59  ;;  %v4456_v44 = vsel %vm4155_vm0, %v4447_v30, %v4455_v48  ;;  %v13316_v13 = vshrl.u32 %v11458_v46, 16  ;;  %v4464_v30 = vor.u32 %v4463_v17, %v4460_v23  ;;  %v8073_v23 = vld [vmem:[%s12858_s7 + $0x98] sm:$0xff]  }
 0x3de   :  { %7803 = vmatmul.mubr.bf16.vlgmr.msra.gmra.mxu0 %v7227_v25  ;;  %7678 = vmatprep.subr.bf16.mxu1 %v11646_v1  ;;  %v4716_v25 = vld [vmem:[#allocation4 + $0x24] sm:$0xf]  ;;  %v11686_v53 = vrot.slane %v13315_v38, 1  ;;  %v7230_v59 = vcombine.low %v4718_v35, %v4719_v11  ;;  %v4481_v24 = vrot.slane %v4479_v58, 4  ;;  %v13318_v17 = vshll.u32 %v11468_v42, 16 }
 0x3df   :  { %7806 = vmatprep.mubr.bf16.mxu0 %v7228_v60  ;;  %7859 = vmatpush3.bf16.msra.mxu0 %v11616_v31  ;;  %v11678_v31 = vcombine.low %v11598_v55, %v11598_v55  ;;  %v11695_v45 = vcombine.low %v4715_v39, %v4716_v25  ;;  %v7229_v60 = vcombine.low %v4716_v25, %v4717_v5  ;;  %v8069_v38 = vld [vmem:[%s12858_s7 + $0xa0] sm:$0xff]   ;;  %v4478_v25 = vrot.slane %v4476_v0, 3 }
 0x3e0   :  { %7860 = vmatprep.subr.bf16.mxu0 %v8062_v12  ;;  %v5995_v32 = vor.u32 %v11686_v53, %v13316_v13  ;;  %v11705_v39 = vcombine.low %v4717_v5, %v4718_v35  ;;  %v13319_v35 = vshll.u32 %v11475_v56, 16  ;;  %v4487_v5 = vrot.slane %v4485_v41, 3  ;;  %v4721_v13 = vld [vmem:[#allocation4 + $0x38] sm:$0xf] }
 0x3e1   :  { %v11734_v55 = vcombine.low %v4719_v11, %v4720_v2  ;;  %v13322_v58 = vshll.u32 %v11501_v26, 16  ;;  %v7231_v3 = vcombine.low %v4720_v2, %v4721_v13  ;;  %v8077_v11 = vld [vmem:[%s12858_s7 + $0x90] sm:$0xff]   ;;  %v4523_v16 = vrot.slane %v13338_v7, 3 }
 0x3e2   :  { %7639 = vmatmul.mubr.bf16.gmra.mxu1 %v4253_v33 }
 0x3e3   :  { %7861 = vmatpush3.bf16.msra.mxu0 %v8062_v12  ;;  %7658 = vmatprep.mubr.bf16.mxu1 %v4456_v44  ;;  %v4473_v12 = vor.u32 %v4472_v57, %v4469_v21  ;;  %v5996_v21 = vrot.slane %v13318_v17, 1  ;;  %v5999_v57 = vrot.slane %v13319_v35, 1  ;;  %v13320_v17 = vshrl.u32 %v11468_v42, 16 }
 0x3e4   :  { %7862 = vmatprep.subr.bf16.mxu0 %v8066_v52  ;;  %v6002_v0 = vrot.slane %v13322_v58, 1 }
 0x3e5   :  { %v4474_v44 = vsel %vm4155_vm0, %v4464_v30, %v4473_v12  ;;  %v11724_v63 = vsel %vm5769_vm13, %v5995_v32, %v5996_v21  ;;  %v5998_v35 = vor.u32 %v5996_v21, %v13320_v17  ;;  %v5725_v32 = vld [vmem:[#allocation4 + $0x4] sm:$0xf]  ;;  %v13321_v21 = vshrl.u32 %v11475_v56, 16 }
 0x3e6   :  { %7807 = vmatmul.mubr.bf16.gmra.mxu0 %v7229_v60  ;;  %v4490_v60 = vrot.slane %v4488_v9, 4  ;;  %v8061_v9 = vld [vmem:[%s12858_s7 + $0x1b0] sm:$0xff]  }
 0x3e7   :  { %7810 = vmatprep.mubr.bf16.mxu0 %v7230_v59  ;;  %7863 = vmatpush3.bf16.msra.mxu0 %v8066_v52  ;;  %v4465_v52 = vsel %vm4155_vm0, %v4455_v48, %v4464_v30  ;;  %v4722_v59 = vld [vmem:[#allocation4 + $0x3c] sm:$0xf]  ;;  %v4482_v48 = vor.u32 %v4481_v24, %v4478_v25  ;;  %v4723_v30 = vld [vmem:[#allocation4 + $0x40] sm:$0xf]  ;;  %v11737_v33 = vsel %vm5769_vm13, %v5998_v35, %v5999_v57  ;;  %v13323_v24 = vshll.u32 %v11507_v28, 16 }
 0x3e8   :  { %7864 = vmatprep.subr.bf16.mxu0 %v8069_v38  ;;  %v6001_v17 = vor.u32 %v5999_v57, %v13321_v21  ;;  %v11743_v41 = vor.u32 %v4490_v60, %v4487_v5  ;;  %v11745_v50 = vcombine.low %v4721_v13, %v4722_v59  ;;  %v4524_v25 = vshll.u32 %v11611_v61, 16 }
 0x3e9   :  { %v7232_v57 = vcombine.low %v4722_v59, %v4723_v30  ;;  %v13324_v5 = vshrl.u32 %v11501_v26, 16  ;;  %v4483_v2 = vsel %vm4155_vm0, %v4473_v12, %v4482_v48  ;;  %v11764_v13 = vcombine.low %v5725_v32, %v11445_v62  ;;  %v4724_v12 = vld [vmem:[#allocation4 + $0x44] sm:$0xf] }
 0x3ea   :  { %7659 = vmatmul.mubr.bf16.vlgmr.msra.gmra.mxu1 %v4465_v52  ;;  %v11755_v58 = vsel %vm5769_vm13, %v6001_v17, %v6002_v0  ;;  %v8063_v52 = vld [vmem:[%s12858_s7 + $0x1a8] sm:$0xff]   ;;  %v13326_v59 = vshll.u32 %v11537_v37, 16  ;;  %v4492_v32 = vsel %vm4155_vm0, %v4482_v48, %v11743_v41  ;;  %v8070_v48 = vld [vmem:[%s12858_s7 + $0x1a0] sm:$0xff]   ;;  %v11800_v10 = vcombine.low %v4723_v30, %v4724_v12 }
 0x3eb   :  { %7865 = vmatpush3.bf16.msra.mxu0 %v8069_v38  ;;  %v6005_v38 = vrot.slane %v13323_v24, 1  ;;  %7679 = vmatpush3.bf16.msra.mxu1 %v11646_v1  ;;  %v6004_v60 = vor.u32 %v6002_v0, %v13324_v5  ;;  %v13325_v1 = vshrl.u32 %v11507_v28, 16  ;;  %v13328_v24 = vshrl.u32 %v11551_v20, 16 }
 0x3ec   :  { %7866 = vmatprep.subr.bf16.mxu0 %v8073_v23  ;;  %7662 = vmatprep.mubr.bf16.mxu1 %v4474_v44  ;;  %v6008_v35 = vrot.slane %v13326_v59, 1  ;;  %v13330_v59 = vshll.u32 %v11551_v20, 16  ;;  %v13332_v0 = vshll.u32 %v11553_v40, 16  ;;  %v13334_v20 = vshll.u32 %v11606_v29, 16 }
 0x3ed   :  { %7680 = vmatprep.subr.bf16.mxu1 %v8061_v9  ;;  %v6007_v44 = vor.u32 %v6005_v38, %v13325_v1  ;;  %v11773_v17 = vsel %vm5769_vm13, %v6004_v60, %v6005_v38  ;;  %v4496_v5 = vrot.slane %v13328_v24, 3  ;;  %v4725_v1 = vld [vmem:[#allocation4 + $0x48] sm:$0xf]  ;;  %v13329_v38 = vshrl.u32 %v11537_v37, 16 }
 0x3ee   :  { %7811 = vmatmul.mubr.bf16.gmra.mxu0 %v7231_v3  ;;  %v13327_v3 = vshll.u32 %v11579_v6, 16  ;;  %v13331_v24 = vshrl.u32 %v11553_v40, 16  ;;  %v4508_v47 = vrot.slane %v13332_v0, 4  ;;  %v13335_v40 = vshrl.u32 %v11581_v27, 16 }
 0x3ef   :  { %7814 = vmatprep.mubr.bf16.mxu0 %v7232_v57  ;;  %7867 = vmatpush3.bf16.msra.mxu0 %v8073_v23  ;;  %v8082_v57 = vld [vmem:[%s12858_s7 + $0x88] sm:$0xff]   ;;  %v11785_v23 = vsel %vm5769_vm13, %v6007_v44, %v6008_v35  ;;  %v6010_v60 = vor.u32 %v6008_v35, %v13329_v38  ;;  %v13333_v44 = vshrl.u32 %v11579_v6, 16  ;;  %v4727_v35 = vld [vmem:[#allocation4 + $0x50] sm:$0xf]  ;;  %v5989_v38 = vshll.u32 %v11764_v13, 16 }
 0x3f0   :  { %v6011_v62 = vrot.slane %v13327_v3, 1  ;;  %7868 = vmatprep.subr.bf16.mxu0 %v8077_v11  ;;  %7681 = vmatpush3.bf16.msra.mxu1 %v8061_v9  ;;  %v4499_v3 = vrot.slane %v13330_v59, 4  ;;  %v4505_v21 = vrot.slane %v13331_v24, 3  ;;  %v4726_v9 = vld [vmem:[#allocation4 + $0x4c] sm:$0xf]  ;;  %v6014_v59 = vrot.slane %v13334_v20, 1 }
 0x3f1   :  { %7682 = vmatprep.subr.bf16.mxu1 %v8063_v52  ;;  %v7233_v24 = vcombine.low %v4724_v12, %v4725_v1  ;;  %v4514_v0 = vrot.slane %v13335_v40, 3  ;;  %v13337_v30 = vshll.u32 %v11609_v36, 16  ;;  %v11825_v40 = vcombine.low %v4725_v1, %v4726_v9 }
 0x3f2   :  { %v6013_v15 = vor.u32 %v6011_v62, %v13333_v44  ;;  %v11804_v43 = vsel %vm5769_vm13, %v6010_v60, %v6011_v62  ;;  %v13336_v44 = vshll.u32 %v11581_v27, 16  ;;  %7663 = vmatmul.mubr.bf16.gmra.mxu1 %v4483_v2  ;;  %v4526_v62 = vrot.slane %v4524_v25, 4  ;;  %v4728_v60 = vld [vmem:[#allocation4 + $0x54] sm:$0xf] }
 0x3f3   :  { %7869 = vmatpush3.bf16.msra.mxu0 %v8077_v11  ;;  %v6017_v22 = vrot.slane %v13337_v30, 1  ;;  %v8085_v11 = vld [vmem:[%s12858_s7 + $0x80] sm:$0xff]   ;;  %v13339_v27 = vshrl.u32 %v11606_v29, 16  ;;  %7666 = vmatprep.mubr.bf16.mxu1 %v4492_v32  ;;  %v7234_v7 = vcombine.low %v4726_v9, %v4727_v35  ;;  %v13340_v61 = vshrl.u32 %v11609_v36, 16 }
 0x3f4   :  { %v4517_v8 = vrot.slane %v13336_v44, 4  ;;  %7870 = vmatprep.subr.bf16.mxu0 %v8082_v57  ;;  %v11820_v12 = vsel %vm5769_vm13, %v6013_v15, %v6014_v59  ;;  %7683 = vmatpush3.bf16.msra.mxu1 %v8063_v52  ;;  %v4500_v44 = vor.u32 %v4499_v3, %v4496_v5  ;;  %v4509_v30 = vor.u32 %v4508_v47, %v4505_v21  ;;  %v8076_v15 = vld [vmem:[%s12858_s7 + $0x198] sm:$0xff]  }
 0x3f5   :  { %v6016_v20 = vor.u32 %v6014_v59, %v13339_v27  ;;  %v11829_v25 = vor.u32 %v6017_v22, %v13340_v61  ;;  %7684 = vmatprep.subr.bf16.mxu1 %v8070_v48  ;;  %v5991_v59 = vrot.slane %v5989_v38, 1  ;;  %v11839_v27 = vld [vmem:[#allocation4 + $0x58] sm:$0xf]  ;;  %v11841_v61 = vcombine.low %v4727_v35, %v4728_v60  ;;  %v11857_v38 = vld [vmem:[#allocation4 + $0x2c] sm:$0xff]  }
 0x3f6   :  { %7815 = vmatmul.mubr.bf16.gmra.mxu0 %v7233_v24  ;;  %v4518_v9 = vor.u32 %v4517_v8, %v4514_v0  ;;  %v11844_v21 = vor.u32 %v4526_v62, %v4523_v16  ;;  %v5987_v5 = vshrl.u32 %v11764_v13, 16  ;;  %v11851_v3 = vld [vmem:[%s12858_s7 + $0x238] sm:$0xff]   ;;  %v4801_v16 = vshrl.u32 %v11681_v51, 16 }
 0x3f7   :  { %v11835_v52 = vsel %vm5769_vm13, %v6016_v20, %v6017_v22  ;;  %7818 = vmatprep.mubr.bf16.mxu0 %v7234_v7  ;;  %7871 = vmatpush3.bf16.msra.mxu0 %v8082_v57  ;;  %v4530_v22 = vshrl.u32 %v11678_v31, 16  ;;  %v4533_v57 = vshll.u32 %v11678_v31, 16  ;;  %v4501_v13 = vsel %vm4155_vm0, %v11743_v41, %v4500_v44 }
 0x3f8   :  { %7872 = vmatprep.subr.bf16.mxu0 %v8085_v11  ;;  %7685 = vmatpush3.bf16.msra.mxu1 %v8070_v48  ;;  %v4510_v24 = vsel %vm4155_vm0, %v4500_v44, %v4509_v30  ;;  %v8078_v48 = vld [vmem:[%s12858_s7 + $0x190] sm:$0xff]   ;;  %v7235_v0 = vcombine.low %v4728_v60, %v11839_v27  ;;  %v5992_v62 = vor.u32 %v5991_v59, %v5987_v5  ;;  %v4804_v8 = vshll.u32 %v11681_v51, 16  ;;  %v8084_v5 = vld [vmem:[%s12858_s7 + $0x188] sm:$0xff]  }
 0x3f9   :  { %7686 = vmatprep.subr.bf16.mxu1 %v8076_v15  ;;  %v4519_v20 = vsel %vm4155_vm0, %v4509_v30, %v4518_v9  ;;  %v4528_v41 = vsel %vm4155_vm0, %v4518_v9, %v11844_v21  ;;  %v11872_v44 = vrot.slane %v4530_v22, 3  ;;  %v13341_v1 = vshrl.u32 %v11662_v49, 16 }
 0x3fa   :  { %7667 = vmatmul.mubr.bf16.gmra.mxu1 %v4501_v13  ;;  %v13342_v60 = vshll.u32 %v11662_v49, 16  ;;  %v11885_v51 = vrot.slane %v4801_v16, 3  ;;  %v6319_v59 = vshll.u32 %v11857_v38, 16  ;;  %v5773_v9 = vshll.u32 %v11689_v18, 16 }
 0x3fb   :  { %7873 = vmatpush3.bf16.msra.mxu0 %v8085_v11  ;;  %v11876_v35 = vrot.slane %v13341_v1, 3  ;;  %7670 = vmatprep.mubr.bf16.mxu1 %v4510_v24  ;;  %v11883_v11 = vrot.slane %v4533_v57, 4  ;;  %v5994_v1 = vsel %vm5769_vm13, %v5992_v62, %v11686_v53  ;;  %v13344_v57 = vshrl.u32 %v11666_v19, 16 }
 0x3fc   :  { %v11880_v30 = vrot.slane %v13342_v60, 4  ;;  %7894 = vmatprep.subr.bf16.mxu0 %v11851_v3  ;;  %7687 = vmatpush3.bf16.msra.mxu1 %v8076_v15  ;;  %v13343_v22 = vmov %v13342_v60  ;;  %v13345_v13 = vshll.u32 %v11695_v45, 16  ;;  %v11901_v60 = vrot.slane %v4804_v8, 4  ;;  %v8118_v8 = vld [vmem:[#allocation4 + $0x58] ss:$0 sps:$4 sm:$0x11]  }
 0x3fd   :  { %7688 = vmatprep.subr.bf16.mxu1 %v8078_v48  ;;  %v5777_v15 = vrot.slane %v13343_v22, 1  ;;  %v5782_v16 = vor.u32 %v11710_v54, %v13344_v57  ;;  %v5775_v53 = vrot.slane %v5773_v9, 1  ;;  %v13346_v62 = vshll.u32 %v11705_v39, 16 }
 0x3fe   :  { %7819 = vmatmul.mubr.bf16.gmra.mxu0 %v7235_v0  ;;  %v5783_v24 = vrot.slane %v13345_v13, 1  ;;  %v5771_v0 = vshrl.u32 %v11689_v18, 16  ;;  %v13347_v7 = vshrl.u32 %v11662_v49, 16  ;;  %v13348_v57 = vshrl.u32 %v11695_v45, 16 }
 0x3ff   :  { %7874 = vmatprep.mubr.bf16.mxu0 %v5994_v1  ;;  %v5786_v31 = vrot.slane %v13346_v62, 1  ;;  %v13349_v13 = vshll.u32 %v11734_v55, 16  ;;  %v11915_v32 = vrot.slane %v6319_v59, 1  ;;  %v13350_v9 = vshrl.u32 %v11705_v39, 16 }
 0x400   :  { %v5779_v2 = vor.u32 %v5777_v15, %v13347_v7  ;;  %v11909_v22 = vsel %vm5769_vm13, %v5782_v16, %v5783_v24  ;;  %v5785_v47 = vor.u32 %v5783_v24, %v13348_v57  ;;  %7689 = vmatpush3.bf16.msra.mxu1 %v8078_v48  ;;  %v5776_v18 = vor.u32 %v5775_v53, %v5771_v0  ;;  %v8086_v16 = vld [vmem:[%s12858_s7 + $0x180] sm:$0xff]  }
 0x401   :  { %v5789_v1 = vrot.slane %v13349_v13, 1  ;;  %v5788_v62 = vor.u32 %v5786_v31, %v13350_v9  ;;  %v13351_v49 = vshll.u32 %v11745_v50, 16  ;;  %7690 = vmatprep.subr.bf16.mxu1 %v8084_v5  ;;  %v13352_v59 = vshrl.u32 %v11734_v55, 16 }
 0x402   :  { %v11928_v24 = vsel %vm5769_vm13, %v5779_v2, %v11710_v54  ;;  %v11931_v48 = vsel %vm5769_vm13, %v5785_v47, %v5786_v31  ;;  %v13353_v53 = vshll.u32 %v11800_v10, 16  ;;  %v11938_v13 = vsel %vm5769_vm13, %v5776_v18, %v5777_v15  ;;  %7671 = vmatmul.mubr.bf16.gmra.mxu1 %v4519_v20  ;;  %v11950_v47 = vld [vmem:[%s12858_s7 + $0x230] sm:$0xff]  }
 0x403   :  { %v5792_v7 = vrot.slane %v13351_v49, 1  ;;  %v5791_v0 = vor.u32 %v5789_v1, %v13352_v59  ;;  %v11941_v9 = vsel %vm5769_vm13, %v5788_v62, %v5789_v1  ;;  %v13354_v49 = vshrl.u32 %v11745_v50, 16  ;;  %7674 = vmatprep.mubr.bf16.mxu1 %v4528_v41 }
 0x404   :  { %v5795_v57 = vrot.slane %v13353_v53, 1  ;;  %v13355_v54 = vshll.u32 %v11825_v40, 16  ;;  %v13356_v15 = vshrl.u32 %v11800_v10, 16  ;;  %v13357_v1 = vshll.u32 %v11841_v61, 16  ;;  %7691 = vmatpush3.bf16.msra.mxu1 %v8084_v5 }
 0x405   :  { %v5794_v34 = vor.u32 %v5792_v7, %v13354_v49  ;;  %v11953_v31 = vsel %vm5769_vm13, %v5791_v0, %v5792_v7  ;;  %v5805_v59 = vshll.u32 %v8118_v8, 16  ;;  %v13358_v20 = vshrl.u32 %v11825_v40, 16  ;;  %7692 = vmatprep.subr.bf16.mxu1 %v8086_v16  ;;  %v8087_v0 = vld [vmem:[%s12858_s7 + $0x78] sm:$0xff]  }
 0x406   :  { %v5798_v2 = vrot.slane %v13355_v54, 1  ;;  %v5797_v18 = vor.u32 %v5795_v57, %v13356_v15  ;;  %v5801_v62 = vrot.slane %v13357_v1, 1  ;;  %v6323_v54 = vshrl.u32 %v11857_v38, 16  ;;  %7875 = vmatmul.mubr.bf16.vlgmr.msra.gmra.mxu0 %v11724_v63 }
 0x407   :  { %v11960_v53 = vsel %vm5769_vm13, %v5794_v34, %v5795_v57  ;;  %v6327_v7 = vshll.u32 %v11921_v4, 16  ;;  %v13359_v34 = vshrl.u32 %v11841_v61, 16  ;;  %v5807_v8 = vrot.slane %v5805_v59, 1  ;;  %7878 = vmatprep.mubr.bf16.mxu0 %v11737_v33  ;;  %7895 = vmatpush3.bf16.msra.mxu0 %v11851_v3  ;;  %v11993_v33 = vld [vmem:[%s12858_s7 + $0x228] sm:$0xff]  }
 0x408   :  { %v5800_v49 = vor.u32 %v5798_v2, %v13358_v20  ;;  %v11971_v41 = vsel %vm5769_vm13, %v5797_v18, %v5798_v2  ;;  %v4536_v57 = vor.u32 %v11883_v11, %v11872_v44  ;;  %v6325_v38 = vor.u32 %v6323_v54, %v11915_v32  ;;  %7896 = vmatprep.subr.bf16.mxu0 %v11950_v47 }
 0x409   :  { %v5803_v5 = vor.u32 %v5801_v62, %v13359_v34  ;;  %v11983_v15 = vrot.slane %v6327_v7, 1  ;;  %v4807_v2 = vor.u32 %v11901_v60, %v11885_v51  ;;  %v4815_v18 = vor.u32 %v11880_v30, %v11876_v35  ;;  %7693 = vmatpush3.bf16.msra.mxu1 %v8086_v16  ;;  %v8089_v7 = vld [vmem:[%s12858_s7 + $0x70] sm:$0xff]  }
 0x40a   :  { %v11980_v63 = vsel %vm5769_vm13, %v5800_v49, %v5801_v62  ;;  %7750 = vmatprep.subr.bf16.mxu1 %v8087_v0  ;;  %v13360_v51 = vshrl.u32 %v11666_v19, 16  ;;  %v13361_v35 = vshll.u32 %v11666_v19, 16  ;;  %v4537_v1 = vsel %vm4155_vm0, %v11844_v21, %v4536_v57  ;;  %v12018_v19 = vld [vmem:[%s12858_s7 + $0x220] sm:$0xff]  }
 0x40b   :  { %v11996_v44 = vsel %vm5769_vm13, %v5803_v5, %v5807_v8  ;;  %v12000_v11 = vsel %vm5769_vm13, %v6325_v38, %v11983_v15  ;;  %7897 = vmatpush3.bf16.msra.mxu0 %v11950_v47  ;;  %7675 = vmatmul.mubr.bf16.gmra.mxu1 %v4537_v1  ;;  %v4816_v62 = vsel %vm4155_vm0, %v4807_v2, %v4815_v18  ;;  %v13362_v16 = vshrl.u32 %v11695_v45, 16 }
 0x40c   :  { %v4820_v60 = vrot.slane %v13360_v51, 3  ;;  %v4823_v30 = vrot.slane %v13361_v35, 4  ;;  %v13363_v20 = vshll.u32 %v11695_v45, 16  ;;  %7898 = vmatprep.subr.bf16.mxu0 %v11993_v33  ;;  %7694 = vmatprep.mubr.bf16.mxu1 %v4816_v62  ;;  %v12027_v45 = vld [vmem:[%s12858_s7 + $0x218] sm:$0xff]   ;;  %v13366_v38 = vshrl.u32 %v11734_v55, 16  ;;  %v8101_v35 = vld [vmem:[#allocation4 + $0xc] sm:$0xff]  }
 0x40d   :  { %v4829_v59 = vrot.slane %v13362_v16, 3  ;;  %v13367_v51 = vshll.u32 %v11734_v55, 16  ;;  %v6290_v1 = vshll.u32 %v8101_v35, 16 }
 0x40e   :  { %v4832_v49 = vrot.slane %v13363_v20, 4  ;;  %7879 = vmatmul.mubr.bf16.gmra.mxu0 %v11755_v58  ;;  %v4824_v21 = vor.u32 %v4823_v30, %v4820_v60  ;;  %v13364_v58 = vshrl.u32 %v11705_v39, 16  ;;  %v4847_v2 = vrot.slane %v13366_v38, 3 }
 0x40f   :  { %7882 = vmatprep.mubr.bf16.mxu0 %v11773_v17  ;;  %7899 = vmatpush3.bf16.msra.mxu0 %v11993_v33  ;;  %v13365_v17 = vshll.u32 %v11705_v39, 16  ;;  %v4850_v60 = vrot.slane %v13367_v51, 4  ;;  %v8091_v39 = vld [vmem:[%s12858_s7 + $0x68] sm:$0xff]   ;;  %v6288_v51 = vshrl.u32 %v8101_v35, 16  ;;  %v13373_v35 = vshll.u32 %v11825_v40, 16 }
 0x410   :  { %v4833_v54 = vor.u32 %v4832_v49, %v4829_v59  ;;  %7900 = vmatprep.subr.bf16.mxu0 %v12018_v19  ;;  %v4825_v34 = vsel %vm4155_vm0, %v4815_v18, %v4824_v21  ;;  %v4838_v5 = vrot.slane %v13364_v58, 3  ;;  %v12047_v18 = vld [vmem:[%s12858_s7 + $0x210] sm:$0xff]   ;;  %v13369_v59 = vshll.u32 %v11745_v50, 16 }
 0x411   :  { %v4841_v8 = vrot.slane %v13365_v17, 4  ;;  %v4851_v55 = vor.u32 %v4850_v60, %v4847_v2  ;;  %v8099_v49 = vld [vmem:[#allocation4 + $0x54] ss:$0 sps:$4 sm:$0x11]   ;;  %v13371_v58 = vshll.u32 %v11800_v10, 16  ;;  %v8096_v17 = vld [vmem:[%s12858_s7 + $0x58] sm:$0xff]  }
 0x412   :  { %v4834_v57 = vsel %vm4155_vm0, %v4824_v21, %v4833_v54  ;;  %v4859_v20 = vrot.slane %v13369_v59, 4  ;;  %v6021_v38 = vshll.u32 %v8099_v49, 16  ;;  %v13375_v49 = vshll.u32 %v11841_v61, 16 }
 0x413   :  { %7901 = vmatpush3.bf16.msra.mxu0 %v12018_v19  ;;  %7695 = vmatmul.mubr.bf16.vlgmr.msra.gmra.mxu1 %v4825_v34  ;;  %v4842_v30 = vor.u32 %v4841_v8, %v4838_v5  ;;  %v4868_v5 = vrot.slane %v13371_v58, 4  ;;  %v6292_v8 = vrot.slane %v6290_v1, 1  ;;  %v8103_v58 = vld [vmem:[%s12858_s7 + $0x48] sm:$0xff]  }
 0x414   :  { %7902 = vmatprep.subr.bf16.mxu0 %v12027_v45  ;;  %7751 = vmatpush3.bf16.msra.mxu1 %v8087_v0  ;;  %v12059_v0 = vld [vmem:[%s12858_s7 + $0x208] sm:$0xff]   ;;  %v6023_v59 = vrot.slane %v6021_v38, 1 }
 0x415   :  { %7698 = vmatprep.mubr.bf16.mxu1 %v4834_v57  ;;  %7752 = vmatprep.subr.bf16.mxu1 %v8089_v7  ;;  %v4843_v62 = vsel %vm4155_vm0, %v4833_v54, %v4842_v30  ;;  %v4852_v21 = vsel %vm4155_vm0, %v4842_v30, %v4851_v55  ;;  %v8102_v54 = vld [vmem:[#allocation4 + $0x14] sm:$0xff]   ;;  %v6293_v30 = vor.u32 %v6292_v8, %v6288_v51 }
 0x416   :  { %7883 = vmatmul.mubr.bf16.gmra.mxu0 %v11785_v23  ;;  %v8094_v23 = vld [vmem:[%s12858_s7 + $0x60] sm:$0xff]   ;;  %v6295_v60 = vshll.u32 %v8102_v54, 16  ;;  %v6299_v38 = vshrl.u32 %v8102_v54, 16 }
 0x417   :  { %7886 = vmatprep.mubr.bf16.mxu0 %v11804_v43  ;;  %7903 = vmatpush3.bf16.msra.mxu0 %v12027_v45  ;;  %v13368_v43 = vshrl.u32 %v11745_v50, 16  ;;  %v12079_v50 = vld [vmem:[%s12858_s7 + $0x200] sm:$0xff]  }
 0x418   :  { %7904 = vmatprep.subr.bf16.mxu0 %v12047_v18  ;;  %7753 = vmatpush3.bf16.msra.mxu1 %v8089_v7  ;;  %v13370_v7 = vshrl.u32 %v11800_v10, 16  ;;  %v8106_v10 = vld [vmem:[#allocation4 + $0x1c] sm:$0xff]  }
 0x419   :  { %7754 = vmatprep.subr.bf16.mxu1 %v8091_v39  ;;  %v4856_v16 = vrot.slane %v13368_v43, 3  ;;  %v6303_v1 = vshll.u32 %v8106_v10, 16 }
 0x41a   :  { %v4865_v34 = vrot.slane %v13370_v7, 3  ;;  %v6297_v7 = vrot.slane %v6295_v60, 1  ;;  %v6307_v60 = vshrl.u32 %v8106_v10, 16 }
 0x41b   :  { %7905 = vmatpush3.bf16.msra.mxu0 %v12047_v18  ;;  %7699 = vmatmul.mubr.bf16.gmra.mxu1 %v4843_v62  ;;  %v4860_v57 = vor.u32 %v4859_v20, %v4856_v16  ;;  %v13372_v62 = vshrl.u32 %v11825_v40, 16  ;;  %v4877_v16 = vrot.slane %v13373_v35, 4  ;;  %v6024_v40 = vsel %vm5769_vm13, %v11829_v25, %v6023_v59  ;;  %v8107_v25 = vld [vmem:[%s12858_s7 + $0x40] sm:$0xff]  }
 0x41c   :  { %7906 = vmatprep.subr.bf16.mxu0 %v12059_v0  ;;  %7702 = vmatprep.mubr.bf16.mxu1 %v4852_v21  ;;  %v4869_v2 = vor.u32 %v4868_v5, %v4865_v34  ;;  %v4886_v21 = vrot.slane %v13375_v49, 4  ;;  %v6298_v34 = vsel %vm5769_vm13, %v6293_v30, %v6297_v7  ;;  %v6305_v5 = vrot.slane %v6303_v1, 1 }
 0x41d   :  { %7755 = vmatpush3.bf16.msra.mxu1 %v8091_v39  ;;  %v8098_v39 = vld [vmem:[%s12858_s7 + $0x50] sm:$0xff]   ;;  %v4874_v43 = vrot.slane %v13372_v62, 3 }
 0x41e   :  { %7756 = vmatprep.subr.bf16.mxu1 %v8094_v23  ;;  %7887 = vmatmul.mubr.bf16.gmra.mxu0 %v11820_v12  ;;  %v7151_v12 = vcombine.low %v11839_v27, %v11839_v27  ;;  %v4870_v27 = vsel %vm4155_vm0, %v4860_v57, %v4869_v2  ;;  %v6309_v30 = vor.u32 %v6307_v60, %v6305_v5 }
 0x41f   :  { %7890 = vmatprep.mubr.bf16.mxu0 %v11835_v52  ;;  %7907 = vmatpush3.bf16.msra.mxu0 %v12059_v0  ;;  %v4861_v52 = vsel %vm4155_vm0, %v4851_v55, %v4860_v57  ;;  %v8108_v55 = vld [vmem:[#allocation4 + $0x24] sm:$0xff]  }
 0x420   :  { %7908 = vmatprep.subr.bf16.mxu0 %v12079_v50  ;;  %v4890_v8 = vshrl.u32 %v7151_v12, 16  ;;  %v4893_v57 = vshll.u32 %v7151_v12, 16 }
 0x421   :  { %7757 = vmatpush3.bf16.msra.mxu1 %v8094_v23  ;;  %v13374_v23 = vshrl.u32 %v11841_v61, 16  ;;  %v4878_v61 = vor.u32 %v4877_v16, %v4874_v43  ;;  %v8109_v43 = vld [vmem:[%s12858_s7 + $0x178] sm:$0xff]  }
 0x422   :  { %7758 = vmatprep.subr.bf16.mxu1 %v8096_v17  ;;  %v4892_v35 = vrot.slane %v4890_v8, 3  ;;  %v4895_v1 = vrot.slane %v4893_v57, 4  ;;  %v8123_v8 = vld [vmem:[#allocation4 + $0x54] sm:$0xff]  }
 0x423   :  { %7909 = vmatpush3.bf16.msra.mxu0 %v12079_v50  ;;  %7703 = vmatmul.mubr.bf16.gmra.mxu1 %v4861_v52  ;;  %v4883_v20 = vrot.slane %v13374_v23, 3  ;;  %v6301_v52 = vor.u32 %v6299_v38, %v6297_v7  ;;  %v4879_v62 = vsel %vm4155_vm0, %v4869_v2, %v4878_v61  ;;  %v6315_v2 = vshrl.u32 %v8108_v55, 16  ;;  %v8129_v23 = vld [vmem:[#allocation4 + $0x8] sm:$0xf] }
 0x424   :  { %7706 = vmatprep.mubr.bf16.mxu1 %v4870_v27  ;;  %v4896_v16 = vor.u32 %v4895_v1, %v4892_v35  ;;  %v8124_v1 = vld [vmem:[#allocation4 + $0x5c] ss:$0 sps:$4 sm:$0x11]  }
 0x425   :  { %7759 = vmatpush3.bf16.msra.mxu1 %v8096_v17  ;;  %v4887_v51 = vor.u32 %v4886_v21, %v4883_v20  ;;  %v6311_v17 = vshll.u32 %v8108_v55, 16  ;;  %v6306_v10 = vsel %vm5769_vm13, %v6301_v52, %v6305_v5  ;;  %v7201_v20 = vcombine.low %v11574_v14, %v8129_v23  ;;  %v8111_v21 = vld [vmem:[%s12858_s7 + $0x170] sm:$0xff]   ;;  %v8112_v14 = vld [vmem:[%s12858_s7 + $0x168] sm:$0xff]  }
 0x426   :  { %7760 = vmatprep.subr.bf16.mxu1 %v8098_v39  ;;  %7891 = vmatmul.mubr.bf16.gmra.mxu0 %v6024_v40 }
 0x427   :  { %7910 = vmatprep.mubr.bf16.mxu0 %v6298_v34  ;;  %v4888_v12 = vsel %vm4155_vm0, %v4878_v61, %v4887_v51  ;;  %v6313_v54 = vrot.slane %v6311_v17, 1  ;;  %v4897_v27 = vsel %vm4155_vm0, %v4887_v51, %v4896_v16  ;;  %v6802_v61 = vld [vmem:[%s12861_s11] sm:$0xff] }
 0x429   :  { %7761 = vmatpush3.bf16.msra.mxu1 %v8098_v39  ;;  %v6314_v39 = vsel %vm5769_vm13, %v6309_v30, %v6313_v54  ;;  %v6317_v59 = vor.u32 %v6315_v2, %v6313_v54  ;;  %v6801_v2 = vld [vmem:[%s12862_s10] sm:$0xff] }
 0x42a   :  { %7762 = vmatprep.subr.bf16.mxu1 %v8103_v58 }
 0x42b   :  { %7707 = vmatmul.mubr.bf16.gmra.mxu1 %v4879_v62  ;;  %v6322_v49 = vsel %vm5769_vm13, %v6317_v59, %v11915_v32  ;;  %v8113_v32 = vld [vmem:[%s12858_s7 + $0x160] sm:$0xff]   ;;  %v6359_v62 = vshll.u32 %v8123_v8, 16 }
 0x42c   :  { %7710 = vmatprep.mubr.bf16.mxu1 %v4888_v12 }
 0x42d   :  { %7763 = vmatpush3.bf16.msra.mxu1 %v8103_v58 }
 0x42e   :  { %7911 = vmatmul.mubr.bf16.vlgmr.msra.gmra.mxu0 %v6306_v10  ;;  %7764 = vmatprep.subr.bf16.mxu1 %v8107_v25 }
 0x42f   :  { %7914 = vmatprep.mubr.bf16.mxu0 %v6314_v39  ;;  %v6361_v39 = vrot.slane %v6359_v62, 1 }
 0x431   :  { %7765 = vmatpush3.bf16.msra.mxu1 %v8107_v25 }
 0x432   :  { %7822 = vmatprep.subr.bf16.mxu1 %v8109_v43 }
 0x433   :  { %7711 = vmatmul.mubr.bf16.gmra.mxu1 %v4897_v27  ;;  %v6367_v27 = vshll.u32 %v8124_v1, 16 }
 0x434   :  { %7766 = vmatprep.mubr.bf16.mxu1 %v7201_v20 }
 0x436   :  { %7915 = vmatmul.mubr.bf16.gmra.mxu0 %v6322_v49 }
 0x43b   :  { %7767 = vmatmul.mubr.bf16.vlgmr.msra.gmra.mxu1 %v11458_v46  ;;  %v8114_v46 = vld [vmem:[%s12858_s7 + $0x158] sm:$0xff]  }
 0x43c   :  { %7823 = vmatpush3.bf16.msra.mxu1 %v8109_v43  ;;  %7770 = vmatprep.mubr.bf16.mxu1 %v11468_v42  ;;  %v8115_v42 = vld [vmem:[%s12858_s7 + $0x150] sm:$0xff]  }
 0x43d   :  { %7824 = vmatprep.subr.bf16.mxu1 %v8111_v21 }
 0x440   :  { %7825 = vmatpush3.bf16.msra.mxu1 %v8111_v21  ;;  %v6363_v21 = vshrl.u32 %v8123_v8, 16 }
 0x441   :  { %7826 = vmatprep.subr.bf16.mxu1 %v8112_v14 }
 0x443   :  { %7771 = vmatmul.mubr.bf16.gmra.mxu1 %v11475_v56  ;;  %v8116_v56 = vld [vmem:[%s12858_s7 + $0x148] sm:$0xff]  }
 0x444   :  { %7774 = vmatprep.mubr.bf16.mxu1 %v11501_v26  ;;  %7827 = vmatpush3.bf16.msra.mxu1 %v8112_v14  ;;  %v8117_v26 = vld [vmem:[%s12858_s7 + $0x140] sm:$0xff]  }
 0x445   :  { %7828 = vmatprep.subr.bf16.mxu1 %v8113_v32 }
 0x448   :  { %7829 = vmatpush3.bf16.msra.mxu1 %v8113_v32  ;;  %v6365_v32 = vor.u32 %v6363_v21, %v6361_v39 }
 0x449   :  { %7830 = vmatprep.subr.bf16.mxu1 %v8114_v46 }
 0x44b   :  { %7775 = vmatmul.mubr.bf16.gmra.mxu1 %v11507_v28 }
 0x44c   :  { %7778 = vmatprep.mubr.bf16.mxu1 %v11537_v37  ;;  %7831 = vmatpush3.bf16.msra.mxu1 %v8114_v46  ;;  %v6369_v46 = vrot.slane %v6367_v27, 1 }
 0x44d   :  { %7832 = vmatprep.subr.bf16.mxu1 %v8115_v42 }
 0x450   :  { %7833 = vmatpush3.bf16.msra.mxu1 %v8115_v42 }
 0x451   :  { %7834 = vmatprep.subr.bf16.mxu1 %v8116_v56 }
 0x453   :  { %7779 = vmatmul.mubr.bf16.gmra.mxu1 %v11579_v6 }
 0x454   :  { %7782 = vmatprep.mubr.bf16.mxu1 %v11606_v29  ;;  %7835 = vmatpush3.bf16.msra.mxu1 %v8116_v56 }
 0x455   :  { %7836 = vmatprep.subr.bf16.mxu1 %v8117_v26 }
 0x458   :  { %7837 = vmatpush3.bf16.msra.mxu1 %v8117_v26 }
 0x459   :  { %7937 = vmatprep.subr.bf16.mxu1 %v11851_v3 }
 0x45b   :  { %7783 = vmatmul.mubr.bf16.gmra.mxu1 %v11609_v36  ;;  %v8120_v36 = vld [vmem:[#allocation4 + $0x3c] sm:$0xff]  }
 0x45c   :  { %7838 = vmatprep.mubr.bf16.mxu1 %v11938_v13 }
 0x463   :  { %7839 = vmatmul.mubr.bf16.vlgmr.msra.gmra.mxu1 %v11928_v24 }
 0x464   :  { %7945 = vmatpush3.bf16.msra.mxu1 %v11851_v3  ;;  %7842 = vmatprep.mubr.bf16.mxu1 %v11909_v22 }
 0x465   :  { %7938 = vmatprep.subr.bf16.mxu1 %v11950_v47 }
 0x468   :  { %7946 = vmatpush3.bf16.msra.mxu1 %v11950_v47  ;;  %v8121_v47 = vld [vmem:[#allocation4 + $0x44] sm:$0xff]  }
 0x469   :  { %7939 = vmatprep.subr.bf16.mxu1 %v11993_v33  ;;  %v6347_v17 = vshrl.u32 %v8121_v47, 16 }
 0x46b   :  { %7843 = vmatmul.mubr.bf16.gmra.mxu1 %v11931_v48  ;;  %v6335_v48 = vshll.u32 %v8120_v36, 16 }
 0x46c   :  { %7846 = vmatprep.mubr.bf16.mxu1 %v11941_v9  ;;  %7947 = vmatpush3.bf16.msra.mxu1 %v11993_v33  ;;  %v8138_v33 = vmov 0.0  }
 0x46d   :  { %7940 = vmatprep.subr.bf16.mxu1 %v12018_v19  ;;  %7930 = vmatprep.subr.mxu0 %v8138_v33 }
 0x46e   :  { %7934 = vmatprep.mubr.msk.f32.mxu0 %vm8139_vm12, %v8138_v33 }
 0x470   :  { %7948 = vmatpush3.bf16.msra.mxu1 %v12018_v19  ;;  %v6803_v19 = vld [vmem:[%s12861_s11 + $0x8] sm:$0xff] }
 0x471   :  { %7941 = vmatprep.subr.bf16.mxu1 %v12027_v45  ;;  %7931 = vmatpush3.msra.mxu0 %v6803_v19 }
 0x472   :  { %7932 = vmatprep.subr.mxu0 %v8138_v33 }
 0x473   :  { %7847 = vmatmul.mubr.bf16.gmra.mxu1 %v11953_v31  ;;  %7933 = vmatpush3.msra.mxu0 %v6802_v61 }
 0x474   :  { %7850 = vmatprep.mubr.bf16.mxu1 %v11960_v53  ;;  %7949 = vmatpush3.bf16.msra.mxu1 %v12027_v45  ;;  %v6331_v45 = vshrl.u32 %v11921_v4, 16 }
 0x475   :  { %7942 = vmatprep.subr.bf16.mxu1 %v12047_v18  ;;  %7935 = vmatmul.mubr.msk.f32.vlgmr.msra.gmra.mxu0 %vm3466_vm6, %v6801_v2 }
 0x476   :  { %v12172_v29 = vpop.f32.mrf.mxu0  ;;  %v6333_v7 = vor.u32 %v6331_v45, %v11983_v15 }
 0x478   :  { %v12174_v28 = vpop.f32.mrf.mxu0  ;;  %7950 = vmatpush3.bf16.msra.mxu1 %v12047_v18 }
 0x479   :  { %7943 = vmatprep.subr.bf16.mxu1 %v12059_v0 }
 0x47a   :  { %v12177_v37 = vpop.f32.mrf.mxu0 }
 0x47b   :  { %7851 = vmatmul.mubr.bf16.gmra.mxu1 %v11971_v41  ;;  %v6337_v41 = vrot.slane %v6335_v48, 1 }
 0x47c   :  { %v12181_v6 = vpop.f32.mrf.mxu0  ;;  %7854 = vmatprep.mubr.bf16.mxu1 %v11980_v63  ;;  %7951 = vmatpush3.bf16.msra.mxu1 %v12059_v0  ;;  %v8122_v63 = vld [vmem:[#allocation4 + $0x4c] sm:$0xff]   ;;  %v6339_v0 = vshrl.u32 %v8120_v36, 16  ;;  %v6370_v36 = vsel %vm5769_vm13, %v6365_v32, %v6369_v46 }
 0x47d   :  { %7944 = vmatprep.subr.bf16.mxu1 %v12079_v50  ;;  %v6351_v58 = vshll.u32 %v8122_v63, 16  ;;  %v6338_v57 = vsel %vm5769_vm13, %v6333_v7, %v6337_v41  ;;  %v6355_v30 = vshrl.u32 %v8122_v63, 16 }
 0x47e   :  { %v12185_v3 = vpop.f32.mrf.mxu0  ;;  %v6341_v40 = vor.u32 %v6339_v0, %v6337_v41 }
 0x47f   :  { %v12188_v22 = vpop.f32.mrf.mxu1  ;;  %v6353_v60 = vrot.slane %v6351_v58, 1 }
 0x480   :  { %v12190_v24 = vpop.f32.mrf.mxu0  ;;  %7952 = vmatpush3.bf16.msra.mxu1 %v12079_v50  ;;  %v6343_v50 = vshll.u32 %v8121_v47, 16 }
 0x481   :  { %v12193_v13 = vpop.f32.mrf.mxu1  ;;  %v6357_v54 = vor.u32 %v6355_v30, %v6353_v60 }
 0x482   :  { %v12195_v9 = vpop.f32.mrf.mxu0  ;;  %v6345_v5 = vrot.slane %v6343_v50, 1 }
 0x483   :  { %7855 = vmatmul.mubr.bf16.gmra.mxu1 %v11996_v44  ;;  %v12198_v31 = vpop.f32.mrf.mxu1  ;;  %v6362_v23 = vsel %vm5769_vm13, %v6357_v54, %v6361_v39 }
 0x484   :  { %v12200_v53 = vpop.f32.mrf.mxu0  ;;  %7918 = vmatprep.mubr.bf16.mxu1 %v12000_v11  ;;  %v6346_v15 = vsel %vm5769_vm13, %v6341_v40, %v6345_v5  ;;  %v6349_v35 = vor.u32 %v6347_v17, %v6345_v5 }
 0x485   :  { %v12207_v18 = vpop.f32.mrf.mxu1 }
 0x486   :  { %v12209_v44 = vpop.f32.mrf.mxu0  ;;  %v6354_v59 = vsel %vm5769_vm13, %v6349_v35, %v6353_v60 }
 0x487   :  { %v12212_v55 = vpop.f32.mrf.mxu1 }
 0x488   :  { %v12214_v34 = vpop.f32.mrf.mxu0 }
 0x489   :  { %13376 = vst [vmem:[#allocation63_spill] sm:$0xff] %v12214_v34  ;;  %v12216_v4 = vpop.f32.mrf.mxu1 }
 0x48a   :  { %v12218_v11 = vpop.f32.mrf.mxu0 }
 0x48b   :  { %7919 = vmatmul.mubr.bf16.vlgmr.msra.gmra.mxu1 %v6338_v57  ;;  %v12225_v38 = vpop.f32.mrf.mxu1 }
 0x48c   :  { %v12227_v51 = vpop.f32.mrf.mxu0  ;;  %7922 = vmatprep.mubr.bf16.mxu1 %v6346_v15 }
 0x48d   :  { %13377 = vst [vmem:[#allocation66_spill] sm:$0xff] %v12227_v51  ;;  %v12229_v52 = vpop.f32.mrf.mxu1 }
 0x48e   :  { %v12231_v25 = vpop.f32.mrf.mxu0 }
 0x48f   :  { %v12233_v12 = vpop.f32.mrf.mxu1 }
 0x490   :  { %v12235_v10 = vpop.f32.mrf.mxu0 }
 0x491   :  { %13378 = vst [vmem:[#allocation69_spill] sm:$0xff] %v12235_v10  ;;  %v12237_v43 = vpop.f32.mrf.mxu1 }
 0x492   :  { %v12239_v16 = vpop.f32.mrf.mxu0 }
 0x493   :  { %7923 = vmatmul.mubr.bf16.gmra.mxu1 %v6354_v59  ;;  %v7633_v20 = vpop.f32.mrf.mxu1 }
 0x494   :  { %v12247_v49 = vpop.f32.mrf.mxu0  ;;  %7926 = vmatprep.mubr.bf16.mxu1 %v6362_v23 }
 0x495   :  { %13379 = vst [vmem:[#allocation70_spill] sm:$0xff] %v12247_v49  ;;  %v4381_v42 = vpop.f32.mrf.mxu1 }
 0x496   :  { %v12249_v14 = vpop.f32.mrf.mxu0 }
 0x498   :  { %v12251_v56 = vpop.f32.mrf.mxu0 }
 0x499   :  { %13380 = vst [vmem:[#allocation71_spill] sm:$0xff] %v12251_v56 }
 0x49a   :  { %v12253_v26 = vpop.f32.mrf.mxu0  ;;  %v7636_v48 = vpop.f32.mrf.mxu1 }
 0x49b   :  { %7927 = vmatmul.mubr.bf16.gmra.mxu1 %v6370_v36 }
 0x49c   :  { %v12256_v47 = vpop.f32.mrf.mxu0  ;;  %v4394_v41 = vpop.f32.mrf.mxu1 }
 0x49d   :  { %13381 = vst [vmem:[#allocation72_spill] sm:$0xff] %v12256_v47 }
 0x49e   :  { %v12258_v63 = vpop.f32.mrf.mxu0  ;;  %v7637_v33 = vpop.f32.mrf.mxu1 }
 0x4a0   :  { %v12260_v19 = vpop.f32.mrf.mxu0  ;;  %v4397_v45 = vpop.f32.mrf.mxu1 }
 0x4a2   :  { %v12262_v0 = vpop.f32.mrf.mxu0  ;;  %v7640_v50 = vpop.f32.mrf.mxu1 }
 0x4a4   :  { %v12264_v7 = vpop.f32.mrf.mxu0  ;;  %v4410_v40 = vpop.f32.mrf.mxu1 }
 0x4a6   :  { %v12266_v58 = vpop.f32.mrf.mxu0  ;;  %v7641_v5 = vpop.f32.mrf.mxu1 }
 0x4a8   :  { %v12268_v8 = vpop.f32.mrf.mxu0  ;;  %v4413_v57 = vpop.f32.mrf.mxu1 }
 0x4a9   :  { %13382 = vst [vmem:[#allocation73_spill] sm:$0xff] %v12268_v8 }
 0x4aa   :  { %v12270_v61 = vpop.f32.mrf.mxu0  ;;  %v7660_v15 = vpop.f32.mrf.mxu1 }
 0x4ab   :  { %v4639_v17 = vadd.f32 %v7660_v15, %v12188_v22 }
 0x4ac   :  { %v12272_v60 = vpop.f32.mrf.mxu0  ;;  %v4630_v30 = vpop.f32.mrf.mxu1 }
 0x4ad   :  { %13383 = vst [vmem:[#allocation74_spill] sm:$0xff] %v12272_v60  ;;  %v4631_v35 = vadd.f32 %v4630_v30, %v12193_v13 }
 0x4ae   :  { %v12275_v62 = vpop.f32.mrf.mxu0  ;;  %v7661_v1 = vpop.f32.mrf.mxu1 }
 0x4af   :  { %v4642_v39 = vadd.f32 %v7661_v1, %v12198_v31 }
 0x4b0   :  { %v12278_v54 = vpop.f32.mrf.mxu0  ;;  %v4633_v2 = vpop.f32.mrf.mxu1 }
 0x4b1   :  { %13384 = vst [vmem:[#allocation75_spill] sm:$0xff] %v12278_v54  ;;  %v4634_v27 = vadd.f32 %v4633_v2, %v12207_v18 }
 0x4b2   :  { %v12281_v59 = vpop.f32.mrf.mxu0  ;;  %v7664_v23 = vpop.f32.mrf.mxu1 }
 0x4b3   :  { %v4655_v22 = vadd.f32 %v7664_v23, %v12212_v55 }
 0x4b4   :  { %v12284_v21 = vpop.f32.mrf.mxu0  ;;  %v4646_v32 = vpop.f32.mrf.mxu1 }
 0x4b5   :  { %13385 = vst [vmem:[#allocation76_spill] sm:$0xff] %v12284_v21  ;;  %v4647_v13 = vadd.f32 %v4646_v32, %v12216_v4 }
 0x4b6   :  { %v12287_v46 = vpop.f32.mrf.mxu0  ;;  %v7665_v36 = vpop.f32.mrf.mxu1 }
 0x4b7   :  { %v4658_v31 = vadd.f32 %v7665_v36, %v12225_v38 }
 0x4b8   :  { %v12290_v15 = vpop.f32.mrf.mxu0  ;;  %v4649_v30 = vpop.f32.mrf.mxu1 }
 0x4b9   :  { %13386 = vst [vmem:[#allocation77_spill] sm:$0xff] %v12290_v15  ;;  %v4650_v18 = vadd.f32 %v4649_v30, %v12229_v52 }
 0x4ba   :  { %v12293_v1 = vpop.f32.mrf.mxu0  ;;  %v7668_v2 = vpop.f32.mrf.mxu1 }
 0x4bb   :  { %v4671_v47 = vadd.f32 %v7668_v2, %v12233_v12 }
 0x4bc   :  { %v4662_v56 = vpop.f32.mrf.mxu1  ;;  %v12297_v55 = vpop.f32.mrf.mxu0 }
 0x4bd   :  { %13387 = vst [vmem:[#allocation78_spill] sm:$0xff] %v12297_v55  ;;  %v4663_v23 = vadd.f32 %v4662_v56, %v12237_v43 }
 0x4be   :  { %v7669_v49 = vpop.f32.mrf.mxu1  ;;  %v12300_v21 = vpop.f32.mrf.mxu0 }
 0x4bf   :  { %v4674_v4 = vadd.f32 %v7669_v49, %v7633_v20 }
 0x4c0   :  { %v4665_v32 = vpop.f32.mrf.mxu1  ;;  %v12302_v51 = vpop.f32.mrf.mxu0 }
 0x4c1   :  { %v4666_v15 = vadd.f32 %v4665_v32, %v4381_v42  ;;  %13388 = vst [vmem:[#allocation79_spill] sm:$0xff] %v12302_v51 }
 0x4c2   :  { %v7672_v38 = vpop.f32.mrf.mxu1  ;;  %v12304_v12 = vpop.f32.mrf.mxu0 }
 0x4c3   :  { %v4687_v36 = vadd.f32 %v7672_v38, %v7636_v48 }
 0x4c4   :  { %v4678_v10 = vpop.f32.mrf.mxu1  ;;  %v12306_v56 = vpop.f32.mrf.mxu0 }
 0x4c5   :  { %v4679_v52 = vadd.f32 %v4678_v10, %v4394_v41  ;;  %13389 = vst [vmem:[#allocation80_spill] sm:$0xff] %v12306_v56 }
 0x4c6   :  { %v7673_v30 = vpop.f32.mrf.mxu1  ;;  %v12308_v32 = vpop.f32.mrf.mxu0 }
 0x4c7   :  { %v4690_v54 = vadd.f32 %v7673_v30, %v7637_v33 }
 0x4c8   :  { %v4681_v2 = vpop.f32.mrf.mxu1  ;;  %v12310_v41 = vpop.f32.mrf.mxu0 }
 0x4c9   :  { %v4682_v55 = vadd.f32 %v4681_v2, %v4397_v45 }
 0x4ca   :  { %v12312_v2 = vpop.f32.mrf.mxu0 }
 0x4cb   :  { %v7676_v34 = vpop.f32.mrf.mxu1 }
 0x4cc   :  { %v4703_v43 = vadd.f32 %v7676_v34, %v7640_v50 }
 0x4cd   :  { %v4694_v20 = vpop.f32.mrf.mxu1 }
 0x4ce   :  { %v4695_v49 = vadd.f32 %v4694_v20, %v4410_v40 }
 0x4cf   :  { %v7677_v60 = vpop.f32.mrf.mxu1 }
 0x4d0   :  { %v4706_v42 = vadd.f32 %v7677_v60, %v7641_v5  ;;  %v12316_v5 = vpop.f32.mrf.mxu0 }
 0x4d1   :  { %v4697_v48 = vpop.f32.mrf.mxu1 }
 0x4d2   :  { %v4698_v38 = vadd.f32 %v4697_v48, %v4413_v57 }
 0x4d3   :  { %v7696_v51 = vpop.f32.mrf.mxu1 }
 0x4d4   :  { %v5071_v10 = vadd.f32 %v7696_v51, %v4639_v17  ;;  %v12322_v17 = vpop.f32.mrf.mxu0 }
 0x4d5   :  { %v4990_v33 = vpop.f32.mrf.mxu1  ;;  %13390 = vst [vmem:[#allocation81_spill] sm:$0xff] %v12322_v17 }
 0x4d6   :  { %v5069_v30 = vadd.f32 %v4990_v33, %v4631_v35 }
 0x4d7   :  { %v7697_v8 = vpop.f32.mrf.mxu1 }
 0x4d8   :  { %v5072_v45 = vadd.f32 %v7697_v8, %v4642_v39 }
 0x4d9   :  { %v4993_v34 = vpop.f32.mrf.mxu1 }
 0x4da   :  { %v12314_v50 = vadd.f32 %v4993_v34, %v4634_v27  ;;  %v12328_v27 = vpop.f32.mrf.mxu0 }
 0x4db   :  { %v7700_v40 = vpop.f32.mrf.mxu1 }
 0x4dc   :  { %v5075_v20 = vadd.f32 %v7700_v40, %v4655_v22 }
 0x4dd   :  { %v5006_v60 = vpop.f32.mrf.mxu1 }
 0x4de   :  { %v12318_v56 = vadd.f32 %v5006_v60, %v4647_v13  ;;  %v12334_v13 = vpop.f32.mrf.mxu0 }
 0x4df   :  { %v7701_v57 = vpop.f32.mrf.mxu1 }
 0x4e0   :  { %v12320_v51 = vadd.f32 %v7701_v57, %v4658_v31 }
 0x4e1   :  { %v5009_v35 = vpop.f32.mrf.mxu1 }
 0x4e2   :  { %v12324_v48 = vadd.f32 %v5009_v35, %v4650_v18  ;;  %v12340_v18 = vpop.f32.mrf.mxu0 }
 0x4e3   :  { %v7704_v8 = vpop.f32.mrf.mxu1 }
 0x4e4   :  { %13391 = vst [vmem:[#allocation82_spill] sm:$0xff] %v12324_v48  ;;  %v12326_v39 = vadd.f32 %v7704_v8, %v4671_v47 }
 0x4e5   :  { %v5022_v33 = vpop.f32.mrf.mxu1 }
 0x4e6   :  { %v12330_v22 = vadd.f32 %v5022_v33, %v4663_v23  ;;  %v12346_v23 = vpop.f32.mrf.mxu0 }
 0x4e7   :  { %v7705_v34 = vpop.f32.mrf.mxu1 }
 0x4e8   :  { %13392 = vst [vmem:[#allocation83_spill] sm:$0xff] %v12330_v22  ;;  %v12332_v40 = vadd.f32 %v7705_v34, %v4674_v4 }
 0x4e9   :  { %v5025_v31 = vpop.f32.mrf.mxu1 }
 0x4ea   :  { %v12336_v60 = vadd.f32 %v5025_v31, %v4666_v15  ;;  %v12352_v15 = vpop.f32.mrf.mxu0 }
 0x4eb   :  { %v7708_v57 = vpop.f32.mrf.mxu1 }
 0x4ec   :  { %13393 = vst [vmem:[#allocation84_spill] sm:$0xff] %v12336_v60  ;;  %v12338_v17 = vadd.f32 %v7708_v57, %v4687_v36 }
 0x4ed   :  { %v5038_v47 = vpop.f32.mrf.mxu1 }
 0x4ee   :  { %v12342_v35 = vadd.f32 %v5038_v47, %v4679_v52  ;;  %v12358_v52 = vpop.f32.mrf.mxu0 }
 0x4ef   :  { %v7709_v8 = vpop.f32.mrf.mxu1 }
 0x4f0   :  { %v12344_v48 = vadd.f32 %v7709_v8, %v4690_v54 }
 0x4f1   :  { %v5041_v4 = vpop.f32.mrf.mxu1 }
 0x4f2   :  { %v12348_v33 = vadd.f32 %v5041_v4, %v4682_v55  ;;  %v12363_v4 = vpop.f32.mrf.mxu0 }
 0x4f3   :  { %v7712_v34 = vpop.f32.mrf.mxu1 }
 0x4f4   :  { %13394 = vst [vmem:[#allocation85_spill] sm:$0xff] %v12348_v33  ;;  %v12350_v22 = vadd.f32 %v7712_v34, %v4703_v43 }
 0x4f5   :  { %v5054_v36 = vpop.f32.mrf.mxu1 }
 0x4f6   :  { %v12354_v31 = vadd.f32 %v5054_v36, %v4695_v49  ;;  %v13397_v49 = vld [vmem:[#allocation12_spill] sm:$0xff] }
 0x4f7   :  { %v7713_v57 = vpop.f32.mrf.mxu1  ;;  %vm13398_vm1 = vcmp.eq.s32.totalorder %v13397_v49, 1  ;;  %v13403_v49 = vld [vmem:[#allocation21_spill] sm:$0xff] }
 0x4f8   :  { %13395 = vst [vmem:[#allocation86_spill] sm:$0xff] %v12354_v31  ;;  %v12356_v60 = vadd.f32 %v7713_v57, %v4706_v42  ;;  %v5091_v36 = vsel %vm13398_vm1, %v5071_v10, 0.0  ;;  %vm13404_vm15 = vcmp.eq.s32.totalorder %v13403_v49, 1 }
 0x4f9   :  { %v5057_v54 = vpop.f32.mrf.mxu1 }
 0x4fa   :  { %v12360_v47 = vadd.f32 %v5057_v54, %v4698_v38  ;;  %v13399_v54 = vld [vmem:[#allocation7_spill] sm:$0xff] }
 0x4fb   :  { %v7768_v8 = vpop.f32.mrf.mxu1  ;;  %vm13400_vm6 = vcmp.eq.s32.totalorder %v13399_v54, 1  ;;  %v13405_v54 = vld [vmem:[#allocation23_spill] sm:$0xff] }
 0x4fc   :  { %13396 = vst [vmem:[#allocation87_spill] sm:$0xff] %v12360_v47  ;;  %v5417_v55 = vadd.f32 %v7768_v8, %v12172_v29  ;;  %v5089_v29 = vsel %vm13400_vm6, %v5069_v30, 0.0  ;;  %v12375_v8 = vpop.f32.mrf.mxu0  ;;  %vm13406_vm7 = vcmp.eq.s32.totalorder %v13405_v54, 1 }
 0x4fd   :  { %v5408_v43 = vpop.f32.mrf.mxu1 }
 0x4fe   :  { %v5687_v34 = vadd.f32 %v12258_v63, %v5417_v55  ;;  %v5409_v33 = vadd.f32 %v5408_v43, %v12174_v28  ;;  %v13401_v55 = vld [vmem:[#allocation16_spill] sm:$0xff] }
 0x4ff   :  { %v7769_v42 = vpop.f32.mrf.mxu1  ;;  %vm13402_vm2 = vcmp.eq.s32.totalorder %v13401_v55, 1 }
 0x500   :  { %v12369_v57 = vadd.f32 %v5687_v34, %v5091_v36  ;;  %v5685_v31 = vadd.f32 %v12260_v19, %v5409_v33  ;;  %v5420_v38 = vadd.f32 %v7769_v42, %v12177_v37  ;;  %v5092_v10 = vsel %vm13402_vm2, %v5072_v45, 0.0  ;;  %v12387_v37 = vpop.f32.mrf.mxu0 }
 0x501   :  { %v12377_v47 = vpop.f32.mrf.mxu1 }
 0x502   :  { %v12379_v63 = vadd.f32 %v5685_v31, %v5089_v29  ;;  %v5688_v28 = vadd.f32 %v12262_v0, %v5420_v38  ;;  %v5095_v31 = vsel %vm13404_vm15, %v5075_v20, 0.0  ;;  %v12397_v45 = vpop.f32.mrf.mxu0  ;;  %v5096_v29 = vsel %vm13406_vm7, %v12320_v51, 0.0 }
 0x503   :  { %v7772_v43 = vpop.f32.mrf.mxu1 }
 0x504   :  { %v12384_v34 = vadd.f32 %v5688_v28, %v5092_v10  ;;  %v5433_v19 = vadd.f32 %v7772_v43, %v12185_v3  ;;  %v12408_v55 = vpop.f32.mrf.mxu0  ;;  %v13407_v43 = vld [vmem:[#allocation28_spill] sm:$0xff] }
 0x505   :  { %v12389_v33 = vpop.f32.mrf.mxu1  ;;  %vm13408_vm11 = vcmp.eq.s32.totalorder %v13407_v43, 1 }
 0x506   :  { %v5691_v30 = vadd.f32 %v12266_v58, %v5433_v19  ;;  %v5099_v19 = vsel %vm13408_vm11, %v12326_v39, 0.0  ;;  %v12419_v49 = vpop.f32.mrf.mxu0 }
 0x507   :  { %v7773_v36 = vpop.f32.mrf.mxu1 }
 0x508   :  { %v12394_v42 = vadd.f32 %v5691_v30, %v5095_v31  ;;  %v5436_v0 = vadd.f32 %v7773_v36, %v12195_v9  ;;  %v13409_v36 = vld [vmem:[#allocation31_spill] sm:$0xff]  ;;  %v12430_v54 = vpop.f32.mrf.mxu0 }
 0x509   :  { %v12399_v38 = vpop.f32.mrf.mxu1  ;;  %vm13410_vm14 = vcmp.eq.s32.totalorder %v13409_v36, 1 }
 0x50a   :  { %v5692_v3 = vadd.f32 %v12270_v61, %v5436_v0  ;;  %v5100_v0 = vsel %vm13410_vm14, %v12332_v40, 0.0  ;;  %v12441_v43 = vpop.f32.mrf.mxu0 }
 0x50b   :  { %v7776_v28 = vpop.f32.mrf.mxu1 }
 0x50c   :  { %v12405_v58 = vadd.f32 %v5692_v3, %v5096_v29  ;;  %v5449_v20 = vadd.f32 %v7776_v28, %v12209_v44  ;;  %v13411_v28 = vld [vmem:[#allocation39_spill] sm:$0xff]  ;;  %v12452_v36 = vpop.f32.mrf.mxu0 }
 0x50d   :  { %v12410_v10 = vpop.f32.mrf.mxu1  ;;  %vm13412_vm8 = vcmp.eq.s32.totalorder %v13411_v28, 1  ;;  %13416 = vst [vmem:[#allocation7_spill] sm:$0xff] %v12452_v36  ;;  %v13423_v36 = vld [vmem:[#allocation9_spill] sm:$0xff] }
 0x50e   :  { %v5695_v9 = vadd.f32 %v12275_v62, %v5449_v20  ;;  %v5103_v20 = vsel %vm13412_vm8, %v12338_v17, 0.0  ;;  %v7912_v28 = vpop.f32.mrf.mxu0  ;;  %vm13424_vm3 = vcmp.eq.s32.totalorder %v13423_v36, 1 }
 0x50f   :  { %v7777_v61 = vpop.f32.mrf.mxu1 }
 0x510   :  { %v12416_v30 = vadd.f32 %v5695_v9, %v5099_v19  ;;  %v5452_v51 = vadd.f32 %v7777_v61, %v12218_v11  ;;  %v13413_v61 = vld [vmem:[#allocation41_spill] sm:$0xff] }
 0x511   :  { %v12421_v31 = vpop.f32.mrf.mxu1  ;;  %vm13414_vm5 = vcmp.eq.s32.totalorder %v13413_v61, 1  ;;  %v6463_v61 = vpop.f32.mrf.mxu0 }
 0x512   :  { %v5696_v44 = vadd.f32 %v12281_v59, %v5452_v51  ;;  %v5104_v51 = vsel %vm13414_vm5, %v12344_v48, 0.0 }
 0x513   :  { %v7780_v62 = vpop.f32.mrf.mxu1 }
 0x514   :  { %v12427_v3 = vadd.f32 %v5696_v44, %v5100_v0  ;;  %v5465_v39 = vadd.f32 %v7780_v62, %v12231_v25  ;;  %v13417_v62 = vld [vmem:[#allocation47_spill] sm:$0xff] }
 0x515   :  { %v12432_v29 = vpop.f32.mrf.mxu1  ;;  %vm13418_vm4 = vcmp.eq.s32.totalorder %v13417_v62, 1 }
 0x516   :  { %v5699_v11 = vadd.f32 %v12287_v46, %v5465_v39  ;;  %v5107_v39 = vsel %vm13418_vm4, %v12350_v22, 0.0 }
 0x517   :  { %v7781_v59 = vpop.f32.mrf.mxu1 }
 0x518   :  { %v12438_v9 = vadd.f32 %v5699_v11, %v5103_v20  ;;  %v5468_v40 = vadd.f32 %v7781_v59, %v12239_v16  ;;  %v13420_v59 = vld [vmem:[#allocation50_spill] sm:$0xff] }
 0x519   :  { %v12443_v19 = vpop.f32.mrf.mxu1  ;;  %vm13421_vm10 = vcmp.eq.s32.totalorder %v13420_v59, 1 }
 0x51a   :  { %v5700_v25 = vadd.f32 %v12293_v1, %v5468_v40  ;;  %v5108_v40 = vsel %vm13421_vm10, %v12356_v60, 0.0 }
 0x51b   :  { %v7784_v46 = vpop.f32.mrf.mxu1 }
 0x51c   :  { %v12449_v44 = vadd.f32 %v5700_v25, %v5104_v51  ;;  %v5481_v17 = vadd.f32 %v7784_v46, %v12249_v14  ;;  %v7913_v46 = vpop.f32.mrf.mxu0 }
 0x51d   :  { %v12454_v0 = vpop.f32.mrf.mxu1 }
 0x51e   :  { %13415 = vst [vmem:[#allocation12_spill] sm:$0xff] %v12449_v44  ;;  %v5703_v16 = vadd.f32 %v12300_v21, %v5481_v17  ;;  %v13427_v44 = vld [vmem:[#allocation5_spill] sm:$0xff] }
 0x51f   :  { %v7785_v1 = vpop.f32.mrf.mxu1  ;;  %vm13428_vm0 = vcmp.eq.s32.totalorder %v13427_v44, 1  ;;  %v5425_v44 = vadd.f32 %v12389_v33, %v12190_v24 }
 0x520   :  { %v12460_v11 = vadd.f32 %v5703_v16, %v5107_v39  ;;  %v5484_v48 = vadd.f32 %v7785_v1, %v12253_v26  ;;  %v5412_v26 = vadd.f32 %v12377_v47, %v12181_v6  ;;  %v6466_v39 = vpop.f32.mrf.mxu0 }
 0x521   :  { %v12463_v20 = vpop.f32.mrf.mxu1 }
 0x522   :  { %13419 = vst [vmem:[#allocation16_spill] sm:$0xff] %v12460_v11  ;;  %v5704_v14 = vadd.f32 %v12304_v12, %v5484_v48  ;;  %v5686_v60 = vadd.f32 %v12264_v7, %v5412_v26 }
 0x523   :  { %v7840_v25 = vpop.f32.mrf.mxu1 }
 0x524   :  { %v12469_v21 = vadd.f32 %v5704_v14, %v5108_v40  ;;  %v6126_v59 = vadd.f32 %v12308_v32, %v7840_v25 }
 0x525   :  { %v5901_v51 = vpop.f32.mrf.mxu1 }
 0x526   :  { %13422 = vst [vmem:[#allocation21_spill] sm:$0xff] %v12469_v21  ;;  %v6118_v12 = vadd.f32 %v12310_v41, %v5901_v51  ;;  %v7916_v21 = vpop.f32.mrf.mxu0  ;;  %v6544_v51 = vadd.f32 %v7912_v28, %v6126_v59 }
 0x527   :  { %v7841_v22 = vpop.f32.mrf.mxu1 }
 0x528   :  { %v6542_v40 = vadd.f32 %v6463_v61, %v6118_v12  ;;  %v6129_v7 = vadd.f32 %v12312_v2, %v7841_v22  ;;  %v6479_v26 = vpop.f32.mrf.mxu0 }
 0x529   :  { %v5904_v17 = vpop.f32.mrf.mxu1 }
 0x52a   :  { %v6121_v16 = vadd.f32 %v12316_v5, %v5904_v17  ;;  %v5090_v5 = vsel %vm13424_vm3, %v12314_v50, 0.0  ;;  %v13425_v17 = vld [vmem:[#allocation6_spill] sm:$0xff]  ;;  %v13429_v50 = vld [vmem:[#allocation8_spill] sm:$0xff]  ;;  %v7917_v28 = vpop.f32.mrf.mxu0 }
 0x52b   :  { %v7844_v62 = vpop.f32.mrf.mxu1  ;;  %vm13426_vm9 = vcmp.eq.s32.totalorder %v13425_v17, 1  ;;  %v5706_v47 = vadd.f32 %v5686_v60, %v5090_v5  ;;  %vm13430_vm13 = vcmp.eq.s32.totalorder %v13429_v50, 1  ;;  %v13431_v60 = vld [vmem:[#allocation53_spill] sm:$0xff]  ;;  %v13432_v5 = vld [vmem:[#allocation52_spill] sm:$0xff] }
 0x52c   :  { %v6543_v48 = vadd.f32 %v6466_v39, %v6121_v16  ;;  %v6562_v16 = vsel %vm13428_vm0, %v6542_v40, 0.0  ;;  %v6564_v12 = vsel %vm13430_vm13, %v6544_v51, 0.0  ;;  %v6545_v39 = vadd.f32 %v7913_v46, %v6129_v7  ;;  %v6482_v17 = vpop.f32.mrf.mxu0 }
 0x52d   :  { %v5917_v1 = vpop.f32.mrf.mxu1  ;;  %v12488_v61 = vadd.f32 %v6562_v16, %v12379_v63  ;;  %v5428_v63 = vadd.f32 %v12399_v38, %v12200_v53  ;;  %v12501_v40 = vadd.f32 %v6564_v12, %v12369_v57  ;;  %v13436_v53 = vld [vmem:[#allocation74_spill] sm:$0xff]  ;;  %v13437_v57 = vld [vmem:[#allocation55_spill] sm:$0xff] }
 0x52e   :  { %v6563_v6 = vsel %vm13426_vm9, %v6543_v48, 0.0  ;;  %v6134_v48 = vadd.f32 %v12328_v27, %v5917_v1  ;;  %v13433_v1 = vld [vmem:[#allocation10_spill] sm:$0xff]  ;;  %v13438_v12 = vld [vmem:[#allocation19_spill] sm:$0xff] }
 0x52f   :  { %v7845_v14 = vpop.f32.mrf.mxu1  ;;  %v12485_v32 = vadd.f32 %v6563_v6, %v5706_v47  ;;  %v6604_v46 = vmul.f32 %v12488_v61, %v13432_v5  ;;  %vm13434_vm12 = vcmp.eq.s32.totalorder %v13433_v1, 1  ;;  %v13435_v6 = vld [vmem:[#allocation73_spill] sm:$0xff]  ;;  %v5690_v38 = vadd.f32 %v13436_v53, %v5428_v63  ;;  %v13443_v1 = vld [vmem:[#allocation82_spill] sm:$0xff] }
 0x530   :  { %v6565_v24 = vsel %vm13434_vm12, %v6545_v39, 0.0  ;;  %v6546_v33 = vadd.f32 %v6479_v26, %v6134_v48  ;;  %v5689_v47 = vadd.f32 %v13435_v6, %v5425_v44  ;;  %v6606_v16 = vmul.f32 %v12501_v40, %v13437_v57  ;;  %v13440_v39 = vld [vmem:[#allocation81_spill] sm:$0xff]  ;;  %v13441_v44 = vld [vmem:[#allocation11_spill] sm:$0xff] }
 0x531   :  { %v5920_v11 = vpop.f32.mrf.mxu1  ;;  %v6605_v2 = vmul.f32 %v12485_v32, %v13431_v60  ;;  %v12516_v7 = vadd.f32 %v6565_v24, %v12384_v34  ;;  %vm13439_vm1 = vcmp.eq.s32.totalorder %v13438_v12, 1  ;;  %v6142_v48 = vadd.f32 %v13440_v39, %v7844_v62  ;;  %v13446_v24 = vld [vmem:[#allocation13_spill] sm:$0xff]  ;;  %v13449_v39 = vld [vmem:[#allocation63_spill] sm:$0xff] }
 0x532   :  { %v6137_v59 = vadd.f32 %v12340_v18, %v5920_v11  ;;  %v5093_v26 = vsel %vm13439_vm1, %v12318_v56, 0.0  ;;  %vm13442_vm6 = vcmp.eq.s32.totalorder %v13441_v44, 1  ;;  %vm13447_vm15 = vcmp.eq.s32.totalorder %v13446_v24, 1  ;;  %v13448_v57 = vld [vmem:[#allocation29_spill] sm:$0xff]  ;;  %v13455_v24 = vld [vmem:[#allocation66_spill] sm:$0xff] }
 0x533   :  { %v7848_v41 = vpop.f32.mrf.mxu1  ;;  %v6624_v51 = vadd.f32 %v6605_v2, %v6604_v46  ;;  %v6566_v2 = vsel %vm13442_vm6, %v6546_v33, 0.0  ;;  %v6607_v56 = vmul.f32 %v12516_v7, %v13448_v57  ;;  %v6548_v33 = vadd.f32 %v7916_v21, %v6142_v48  ;;  %v13453_v48 = vld [vmem:[#allocation56_spill] sm:$0xff] }
 0x534   :  { %v6547_v11 = vadd.f32 %v6482_v17, %v6137_v59  ;;  %v5709_v59 = vadd.f32 %v5689_v47, %v5093_v26  ;;  %v13444_v17 = vld [vmem:[#allocation20_spill] sm:$0xff]  ;;  %v6145_v47 = vadd.f32 %v12334_v13, %v7845_v14  ;;  %v5441_v44 = vadd.f32 %v12410_v10, %v13449_v39 }
 0x535   :  { %v5933_v25 = vpop.f32.mrf.mxu1  ;;  %v6625_v46 = vadd.f32 %v6624_v51, %v6606_v16  ;;  %vm13445_vm2 = vcmp.eq.s32.totalorder %v13444_v17, 1  ;;  %v5444_v10 = vadd.f32 %v12421_v31, %v13455_v24 }
 0x536   :  { %v5094_v34 = vsel %vm13445_vm2, %v13443_v1, 0.0  ;;  %v6567_v6 = vsel %vm13447_vm15, %v6547_v11, 0.0  ;;  %v12535_v12 = vadd.f32 %v6566_v2, %v5709_v59  ;;  %v13450_v11 = vld [vmem:[#allocation49_spill] sm:$0xff]  ;;  %v13451_v2 = vld [vmem:[#allocation14_spill] sm:$0xff]  ;;  %v6549_v17 = vadd.f32 %v7917_v28, %v6145_v47 }
 0x537   :  { %v7849_v36 = vpop.f32.mrf.mxu1  ;;  %v5710_v53 = vadd.f32 %v5690_v38, %v5094_v34  ;;  %v6626_v51 = vadd.f32 %v6625_v46, %v6607_v56  ;;  %vm13452_vm7 = vcmp.eq.s32.totalorder %v13451_v2, 1  ;;  %v13454_v46 = vld [vmem:[#allocation75_spill] sm:$0xff]  ;;  %v6158_v28 = vadd.f32 %v12346_v23, %v7848_v41  ;;  %v13458_v47 = vld [vmem:[#allocation69_spill] sm:$0xff] }
 0x538   :  { %v6608_v38 = vmul.f32 %v12535_v12, %v13450_v11  ;;  %v6568_v59 = vsel %vm13452_vm7, %v6548_v33, 0.0  ;;  %v5693_v34 = vadd.f32 %v13454_v46, %v5441_v44  ;;  %v13456_v56 = vld [vmem:[#allocation15_spill] sm:$0xff]  ;;  %v6150_v33 = vadd.f32 %v12352_v15, %v5933_v25  ;;  %v13460_v46 = vld [vmem:[#allocation24_spill] sm:$0xff]  ;;  %v13464_v25 = vld [vmem:[#allocation17_spill] sm:$0xff] }
 0x539   :  { %v5936_v22 = vpop.f32.mrf.mxu1  ;;  %v12540_v16 = vadd.f32 %v6567_v6, %v5710_v53  ;;  %v12560_v6 = vadd.f32 %v6568_v59, %v12394_v42  ;;  %vm13457_vm11 = vcmp.eq.s32.totalorder %v13456_v56, 1  ;;  %v13459_v44 = vld [vmem:[#allocation83_spill] sm:$0xff]  ;;  %vm13461_vm14 = vcmp.eq.s32.totalorder %v13460_v46, 1  ;;  %v13462_v56 = vld [vmem:[#allocation76_spill] sm:$0xff]  ;;  %v13474_v46 = vld [vmem:[#allocation70_spill] sm:$0xff] }
 0x53a   :  { %v6627_v21 = vadd.f32 %v6626_v51, %v6608_v38  ;;  %v6569_v39 = vsel %vm13457_vm11, %v6549_v17, 0.0  ;;  %v5457_v51 = vadd.f32 %v12432_v29, %v13458_v47  ;;  %v5097_v31 = vsel %vm13461_vm14, %v13459_v44, 0.0  ;;  %v13463_v11 = vld [vmem:[#allocation51_spill] sm:$0xff]  ;;  %v13466_v47 = vld [vmem:[#allocation77_spill] sm:$0xff] }
 0x53b   :  { %v12505_v27 = vpop.f32.mrf.mxu1  ;;  %v6609_v13 = vmul.f32 %v12540_v16, %v13453_v48  ;;  %v6161_v42 = vadd.f32 %v12358_v52, %v7849_v36  ;;  %v5713_v48 = vadd.f32 %v5693_v34, %v5097_v31  ;;  %v5694_v17 = vadd.f32 %v13462_v56, %v5444_v10  ;;  %v13467_v10 = vld [vmem:[#allocation84_spill] sm:$0xff]  ;;  %v13476_v31 = vld [vmem:[#allocation62_spill] sm:$0xff] }
 0x53c   :  { %v6610_v23 = vmul.f32 %v12560_v6, %v13463_v11  ;;  %v12576_v15 = vadd.f32 %v6569_v39, %v12405_v58  ;;  %v6153_v41 = vadd.f32 %v12363_v4, %v5936_v22  ;;  %vm13465_vm8 = vcmp.eq.s32.totalorder %v13464_v25, 1  ;;  %v13470_v58 = vld [vmem:[#allocation33_spill] sm:$0xff] }
 0x53d   :  { %v12510_v18 = vpop.f32.mrf.mxu1  ;;  %v6628_v38 = vadd.f32 %v6627_v21, %v6609_v13  ;;  %v5697_v52 = vadd.f32 %v13466_v47, %v5457_v51  ;;  %vm13471_vm4 = vcmp.eq.s32.totalorder %v13470_v58, 1  ;;  %v5460_v51 = vadd.f32 %v12443_v19, %v13474_v46 }
 0x53e   :  { %v5101_v39 = vsel %vm13471_vm4, %v12342_v35, 0.0  ;;  %v6174_v56 = vadd.f32 %v12375_v8, %v12505_v27  ;;  %v6166_v35 = vadd.f32 %v12387_v37, %v12510_v18 }
 0x53f   :  { %v12518_v50 = vpop.f32.mrf.mxu1  ;;  %v6629_v34 = vadd.f32 %v6628_v38, %v6610_v23  ;;  %v13477_v23 = vld [vmem:[#allocation25_spill] sm:$0xff]  ;;  %v5717_v19 = vadd.f32 %v5697_v52, %v5101_v39  ;;  %v13484_v39 = vld [vmem:[#allocation27_spill] sm:$0xff] }
 0x540   :  { %vm13478_vm3 = vcmp.eq.s32.totalorder %v13477_v23, 1  ;;  %v6177_v37 = vadd.f32 %v12397_v45, %v12518_v50  ;;  %vm13485_vm0 = vcmp.eq.s32.totalorder %v13484_v39, 1  ;;  %v13486_v45 = vld [vmem:[#allocation85_spill] sm:$0xff]  ;;  %v13487_v50 = vld [vmem:[#allocation36_spill] sm:$0xff] }
 0x541   :  { %v12526_v63 = vpop.f32.mrf.mxu1  ;;  %vm13488_vm13 = vcmp.eq.s32.totalorder %v13487_v50, 1  ;;  %v13504_v50 = vld [vmem:[#allocation12_spill] sm:$0xff] }
 0x542   :  { %v6169_v58 = vadd.f32 %v12408_v55, %v12526_v63  ;;  %v13493_v55 = vld [vmem:[#allocation79_spill] sm:$0xff] }
 0x543   :  { %v12537_v62 = vpop.f32.mrf.mxu1 }
 0x545   :  { %v12542_v26 = vpop.f32.mrf.mxu1 }
 0x547   :  { %v12548_v1 = vpop.f32.mrf.mxu1 }
 0x549   :  { %v12554_v14 = vpop.f32.mrf.mxu1 }
 0x54b   :  { %v7920_v53 = vpop.f32.mrf.mxu1 }
 0x54c   :  { %v6552_v59 = vadd.f32 %v7920_v53, %v6158_v28  ;;  %v13468_v28 = vld [vmem:[#allocation26_spill] sm:$0xff] }
 0x54d   :  { %v6495_v2 = vpop.f32.mrf.mxu1  ;;  %vm13469_vm5 = vcmp.eq.s32.totalorder %v13468_v28, 1 }
 0x54e   :  { %v6550_v24 = vadd.f32 %v6495_v2, %v6150_v33  ;;  %v5098_v33 = vsel %vm13469_vm5, %v13467_v10, 0.0  ;;  %v13472_v2 = vld [vmem:[#allocation22_spill] sm:$0xff] }
 0x54f   :  { %v7921_v29 = vpop.f32.mrf.mxu1  ;;  %vm13473_vm10 = vcmp.eq.s32.totalorder %v13472_v2, 1  ;;  %v5714_v44 = vadd.f32 %v5694_v17, %v5098_v33  ;;  %v13479_v17 = vld [vmem:[#allocation18_spill] sm:$0xff] }
 0x550   :  { %v6570_v21 = vsel %vm13465_vm8, %v6550_v24, 0.0  ;;  %v6553_v13 = vadd.f32 %v7921_v29, %v6161_v42  ;;  %v6572_v4 = vsel %vm13473_vm10, %v6552_v59, 0.0  ;;  %vm13480_vm9 = vcmp.eq.s32.totalorder %v13479_v17, 1  ;;  %v13496_v17 = vld [vmem:[#allocation72_spill] sm:$0xff] }
 0x551   :  { %v12582_v36 = vadd.f32 %v6570_v21, %v5713_v48  ;;  %v6498_v53 = vpop.f32.mrf.mxu1  ;;  %v13475_v48 = vld [vmem:[#allocation34_spill] sm:$0xff] }
 0x552   :  { %v6551_v22 = vadd.f32 %v6498_v53, %v6153_v41  ;;  %v6611_v38 = vmul.f32 %v12576_v15, %v13475_v48  ;;  %v6573_v59 = vsel %vm13478_vm3, %v6553_v13, 0.0  ;;  %v12607_v41 = vadd.f32 %v6572_v4, %v12416_v30  ;;  %v13481_v53 = vld [vmem:[#allocation71_spill] sm:$0xff]  ;;  %v13482_v13 = vld [vmem:[#allocation78_spill] sm:$0xff]  ;;  %v13483_v30 = vld [vmem:[#allocation60_spill] sm:$0xff] }
 0x553   :  { %v6612_v42 = vmul.f32 %v12582_v36, %v13476_v31  ;;  %v7924_v24 = vpop.f32.mrf.mxu1  ;;  %v5473_v8 = vadd.f32 %v12454_v0, %v13481_v53  ;;  %v5698_v10 = vadd.f32 %v13482_v13, %v5460_v51  ;;  %v12617_v52 = vadd.f32 %v6573_v59, %v12427_v3 }
 0x554   :  { %v6571_v29 = vsel %vm13480_vm9, %v6551_v22, 0.0  ;;  %v6630_v25 = vadd.f32 %v6629_v34, %v6611_v38  ;;  %v6556_v27 = vadd.f32 %v7924_v24, %v6174_v56  ;;  %v5102_v4 = vsel %vm13488_vm13, %v13486_v45, 0.0  ;;  %v13489_v22 = vld [vmem:[#allocation37_spill] sm:$0xff]  ;;  %v13490_v38 = vld [vmem:[#allocation86_spill] sm:$0xff]  ;;  %v13494_v56 = vld [vmem:[#allocation32_spill] sm:$0xff] }
 0x555   :  { %v12609_v21 = vadd.f32 %v6571_v29, %v5714_v44  ;;  %v6511_v47 = vpop.f32.mrf.mxu1  ;;  %v6614_v44 = vmul.f32 %v12607_v41, %v13489_v22  ;;  %v5701_v63 = vadd.f32 %v13493_v55, %v5473_v8  ;;  %vm13495_vm1 = vcmp.eq.s32.totalorder %v13494_v56, 1  ;;  %v13498_v8 = vld [vmem:[#allocation35_spill] sm:$0xff] }
 0x556   :  { %v6554_v18 = vadd.f32 %v6511_v47, %v6166_v35  ;;  %v6631_v28 = vadd.f32 %v6630_v25, %v6612_v42  ;;  %v13491_v42 = vld [vmem:[#allocation43_spill] sm:$0xff]  ;;  %v6576_v35 = vsel %vm13495_vm1, %v6556_v27, 0.0  ;;  %v5718_v59 = vadd.f32 %v5698_v10, %v5102_v4  ;;  %v13497_v25 = vld [vmem:[#allocation44_spill] sm:$0xff]  ;;  %v13500_v27 = vld [vmem:[#allocation30_spill] sm:$0xff] }
 0x557   :  { %v6613_v34 = vmul.f32 %v12609_v21, %v13483_v30  ;;  %v7925_v33 = vpop.f32.mrf.mxu1  ;;  %vm13492_vm12 = vcmp.eq.s32.totalorder %v13491_v42, 1  ;;  %v5476_v29 = vadd.f32 %v12463_v20, %v13496_v17  ;;  %v6615_v47 = vmul.f32 %v12617_v52, %v13497_v25  ;;  %v13507_v42 = vld [vmem:[#allocation38_spill] sm:$0xff] }
 0x558   :  { %v6574_v0 = vsel %vm13485_vm0, %v6554_v18, 0.0  ;;  %v6557_v2 = vadd.f32 %v7925_v33, %v6177_v37  ;;  %v5105_v24 = vsel %vm13492_vm12, %v13490_v38, 0.0  ;;  %v6190_v37 = vadd.f32 %v12419_v49, %v12537_v62  ;;  %v13511_v17 = vld [vmem:[#allocation46_spill] sm:$0xff] }
 0x559   :  { %v6632_v3 = vadd.f32 %v6631_v28, %v6613_v34  ;;  %v12630_v46 = vadd.f32 %v6574_v0, %v5717_v19  ;;  %v6514_v51 = vpop.f32.mrf.mxu1  ;;  %v6182_v18 = vadd.f32 %v12430_v54, %v12542_v26  ;;  %vm13499_vm6 = vcmp.eq.s32.totalorder %v13498_v8, 1  ;;  %v13502_v34 = vld [vmem:[#allocation48_spill] sm:$0xff] }
 0x55a   :  { %v6555_v23 = vadd.f32 %v6514_v51, %v6169_v58  ;;  %v6577_v13 = vsel %vm13499_vm6, %v6557_v2, 0.0  ;;  %vm13501_vm2 = vcmp.eq.s32.totalorder %v13500_v27, 1  ;;  %v12651_v20 = vadd.f32 %v6576_v35, %v12438_v9  ;;  %v13503_v0 = vld [vmem:[#allocation80_spill] sm:$0xff]  ;;  %v13505_v9 = vld [vmem:[#allocation54_spill] sm:$0xff]  ;;  %v13506_v51 = vld [vmem:[#allocation7_spill] sm:$0xff] }
 0x55b   :  { %v6633_v19 = vadd.f32 %v6632_v3, %v6614_v44  ;;  %v7928_v53 = vpop.f32.mrf.mxu1  ;;  %v6616_v33 = vmul.f32 %v12630_v46, %v13502_v34  ;;  %v5721_v49 = vadd.f32 %v5701_v63, %v5105_v24  ;;  %v6193_v54 = vadd.f32 %v12441_v43, %v12548_v1  ;;  %v12669_v43 = vpop.f32.mrf.mxu0  ;;  %v13509_v1 = vld [vmem:[#allocation57_spill] sm:$0xff] }
 0x55c   :  { %v6575_v10 = vsel %vm13501_vm2, %v6555_v23, 0.0  ;;  %v6560_v62 = vadd.f32 %v7928_v53, %v6190_v37  ;;  %v5702_v2 = vadd.f32 %v13503_v0, %v5476_v29  ;;  %v12661_v4 = vadd.f32 %v6577_v13, %v13504_v50  ;;  %v13516_v27 = vld [vmem:[#allocation45_spill] sm:$0xff] }
 0x55d   :  { %v6634_v28 = vadd.f32 %v6633_v19, %v6615_v47  ;;  %v12655_v58 = vadd.f32 %v6575_v10, %v5718_v59  ;;  %v6527_v39 = vpop.f32.mrf.mxu1  ;;  %v6185_v38 = vadd.f32 %v13506_v51, %v12554_v14  ;;  %vm13508_vm15 = vcmp.eq.s32.totalorder %v13507_v42, 1  ;;  %v13510_v59 = vld [vmem:[#allocation87_spill] sm:$0xff]  ;;  %v13513_v47 = vld [vmem:[#allocation42_spill] sm:$0xff]  ;;  %v7936_v53 = vpop.f32.mrf.mxu0  ;;  %v13524_v51 = vld [vmem:[#allocation64_spill] sm:$0xff] }
 0x55e   :  { %v6558_v26 = vadd.f32 %v6527_v39, %v6182_v18  ;;  %v6618_v63 = vmul.f32 %v12651_v20, %v13509_v1  ;;  %vm13512_vm7 = vcmp.eq.s32.totalorder %v13511_v17, 1  ;;  %vm13514_vm11 = vcmp.eq.s32.totalorder %v13513_v47, 1  ;;  %v13515_v18 = vld [vmem:[#allocation58_spill] sm:$0xff]  ;;  %v13520_v39 = vld [vmem:[#allocation16_spill] sm:$0xff] }
 0x55f   :  { %v6635_v45 = vadd.f32 %v6634_v28, %v6616_v33  ;;  %v6617_v44 = vmul.f32 %v12655_v58, %v13505_v9  ;;  %v7929_v3 = vpop.f32.mrf.mxu1  ;;  %v5106_v29 = vsel %vm13512_vm7, %v13510_v59, 0.0  ;;  %v6580_v14 = vsel %vm13514_vm11, %v6560_v62, 0.0  ;;  %v13518_v28 = vld [vmem:[#allocation40_spill] sm:$0xff] }
 0x560   :  { %v6578_v24 = vsel %vm13508_vm15, %v6558_v26, 0.0  ;;  %v6561_v55 = vadd.f32 %v7929_v3, %v6193_v54  ;;  %v5722_v37 = vadd.f32 %v5702_v2, %v5106_v29  ;;  %v6619_v8 = vmul.f32 %v12661_v4, %v13515_v18  ;;  %v13521_v54 = vld [vmem:[#allocation59_spill] sm:$0xff] }
 0x561   :  { %v6636_v56 = vadd.f32 %v6635_v45, %v6617_v44  ;;  %v12673_v35 = vadd.f32 %v6578_v24, %v5721_v49  ;;  %v6530_v23 = vpop.f32.mrf.mxu1  ;;  %vm13517_vm14 = vcmp.eq.s32.totalorder %v13516_v27, 1  ;;  %vm13519_vm8 = vcmp.eq.s32.totalorder %v13518_v28, 1  ;;  %v13522_v45 = vld [vmem:[#allocation21_spill] sm:$0xff] }
 0x562   :  { %v6559_v19 = vadd.f32 %v6530_v23, %v6185_v38  ;;  %v6581_v10 = vsel %vm13517_vm14, %v6561_v55, 0.0  ;;  %v12687_v49 = vadd.f32 %v6580_v14, %v13520_v39  ;;  %v13523_v44 = vld [vmem:[#allocation61_spill] sm:$0xff] }
 0x563   :  { %v6637_v13 = vadd.f32 %v6636_v56, %v6618_v63  ;;  %v6620_v26 = vmul.f32 %v12673_v35, %v13521_v54  ;;  %v12694_v50 = vadd.f32 %v6581_v10, %v13522_v45  ;;  %v13525_v24 = vld [vmem:[#allocation65_spill] sm:$0xff] }
 0x564   :  { %v6579_v33 = vsel %vm13519_vm8, %v6559_v19, 0.0  ;;  %v6622_v38 = vmul.f32 %v12687_v49, %v13524_v51 }
 0x565   :  { %v6638_v62 = vadd.f32 %v6637_v13, %v6619_v8  ;;  %v12691_v0 = vadd.f32 %v6579_v33, %v5722_v37  ;;  %v6623_v55 = vmul.f32 %v12694_v50, %v13525_v24  ;;  %v13526_v33 = vld [vmem:[#allocation55_spill] sm:$0xff] }
 0x567   :  { %v6639_v2 = vadd.f32 %v6638_v62, %v6620_v26  ;;  %v6621_v3 = vmul.f32 %v12691_v0, %v13523_v44 }
 0x569   :  { %v6640_v42 = vadd.f32 %v6639_v2, %v6621_v3  ;;  %v13527_v3 = vld [vmem:[#allocation49_spill] sm:$0xff] }
 0x56b   :  { %v6641_v63 = vadd.f32 %v6640_v42, %v6622_v38 }
 0x56d   :  { %v6642_v56 = vadd.f32 %v6641_v63, %v6623_v55  ;;  %v13528_v63 = vld [vmem:[#allocation56_spill] sm:$0xff] }
 0x56f   :  { %v6643_v23 = vrot.slane %v6642_v56, 4 }
 0x571   :  { %v6644_v59 = vadd.f32 %v6643_v23, %v6642_v56 }
 0x573   :  { %v6645_v17 = vrot.slane %v6644_v59, 2 }
 0x575   :  { %v6646_v29 = vadd.f32 %v6645_v17, %v6644_v59 }
 0x577   :  { %v6647_v47 = vrot.slane %v6646_v29, 1 }
 0x579   :  { %v6648_v14 = vadd.f32 %v6647_v47, %v6646_v29 }
 0x57b   :  { %v12702_v19 = vmul.f32 0.0078125, %v6648_v14 }
 0x57d   :  { %v6650_v53 = vsub.f32 %v12488_v61, %v12702_v19  ;;  %v6651_v37 = vsub.f32 %v12485_v32, %v12702_v19  ;;  %v6652_v8 = vsub.f32 %v12501_v40, %v12702_v19  ;;  %v6653_v10 = vsub.f32 %v12516_v7, %v12702_v19 }
 0x57e   :  { %v6654_v28 = vsub.f32 %v12535_v12, %v12702_v19  ;;  %v6655_v2 = vsub.f32 %v12540_v16, %v12702_v19  ;;  %v6657_v55 = vsub.f32 %v12576_v15, %v12702_v19  ;;  %v6658_v17 = vsub.f32 %v12582_v36, %v12702_v19 }
 0x57f   :  { %v6670_v13 = vmul.f32 %v6650_v53, %v13432_v5  ;;  %v6671_v27 = vmul.f32 %v6651_v37, %v13431_v60  ;;  %v6672_v39 = vmul.f32 %v6652_v8, %v13526_v33  ;;  %v6673_v45 = vmul.f32 %v6653_v10, %v13448_v57 }
 0x580   :  { %v6656_v5 = vsub.f32 %v12560_v6, %v12702_v19  ;;  %v6674_v60 = vmul.f32 %v6654_v28, %v13527_v3  ;;  %v6675_v56 = vmul.f32 %v6655_v2, %v13528_v63  ;;  %v6659_v14 = vsub.f32 %v12609_v21, %v12702_v19 }
 0x581   :  { %v6690_v26 = vmul.f32 %v6670_v13, %v6670_v13  ;;  %v6691_v62 = vmul.f32 %v6671_v27, %v6671_v27  ;;  %v6692_v38 = vmul.f32 %v6672_v39, %v6672_v39  ;;  %v6693_v23 = vmul.f32 %v6673_v45, %v6673_v45 }
 0x582   :  { %v6676_v29 = vmul.f32 %v6656_v5, %v13463_v11  ;;  %v6694_v57 = vmul.f32 %v6674_v60, %v6674_v60  ;;  %v6677_v53 = vmul.f32 %v6657_v55, %v13475_v48  ;;  %v6695_v37 = vmul.f32 %v6675_v56, %v6675_v56 }
 0x583   :  { %v6710_v42 = vadd.f32 %v6691_v62, %v6690_v26  ;;  %v6660_v13 = vsub.f32 %v12607_v41, %v12702_v19  ;;  %v6678_v27 = vmul.f32 %v6658_v17, %v13476_v31  ;;  %v6661_v36 = vsub.f32 %v12617_v52, %v12702_v19 }
 0x584   :  { %v6696_v10 = vmul.f32 %v6676_v29, %v6676_v29  ;;  %v6679_v11 = vmul.f32 %v6659_v14, %v13483_v30  ;;  %v6697_v33 = vmul.f32 %v6677_v53, %v6677_v53  ;;  %v6662_v21 = vsub.f32 %v12630_v46, %v12702_v19 }
 0x585   :  { %v6711_v59 = vadd.f32 %v6710_v42, %v6692_v38  ;;  %v6680_v48 = vmul.f32 %v6660_v13, %v13489_v22  ;;  %v6698_v26 = vmul.f32 %v6678_v27, %v6678_v27  ;;  %v6663_v2 = vsub.f32 %v12655_v58, %v12702_v19 }
 0x586   :  { %v6681_v31 = vmul.f32 %v6661_v36, %v13497_v25  ;;  %v6699_v45 = vmul.f32 %v6679_v11, %v6679_v11  ;;  %v6664_v3 = vsub.f32 %v12651_v20, %v12702_v19  ;;  %v6682_v30 = vmul.f32 %v6662_v21, %v13502_v34 }
 0x587   :  { %v6712_v47 = vadd.f32 %v6711_v59, %v6693_v23  ;;  %v6700_v60 = vmul.f32 %v6680_v48, %v6680_v48  ;;  %v6665_v42 = vsub.f32 %v12661_v4, %v12702_v19  ;;  %v6683_v22 = vmul.f32 %v6663_v2, %v13505_v9 }
 0x588   :  { %v6701_v55 = vmul.f32 %v6681_v31, %v6681_v31  ;;  %v6666_v56 = vsub.f32 %v12673_v35, %v12702_v19  ;;  %v6684_v25 = vmul.f32 %v6664_v3, %v13509_v1  ;;  %v6702_v23 = vmul.f32 %v6682_v30, %v6682_v30  ;;  %v13529_v30 = vld [vmem:[#allocation67_spill] sm:$0xff] }
 0x589   :  { %v6713_v8 = vadd.f32 %v6712_v47, %v6694_v57  ;;  %v6667_v17 = vsub.f32 %v12691_v0, %v12702_v19  ;;  %v6685_v34 = vmul.f32 %v6665_v42, %v13515_v18  ;;  %v6703_v29 = vmul.f32 %v6683_v22, %v6683_v22  ;;  %v6603_v42 = vld [vmem:[%s12865_s9] sm:$0x1] }
 0x58a   :  { %v6668_v47 = vsub.f32 %v12687_v49, %v12702_v19  ;;  %v6686_v9 = vmul.f32 %v6666_v56, %v13521_v54  ;;  %v6704_v14 = vmul.f32 %v6684_v25, %v6684_v25 }
 0x58b   :  { %v6714_v28 = vadd.f32 %v6713_v8, %v6695_v37  ;;  %v6669_v37 = vsub.f32 %v12694_v50, %v12702_v19  ;;  %v6687_v1 = vmul.f32 %v6667_v17, %v13523_v44  ;;  %v6705_v8 = vmul.f32 %v6685_v34, %v6685_v34 }
 0x58c   :  { %v6688_v27 = vmul.f32 %v6668_v47, %v13524_v51  ;;  %v7331_v51 = vld [vmem:[%s12863_s12] ss:$0 sm:$0xff] }
 0x58d   :  { %v6715_v39 = vadd.f32 %v6714_v28, %v6696_v10  ;;  %v6706_v10 = vmul.f32 %v6686_v9, %v6686_v9  ;;  %v6689_v28 = vmul.f32 %v6669_v37, %v13525_v24  ;;  %v6707_v36 = vmul.f32 %v6687_v1, %v6687_v1  ;;  %v6602_v24 = vld [vmem:[%s12864_s8] sm:$0x1] }
 0x58e   :  { %v6708_v49 = vmul.f32 %v6688_v27, %v6688_v27  ;;  %v6881_v3 = vadd.f32 %v7331_v51, %v12669_v43 }
 0x58f   :  { %v6716_v62 = vadd.f32 %v6715_v39, %v6697_v33  ;;  %v6709_v54 = vmul.f32 %v6689_v28, %v6689_v28 }
 0x591   :  { %v6717_v5 = vadd.f32 %v6716_v62, %v6698_v26 }
 0x593   :  { %v6718_v38 = vadd.f32 %v6717_v5, %v6699_v45 }
 0x595   :  { %v6719_v63 = vadd.f32 %v6718_v38, %v6700_v60  ;;  %v6906_v60 = vsub.s32 1, %v13529_v30 }
 0x597   :  { %v6720_v59 = vadd.f32 %v6719_v63, %v6701_v55  ;;  %v13530_v55 = vld [vmem:[#allocation68_spill] sm:$0xff]  ;;  %v12778_v25 = vrot.slane %v6881_v3, %v6906_v60 }
 0x598   :  { %v6887_v56 = vrot.slane %v6881_v3, %v13530_v55 }
 0x599   :  { %v6721_v57 = vadd.f32 %v6720_v59, %v6702_v23 }
 0x59b   :  { %v6722_v53 = vadd.f32 %v6721_v57, %v6703_v29 }
 0x59d   :  { %v6723_v13 = vadd.f32 %v6722_v53, %v6704_v14 }
 0x59f   :  { %v6724_v18 = vadd.f32 %v6723_v13, %v6705_v8 }
 0x5a1   :  { %v6725_v11 = vadd.f32 %v6724_v18, %v6706_v10 }
 0x5a3   :  { %v6726_v33 = vadd.f32 %v6725_v11, %v6707_v36 }
 0x5a5   :  { %v6727_v39 = vadd.f32 %v6726_v33, %v6708_v49 }
 0x5a7   :  { %v6728_v21 = vadd.f32 %v6727_v39, %v6709_v54 }
 0x5a9   :  { %v6729_v48 = vrot.slane %v6728_v21, 4 }
 0x5ab   :  { %v6730_v26 = vadd.f32 %v6729_v48, %v6728_v21 }
 0x5ad   :  { %v6731_v50 = vrot.slane %v6730_v26, 2 }
 0x5af   :  { %v6732_v62 = vadd.f32 %v6731_v50, %v6730_v26 }
 0x5b1   :  { %v6733_v44 = vrot.slane %v6732_v62, 1 }
 0x5b3   :  { %v6734_v2 = vadd.f32 %v6733_v44, %v6732_v62 }
 0x5b5   :  { %v6735_v31 = vmul.f32 0.0078125, %v6734_v2 }
 0x5b7   :  { %v6736_v45 = vadd.f32 1e-05, %v6735_v31 }
 0x5b9   :  { %8127 = vrsqrt.f32 %v6736_v45 }
 0x5c6   :  { %v8128_v5 = vpop.eup %8127 }
 0x5c7   :  { %v6738_v38 = vmul.f32 %v8128_v5, %v6602_v24 }
 0x5c9   :  { %v6739_v22 = vmul.f32 %v6738_v38, %v12702_v19  ;;  %v6745_v63 = vrot.slane %v6738_v38, %v13530_v55 }
 0x5cb   :  { %v6740_v23 = vsub.f32 %v6603_v42, %v6739_v22  ;;  %v6762_v59 = vmul.f32 %v6745_v63, %v12691_v0  ;;  %v6747_v43 = vmul.f32 %v6745_v63, %v12488_v61  ;;  %v6748_v17 = vmul.f32 %v6745_v63, %v12485_v32 }
 0x5cc   :  { %v6749_v34 = vmul.f32 %v6745_v63, %v12501_v40  ;;  %v6750_v29 = vmul.f32 %v6745_v63, %v12516_v7  ;;  %v6751_v57 = vmul.f32 %v6745_v63, %v12535_v12  ;;  %v6752_v19 = vmul.f32 %v6745_v63, %v12540_v16 }
 0x5cd   :  { %v6767_v47 = vrot.slane %v6740_v23, %v13530_v55  ;;  %v6753_v9 = vmul.f32 %v6745_v63, %v12560_v6  ;;  %v6754_v14 = vmul.f32 %v6745_v63, %v12576_v15  ;;  %v6755_v0 = vmul.f32 %v6745_v63, %v12607_v41 }
 0x5ce   :  { %v6756_v61 = vmul.f32 %v6745_v63, %v12617_v52  ;;  %v6757_v32 = vmul.f32 %v6745_v63, %v12630_v46  ;;  %v6758_v40 = vmul.f32 %v6745_v63, %v12655_v58  ;;  %v6759_v7 = vmul.f32 %v6745_v63, %v12651_v20 }
 0x5cf   :  { %v6784_v53 = vadd.f32 %v6767_v47, %v6762_v59  ;;  %v6760_v12 = vmul.f32 %v6745_v63, %v12661_v4  ;;  %v6761_v16 = vmul.f32 %v6745_v63, %v12673_v35  ;;  %v6769_v37 = vadd.f32 %v6767_v47, %v6747_v43 }
 0x5d0   :  { %v6770_v1 = vadd.f32 %v6767_v47, %v6748_v17  ;;  %v6771_v6 = vadd.f32 %v6767_v47, %v6749_v34  ;;  %v6772_v8 = vadd.f32 %v6767_v47, %v6750_v29  ;;  %v6773_v15 = vadd.f32 %v6767_v47, %v6751_v57 }
 0x5d1   :  { %v6800_v13 = vmax.f32 %v6784_v53, 0.0  ;;  %v6774_v41 = vadd.f32 %v6767_v47, %v6752_v19  ;;  %v6775_v27 = vadd.f32 %v6767_v47, %v6753_v9  ;;  %v6776_v52 = vadd.f32 %v6767_v47, %v6754_v14 }
 0x5d2   :  { %v6777_v10 = vadd.f32 %v6767_v47, %v6755_v0  ;;  %v6778_v46 = vadd.f32 %v6767_v47, %v6756_v61  ;;  %v6779_v18 = vadd.f32 %v6767_v47, %v6757_v32  ;;  %v6780_v58 = vadd.f32 %v6767_v47, %v6758_v40 }
 0x5d3   :  { %v6781_v28 = vadd.f32 %v6767_v47, %v6759_v7  ;;  %v6782_v20 = vadd.f32 %v6767_v47, %v6760_v12  ;;  %v6783_v36 = vadd.f32 %v6767_v47, %v6761_v16  ;;  %v6785_v11 = vmax.f32 %v6769_v37, 0.0 }
 0x5d4   :  { %v6786_v4 = vmax.f32 %v6770_v1, 0.0  ;;  %v6787_v49 = vmax.f32 %v6771_v6, 0.0  ;;  %v6788_v35 = vmax.f32 %v6772_v8, 0.0  ;;  %v6789_v33 = vmax.f32 %v6773_v15, 0.0 }
 0x5d5   :  { %v6790_v54 = vmax.f32 %v6774_v41, 0.0  ;;  %v6791_v39 = vmax.f32 %v6775_v27, 0.0  ;;  %v6792_v21 = vmax.f32 %v6776_v52, 0.0  ;;  %v6793_v48 = vmax.f32 %v6777_v10, 0.0 }
 0x5d6   :  { %v6794_v26 = vmax.f32 %v6778_v46, 0.0  ;;  %v6795_v50 = vmax.f32 %v6779_v18, 0.0  ;;  %v6796_v62 = vmax.f32 %v6780_v58, 0.0  ;;  %v6797_v44 = vmax.f32 %v6781_v28, 0.0 }
 0x5d7   :  { %v6798_v2 = vmax.f32 %v6782_v20, 0.0  ;;  %v6799_v31 = vmax.f32 %v6783_v36, 0.0  ;;  %v6888_v45 = vadd.f32 %v6887_v56, %v6785_v11  ;;  %v6889_v51 = vadd.f32 %v6887_v56, %v6786_v4 }
 0x5d8   :  { %v6890_v24 = vadd.f32 %v6887_v56, %v6787_v49  ;;  %v6891_v5 = vadd.f32 %v6887_v56, %v6788_v35  ;;  %v6892_v3 = vadd.f32 %v6887_v56, %v6789_v33  ;;  %v6893_v30 = vadd.f32 %v6887_v56, %v6790_v54 }
 0x5d9   :  { %v6894_v60 = vadd.f32 %v6887_v56, %v6791_v39  ;;  %v6895_v38 = vadd.f32 %v6887_v56, %v6792_v21  ;;  %6896 = vst [vmem:[%s12866_s13] sm:$0xff] %v6888_v45  ;;  %6897 = vst [vmem:[%s12866_s13 + $0x8] sm:$0xff] %v6889_v51  ;;  %v6908_v42 = vadd.f32 %v12778_v25, %v6793_v48 }
 0x5da   :  { %v6909_v22 = vadd.f32 %v12778_v25, %v6794_v26  ;;  %6898 = vst [vmem:[%s12866_s13 + $0x10] sm:$0xff] %v6890_v24  ;;  %6899 = vst [vmem:[%s12866_s13 + $0x18] sm:$0xff] %v6891_v5  ;;  %v6910_v55 = vadd.f32 %v12778_v25, %v6795_v50  ;;  %v6911_v63 = vadd.f32 %v12778_v25, %v6796_v62 }
 0x5db   :  { %6900 = vst [vmem:[%s12866_s13 + $0x20] sm:$0xff] %v6892_v3  ;;  %6901 = vst [vmem:[%s12866_s13 + $0x28] sm:$0xff] %v6893_v30  ;;  %v6912_v56 = vadd.f32 %v12778_v25, %v6797_v44  ;;  %v6913_v23 = vadd.f32 %v12778_v25, %v6798_v2  ;;  %v6914_v59 = vadd.f32 %v12778_v25, %v6799_v31 }
 0x5dc   :  { %6902 = vst [vmem:[%s12866_s13 + $0x30] sm:$0xff] %v6894_v60  ;;  %6903 = vst [vmem:[%s12866_s13 + $0x38] sm:$0xff] %v6895_v38  ;;  %v6915_v43 = vadd.f32 %v12778_v25, %v6800_v13 }
 0x5dd   :  { %7333 = vst [vmem:[%s12866_s13 + $0x40] sm:$0xff] %v6908_v42  ;;  %7334 = vst [vmem:[%s12866_s13 + $0x48] sm:$0xff] %v6909_v22 }
 0x5de   :  { %7335 = vst [vmem:[%s12866_s13 + $0x50] sm:$0xff] %v6910_v55  ;;  %7336 = vst [vmem:[%s12866_s13 + $0x58] sm:$0xff] %v6911_v63 }
 0x5df   :  { %7337 = vst [vmem:[%s12866_s13 + $0x60] sm:$0xff] %v6912_v56  ;;  %7338 = vst [vmem:[%s12866_s13 + $0x68] sm:$0xff] %v6913_v23 }
 0x5e0   :  { %7339 = vst [vmem:[%s12866_s13 + $0x70] sm:$0xff] %v6914_v59  ;;  %7340 = vst [vmem:[%s12866_s13 + $0x78] sm:$0xff] %v6915_v43 }

</bundles_post_ra>
